<compile_context>
chip_gen: v6e
topology: v6e:2x2x1
jax: 0.10.0
libtpu: 0.0.40
codegen_flags: <defaults>
</compile_context>

<pallas_src>
import math
import functools

import jax
import jax.numpy as jnp
from jax.experimental import pallas as pl
from jax.experimental.pallas import tpu as pltpu

LN_EPS = 1e-12  # BERT LayerNorm eps


# ----------------------------- in-kernel helpers -----------------------------

def _gelu(x):
    # tanh-approx GELU (EUP slot).  Differs from exact erf-GELU by <~1e-3.
    c = math.sqrt(2.0 / math.pi)
    return 0.5 * x * (1.0 + jnp.tanh(c * (x + 0.044715 * (x * x * x))))


def _layer_norm(x, gamma, beta):
    mean = jnp.mean(x, axis=-1, keepdims=True)
    var = jnp.mean(jnp.square(x - mean), axis=-1, keepdims=True)
    return (x - mean) * jax.lax.rsqrt(var + LN_EPS) * gamma + beta


def _mha(q, k, v, mask, num_heads, head_dim):
    """Multi-head attention for one batch item.

    q: (Lq, H) f32 with the 1/sqrt(d) scale already folded into the projection.
    k/v: (Lk, H) f32.  mask: additive (Lq, Lk) f32.
    Per-head contexts stay in registers and are concatenated once (no masked
    per-head VMEM stores).  Returns (Lq, H) bf16 (MXU operand for the output
    projection).
    """
    qb = q.astype(jnp.bfloat16)
    kb = k.astype(jnp.bfloat16)
    vb = v.astype(jnp.bfloat16)
    heads = []
    for h in range(num_heads):                     # static unroll, static slices
        lo = h * head_dim
        qh = qb[:, lo:lo + head_dim]
        kh = kb[:, lo:lo + head_dim]
        vh = vb[:, lo:lo + head_dim]
        s = jax.lax.dot_general(qh, kh, (((1,), (1,)), ((), ())),
                                preferred_element_type=jnp.float32)
        s = s + mask
        m = jnp.max(s, axis=-1, keepdims=True)
        e = jnp.exp(s - m)
        # divide -> EUP approximate reciprocal (VPU slot stays free)
        p = e * pl.reciprocal(jnp.sum(e, axis=-1, keepdims=True), approx=True)
        heads.append(jnp.dot(p.astype(jnp.bfloat16), vh,
                             preferred_element_type=jnp.float32
                             ).astype(jnp.bfloat16))
    return heads[0] if num_heads == 1 else jnp.concatenate(heads, axis=-1)


# --------------------------------- the kernel --------------------------------

def _graph_lxrtx_kernel(num_heads, head_dim, has_sprels, *args):
    args = list(args)
    visn_ref, lang_ref, lmask_ref, vmask_ref = args[:4]
    idx = 4
    sprels_ref = None
    if has_sprels:
        sprels_ref = args[idx]
        idx += 1
    (xwq_ref, xbq_ref, xwkv_ref, xbkv_ref, xwo_ref, xbo_ref, xlg_ref, xlb_ref,
     swqkv_ref, sbqkv_ref, swo_ref, sbo_ref, slg_ref, slb_ref,
     wi_ref, bi_ref, wo2_ref, bo2_ref, olg_ref, olb_ref,
     out_ref, satt_ref, satt_bf_ref, acc_ref) = args[idx:]

    H = num_heads * head_dim
    Bt = lmask_ref.shape[0]
    Ll = lmask_ref.shape[2]
    Lv = vmask_ref.shape[2]

    chunk = pl.program_id(1)
    last_chunk = pl.num_programs(1) - 1

    # ------- chunk == 0: cross-attention + self-attention + FFN-accum init ----
    @pl.when(chunk == 0)
    def _attention_phase():
        visn = visn_ref[...]                       # (Bt*Lv, H) f32 (residual)
        lang = lang_ref[...]                       # (Bt*Ll, C) bf16
        visn_bf = visn.astype(jnp.bfloat16)

        xbq, xbkv, xbo = xbq_ref[...], xbkv_ref[...], xbo_ref[...]
        xlg, xlb = xlg_ref[...], xlb_ref[...]
        sbqkv, sbo = sbqkv_ref[...], sbo_ref[...]
        slg, slb = slg_ref[...], slb_ref[...]

        # --- visual_attention: cross-modal (visn queries, lang context) ---
        # 1/sqrt(head_dim) already folded into xwq/xbq in the wrapper.
        q = jnp.dot(visn_bf, xwq_ref[...],
                    preferred_element_type=jnp.float32) + xbq        # (Bt*Lv, H)
        kv = jnp.dot(lang, xwkv_ref[...],
                     preferred_element_type=jnp.float32) + xbkv      # (Bt*Ll, 2H)
        k, v = kv[:, :H], kv[:, H:]

        ctx_rows = []
        for t in range(Bt):                        # per-item attention (masks differ)
            r0, l0 = t * Lv, t * Ll
            lmask = jnp.broadcast_to(lmask_ref[t].astype(jnp.float32), (Lv, Ll))
            ctx_rows.append(_mha(q[r0:r0 + Lv], k[l0:l0 + Ll], v[l0:l0 + Ll],
                                 lmask, num_heads, head_dim))
        ctx = ctx_rows[0] if Bt == 1 else jnp.concatenate(ctx_rows, axis=0)
        x_proj = jnp.dot(ctx, xwo_ref[...],
                         preferred_element_type=jnp.float32) + xbo
        visn_att = _layer_norm(x_proj + visn, xlg, xlb)               # (Bt*Lv, H)

        # --- visn_self_att: self-attention (mask + graph_sprels, in-kernel) ---
        qkv = jnp.dot(visn_att.astype(jnp.bfloat16), swqkv_ref[...],
                      preferred_element_type=jnp.float32) + sbqkv     # (Bt*Lv, 3H)
        q2, k2, v2 = qkv[:, :H], qkv[:, H:2 * H], qkv[:, 2 * H:]
        ctx2_rows = []
        for t in range(Bt):
            r0 = t * Lv
            vm = jnp.broadcast_to(vmask_ref[t].astype(jnp.float32), (Lv, Lv))
            if sprels_ref is not None:             # matches the PyTorch forward
                vm = vm + sprels_ref[t].astype(jnp.float32)
            ctx2_rows.append(_mha(q2[r0:r0 + Lv], k2[r0:r0 + Lv], v2[r0:r0 + Lv],
                                  vm, num_heads, head_dim))
        ctx2 = ctx2_rows[0] if Bt == 1 else jnp.concatenate(ctx2_rows, axis=0)
        s_proj = jnp.dot(ctx2, swo_ref[...],
                         preferred_element_type=jnp.float32) + sbo
        self_att = _layer_norm(s_proj + visn_att, slg, slb)

        satt_ref[...] = self_att                          # f32 residual
        satt_bf_ref[...] = self_att.astype(jnp.bfloat16)  # MXU operand for FFN
        acc_ref[...] = jnp.zeros_like(acc_ref)

    # ------- every chunk: streamed FFN (GELU per chunk, f32 accumulation) -----
    inter = _gelu(jnp.dot(satt_bf_ref[...], wi_ref[...],
                          preferred_element_type=jnp.float32) + bi_ref[...])
    acc_ref[...] += jnp.dot(inter.astype(jnp.bfloat16), wo2_ref[...],
                            preferred_element_type=jnp.float32)

    # ------- last chunk: visn_output (bias + residual + LayerNorm) ------------
    @pl.when(chunk == last_chunk)
    def _finalize():
        ffn = acc_ref[...] + bo2_ref[...]
        out = _layer_norm(ffn + satt_ref[...], olg_ref[...], olb_ref[...])
        out_ref[...] = out.astype(out_ref.dtype)


# --------------------------------- wrapper ------------------------------------

def _pick_batch_tile(B, Lv, Ll):
    """Pick items-per-grid-step: keep blocks (Bt*L, .) sublane-friendly and
    prefer an even batch-grid extent so v7x's two TensorCores split evenly."""
    def valid(bt):
        return (B % bt == 0
                and ((bt * Lv) % 8 == 0 or bt == B)
                and ((bt * Ll) % 8 == 0 or bt == B))
    cands = [c for c in (4, 2, 1) if valid(c)]
    for c in cands:
        if (B // c) % 2 == 0:
            return c
    return cands[0] if cands else B


def graph_lxrtx_layer(params, lang_feats, lang_attention_mask,
                      visn_feats, visn_attention_mask, graph_sprels=None,
                      *, num_heads, batch_tile=None, ffn_chunk=512):
    B, Lv, H = visn_feats.shape
    _, Ll, C = lang_feats.shape
    assert H % num_heads == 0
    head_dim = H // num_heads
    scale = 1.0 / math.sqrt(head_dim)
    f32, bf16 = jnp.float32, jnp.bfloat16

    (xwq, xbq, xwk, xbk, xwv, xbv, xwo, xbo, xlg, xlb,
     swq, sbq, swk, sbk, swv, sbv, swo, sbo, slg, slb,
     wi, bi, wo2, bo2, olg, olb) = params
    inter_dim = wi.shape[1]

    # ---- wrapper-side packing (layout + constant folding only, no math) -----
    # Fold 1/sqrt(d) into the query projections; fuse KV / QKV weights.
    xwq_s = (xwq * scale).astype(bf16)
    xbq_s = (xbq * scale).astype(f32)
    xwkv = jnp.concatenate([xwk, xwv], axis=1).astype(bf16)           # (C, 2H)
    xbkv = jnp.concatenate([xbk, xbv], axis=1).astype(f32)            # (1, 2H)
    swqkv = jnp.concatenate([swq * scale, swk, swv], axis=1).astype(bf16)  # (H, 3H)
    sbqkv = jnp.concatenate([sbq * scale, sbk, sbv], axis=1).astype(f32)   # (1, 3H)

    res_weights_a = (xwq_s, xbq_s, xwkv, xbkv,
                     xwo.astype(bf16), xbo.astype(f32),
                     xlg.astype(f32), xlb.astype(f32),
                     swqkv, sbqkv, swo.astype(bf16), sbo.astype(f32),
                     slg.astype(f32), slb.astype(f32))
    ffn_chunked = (wi.astype(bf16), bi.astype(f32), wo2.astype(bf16))
    res_weights_b = (bo2.astype(f32), olg.astype(f32), olb.astype(f32))

    # Masks stay un-broadcast: bf16 (B,1,L) rows; graph_sprels separate bf16.
    lmask_row = lang_attention_mask.astype(bf16).reshape(B, 1, Ll)
    vmask_row = visn_attention_mask.astype(bf16).reshape(B, 1, Lv)
    has_sprels = graph_sprels is not None

    # Flatten batch*seq so projections/FFN see lane/sublane-natural 2-D slabs.
    visn2 = visn_feats.astype(f32).reshape(B * Lv, H)   # residual path stays f32
    lang2 = lang_feats.astype(bf16).reshape(B * Ll, C)  # matmul-only operand

    batch_inputs = [visn2, lang2, lmask_row, vmask_row]
    batch_specs = [
        pl.BlockSpec((None, H), None),  # placeholder, replaced below
    ]
    if has_sprels:
        sprels2 = graph_sprels.astype(bf16).reshape(B, Lv, Lv)
        batch_inputs.append(sprels2)

    bt = batch_tile if batch_tile is not None else _pick_batch_tile(B, Lv, Ll)
    assert B % bt == 0

    # FFN streaming chunk (inner "arbitrary" grid axis over inter_dim).
    tk = inter_dim
    if inter_dim > ffn_chunk and inter_dim % ffn_chunk == 0 and ffn_chunk % 128 == 0:
        tk = ffn_chunk
    n_chunks = inter_dim // tk

    batch_specs = [
        pl.BlockSpec((bt * Lv, H), lambda b, c: (b, 0)),     # visn (flattened)
        pl.BlockSpec((bt * Ll, C), lambda b, c: (b, 0)),     # lang (flattened)
        pl.BlockSpec((bt, 1, Ll), lambda b, c: (b, 0, 0)),   # lang mask rows
        pl.BlockSpec((bt, 1, Lv), lambda b, c: (b, 0, 0)),   # visn mask rows
    ]
    if has_sprels:
        batch_specs.append(pl.BlockSpec((bt, Lv, Lv), lambda b, c: (b, 0, 0)))

    inputs = tuple(batch_inputs) + res_weights_a + ffn_chunked + res_weights_b

    def _nb(shape, dt):
        return math.prod(int(d) for d in shape) * jnp.dtype(dt).itemsize

    def _vmem_limit(wmult):
        # Per-grid-step blocks: resident weights x wmult, streamed FFN blocks
        # x2 (x wmult if single-chunk), activations/output x2, scratch x1.
        res = sum(int(a.size) * a.dtype.itemsize
                  for a in res_weights_a + res_weights_b) * wmult
        ffn = (_nb((H, tk), bf16) + _nb((1, tk), f32) + _nb((tk, H), bf16)) \
            * (2 if n_chunks > 1 else wmult)
        act = (_nb((bt * Lv, H), f32) + _nb((bt * Ll, C), bf16)
               + _nb((bt, 1, Ll), bf16) + _nb((bt, 1, Lv), bf16)
               + (_nb((bt, Lv, Lv), bf16) if has_sprels else 0)) * 2
        outb = _nb((bt * Lv, H), f32) * 2
        scr = 2 * _nb((bt * Lv, H), f32) + _nb((bt * Lv, H), bf16)
        need = res + ffn + act + outb + scr + (4 << 20)
        try:
            phys = pltpu.get_tpu_info().vmem_capacity_bytes
        except Exception:
            phys = 64 << 20                     # assume the tightest (v7x) VMEM
        return int(min(max(need, 32 << 20), phys - (8 << 20)))

    def _build(weight_mode, wmult):
        def wspec(arr):
            dims = tuple(int(d) for d in arr.shape)
            imap = (lambda b, c, _z=(0,) * len(dims): _z)
            if weight_mode is None:
                return pl.BlockSpec(dims, imap)
            return pl.BlockSpec(dims, imap, pipeline_mode=weight_mode)

        ffn_mode = weight_mode if n_chunks == 1 else None

        def cspec(shape, imap):
            if ffn_mode is None:
                return pl.BlockSpec(shape, imap)
            return pl.BlockSpec(shape, imap, pipeline_mode=ffn_mode)

        in_specs = (batch_specs
                    + [wspec(a) for a in res_weights_a]
                    + [cspec((H, tk), lambda b, c: (0, c)),       # wi chunk
                       cspec((1, tk), lambda b, c: (0, c)),       # bi chunk
                       cspec((tk, H), lambda b, c: (c, 0))]       # wo2 chunk
                    + [wspec(a) for a in res_weights_b])

        return pl.pallas_call(
            functools.partial(_graph_lxrtx_kernel, num_heads, head_dim, has_sprels),
            grid=(B // bt, n_chunks),
            in_specs=in_specs,
            out_specs=pl.BlockSpec((bt * Lv, H), lambda b, c: (b, 0)),
            out_shape=jax.ShapeDtypeStruct((B * Lv, H), f32),
            scratch_shapes=[pltpu.VMEM((bt * Lv, H), jnp.float32),   # self_att (residual)
                            pltpu.VMEM((bt * Lv, H), jnp.bfloat16),  # self_att (MXU operand)
                            pltpu.VMEM((bt * Lv, H), jnp.float32)],  # FFN accumulator
            compiler_params=pltpu.CompilerParams(
                dimension_semantics=("parallel", "arbitrary"),
                vmem_limit_bytes=_vmem_limit(wmult)),
        )

    try:
        out_flat = _build(pl.Buffered(1), 1)(*inputs)
    except Exception:
        # TODO(synk): this JAX version rejected single-buffered weight specs;
        # fall back to default double-buffered weights (same semantics).
        out_flat = _build(None, 2)(*inputs)
    return out_flat.reshape(B, Lv, H)


# ------------------------------ parameter init --------------------------------

def init_params(key, hidden, ctx_dim, inter_dim):
    keys = iter(jax.random.split(key, 32))

    def w(shape):
        return (0.02 * jax.random.normal(next(keys), shape)).astype(jnp.float32)

    def b(n):
        return (0.02 * jax.random.normal(next(keys), (1, n))).astype(jnp.float32)

    ones = lambda n: jnp.ones((1, n), jnp.float32)
    zeros = lambda n: jnp.zeros((1, n), jnp.float32)

    return (
        # BertXAttention: q from hidden, k/v from ctx_dim (llm_ctx_size)
        w((hidden, hidden)), b(hidden),     # x query
        w((ctx_dim, hidden)), b(hidden),    # x key
        w((ctx_dim, hidden)), b(hidden),    # x value
        w((hidden, hidden)), b(hidden),     # x output dense
        ones(hidden), zeros(hidden),        # x output LayerNorm
        # visn_self_att (BertAttention)
        w((hidden, hidden)), b(hidden),     # s query
        w((hidden, hidden)), b(hidden),     # s key
        w((hidden, hidden)), b(hidden),     # s value
        w((hidden, hidden)), b(hidden),     # s output dense
        ones(hidden), zeros(hidden),        # s output LayerNorm
        # visn_inter + visn_output
        w((hidden, inter_dim)), b(inter_dim),   # intermediate dense
        w((inter_dim, hidden)), b(hidden),      # output dense
        ones(hidden), zeros(hidden),            # output LayerNorm
    )


# ----------------------------------- main --------------------------------------

if __name__ == "__main__":
    B, Lv, Ll = 4, 8, 8
    HIDDEN, CTX, INTER, HEADS = 64, 96, 128, 4

    key = jax.random.PRNGKey(0)
    k_visn, k_lang, k_sprel, k_param = jax.random.split(key, 4)

    visn_feats = jax.random.normal(k_visn, (B, Lv, HIDDEN), jnp.float32)
    lang_feats = jax.random.normal(k_lang, (B, Ll, CTX), jnp.float32)

    # BERT-style additive masks [B,1,1,L]: 0 = attend, -10000 = masked.
    lang_valid = jnp.ones((B, Ll), jnp.float32).at[2:, Ll - 2:].set(0.0)
    lang_attention_mask = (1.0 - lang_valid)[:, None, None, :] * -10000.0
    visn_attention_mask = jnp.zeros((B, 1, 1, Lv), jnp.float32)
    graph_sprels = 0.1 * jax.random.normal(k_sprel, (B, 1, Lv, Lv), jnp.float32)

    params = init_params(k_param, HIDDEN, CTX, INTER)

    out = graph_lxrtx_layer(params, lang_feats, lang_attention_mask,
                            visn_feats, visn_attention_mask, graph_sprels,
                            num_heads=HEADS)
    jax.block_until_ready(out)
    assert out.shape == (B, Lv, HIDDEN) and bool(jnp.all(jnp.isfinite(out)))
    print("KERNEL_OK")
</pallas_src>

<mosaic_0001>
module attributes {stable_mosaic.version = 11 : i64} {
  func.func @_graph_lxrtx_kernel(%arg0: i32, %arg1: i32, %arg2: memref<16x64xf32, #tpu.memory_space<vmem>>, %arg3: memref<16x96xbf16, #tpu.memory_space<vmem>>, %arg4: memref<2x1x8xbf16, #tpu.memory_space<vmem>>, %arg5: memref<2x1x8xbf16, #tpu.memory_space<vmem>>, %arg6: memref<2x8x8xbf16, #tpu.memory_space<vmem>>, %arg7: memref<64x64xbf16, #tpu.memory_space<vmem>>, %arg8: memref<1x64xf32, #tpu.memory_space<vmem>>, %arg9: memref<96x128xbf16, #tpu.memory_space<vmem>>, %arg10: memref<1x128xf32, #tpu.memory_space<vmem>>, %arg11: memref<64x64xbf16, #tpu.memory_space<vmem>>, %arg12: memref<1x64xf32, #tpu.memory_space<vmem>>, %arg13: memref<1x64xf32, #tpu.memory_space<vmem>>, %arg14: memref<1x64xf32, #tpu.memory_space<vmem>>, %arg15: memref<64x192xbf16, #tpu.memory_space<vmem>>, %arg16: memref<1x192xf32, #tpu.memory_space<vmem>>, %arg17: memref<64x64xbf16, #tpu.memory_space<vmem>>, %arg18: memref<1x64xf32, #tpu.memory_space<vmem>>, %arg19: memref<1x64xf32, #tpu.memory_space<vmem>>, %arg20: memref<1x64xf32, #tpu.memory_space<vmem>>, %arg21: memref<64x128xbf16, #tpu.memory_space<vmem>>, %arg22: memref<1x128xf32, #tpu.memory_space<vmem>>, %arg23: memref<128x64xbf16, #tpu.memory_space<vmem>>, %arg24: memref<1x64xf32, #tpu.memory_space<vmem>>, %arg25: memref<1x64xf32, #tpu.memory_space<vmem>>, %arg26: memref<1x64xf32, #tpu.memory_space<vmem>>, %arg27: memref<16x64xf32, #tpu.memory_space<vmem>>, %arg28: memref<16x64xf32, #tpu.memory_space<vmem>>, %arg29: memref<16x64xbf16, #tpu.memory_space<vmem>>, %arg30: memref<16x64xf32, #tpu.memory_space<vmem>>) attributes {dimension_semantics = [#tpu.dimension_semantics<parallel>, #tpu.dimension_semantics<arbitrary>], iteration_bounds = array<i64: 2, 1>, scalar_prefetch = 0 : i64, scratch_operands = 3 : i64, tpu.core_type = #tpu.core_type<tc>, window_params = [{transform_indices = @transform_0, window_bounds = array<i64: 16, 64>}, {transform_indices = @transform_1, window_bounds = array<i64: 16, 96>}, {transform_indices = @transform_2, window_bounds = array<i64: 2, 1, 8>}, {transform_indices = @transform_3, window_bounds = array<i64: 2, 1, 8>}, {transform_indices = @transform_4, window_bounds = array<i64: 2, 8, 8>}, {pipeline_mode = #tpu.pipeline_mode<synchronous>, transform_indices = @transform_5, window_bounds = array<i64: 64, 64>}, {pipeline_mode = #tpu.pipeline_mode<synchronous>, transform_indices = @transform_6, window_bounds = array<i64: 1, 64>}, {pipeline_mode = #tpu.pipeline_mode<synchronous>, transform_indices = @transform_7, window_bounds = array<i64: 96, 128>}, {pipeline_mode = #tpu.pipeline_mode<synchronous>, transform_indices = @transform_8, window_bounds = array<i64: 1, 128>}, {pipeline_mode = #tpu.pipeline_mode<synchronous>, transform_indices = @transform_9, window_bounds = array<i64: 64, 64>}, {pipeline_mode = #tpu.pipeline_mode<synchronous>, transform_indices = @transform_10, window_bounds = array<i64: 1, 64>}, {pipeline_mode = #tpu.pipeline_mode<synchronous>, transform_indices = @transform_11, window_bounds = array<i64: 1, 64>}, {pipeline_mode = #tpu.pipeline_mode<synchronous>, transform_indices = @transform_12, window_bounds = array<i64: 1, 64>}, {pipeline_mode = #tpu.pipeline_mode<synchronous>, transform_indices = @transform_13, window_bounds = array<i64: 64, 192>}, {pipeline_mode = #tpu.pipeline_mode<synchronous>, transform_indices = @transform_14, window_bounds = array<i64: 1, 192>}, {pipeline_mode = #tpu.pipeline_mode<synchronous>, transform_indices = @transform_15, window_bounds = array<i64: 64, 64>}, {pipeline_mode = #tpu.pipeline_mode<synchronous>, transform_indices = @transform_16, window_bounds = array<i64: 1, 64>}, {pipeline_mode = #tpu.pipeline_mode<synchronous>, transform_indices = @transform_17, window_bounds = array<i64: 1, 64>}, {pipeline_mode = #tpu.pipeline_mode<synchronous>, transform_indices = @transform_18, window_bounds = array<i64: 1, 64>}, {pipeline_mode = #tpu.pipeline_mode<synchronous>, transform_indices = @transform_19, window_bounds = array<i64: 64, 128>}, {pipeline_mode = #tpu.pipeline_mode<synchronous>, transform_indices = @transform_20, window_bounds = array<i64: 1, 128>}, {pipeline_mode = #tpu.pipeline_mode<synchronous>, transform_indices = @transform_21, window_bounds = array<i64: 128, 64>}, {pipeline_mode = #tpu.pipeline_mode<synchronous>, transform_indices = @transform_22, window_bounds = array<i64: 1, 64>}, {pipeline_mode = #tpu.pipeline_mode<synchronous>, transform_indices = @transform_23, window_bounds = array<i64: 1, 64>}, {pipeline_mode = #tpu.pipeline_mode<synchronous>, transform_indices = @transform_24, window_bounds = array<i64: 1, 64>}, {transform_indices = @transform_25, window_bounds = array<i64: 16, 64>}]} {
    %c0_i32 = arith.constant 0 : i32
    %0 = arith.cmpi eq, %arg1, %c0_i32 : i32
    %1 = arith.extui %0 : i1 to i32
    %c0_i32_0 = arith.constant 0 : i32
    %2 = arith.cmpi ne, %1, %c0_i32_0 : i32
    scf.if %2 {
      %c0_19 = arith.constant 0 : index
      %c0_20 = arith.constant 0 : index
      %31 = vector.load %arg2[%c0_19, %c0_20] : memref<16x64xf32, #tpu.memory_space<vmem>>, vector<16x64xf32>
      %c0_21 = arith.constant 0 : index
      %c0_22 = arith.constant 0 : index
      %32 = vector.load %arg3[%c0_21, %c0_22] : memref<16x96xbf16, #tpu.memory_space<vmem>>, vector<16x96xbf16>
      %33 = arith.truncf %31 : vector<16x64xf32> to vector<16x64xbf16>
      %c0_23 = arith.constant 0 : index
      %c0_24 = arith.constant 0 : index
      %34 = vector.load %arg8[%c0_23, %c0_24] : memref<1x64xf32, #tpu.memory_space<vmem>>, vector<1x64xf32>
      %c0_25 = arith.constant 0 : index
      %c0_26 = arith.constant 0 : index
      %35 = vector.load %arg10[%c0_25, %c0_26] : memref<1x128xf32, #tpu.memory_space<vmem>>, vector<1x128xf32>
      %c0_27 = arith.constant 0 : index
      %c0_28 = arith.constant 0 : index
      %36 = vector.load %arg12[%c0_27, %c0_28] : memref<1x64xf32, #tpu.memory_space<vmem>>, vector<1x64xf32>
      %c0_29 = arith.constant 0 : index
      %c0_30 = arith.constant 0 : index
      %37 = vector.load %arg13[%c0_29, %c0_30] : memref<1x64xf32, #tpu.memory_space<vmem>>, vector<1x64xf32>
      %c0_31 = arith.constant 0 : index
      %c0_32 = arith.constant 0 : index
      %38 = vector.load %arg14[%c0_31, %c0_32] : memref<1x64xf32, #tpu.memory_space<vmem>>, vector<1x64xf32>
      %c0_33 = arith.constant 0 : index
      %c0_34 = arith.constant 0 : index
      %39 = vector.load %arg16[%c0_33, %c0_34] : memref<1x192xf32, #tpu.memory_space<vmem>>, vector<1x192xf32>
      %c0_35 = arith.constant 0 : index
      %c0_36 = arith.constant 0 : index
      %40 = vector.load %arg18[%c0_35, %c0_36] : memref<1x64xf32, #tpu.memory_space<vmem>>, vector<1x64xf32>
      %c0_37 = arith.constant 0 : index
      %c0_38 = arith.constant 0 : index
      %41 = vector.load %arg19[%c0_37, %c0_38] : memref<1x64xf32, #tpu.memory_space<vmem>>, vector<1x64xf32>
      %c0_39 = arith.constant 0 : index
      %c0_40 = arith.constant 0 : index
      %42 = vector.load %arg20[%c0_39, %c0_40] : memref<1x64xf32, #tpu.memory_space<vmem>>, vector<1x64xf32>
      %c0_41 = arith.constant 0 : index
      %c0_42 = arith.constant 0 : index
      %43 = vector.load %arg7[%c0_41, %c0_42] : memref<64x64xbf16, #tpu.memory_space<vmem>>, vector<64x64xbf16>
      %cst_43 = arith.constant dense<0.000000e+00> : vector<16x64xf32>
      %44 = tpu.matmul %33, %43, %cst_43 {dimension_numbers = #tpu.dot_dimension_numbers<[1], [0], [0], [1], [0, 0, 1, 1], [], []>} : vector<16x64xbf16>, vector<64x64xbf16>, vector<16x64xf32> -> vector<16x64xf32>
      %45 = vector.broadcast %34 : vector<1x64xf32> to vector<16x64xf32>
      %46 = arith.addf %44, %45 : vector<16x64xf32>
      %c0_44 = arith.constant 0 : index
      %c0_45 = arith.constant 0 : index
      %47 = vector.load %arg9[%c0_44, %c0_45] : memref<96x128xbf16, #tpu.memory_space<vmem>>, vector<96x128xbf16>
      %cst_46 = arith.constant dense<0.000000e+00> : vector<16x128xf32>
      %48 = tpu.matmul %32, %47, %cst_46 {dimension_numbers = #tpu.dot_dimension_numbers<[1], [0], [0], [1], [0, 0, 1, 1], [], []>} : vector<16x96xbf16>, vector<96x128xbf16>, vector<16x128xf32> -> vector<16x128xf32>
      %49 = vector.broadcast %35 : vector<1x128xf32> to vector<16x128xf32>
      %50 = arith.addf %48, %49 : vector<16x128xf32>
      %51 = vector.extract_strided_slice %50 {offsets = [0, 0], sizes = [16, 64], strides = [1, 1]} : vector<16x128xf32> to vector<16x64xf32>
      %52 = vector.extract_strided_slice %50 {offsets = [0, 64], sizes = [16, 64], strides = [1, 1]} : vector<16x128xf32> to vector<16x64xf32>
      %c0_47 = arith.constant 0 : index
      %c0_48 = arith.constant 0 : index
      %c0_49 = arith.constant 0 : index
      %53 = vector.load %arg4[%c0_47, %c0_48, %c0_49] : memref<2x1x8xbf16, #tpu.memory_space<vmem>>, vector<1x1x8xbf16>
      %54 = vector.shape_cast %53 : vector<1x1x8xbf16> to vector<1x8xbf16>
      %55 = arith.extf %54 : vector<1x8xbf16> to vector<1x8xf32>
      %56 = vector.shape_cast %55 : vector<1x8xf32> to vector<1x8xf32>
      %57 = vector.broadcast %56 : vector<1x8xf32> to vector<8x8xf32>
      %58 = vector.extract_strided_slice %46 {offsets = [0, 0], sizes = [8, 64], strides = [1, 1]} : vector<16x64xf32> to vector<8x64xf32>
      %59 = vector.extract_strided_slice %51 {offsets = [0, 0], sizes = [8, 64], strides = [1, 1]} : vector<16x64xf32> to vector<8x64xf32>
      %60 = vector.extract_strided_slice %52 {offsets = [0, 0], sizes = [8, 64], strides = [1, 1]} : vector<16x64xf32> to vector<8x64xf32>
      %61 = arith.truncf %58 : vector<8x64xf32> to vector<8x64xbf16>
      %62 = arith.truncf %59 : vector<8x64xf32> to vector<8x64xbf16>
      %63 = arith.truncf %60 : vector<8x64xf32> to vector<8x64xbf16>
      %64 = vector.extract_strided_slice %61 {offsets = [0, 0], sizes = [8, 16], strides = [1, 1]} : vector<8x64xbf16> to vector<8x16xbf16>
      %65 = vector.extract_strided_slice %62 {offsets = [0, 0], sizes = [8, 16], strides = [1, 1]} : vector<8x64xbf16> to vector<8x16xbf16>
      %66 = vector.extract_strided_slice %63 {offsets = [0, 0], sizes = [8, 16], strides = [1, 1]} : vector<8x64xbf16> to vector<8x16xbf16>
      %cst_50 = arith.constant dense<0.000000e+00> : vector<8x8xf32>
      %67 = tpu.matmul %64, %65, %cst_50 {dimension_numbers = #tpu.dot_dimension_numbers<[1], [1], [0], [0], [0, 0, 1, 0], [], []>} : vector<8x16xbf16>, vector<8x16xbf16>, vector<8x8xf32> -> vector<8x8xf32>
      %68 = arith.addf %67, %57 : vector<8x8xf32>
      %cst_51 = arith.constant dense<0xFF800000> : vector<8xf32>
      %69 = vector.multi_reduction <maximumf>, %68, %cst_51 [1] : vector<8x8xf32> to vector<8xf32>
      %70 = vector.shape_cast %69 : vector<8xf32> to vector<8x1xf32>
      %71 = vector.broadcast %70 : vector<8x1xf32> to vector<8x8xf32>
      %72 = arith.subf %68, %71 : vector<8x8xf32>
      %73 = math.exp %72 : vector<8x8xf32>
      %cst_52 = arith.constant dense<0.000000e+00> : vector<8xf32>
      %74 = vector.multi_reduction <add>, %73, %cst_52 [1] : vector<8x8xf32> to vector<8xf32>
      %75 = vector.shape_cast %74 : vector<8xf32> to vector<8x1xf32>
      %76 = tpu.reciprocal %75 {approx = true} : vector<8x1xf32> -> vector<8x1xf32>
      %77 = vector.broadcast %76 : vector<8x1xf32> to vector<8x8xf32>
      %78 = arith.mulf %73, %77 : vector<8x8xf32>
      %79 = arith.truncf %78 : vector<8x8xf32> to vector<8x8xbf16>
      %cst_53 = arith.constant dense<0.000000e+00> : vector<8x16xf32>
      %80 = tpu.matmul %79, %66, %cst_53 {dimension_numbers = #tpu.dot_dimension_numbers<[1], [0], [0], [1], [0, 0, 1, 1], [], []>} : vector<8x8xbf16>, vector<8x16xbf16>, vector<8x16xf32> -> vector<8x16xf32>
      %81 = arith.truncf %80 : vector<8x16xf32> to vector<8x16xbf16>
      %82 = vector.extract_strided_slice %61 {offsets = [0, 16], sizes = [8, 16], strides = [1, 1]} : vector<8x64xbf16> to vector<8x16xbf16>
      %83 = vector.extract_strided_slice %62 {offsets = [0, 16], sizes = [8, 16], strides = [1, 1]} : vector<8x64xbf16> to vector<8x16xbf16>
      %84 = vector.extract_strided_slice %63 {offsets = [0, 16], sizes = [8, 16], strides = [1, 1]} : vector<8x64xbf16> to vector<8x16xbf16>
      %cst_54 = arith.constant dense<0.000000e+00> : vector<8x8xf32>
      %85 = tpu.matmul %82, %83, %cst_54 {dimension_numbers = #tpu.dot_dimension_numbers<[1], [1], [0], [0], [0, 0, 1, 0], [], []>} : vector<8x16xbf16>, vector<8x16xbf16>, vector<8x8xf32> -> vector<8x8xf32>
      %86 = arith.addf %85, %57 : vector<8x8xf32>
      %cst_55 = arith.constant dense<0xFF800000> : vector<8xf32>
      %87 = vector.multi_reduction <maximumf>, %86, %cst_55 [1] : vector<8x8xf32> to vector<8xf32>
      %88 = vector.shape_cast %87 : vector<8xf32> to vector<8x1xf32>
      %89 = vector.broadcast %88 : vector<8x1xf32> to vector<8x8xf32>
      %90 = arith.subf %86, %89 : vector<8x8xf32>
      %91 = math.exp %90 : vector<8x8xf32>
      %cst_56 = arith.constant dense<0.000000e+00> : vector<8xf32>
      %92 = vector.multi_reduction <add>, %91, %cst_56 [1] : vector<8x8xf32> to vector<8xf32>
      %93 = vector.shape_cast %92 : vector<8xf32> to vector<8x1xf32>
      %94 = tpu.reciprocal %93 {approx = true} : vector<8x1xf32> -> vector<8x1xf32>
      %95 = vector.broadcast %94 : vector<8x1xf32> to vector<8x8xf32>
      %96 = arith.mulf %91, %95 : vector<8x8xf32>
      %97 = arith.truncf %96 : vector<8x8xf32> to vector<8x8xbf16>
      %cst_57 = arith.constant dense<0.000000e+00> : vector<8x16xf32>
      %98 = tpu.matmul %97, %84, %cst_57 {dimension_numbers = #tpu.dot_dimension_numbers<[1], [0], [0], [1], [0, 0, 1, 1], [], []>} : vector<8x8xbf16>, vector<8x16xbf16>, vector<8x16xf32> -> vector<8x16xf32>
      %99 = arith.truncf %98 : vector<8x16xf32> to vector<8x16xbf16>
      %100 = vector.extract_strided_slice %61 {offsets = [0, 32], sizes = [8, 16], strides = [1, 1]} : vector<8x64xbf16> to vector<8x16xbf16>
      %101 = vector.extract_strided_slice %62 {offsets = [0, 32], sizes = [8, 16], strides = [1, 1]} : vector<8x64xbf16> to vector<8x16xbf16>
      %102 = vector.extract_strided_slice %63 {offsets = [0, 32], sizes = [8, 16], strides = [1, 1]} : vector<8x64xbf16> to vector<8x16xbf16>
      %cst_58 = arith.constant dense<0.000000e+00> : vector<8x8xf32>
      %103 = tpu.matmul %100, %101, %cst_58 {dimension_numbers = #tpu.dot_dimension_numbers<[1], [1], [0], [0], [0, 0, 1, 0], [], []>} : vector<8x16xbf16>, vector<8x16xbf16>, vector<8x8xf32> -> vector<8x8xf32>
      %104 = arith.addf %103, %57 : vector<8x8xf32>
      %cst_59 = arith.constant dense<0xFF800000> : vector<8xf32>
      %105 = vector.multi_reduction <maximumf>, %104, %cst_59 [1] : vector<8x8xf32> to vector<8xf32>
      %106 = vector.shape_cast %105 : vector<8xf32> to vector<8x1xf32>
      %107 = vector.broadcast %106 : vector<8x1xf32> to vector<8x8xf32>
      %108 = arith.subf %104, %107 : vector<8x8xf32>
      %109 = math.exp %108 : vector<8x8xf32>
      %cst_60 = arith.constant dense<0.000000e+00> : vector<8xf32>
      %110 = vector.multi_reduction <add>, %109, %cst_60 [1] : vector<8x8xf32> to vector<8xf32>
      %111 = vector.shape_cast %110 : vector<8xf32> to vector<8x1xf32>
      %112 = tpu.reciprocal %111 {approx = true} : vector<8x1xf32> -> vector<8x1xf32>
      %113 = vector.broadcast %112 : vector<8x1xf32> to vector<8x8xf32>
      %114 = arith.mulf %109, %113 : vector<8x8xf32>
      %115 = arith.truncf %114 : vector<8x8xf32> to vector<8x8xbf16>
      %cst_61 = arith.constant dense<0.000000e+00> : vector<8x16xf32>
      %116 = tpu.matmul %115, %102, %cst_61 {dimension_numbers = #tpu.dot_dimension_numbers<[1], [0], [0], [1], [0, 0, 1, 1], [], []>} : vector<8x8xbf16>, vector<8x16xbf16>, vector<8x16xf32> -> vector<8x16xf32>
      %117 = arith.truncf %116 : vector<8x16xf32> to vector<8x16xbf16>
      %118 = vector.extract_strided_slice %61 {offsets = [0, 48], sizes = [8, 16], strides = [1, 1]} : vector<8x64xbf16> to vector<8x16xbf16>
      %119 = vector.extract_strided_slice %62 {offsets = [0, 48], sizes = [8, 16], strides = [1, 1]} : vector<8x64xbf16> to vector<8x16xbf16>
      %120 = vector.extract_strided_slice %63 {offsets = [0, 48], sizes = [8, 16], strides = [1, 1]} : vector<8x64xbf16> to vector<8x16xbf16>
      %cst_62 = arith.constant dense<0.000000e+00> : vector<8x8xf32>
      %121 = tpu.matmul %118, %119, %cst_62 {dimension_numbers = #tpu.dot_dimension_numbers<[1], [1], [0], [0], [0, 0, 1, 0], [], []>} : vector<8x16xbf16>, vector<8x16xbf16>, vector<8x8xf32> -> vector<8x8xf32>
      %122 = arith.addf %121, %57 : vector<8x8xf32>
      %cst_63 = arith.constant dense<0xFF800000> : vector<8xf32>
      %123 = vector.multi_reduction <maximumf>, %122, %cst_63 [1] : vector<8x8xf32> to vector<8xf32>
      %124 = vector.shape_cast %123 : vector<8xf32> to vector<8x1xf32>
      %125 = vector.broadcast %124 : vector<8x1xf32> to vector<8x8xf32>
      %126 = arith.subf %122, %125 : vector<8x8xf32>
      %127 = math.exp %126 : vector<8x8xf32>
      %cst_64 = arith.constant dense<0.000000e+00> : vector<8xf32>
      %128 = vector.multi_reduction <add>, %127, %cst_64 [1] : vector<8x8xf32> to vector<8xf32>
      %129 = vector.shape_cast %128 : vector<8xf32> to vector<8x1xf32>
      %130 = tpu.reciprocal %129 {approx = true} : vector<8x1xf32> -> vector<8x1xf32>
      %131 = vector.broadcast %130 : vector<8x1xf32> to vector<8x8xf32>
      %132 = arith.mulf %127, %131 : vector<8x8xf32>
      %133 = arith.truncf %132 : vector<8x8xf32> to vector<8x8xbf16>
      %cst_65 = arith.constant dense<0.000000e+00> : vector<8x16xf32>
      %134 = tpu.matmul %133, %120, %cst_65 {dimension_numbers = #tpu.dot_dimension_numbers<[1], [0], [0], [1], [0, 0, 1, 1], [], []>} : vector<8x8xbf16>, vector<8x16xbf16>, vector<8x16xf32> -> vector<8x16xf32>
      %135 = arith.truncf %134 : vector<8x16xf32> to vector<8x16xbf16>
      %136 = tpu.concatenate %81, %99, %117, %135 in 1 : vector<8x16xbf16>, vector<8x16xbf16>, vector<8x16xbf16>, vector<8x16xbf16> -> vector<8x64xbf16>
      %c1 = arith.constant 1 : index
      %c0_66 = arith.constant 0 : index
      %c0_67 = arith.constant 0 : index
      %137 = vector.load %arg4[%c1, %c0_66, %c0_67] : memref<2x1x8xbf16, #tpu.memory_space<vmem>>, vector<1x1x8xbf16>
      %138 = vector.shape_cast %137 : vector<1x1x8xbf16> to vector<1x8xbf16>
      %139 = arith.extf %138 : vector<1x8xbf16> to vector<1x8xf32>
      %140 = vector.shape_cast %139 : vector<1x8xf32> to vector<1x8xf32>
      %141 = vector.broadcast %140 : vector<1x8xf32> to vector<8x8xf32>
      %142 = vector.extract_strided_slice %46 {offsets = [8, 0], sizes = [8, 64], strides = [1, 1]} : vector<16x64xf32> to vector<8x64xf32>
      %143 = vector.extract_strided_slice %51 {offsets = [8, 0], sizes = [8, 64], strides = [1, 1]} : vector<16x64xf32> to vector<8x64xf32>
      %144 = vector.extract_strided_slice %52 {offsets = [8, 0], sizes = [8, 64], strides = [1, 1]} : vector<16x64xf32> to vector<8x64xf32>
      %145 = arith.truncf %142 : vector<8x64xf32> to vector<8x64xbf16>
      %146 = arith.truncf %143 : vector<8x64xf32> to vector<8x64xbf16>
      %147 = arith.truncf %144 : vector<8x64xf32> to vector<8x64xbf16>
      %148 = vector.extract_strided_slice %145 {offsets = [0, 0], sizes = [8, 16], strides = [1, 1]} : vector<8x64xbf16> to vector<8x16xbf16>
      %149 = vector.extract_strided_slice %146 {offsets = [0, 0], sizes = [8, 16], strides = [1, 1]} : vector<8x64xbf16> to vector<8x16xbf16>
      %150 = vector.extract_strided_slice %147 {offsets = [0, 0], sizes = [8, 16], strides = [1, 1]} : vector<8x64xbf16> to vector<8x16xbf16>
      %cst_68 = arith.constant dense<0.000000e+00> : vector<8x8xf32>
      %151 = tpu.matmul %148, %149, %cst_68 {dimension_numbers = #tpu.dot_dimension_numbers<[1], [1], [0], [0], [0, 0, 1, 0], [], []>} : vector<8x16xbf16>, vector<8x16xbf16>, vector<8x8xf32> -> vector<8x8xf32>
      %152 = arith.addf %151, %141 : vector<8x8xf32>
      %cst_69 = arith.constant dense<0xFF800000> : vector<8xf32>
      %153 = vector.multi_reduction <maximumf>, %152, %cst_69 [1] : vector<8x8xf32> to vector<8xf32>
      %154 = vector.shape_cast %153 : vector<8xf32> to vector<8x1xf32>
      %155 = vector.broadcast %154 : vector<8x1xf32> to vector<8x8xf32>
      %156 = arith.subf %152, %155 : vector<8x8xf32>
      %157 = math.exp %156 : vector<8x8xf32>
      %cst_70 = arith.constant dense<0.000000e+00> : vector<8xf32>
      %158 = vector.multi_reduction <add>, %157, %cst_70 [1] : vector<8x8xf32> to vector<8xf32>
      %159 = vector.shape_cast %158 : vector<8xf32> to vector<8x1xf32>
      %160 = tpu.reciprocal %159 {approx = true} : vector<8x1xf32> -> vector<8x1xf32>
      %161 = vector.broadcast %160 : vector<8x1xf32> to vector<8x8xf32>
      %162 = arith.mulf %157, %161 : vector<8x8xf32>
      %163 = arith.truncf %162 : vector<8x8xf32> to vector<8x8xbf16>
      %cst_71 = arith.constant dense<0.000000e+00> : vector<8x16xf32>
      %164 = tpu.matmul %163, %150, %cst_71 {dimension_numbers = #tpu.dot_dimension_numbers<[1], [0], [0], [1], [0, 0, 1, 1], [], []>} : vector<8x8xbf16>, vector<8x16xbf16>, vector<8x16xf32> -> vector<8x16xf32>
      %165 = arith.truncf %164 : vector<8x16xf32> to vector<8x16xbf16>
      %166 = vector.extract_strided_slice %145 {offsets = [0, 16], sizes = [8, 16], strides = [1, 1]} : vector<8x64xbf16> to vector<8x16xbf16>
      %167 = vector.extract_strided_slice %146 {offsets = [0, 16], sizes = [8, 16], strides = [1, 1]} : vector<8x64xbf16> to vector<8x16xbf16>
      %168 = vector.extract_strided_slice %147 {offsets = [0, 16], sizes = [8, 16], strides = [1, 1]} : vector<8x64xbf16> to vector<8x16xbf16>
      %cst_72 = arith.constant dense<0.000000e+00> : vector<8x8xf32>
      %169 = tpu.matmul %166, %167, %cst_72 {dimension_numbers = #tpu.dot_dimension_numbers<[1], [1], [0], [0], [0, 0, 1, 0], [], []>} : vector<8x16xbf16>, vector<8x16xbf16>, vector<8x8xf32> -> vector<8x8xf32>
      %170 = arith.addf %169, %141 : vector<8x8xf32>
      %cst_73 = arith.constant dense<0xFF800000> : vector<8xf32>
      %171 = vector.multi_reduction <maximumf>, %170, %cst_73 [1] : vector<8x8xf32> to vector<8xf32>
      %172 = vector.shape_cast %171 : vector<8xf32> to vector<8x1xf32>
      %173 = vector.broadcast %172 : vector<8x1xf32> to vector<8x8xf32>
      %174 = arith.subf %170, %173 : vector<8x8xf32>
      %175 = math.exp %174 : vector<8x8xf32>
      %cst_74 = arith.constant dense<0.000000e+00> : vector<8xf32>
      %176 = vector.multi_reduction <add>, %175, %cst_74 [1] : vector<8x8xf32> to vector<8xf32>
      %177 = vector.shape_cast %176 : vector<8xf32> to vector<8x1xf32>
      %178 = tpu.reciprocal %177 {approx = true} : vector<8x1xf32> -> vector<8x1xf32>
      %179 = vector.broadcast %178 : vector<8x1xf32> to vector<8x8xf32>
      %180 = arith.mulf %175, %179 : vector<8x8xf32>
      %181 = arith.truncf %180 : vector<8x8xf32> to vector<8x8xbf16>
      %cst_75 = arith.constant dense<0.000000e+00> : vector<8x16xf32>
      %182 = tpu.matmul %181, %168, %cst_75 {dimension_numbers = #tpu.dot_dimension_numbers<[1], [0], [0], [1], [0, 0, 1, 1], [], []>} : vector<8x8xbf16>, vector<8x16xbf16>, vector<8x16xf32> -> vector<8x16xf32>
      %183 = arith.truncf %182 : vector<8x16xf32> to vector<8x16xbf16>
      %184 = vector.extract_strided_slice %145 {offsets = [0, 32], sizes = [8, 16], strides = [1, 1]} : vector<8x64xbf16> to vector<8x16xbf16>
      %185 = vector.extract_strided_slice %146 {offsets = [0, 32], sizes = [8, 16], strides = [1, 1]} : vector<8x64xbf16> to vector<8x16xbf16>
      %186 = vector.extract_strided_slice %147 {offsets = [0, 32], sizes = [8, 16], strides = [1, 1]} : vector<8x64xbf16> to vector<8x16xbf16>
      %cst_76 = arith.constant dense<0.000000e+00> : vector<8x8xf32>
      %187 = tpu.matmul %184, %185, %cst_76 {dimension_numbers = #tpu.dot_dimension_numbers<[1], [1], [0], [0], [0, 0, 1, 0], [], []>} : vector<8x16xbf16>, vector<8x16xbf16>, vector<8x8xf32> -> vector<8x8xf32>
      %188 = arith.addf %187, %141 : vector<8x8xf32>
      %cst_77 = arith.constant dense<0xFF800000> : vector<8xf32>
      %189 = vector.multi_reduction <maximumf>, %188, %cst_77 [1] : vector<8x8xf32> to vector<8xf32>
      %190 = vector.shape_cast %189 : vector<8xf32> to vector<8x1xf32>
      %191 = vector.broadcast %190 : vector<8x1xf32> to vector<8x8xf32>
      %192 = arith.subf %188, %191 : vector<8x8xf32>
      %193 = math.exp %192 : vector<8x8xf32>
      %cst_78 = arith.constant dense<0.000000e+00> : vector<8xf32>
      %194 = vector.multi_reduction <add>, %193, %cst_78 [1] : vector<8x8xf32> to vector<8xf32>
      %195 = vector.shape_cast %194 : vector<8xf32> to vector<8x1xf32>
      %196 = tpu.reciprocal %195 {approx = true} : vector<8x1xf32> -> vector<8x1xf32>
      %197 = vector.broadcast %196 : vector<8x1xf32> to vector<8x8xf32>
      %198 = arith.mulf %193, %197 : vector<8x8xf32>
      %199 = arith.truncf %198 : vector<8x8xf32> to vector<8x8xbf16>
      %cst_79 = arith.constant dense<0.000000e+00> : vector<8x16xf32>
      %200 = tpu.matmul %199, %186, %cst_79 {dimension_numbers = #tpu.dot_dimension_numbers<[1], [0], [0], [1], [0, 0, 1, 1], [], []>} : vector<8x8xbf16>, vector<8x16xbf16>, vector<8x16xf32> -> vector<8x16xf32>
      %201 = arith.truncf %200 : vector<8x16xf32> to vector<8x16xbf16>
      %202 = vector.extract_strided_slice %145 {offsets = [0, 48], sizes = [8, 16], strides = [1, 1]} : vector<8x64xbf16> to vector<8x16xbf16>
      %203 = vector.extract_strided_slice %146 {offsets = [0, 48], sizes = [8, 16], strides = [1, 1]} : vector<8x64xbf16> to vector<8x16xbf16>
      %204 = vector.extract_strided_slice %147 {offsets = [0, 48], sizes = [8, 16], strides = [1, 1]} : vector<8x64xbf16> to vector<8x16xbf16>
      %cst_80 = arith.constant dense<0.000000e+00> : vector<8x8xf32>
      %205 = tpu.matmul %202, %203, %cst_80 {dimension_numbers = #tpu.dot_dimension_numbers<[1], [1], [0], [0], [0, 0, 1, 0], [], []>} : vector<8x16xbf16>, vector<8x16xbf16>, vector<8x8xf32> -> vector<8x8xf32>
      %206 = arith.addf %205, %141 : vector<8x8xf32>
      %cst_81 = arith.constant dense<0xFF800000> : vector<8xf32>
      %207 = vector.multi_reduction <maximumf>, %206, %cst_81 [1] : vector<8x8xf32> to vector<8xf32>
      %208 = vector.shape_cast %207 : vector<8xf32> to vector<8x1xf32>
      %209 = vector.broadcast %208 : vector<8x1xf32> to vector<8x8xf32>
      %210 = arith.subf %206, %209 : vector<8x8xf32>
      %211 = math.exp %210 : vector<8x8xf32>
      %cst_82 = arith.constant dense<0.000000e+00> : vector<8xf32>
      %212 = vector.multi_reduction <add>, %211, %cst_82 [1] : vector<8x8xf32> to vector<8xf32>
      %213 = vector.shape_cast %212 : vector<8xf32> to vector<8x1xf32>
      %214 = tpu.reciprocal %213 {approx = true} : vector<8x1xf32> -> vector<8x1xf32>
      %215 = vector.broadcast %214 : vector<8x1xf32> to vector<8x8xf32>
      %216 = arith.mulf %211, %215 : vector<8x8xf32>
      %217 = arith.truncf %216 : vector<8x8xf32> to vector<8x8xbf16>
      %cst_83 = arith.constant dense<0.000000e+00> : vector<8x16xf32>
      %218 = tpu.matmul %217, %204, %cst_83 {dimension_numbers = #tpu.dot_dimension_numbers<[1], [0], [0], [1], [0, 0, 1, 1], [], []>} : vector<8x8xbf16>, vector<8x16xbf16>, vector<8x16xf32> -> vector<8x16xf32>
      %219 = arith.truncf %218 : vector<8x16xf32> to vector<8x16xbf16>
      %220 = tpu.concatenate %165, %183, %201, %219 in 1 : vector<8x16xbf16>, vector<8x16xbf16>, vector<8x16xbf16>, vector<8x16xbf16> -> vector<8x64xbf16>
      %221 = tpu.concatenate %136, %220 in 0 : vector<8x64xbf16>, vector<8x64xbf16> -> vector<16x64xbf16>
      %c0_84 = arith.constant 0 : index
      %c0_85 = arith.constant 0 : index
      %222 = vector.load %arg11[%c0_84, %c0_85] : memref<64x64xbf16, #tpu.memory_space<vmem>>, vector<64x64xbf16>
      %cst_86 = arith.constant dense<0.000000e+00> : vector<16x64xf32>
      %223 = tpu.matmul %221, %222, %cst_86 {dimension_numbers = #tpu.dot_dimension_numbers<[1], [0], [0], [1], [0, 0, 1, 1], [], []>} : vector<16x64xbf16>, vector<64x64xbf16>, vector<16x64xf32> -> vector<16x64xf32>
      %224 = vector.broadcast %36 : vector<1x64xf32> to vector<16x64xf32>
      %225 = arith.addf %223, %224 : vector<16x64xf32>
      %226 = arith.addf %225, %31 : vector<16x64xf32>
      %cst_87 = arith.constant dense<0.000000e+00> : vector<16xf32>
      %227 = vector.multi_reduction <add>, %226, %cst_87 [1] : vector<16x64xf32> to vector<16xf32>
      %228 = vector.shape_cast %227 : vector<16xf32> to vector<16x1xf32>
      %cst_88 = arith.constant 6.400000e+01 : f32
      %229 = vector.broadcast %cst_88 : f32 to vector<16x1xf32>
      %230 = arith.divf %228, %229 : vector<16x1xf32>
      %231 = vector.broadcast %230 : vector<16x1xf32> to vector<16x64xf32>
      %232 = arith.subf %226, %231 : vector<16x64xf32>
      %233 = arith.mulf %232, %232 : vector<16x64xf32>
      %cst_89 = arith.constant dense<0.000000e+00> : vector<16xf32>
      %234 = vector.multi_reduction <add>, %233, %cst_89 [1] : vector<16x64xf32> to vector<16xf32>
      %235 = vector.shape_cast %234 : vector<16xf32> to vector<16x1xf32>
      %cst_90 = arith.constant 6.400000e+01 : f32
      %236 = vector.broadcast %cst_90 : f32 to vector<16x1xf32>
      %237 = arith.divf %235, %236 : vector<16x1xf32>
      %238 = vector.broadcast %230 : vector<16x1xf32> to vector<16x64xf32>
      %239 = arith.subf %226, %238 : vector<16x64xf32>
      %cst_91 = arith.constant 9.99999996E-13 : f32
      %240 = vector.broadcast %cst_91 : f32 to vector<16x1xf32>
      %241 = arith.addf %237, %240 : vector<16x1xf32>
      %242 = math.rsqrt %241 : vector<16x1xf32>
      %243 = vector.broadcast %242 : vector<16x1xf32> to vector<16x64xf32>
      %244 = arith.mulf %239, %243 : vector<16x64xf32>
      %245 = vector.broadcast %37 : vector<1x64xf32> to vector<16x64xf32>
      %246 = arith.mulf %244, %245 : vector<16x64xf32>
      %247 = vector.broadcast %38 : vector<1x64xf32> to vector<16x64xf32>
      %248 = arith.addf %246, %247 : vector<16x64xf32>
      %249 = arith.truncf %248 : vector<16x64xf32> to vector<16x64xbf16>
      %c0_92 = arith.constant 0 : index
      %c0_93 = arith.constant 0 : index
      %250 = vector.load %arg15[%c0_92, %c0_93] : memref<64x192xbf16, #tpu.memory_space<vmem>>, vector<64x192xbf16>
      %cst_94 = arith.constant dense<0.000000e+00> : vector<16x192xf32>
      %251 = tpu.matmul %249, %250, %cst_94 {dimension_numbers = #tpu.dot_dimension_numbers<[1], [0], [0], [1], [0, 0, 1, 1], [], []>} : vector<16x64xbf16>, vector<64x192xbf16>, vector<16x192xf32> -> vector<16x192xf32>
      %252 = vector.broadcast %39 : vector<1x192xf32> to vector<16x192xf32>
      %253 = arith.addf %251, %252 : vector<16x192xf32>
      %254 = vector.extract_strided_slice %253 {offsets = [0, 0], sizes = [16, 64], strides = [1, 1]} : vector<16x192xf32> to vector<16x64xf32>
      %255 = vector.extract_strided_slice %253 {offsets = [0, 64], sizes = [16, 64], strides = [1, 1]} : vector<16x192xf32> to vector<16x64xf32>
      %256 = vector.extract_strided_slice %253 {offsets = [0, 128], sizes = [16, 64], strides = [1, 1]} : vector<16x192xf32> to vector<16x64xf32>
      %c0_95 = arith.constant 0 : index
      %c0_96 = arith.constant 0 : index
      %c0_97 = arith.constant 0 : index
      %257 = vector.load %arg5[%c0_95, %c0_96, %c0_97] : memref<2x1x8xbf16, #tpu.memory_space<vmem>>, vector<1x1x8xbf16>
      %258 = vector.shape_cast %257 : vector<1x1x8xbf16> to vector<1x8xbf16>
      %259 = arith.extf %258 : vector<1x8xbf16> to vector<1x8xf32>
      %260 = vector.shape_cast %259 : vector<1x8xf32> to vector<1x8xf32>
      %261 = vector.broadcast %260 : vector<1x8xf32> to vector<8x8xf32>
      %c0_98 = arith.constant 0 : index
      %c0_99 = arith.constant 0 : index
      %c0_100 = arith.constant 0 : index
      %262 = vector.load %arg6[%c0_98, %c0_99, %c0_100] : memref<2x8x8xbf16, #tpu.memory_space<vmem>>, vector<1x8x8xbf16>
      %263 = vector.shape_cast %262 : vector<1x8x8xbf16> to vector<8x8xbf16>
      %264 = arith.extf %263 : vector<8x8xbf16> to vector<8x8xf32>
      %265 = arith.addf %261, %264 : vector<8x8xf32>
      %266 = vector.extract_strided_slice %254 {offsets = [0, 0], sizes = [8, 64], strides = [1, 1]} : vector<16x64xf32> to vector<8x64xf32>
      %267 = vector.extract_strided_slice %255 {offsets = [0, 0], sizes = [8, 64], strides = [1, 1]} : vector<16x64xf32> to vector<8x64xf32>
      %268 = vector.extract_strided_slice %256 {offsets = [0, 0], sizes = [8, 64], strides = [1, 1]} : vector<16x64xf32> to vector<8x64xf32>
      %269 = arith.truncf %266 : vector<8x64xf32> to vector<8x64xbf16>
      %270 = arith.truncf %267 : vector<8x64xf32> to vector<8x64xbf16>
      %271 = arith.truncf %268 : vector<8x64xf32> to vector<8x64xbf16>
      %272 = vector.extract_strided_slice %269 {offsets = [0, 0], sizes = [8, 16], strides = [1, 1]} : vector<8x64xbf16> to vector<8x16xbf16>
      %273 = vector.extract_strided_slice %270 {offsets = [0, 0], sizes = [8, 16], strides = [1, 1]} : vector<8x64xbf16> to vector<8x16xbf16>
      %274 = vector.extract_strided_slice %271 {offsets = [0, 0], sizes = [8, 16], strides = [1, 1]} : vector<8x64xbf16> to vector<8x16xbf16>
      %cst_101 = arith.constant dense<0.000000e+00> : vector<8x8xf32>
      %275 = tpu.matmul %272, %273, %cst_101 {dimension_numbers = #tpu.dot_dimension_numbers<[1], [1], [0], [0], [0, 0, 1, 0], [], []>} : vector<8x16xbf16>, vector<8x16xbf16>, vector<8x8xf32> -> vector<8x8xf32>
      %276 = arith.addf %275, %265 : vector<8x8xf32>
      %cst_102 = arith.constant dense<0xFF800000> : vector<8xf32>
      %277 = vector.multi_reduction <maximumf>, %276, %cst_102 [1] : vector<8x8xf32> to vector<8xf32>
      %278 = vector.shape_cast %277 : vector<8xf32> to vector<8x1xf32>
      %279 = vector.broadcast %278 : vector<8x1xf32> to vector<8x8xf32>
      %280 = arith.subf %276, %279 : vector<8x8xf32>
      %281 = math.exp %280 : vector<8x8xf32>
      %cst_103 = arith.constant dense<0.000000e+00> : vector<8xf32>
      %282 = vector.multi_reduction <add>, %281, %cst_103 [1] : vector<8x8xf32> to vector<8xf32>
      %283 = vector.shape_cast %282 : vector<8xf32> to vector<8x1xf32>
      %284 = tpu.reciprocal %283 {approx = true} : vector<8x1xf32> -> vector<8x1xf32>
      %285 = vector.broadcast %284 : vector<8x1xf32> to vector<8x8xf32>
      %286 = arith.mulf %281, %285 : vector<8x8xf32>
      %287 = arith.truncf %286 : vector<8x8xf32> to vector<8x8xbf16>
      %cst_104 = arith.constant dense<0.000000e+00> : vector<8x16xf32>
      %288 = tpu.matmul %287, %274, %cst_104 {dimension_numbers = #tpu.dot_dimension_numbers<[1], [0], [0], [1], [0, 0, 1, 1], [], []>} : vector<8x8xbf16>, vector<8x16xbf16>, vector<8x16xf32> -> vector<8x16xf32>
      %289 = arith.truncf %288 : vector<8x16xf32> to vector<8x16xbf16>
      %290 = vector.extract_strided_slice %269 {offsets = [0, 16], sizes = [8, 16], strides = [1, 1]} : vector<8x64xbf16> to vector<8x16xbf16>
      %291 = vector.extract_strided_slice %270 {offsets = [0, 16], sizes = [8, 16], strides = [1, 1]} : vector<8x64xbf16> to vector<8x16xbf16>
      %292 = vector.extract_strided_slice %271 {offsets = [0, 16], sizes = [8, 16], strides = [1, 1]} : vector<8x64xbf16> to vector<8x16xbf16>
      %cst_105 = arith.constant dense<0.000000e+00> : vector<8x8xf32>
      %293 = tpu.matmul %290, %291, %cst_105 {dimension_numbers = #tpu.dot_dimension_numbers<[1], [1], [0], [0], [0, 0, 1, 0], [], []>} : vector<8x16xbf16>, vector<8x16xbf16>, vector<8x8xf32> -> vector<8x8xf32>
      %294 = arith.addf %293, %265 : vector<8x8xf32>
      %cst_106 = arith.constant dense<0xFF800000> : vector<8xf32>
      %295 = vector.multi_reduction <maximumf>, %294, %cst_106 [1] : vector<8x8xf32> to vector<8xf32>
      %296 = vector.shape_cast %295 : vector<8xf32> to vector<8x1xf32>
      %297 = vector.broadcast %296 : vector<8x1xf32> to vector<8x8xf32>
      %298 = arith.subf %294, %297 : vector<8x8xf32>
      %299 = math.exp %298 : vector<8x8xf32>
      %cst_107 = arith.constant dense<0.000000e+00> : vector<8xf32>
      %300 = vector.multi_reduction <add>, %299, %cst_107 [1] : vector<8x8xf32> to vector<8xf32>
      %301 = vector.shape_cast %300 : vector<8xf32> to vector<8x1xf32>
      %302 = tpu.reciprocal %301 {approx = true} : vector<8x1xf32> -> vector<8x1xf32>
      %303 = vector.broadcast %302 : vector<8x1xf32> to vector<8x8xf32>
      %304 = arith.mulf %299, %303 : vector<8x8xf32>
      %305 = arith.truncf %304 : vector<8x8xf32> to vector<8x8xbf16>
      %cst_108 = arith.constant dense<0.000000e+00> : vector<8x16xf32>
      %306 = tpu.matmul %305, %292, %cst_108 {dimension_numbers = #tpu.dot_dimension_numbers<[1], [0], [0], [1], [0, 0, 1, 1], [], []>} : vector<8x8xbf16>, vector<8x16xbf16>, vector<8x16xf32> -> vector<8x16xf32>
      %307 = arith.truncf %306 : vector<8x16xf32> to vector<8x16xbf16>
      %308 = vector.extract_strided_slice %269 {offsets = [0, 32], sizes = [8, 16], strides = [1, 1]} : vector<8x64xbf16> to vector<8x16xbf16>
      %309 = vector.extract_strided_slice %270 {offsets = [0, 32], sizes = [8, 16], strides = [1, 1]} : vector<8x64xbf16> to vector<8x16xbf16>
      %310 = vector.extract_strided_slice %271 {offsets = [0, 32], sizes = [8, 16], strides = [1, 1]} : vector<8x64xbf16> to vector<8x16xbf16>
      %cst_109 = arith.constant dense<0.000000e+00> : vector<8x8xf32>
      %311 = tpu.matmul %308, %309, %cst_109 {dimension_numbers = #tpu.dot_dimension_numbers<[1], [1], [0], [0], [0, 0, 1, 0], [], []>} : vector<8x16xbf16>, vector<8x16xbf16>, vector<8x8xf32> -> vector<8x8xf32>
      %312 = arith.addf %311, %265 : vector<8x8xf32>
      %cst_110 = arith.constant dense<0xFF800000> : vector<8xf32>
      %313 = vector.multi_reduction <maximumf>, %312, %cst_110 [1] : vector<8x8xf32> to vector<8xf32>
      %314 = vector.shape_cast %313 : vector<8xf32> to vector<8x1xf32>
      %315 = vector.broadcast %314 : vector<8x1xf32> to vector<8x8xf32>
      %316 = arith.subf %312, %315 : vector<8x8xf32>
      %317 = math.exp %316 : vector<8x8xf32>
      %cst_111 = arith.constant dense<0.000000e+00> : vector<8xf32>
      %318 = vector.multi_reduction <add>, %317, %cst_111 [1] : vector<8x8xf32> to vector<8xf32>
      %319 = vector.shape_cast %318 : vector<8xf32> to vector<8x1xf32>
      %320 = tpu.reciprocal %319 {approx = true} : vector<8x1xf32> -> vector<8x1xf32>
      %321 = vector.broadcast %320 : vector<8x1xf32> to vector<8x8xf32>
      %322 = arith.mulf %317, %321 : vector<8x8xf32>
      %323 = arith.truncf %322 : vector<8x8xf32> to vector<8x8xbf16>
      %cst_112 = arith.constant dense<0.000000e+00> : vector<8x16xf32>
      %324 = tpu.matmul %323, %310, %cst_112 {dimension_numbers = #tpu.dot_dimension_numbers<[1], [0], [0], [1], [0, 0, 1, 1], [], []>} : vector<8x8xbf16>, vector<8x16xbf16>, vector<8x16xf32> -> vector<8x16xf32>
      %325 = arith.truncf %324 : vector<8x16xf32> to vector<8x16xbf16>
      %326 = vector.extract_strided_slice %269 {offsets = [0, 48], sizes = [8, 16], strides = [1, 1]} : vector<8x64xbf16> to vector<8x16xbf16>
      %327 = vector.extract_strided_slice %270 {offsets = [0, 48], sizes = [8, 16], strides = [1, 1]} : vector<8x64xbf16> to vector<8x16xbf16>
      %328 = vector.extract_strided_slice %271 {offsets = [0, 48], sizes = [8, 16], strides = [1, 1]} : vector<8x64xbf16> to vector<8x16xbf16>
      %cst_113 = arith.constant dense<0.000000e+00> : vector<8x8xf32>
      %329 = tpu.matmul %326, %327, %cst_113 {dimension_numbers = #tpu.dot_dimension_numbers<[1], [1], [0], [0], [0, 0, 1, 0], [], []>} : vector<8x16xbf16>, vector<8x16xbf16>, vector<8x8xf32> -> vector<8x8xf32>
      %330 = arith.addf %329, %265 : vector<8x8xf32>
      %cst_114 = arith.constant dense<0xFF800000> : vector<8xf32>
      %331 = vector.multi_reduction <maximumf>, %330, %cst_114 [1] : vector<8x8xf32> to vector<8xf32>
      %332 = vector.shape_cast %331 : vector<8xf32> to vector<8x1xf32>
      %333 = vector.broadcast %332 : vector<8x1xf32> to vector<8x8xf32>
      %334 = arith.subf %330, %333 : vector<8x8xf32>
      %335 = math.exp %334 : vector<8x8xf32>
      %cst_115 = arith.constant dense<0.000000e+00> : vector<8xf32>
      %336 = vector.multi_reduction <add>, %335, %cst_115 [1] : vector<8x8xf32> to vector<8xf32>
      %337 = vector.shape_cast %336 : vector<8xf32> to vector<8x1xf32>
      %338 = tpu.reciprocal %337 {approx = true} : vector<8x1xf32> -> vector<8x1xf32>
      %339 = vector.broadcast %338 : vector<8x1xf32> to vector<8x8xf32>
      %340 = arith.mulf %335, %339 : vector<8x8xf32>
      %341 = arith.truncf %340 : vector<8x8xf32> to vector<8x8xbf16>
      %cst_116 = arith.constant dense<0.000000e+00> : vector<8x16xf32>
      %342 = tpu.matmul %341, %328, %cst_116 {dimension_numbers = #tpu.dot_dimension_numbers<[1], [0], [0], [1], [0, 0, 1, 1], [], []>} : vector<8x8xbf16>, vector<8x16xbf16>, vector<8x16xf32> -> vector<8x16xf32>
      %343 = arith.truncf %342 : vector<8x16xf32> to vector<8x16xbf16>
      %344 = tpu.concatenate %289, %307, %325, %343 in 1 : vector<8x16xbf16>, vector<8x16xbf16>, vector<8x16xbf16>, vector<8x16xbf16> -> vector<8x64xbf16>
      %c1_117 = arith.constant 1 : index
      %c0_118 = arith.constant 0 : index
      %c0_119 = arith.constant 0 : index
      %345 = vector.load %arg5[%c1_117, %c0_118, %c0_119] : memref<2x1x8xbf16, #tpu.memory_space<vmem>>, vector<1x1x8xbf16>
      %346 = vector.shape_cast %345 : vector<1x1x8xbf16> to vector<1x8xbf16>
      %347 = arith.extf %346 : vector<1x8xbf16> to vector<1x8xf32>
      %348 = vector.shape_cast %347 : vector<1x8xf32> to vector<1x8xf32>
      %349 = vector.broadcast %348 : vector<1x8xf32> to vector<8x8xf32>
      %c1_120 = arith.constant 1 : index
      %c0_121 = arith.constant 0 : index
      %c0_122 = arith.constant 0 : index
      %350 = vector.load %arg6[%c1_120, %c0_121, %c0_122] : memref<2x8x8xbf16, #tpu.memory_space<vmem>>, vector<1x8x8xbf16>
      %351 = vector.shape_cast %350 : vector<1x8x8xbf16> to vector<8x8xbf16>
      %352 = arith.extf %351 : vector<8x8xbf16> to vector<8x8xf32>
      %353 = arith.addf %349, %352 : vector<8x8xf32>
      %354 = vector.extract_strided_slice %254 {offsets = [8, 0], sizes = [8, 64], strides = [1, 1]} : vector<16x64xf32> to vector<8x64xf32>
      %355 = vector.extract_strided_slice %255 {offsets = [8, 0], sizes = [8, 64], strides = [1, 1]} : vector<16x64xf32> to vector<8x64xf32>
      %356 = vector.extract_strided_slice %256 {offsets = [8, 0], sizes = [8, 64], strides = [1, 1]} : vector<16x64xf32> to vector<8x64xf32>
      %357 = arith.truncf %354 : vector<8x64xf32> to vector<8x64xbf16>
      %358 = arith.truncf %355 : vector<8x64xf32> to vector<8x64xbf16>
      %359 = arith.truncf %356 : vector<8x64xf32> to vector<8x64xbf16>
      %360 = vector.extract_strided_slice %357 {offsets = [0, 0], sizes = [8, 16], strides = [1, 1]} : vector<8x64xbf16> to vector<8x16xbf16>
      %361 = vector.extract_strided_slice %358 {offsets = [0, 0], sizes = [8, 16], strides = [1, 1]} : vector<8x64xbf16> to vector<8x16xbf16>
      %362 = vector.extract_strided_slice %359 {offsets = [0, 0], sizes = [8, 16], strides = [1, 1]} : vector<8x64xbf16> to vector<8x16xbf16>
      %cst_123 = arith.constant dense<0.000000e+00> : vector<8x8xf32>
      %363 = tpu.matmul %360, %361, %cst_123 {dimension_numbers = #tpu.dot_dimension_numbers<[1], [1], [0], [0], [0, 0, 1, 0], [], []>} : vector<8x16xbf16>, vector<8x16xbf16>, vector<8x8xf32> -> vector<8x8xf32>
      %364 = arith.addf %363, %353 : vector<8x8xf32>
      %cst_124 = arith.constant dense<0xFF800000> : vector<8xf32>
      %365 = vector.multi_reduction <maximumf>, %364, %cst_124 [1] : vector<8x8xf32> to vector<8xf32>
      %366 = vector.shape_cast %365 : vector<8xf32> to vector<8x1xf32>
      %367 = vector.broadcast %366 : vector<8x1xf32> to vector<8x8xf32>
      %368 = arith.subf %364, %367 : vector<8x8xf32>
      %369 = math.exp %368 : vector<8x8xf32>
      %cst_125 = arith.constant dense<0.000000e+00> : vector<8xf32>
      %370 = vector.multi_reduction <add>, %369, %cst_125 [1] : vector<8x8xf32> to vector<8xf32>
      %371 = vector.shape_cast %370 : vector<8xf32> to vector<8x1xf32>
      %372 = tpu.reciprocal %371 {approx = true} : vector<8x1xf32> -> vector<8x1xf32>
      %373 = vector.broadcast %372 : vector<8x1xf32> to vector<8x8xf32>
      %374 = arith.mulf %369, %373 : vector<8x8xf32>
      %375 = arith.truncf %374 : vector<8x8xf32> to vector<8x8xbf16>
      %cst_126 = arith.constant dense<0.000000e+00> : vector<8x16xf32>
      %376 = tpu.matmul %375, %362, %cst_126 {dimension_numbers = #tpu.dot_dimension_numbers<[1], [0], [0], [1], [0, 0, 1, 1], [], []>} : vector<8x8xbf16>, vector<8x16xbf16>, vector<8x16xf32> -> vector<8x16xf32>
      %377 = arith.truncf %376 : vector<8x16xf32> to vector<8x16xbf16>
      %378 = vector.extract_strided_slice %357 {offsets = [0, 16], sizes = [8, 16], strides = [1, 1]} : vector<8x64xbf16> to vector<8x16xbf16>
      %379 = vector.extract_strided_slice %358 {offsets = [0, 16], sizes = [8, 16], strides = [1, 1]} : vector<8x64xbf16> to vector<8x16xbf16>
      %380 = vector.extract_strided_slice %359 {offsets = [0, 16], sizes = [8, 16], strides = [1, 1]} : vector<8x64xbf16> to vector<8x16xbf16>
      %cst_127 = arith.constant dense<0.000000e+00> : vector<8x8xf32>
      %381 = tpu.matmul %378, %379, %cst_127 {dimension_numbers = #tpu.dot_dimension_numbers<[1], [1], [0], [0], [0, 0, 1, 0], [], []>} : vector<8x16xbf16>, vector<8x16xbf16>, vector<8x8xf32> -> vector<8x8xf32>
      %382 = arith.addf %381, %353 : vector<8x8xf32>
      %cst_128 = arith.constant dense<0xFF800000> : vector<8xf32>
      %383 = vector.multi_reduction <maximumf>, %382, %cst_128 [1] : vector<8x8xf32> to vector<8xf32>
      %384 = vector.shape_cast %383 : vector<8xf32> to vector<8x1xf32>
      %385 = vector.broadcast %384 : vector<8x1xf32> to vector<8x8xf32>
      %386 = arith.subf %382, %385 : vector<8x8xf32>
      %387 = math.exp %386 : vector<8x8xf32>
      %cst_129 = arith.constant dense<0.000000e+00> : vector<8xf32>
      %388 = vector.multi_reduction <add>, %387, %cst_129 [1] : vector<8x8xf32> to vector<8xf32>
      %389 = vector.shape_cast %388 : vector<8xf32> to vector<8x1xf32>
      %390 = tpu.reciprocal %389 {approx = true} : vector<8x1xf32> -> vector<8x1xf32>
      %391 = vector.broadcast %390 : vector<8x1xf32> to vector<8x8xf32>
      %392 = arith.mulf %387, %391 : vector<8x8xf32>
      %393 = arith.truncf %392 : vector<8x8xf32> to vector<8x8xbf16>
      %cst_130 = arith.constant dense<0.000000e+00> : vector<8x16xf32>
      %394 = tpu.matmul %393, %380, %cst_130 {dimension_numbers = #tpu.dot_dimension_numbers<[1], [0], [0], [1], [0, 0, 1, 1], [], []>} : vector<8x8xbf16>, vector<8x16xbf16>, vector<8x16xf32> -> vector<8x16xf32>
      %395 = arith.truncf %394 : vector<8x16xf32> to vector<8x16xbf16>
      %396 = vector.extract_strided_slice %357 {offsets = [0, 32], sizes = [8, 16], strides = [1, 1]} : vector<8x64xbf16> to vector<8x16xbf16>
      %397 = vector.extract_strided_slice %358 {offsets = [0, 32], sizes = [8, 16], strides = [1, 1]} : vector<8x64xbf16> to vector<8x16xbf16>
      %398 = vector.extract_strided_slice %359 {offsets = [0, 32], sizes = [8, 16], strides = [1, 1]} : vector<8x64xbf16> to vector<8x16xbf16>
      %cst_131 = arith.constant dense<0.000000e+00> : vector<8x8xf32>
      %399 = tpu.matmul %396, %397, %cst_131 {dimension_numbers = #tpu.dot_dimension_numbers<[1], [1], [0], [0], [0, 0, 1, 0], [], []>} : vector<8x16xbf16>, vector<8x16xbf16>, vector<8x8xf32> -> vector<8x8xf32>
      %400 = arith.addf %399, %353 : vector<8x8xf32>
      %cst_132 = arith.constant dense<0xFF800000> : vector<8xf32>
      %401 = vector.multi_reduction <maximumf>, %400, %cst_132 [1] : vector<8x8xf32> to vector<8xf32>
      %402 = vector.shape_cast %401 : vector<8xf32> to vector<8x1xf32>
      %403 = vector.broadcast %402 : vector<8x1xf32> to vector<8x8xf32>
      %404 = arith.subf %400, %403 : vector<8x8xf32>
      %405 = math.exp %404 : vector<8x8xf32>
      %cst_133 = arith.constant dense<0.000000e+00> : vector<8xf32>
      %406 = vector.multi_reduction <add>, %405, %cst_133 [1] : vector<8x8xf32> to vector<8xf32>
      %407 = vector.shape_cast %406 : vector<8xf32> to vector<8x1xf32>
      %408 = tpu.reciprocal %407 {approx = true} : vector<8x1xf32> -> vector<8x1xf32>
      %409 = vector.broadcast %408 : vector<8x1xf32> to vector<8x8xf32>
      %410 = arith.mulf %405, %409 : vector<8x8xf32>
      %411 = arith.truncf %410 : vector<8x8xf32> to vector<8x8xbf16>
      %cst_134 = arith.constant dense<0.000000e+00> : vector<8x16xf32>
      %412 = tpu.matmul %411, %398, %cst_134 {dimension_numbers = #tpu.dot_dimension_numbers<[1], [0], [0], [1], [0, 0, 1, 1], [], []>} : vector<8x8xbf16>, vector<8x16xbf16>, vector<8x16xf32> -> vector<8x16xf32>
      %413 = arith.truncf %412 : vector<8x16xf32> to vector<8x16xbf16>
      %414 = vector.extract_strided_slice %357 {offsets = [0, 48], sizes = [8, 16], strides = [1, 1]} : vector<8x64xbf16> to vector<8x16xbf16>
      %415 = vector.extract_strided_slice %358 {offsets = [0, 48], sizes = [8, 16], strides = [1, 1]} : vector<8x64xbf16> to vector<8x16xbf16>
      %416 = vector.extract_strided_slice %359 {offsets = [0, 48], sizes = [8, 16], strides = [1, 1]} : vector<8x64xbf16> to vector<8x16xbf16>
      %cst_135 = arith.constant dense<0.000000e+00> : vector<8x8xf32>
      %417 = tpu.matmul %414, %415, %cst_135 {dimension_numbers = #tpu.dot_dimension_numbers<[1], [1], [0], [0], [0, 0, 1, 0], [], []>} : vector<8x16xbf16>, vector<8x16xbf16>, vector<8x8xf32> -> vector<8x8xf32>
      %418 = arith.addf %417, %353 : vector<8x8xf32>
      %cst_136 = arith.constant dense<0xFF800000> : vector<8xf32>
      %419 = vector.multi_reduction <maximumf>, %418, %cst_136 [1] : vector<8x8xf32> to vector<8xf32>
      %420 = vector.shape_cast %419 : vector<8xf32> to vector<8x1xf32>
      %421 = vector.broadcast %420 : vector<8x1xf32> to vector<8x8xf32>
      %422 = arith.subf %418, %421 : vector<8x8xf32>
      %423 = math.exp %422 : vector<8x8xf32>
      %cst_137 = arith.constant dense<0.000000e+00> : vector<8xf32>
      %424 = vector.multi_reduction <add>, %423, %cst_137 [1] : vector<8x8xf32> to vector<8xf32>
      %425 = vector.shape_cast %424 : vector<8xf32> to vector<8x1xf32>
      %426 = tpu.reciprocal %425 {approx = true} : vector<8x1xf32> -> vector<8x1xf32>
      %427 = vector.broadcast %426 : vector<8x1xf32> to vector<8x8xf32>
      %428 = arith.mulf %423, %427 : vector<8x8xf32>
      %429 = arith.truncf %428 : vector<8x8xf32> to vector<8x8xbf16>
      %cst_138 = arith.constant dense<0.000000e+00> : vector<8x16xf32>
      %430 = tpu.matmul %429, %416, %cst_138 {dimension_numbers = #tpu.dot_dimension_numbers<[1], [0], [0], [1], [0, 0, 1, 1], [], []>} : vector<8x8xbf16>, vector<8x16xbf16>, vector<8x16xf32> -> vector<8x16xf32>
      %431 = arith.truncf %430 : vector<8x16xf32> to vector<8x16xbf16>
      %432 = tpu.concatenate %377, %395, %413, %431 in 1 : vector<8x16xbf16>, vector<8x16xbf16>, vector<8x16xbf16>, vector<8x16xbf16> -> vector<8x64xbf16>
      %433 = tpu.concatenate %344, %432 in 0 : vector<8x64xbf16>, vector<8x64xbf16> -> vector<16x64xbf16>
      %c0_139 = arith.constant 0 : index
      %c0_140 = arith.constant 0 : index
      %434 = vector.load %arg17[%c0_139, %c0_140] : memref<64x64xbf16, #tpu.memory_space<vmem>>, vector<64x64xbf16>
      %cst_141 = arith.constant dense<0.000000e+00> : vector<16x64xf32>
      %435 = tpu.matmul %433, %434, %cst_141 {dimension_numbers = #tpu.dot_dimension_numbers<[1], [0], [0], [1], [0, 0, 1, 1], [], []>} : vector<16x64xbf16>, vector<64x64xbf16>, vector<16x64xf32> -> vector<16x64xf32>
      %436 = vector.broadcast %40 : vector<1x64xf32> to vector<16x64xf32>
      %437 = arith.addf %435, %436 : vector<16x64xf32>
      %438 = arith.addf %437, %248 : vector<16x64xf32>
      %cst_142 = arith.constant dense<0.000000e+00> : vector<16xf32>
      %439 = vector.multi_reduction <add>, %438, %cst_142 [1] : vector<16x64xf32> to vector<16xf32>
      %440 = vector.shape_cast %439 : vector<16xf32> to vector<16x1xf32>
      %cst_143 = arith.constant 6.400000e+01 : f32
      %441 = vector.broadcast %cst_143 : f32 to vector<16x1xf32>
      %442 = arith.divf %440, %441 : vector<16x1xf32>
      %443 = vector.broadcast %442 : vector<16x1xf32> to vector<16x64xf32>
      %444 = arith.subf %438, %443 : vector<16x64xf32>
      %445 = arith.mulf %444, %444 : vector<16x64xf32>
      %cst_144 = arith.constant dense<0.000000e+00> : vector<16xf32>
      %446 = vector.multi_reduction <add>, %445, %cst_144 [1] : vector<16x64xf32> to vector<16xf32>
      %447 = vector.shape_cast %446 : vector<16xf32> to vector<16x1xf32>
      %cst_145 = arith.constant 6.400000e+01 : f32
      %448 = vector.broadcast %cst_145 : f32 to vector<16x1xf32>
      %449 = arith.divf %447, %448 : vector<16x1xf32>
      %450 = vector.broadcast %442 : vector<16x1xf32> to vector<16x64xf32>
      %451 = arith.subf %438, %450 : vector<16x64xf32>
      %cst_146 = arith.constant 9.99999996E-13 : f32
      %452 = vector.broadcast %cst_146 : f32 to vector<16x1xf32>
      %453 = arith.addf %449, %452 : vector<16x1xf32>
      %454 = math.rsqrt %453 : vector<16x1xf32>
      %455 = vector.broadcast %454 : vector<16x1xf32> to vector<16x64xf32>
      %456 = arith.mulf %451, %455 : vector<16x64xf32>
      %457 = vector.broadcast %41 : vector<1x64xf32> to vector<16x64xf32>
      %458 = arith.mulf %456, %457 : vector<16x64xf32>
      %459 = vector.broadcast %42 : vector<1x64xf32> to vector<16x64xf32>
      %460 = arith.addf %458, %459 : vector<16x64xf32>
      %c0_147 = arith.constant 0 : index
      %c0_148 = arith.constant 0 : index
      %461 = vector.load %arg28[%c0_147, %c0_148] : memref<16x64xf32, #tpu.memory_space<vmem>>, vector<16x64xf32>
      tpu.vector_store %arg28[%c0_147, %c0_148], %460 {strides = array<i32>} : memref<16x64xf32, #tpu.memory_space<vmem>>, vector<16x64xf32>,
      %462 = arith.truncf %460 : vector<16x64xf32> to vector<16x64xbf16>
      %c0_149 = arith.constant 0 : index
      %c0_150 = arith.constant 0 : index
      %463 = vector.load %arg29[%c0_149, %c0_150] : memref<16x64xbf16, #tpu.memory_space<vmem>>, vector<16x64xbf16>
      tpu.vector_store %arg29[%c0_149, %c0_150], %462 {strides = array<i32>} : memref<16x64xbf16, #tpu.memory_space<vmem>>, vector<16x64xbf16>,
      %cst_151 = arith.constant 0.000000e+00 : f32
      %464 = vector.broadcast %cst_151 : f32 to vector<16x64xf32>
      %c0_152 = arith.constant 0 : index
      %c0_153 = arith.constant 0 : index
      %465 = vector.load %arg30[%c0_152, %c0_153] : memref<16x64xf32, #tpu.memory_space<vmem>>, vector<16x64xf32>
      tpu.vector_store %arg30[%c0_152, %c0_153], %464 {strides = array<i32>} : memref<16x64xf32, #tpu.memory_space<vmem>>, vector<16x64xf32>,
    } else {
    }
    %c0 = arith.constant 0 : index
    %c0_1 = arith.constant 0 : index
    %3 = vector.load %arg29[%c0, %c0_1] : memref<16x64xbf16, #tpu.memory_space<vmem>>, vector<16x64xbf16>
    %c0_2 = arith.constant 0 : index
    %c0_3 = arith.constant 0 : index
    %4 = vector.load %arg21[%c0_2, %c0_3] : memref<64x128xbf16, #tpu.memory_space<vmem>>, vector<64x128xbf16>
    %cst = arith.constant dense<0.000000e+00> : vector<16x128xf32>
    %5 = tpu.matmul %3, %4, %cst {dimension_numbers = #tpu.dot_dimension_numbers<[1], [0], [0], [1], [0, 0, 1, 1], [], []>} : vector<16x64xbf16>, vector<64x128xbf16>, vector<16x128xf32> -> vector<16x128xf32>
    %c0_4 = arith.constant 0 : index
    %c0_5 = arith.constant 0 : index
    %6 = vector.load %arg22[%c0_4, %c0_5] : memref<1x128xf32, #tpu.memory_space<vmem>>, vector<1x128xf32>
    %7 = vector.broadcast %6 : vector<1x128xf32> to vector<16x128xf32>
    %8 = arith.addf %5, %7 : vector<16x128xf32>
    %cst_6 = arith.constant 5.000000e-01 : f32
    %9 = vector.broadcast %cst_6 : f32 to vector<16x128xf32>
    %10 = arith.mulf %9, %8 : vector<16x128xf32>
    %11 = arith.mulf %8, %8 : vector<16x128xf32>
    %12 = arith.mulf %11, %8 : vector<16x128xf32>
    %cst_7 = arith.constant 4.471500e-02 : f32
    %13 = vector.broadcast %cst_7 : f32 to vector<16x128xf32>
    %14 = arith.mulf %13, %12 : vector<16x128xf32>
    %15 = arith.addf %8, %14 : vector<16x128xf32>
    %cst_8 = arith.constant 0.797884583 : f32
    %16 = vector.broadcast %cst_8 : f32 to vector<16x128xf32>
    %17 = arith.mulf %16, %15 : vector<16x128xf32>
    %18 = math.tanh %17 : vector<16x128xf32>
    %cst_9 = arith.constant 1.000000e+00 : f32
    %19 = vector.broadcast %cst_9 : f32 to vector<16x128xf32>
    %20 = arith.addf %19, %18 : vector<16x128xf32>
    %21 = arith.mulf %10, %20 : vector<16x128xf32>
    %c0_10 = arith.constant 0 : index
    %c0_11 = arith.constant 0 : index
    %22 = vector.load %arg30[%c0_10, %c0_11] : memref<16x64xf32, #tpu.memory_space<vmem>>, vector<16x64xf32>
    %23 = arith.truncf %21 : vector<16x128xf32> to vector<16x128xbf16>
    %c0_12 = arith.constant 0 : index
    %c0_13 = arith.constant 0 : index
    %24 = vector.load %arg23[%c0_12, %c0_13] : memref<128x64xbf16, #tpu.memory_space<vmem>>, vector<128x64xbf16>
    %cst_14 = arith.constant dense<0.000000e+00> : vector<16x64xf32>
    %25 = tpu.matmul %23, %24, %cst_14 {dimension_numbers = #tpu.dot_dimension_numbers<[1], [0], [0], [1], [0, 0, 1, 1], [], []>} : vector<16x128xbf16>, vector<128x64xbf16>, vector<16x64xf32> -> vector<16x64xf32>
    %26 = arith.addf %22, %25 : vector<16x64xf32>
    %c0_15 = arith.constant 0 : index
    %c0_16 = arith.constant 0 : index
    %27 = vector.load %arg30[%c0_15, %c0_16] : memref<16x64xf32, #tpu.memory_space<vmem>>, vector<16x64xf32>
    tpu.vector_store %arg30[%c0_15, %c0_16], %26 {strides = array<i32>} : memref<16x64xf32, #tpu.memory_space<vmem>>, vector<16x64xf32>,
    %c0_i32_17 = arith.constant 0 : i32
    %28 = arith.cmpi eq, %arg1, %c0_i32_17 : i32
    %29 = arith.extui %28 : i1 to i32
    %c0_i32_18 = arith.constant 0 : i32
    %30 = arith.cmpi ne, %29, %c0_i32_18 : i32
    scf.if %30 {
      %c0_19 = arith.constant 0 : index
      %c0_20 = arith.constant 0 : index
      %31 = vector.load %arg30[%c0_19, %c0_20] : memref<16x64xf32, #tpu.memory_space<vmem>>, vector<16x64xf32>
      %c0_21 = arith.constant 0 : index
      %c0_22 = arith.constant 0 : index
      %32 = vector.load %arg24[%c0_21, %c0_22] : memref<1x64xf32, #tpu.memory_space<vmem>>, vector<1x64xf32>
      %33 = vector.broadcast %32 : vector<1x64xf32> to vector<16x64xf32>
      %34 = arith.addf %31, %33 : vector<16x64xf32>
      %c0_23 = arith.constant 0 : index
      %c0_24 = arith.constant 0 : index
      %35 = vector.load %arg28[%c0_23, %c0_24] : memref<16x64xf32, #tpu.memory_space<vmem>>, vector<16x64xf32>
      %36 = arith.addf %34, %35 : vector<16x64xf32>
      %c0_25 = arith.constant 0 : index
      %c0_26 = arith.constant 0 : index
      %37 = vector.load %arg25[%c0_25, %c0_26] : memref<1x64xf32, #tpu.memory_space<vmem>>, vector<1x64xf32>
      %c0_27 = arith.constant 0 : index
      %c0_28 = arith.constant 0 : index
      %38 = vector.load %arg26[%c0_27, %c0_28] : memref<1x64xf32, #tpu.memory_space<vmem>>, vector<1x64xf32>
      %cst_29 = arith.constant dense<0.000000e+00> : vector<16xf32>
      %39 = vector.multi_reduction <add>, %36, %cst_29 [1] : vector<16x64xf32> to vector<16xf32>
      %40 = vector.shape_cast %39 : vector<16xf32> to vector<16x1xf32>
      %cst_30 = arith.constant 6.400000e+01 : f32
      %41 = vector.broadcast %cst_30 : f32 to vector<16x1xf32>
      %42 = arith.divf %40, %41 : vector<16x1xf32>
      %43 = vector.broadcast %42 : vector<16x1xf32> to vector<16x64xf32>
      %44 = arith.subf %36, %43 : vector<16x64xf32>
      %45 = arith.mulf %44, %44 : vector<16x64xf32>
      %cst_31 = arith.constant dense<0.000000e+00> : vector<16xf32>
      %46 = vector.multi_reduction <add>, %45, %cst_31 [1] : vector<16x64xf32> to vector<16xf32>
      %47 = vector.shape_cast %46 : vector<16xf32> to vector<16x1xf32>
      %cst_32 = arith.constant 6.400000e+01 : f32
      %48 = vector.broadcast %cst_32 : f32 to vector<16x1xf32>
      %49 = arith.divf %47, %48 : vector<16x1xf32>
      %50 = vector.broadcast %42 : vector<16x1xf32> to vector<16x64xf32>
      %51 = arith.subf %36, %50 : vector<16x64xf32>
      %cst_33 = arith.constant 9.99999996E-13 : f32
      %52 = vector.broadcast %cst_33 : f32 to vector<16x1xf32>
      %53 = arith.addf %49, %52 : vector<16x1xf32>
      %54 = math.rsqrt %53 : vector<16x1xf32>
      %55 = vector.broadcast %54 : vector<16x1xf32> to vector<16x64xf32>
      %56 = arith.mulf %51, %55 : vector<16x64xf32>
      %57 = vector.broadcast %37 : vector<1x64xf32> to vector<16x64xf32>
      %58 = arith.mulf %56, %57 : vector<16x64xf32>
      %59 = vector.broadcast %38 : vector<1x64xf32> to vector<16x64xf32>
      %60 = arith.addf %58, %59 : vector<16x64xf32>
      %c0_34 = arith.constant 0 : index
      %c0_35 = arith.constant 0 : index
      %61 = vector.load %arg27[%c0_34, %c0_35] : memref<16x64xf32, #tpu.memory_space<vmem>>, vector<16x64xf32>
      tpu.vector_store %arg27[%c0_34, %c0_35], %60 {strides = array<i32>} : memref<16x64xf32, #tpu.memory_space<vmem>>, vector<16x64xf32>,
    } else {
    }
    return
  }
  func.func @transform_0(%arg0: i32, %arg1: i32) -> (i32, i32) {
    %c0_i32 = arith.constant 0 : i32
    %c0_i32_0 = arith.constant 0 : i32
    return %arg0, %c0_i32 : i32, i32
  }
  func.func @transform_1(%arg0: i32, %arg1: i32) -> (i32, i32) {
    %c0_i32 = arith.constant 0 : i32
    %c0_i32_0 = arith.constant 0 : i32
    return %arg0, %c0_i32 : i32, i32
  }
  func.func @transform_2(%arg0: i32, %arg1: i32) -> (i32, i32, i32) {
    %c0_i32 = arith.constant 0 : i32
    %c0_i32_0 = arith.constant 0 : i32
    %c0_i32_1 = arith.constant 0 : i32
    return %arg0, %c0_i32, %c0_i32_0 : i32, i32, i32
  }
  func.func @transform_3(%arg0: i32, %arg1: i32) -> (i32, i32, i32) {
    %c0_i32 = arith.constant 0 : i32
    %c0_i32_0 = arith.constant 0 : i32
    %c0_i32_1 = arith.constant 0 : i32
    return %arg0, %c0_i32, %c0_i32_0 : i32, i32, i32
  }
  func.func @transform_4(%arg0: i32, %arg1: i32) -> (i32, i32, i32) {
    %c0_i32 = arith.constant 0 : i32
    %c0_i32_0 = arith.constant 0 : i32
    %c0_i32_1 = arith.constant 0 : i32
    return %arg0, %c0_i32, %c0_i32_0 : i32, i32, i32
  }
  func.func @transform_5(%arg0: i32, %arg1: i32) -> (i32, i32) {
    %c0_i32 = arith.constant 0 : i32
    %c0_i32_0 = arith.constant 0 : i32
    %c0_i32_1 = arith.constant 0 : i32
    return %c0_i32, %c0_i32_0 : i32, i32
  }
  func.func @transform_6(%arg0: i32, %arg1: i32) -> (i32, i32) {
    %c0_i32 = arith.constant 0 : i32
    %c0_i32_0 = arith.constant 0 : i32
    %c0_i32_1 = arith.constant 0 : i32
    return %c0_i32, %c0_i32_0 : i32, i32
  }
  func.func @transform_7(%arg0: i32, %arg1: i32) -> (i32, i32) {
    %c0_i32 = arith.constant 0 : i32
    %c0_i32_0 = arith.constant 0 : i32
    %c0_i32_1 = arith.constant 0 : i32
    return %c0_i32, %c0_i32_0 : i32, i32
  }
  func.func @transform_8(%arg0: i32, %arg1: i32) -> (i32, i32) {
    %c0_i32 = arith.constant 0 : i32
    %c0_i32_0 = arith.constant 0 : i32
    %c0_i32_1 = arith.constant 0 : i32
    return %c0_i32, %c0_i32_0 : i32, i32
  }
  func.func @transform_9(%arg0: i32, %arg1: i32) -> (i32, i32) {
    %c0_i32 = arith.constant 0 : i32
    %c0_i32_0 = arith.constant 0 : i32
    %c0_i32_1 = arith.constant 0 : i32
    return %c0_i32, %c0_i32_0 : i32, i32
  }
  func.func @transform_10(%arg0: i32, %arg1: i32) -> (i32, i32) {
    %c0_i32 = arith.constant 0 : i32
    %c0_i32_0 = arith.constant 0 : i32
    %c0_i32_1 = arith.constant 0 : i32
    return %c0_i32, %c0_i32_0 : i32, i32
  }
  func.func @transform_11(%arg0: i32, %arg1: i32) -> (i32, i32) {
    %c0_i32 = arith.constant 0 : i32
    %c0_i32_0 = arith.constant 0 : i32
    %c0_i32_1 = arith.constant 0 : i32
    return %c0_i32, %c0_i32_0 : i32, i32
  }
  func.func @transform_12(%arg0: i32, %arg1: i32) -> (i32, i32) {
    %c0_i32 = arith.constant 0 : i32
    %c0_i32_0 = arith.constant 0 : i32
    %c0_i32_1 = arith.constant 0 : i32
    return %c0_i32, %c0_i32_0 : i32, i32
  }
  func.func @transform_13(%arg0: i32, %arg1: i32) -> (i32, i32) {
    %c0_i32 = arith.constant 0 : i32
    %c0_i32_0 = arith.constant 0 : i32
    %c0_i32_1 = arith.constant 0 : i32
    return %c0_i32, %c0_i32_0 : i32, i32
  }
  func.func @transform_14(%arg0: i32, %arg1: i32) -> (i32, i32) {
    %c0_i32 = arith.constant 0 : i32
    %c0_i32_0 = arith.constant 0 : i32
    %c0_i32_1 = arith.constant 0 : i32
    return %c0_i32, %c0_i32_0 : i32, i32
  }
  func.func @transform_15(%arg0: i32, %arg1: i32) -> (i32, i32) {
    %c0_i32 = arith.constant 0 : i32
    %c0_i32_0 = arith.constant 0 : i32
    %c0_i32_1 = arith.constant 0 : i32
    return %c0_i32, %c0_i32_0 : i32, i32
  }
  func.func @transform_16(%arg0: i32, %arg1: i32) -> (i32, i32) {
    %c0_i32 = arith.constant 0 : i32
    %c0_i32_0 = arith.constant 0 : i32
    %c0_i32_1 = arith.constant 0 : i32
    return %c0_i32, %c0_i32_0 : i32, i32
  }
  func.func @transform_17(%arg0: i32, %arg1: i32) -> (i32, i32) {
    %c0_i32 = arith.constant 0 : i32
    %c0_i32_0 = arith.constant 0 : i32
    %c0_i32_1 = arith.constant 0 : i32
    return %c0_i32, %c0_i32_0 : i32, i32
  }
  func.func @transform_18(%arg0: i32, %arg1: i32) -> (i32, i32) {
    %c0_i32 = arith.constant 0 : i32
    %c0_i32_0 = arith.constant 0 : i32
    %c0_i32_1 = arith.constant 0 : i32
    return %c0_i32, %c0_i32_0 : i32, i32
  }
  func.func @transform_19(%arg0: i32, %arg1: i32) -> (i32, i32) {
    %c0_i32 = arith.constant 0 : i32
    %c0_i32_0 = arith.constant 0 : i32
    return %c0_i32, %arg1 : i32, i32
  }
  func.func @transform_20(%arg0: i32, %arg1: i32) -> (i32, i32) {
    %c0_i32 = arith.constant 0 : i32
    %c0_i32_0 = arith.constant 0 : i32
    return %c0_i32, %arg1 : i32, i32
  }
  func.func @transform_21(%arg0: i32, %arg1: i32) -> (i32, i32) {
    %c0_i32 = arith.constant 0 : i32
    %c0_i32_0 = arith.constant 0 : i32
    return %arg1, %c0_i32 : i32, i32
  }
  func.func @transform_22(%arg0: i32, %arg1: i32) -> (i32, i32) {
    %c0_i32 = arith.constant 0 : i32
    %c0_i32_0 = arith.constant 0 : i32
    %c0_i32_1 = arith.constant 0 : i32
    return %c0_i32, %c0_i32_0 : i32, i32
  }
  func.func @transform_23(%arg0: i32, %arg1: i32) -> (i32, i32) {
    %c0_i32 = arith.constant 0 : i32
    %c0_i32_0 = arith.constant 0 : i32
    %c0_i32_1 = arith.constant 0 : i32
    return %c0_i32, %c0_i32_0 : i32, i32
  }
  func.func @transform_24(%arg0: i32, %arg1: i32) -> (i32, i32) {
    %c0_i32 = arith.constant 0 : i32
    %c0_i32_0 = arith.constant 0 : i32
    %c0_i32_1 = arith.constant 0 : i32
    return %c0_i32, %c0_i32_0 : i32, i32
  }
  func.func @transform_25(%arg0: i32, %arg1: i32) -> (i32, i32) {
    %c0_i32 = arith.constant 0 : i32
    %c0_i32_0 = arith.constant 0 : i32
    return %arg0, %c0_i32 : i32, i32
  }
}

module attributes {stable_mosaic.version = 11 : i64} {
  func.func @_graph_lxrtx_kernel(%arg0: i32, %arg1: i32, %arg2: memref<16x64xf32, #tpu.memory_space<vmem>>, %arg3: memref<16x96xbf16, #tpu.memory_space<vmem>>, %arg4: memref<2x1x8xbf16, #tpu.memory_space<vmem>>, %arg5: memref<2x1x8xbf16, #tpu.memory_space<vmem>>, %arg6: memref<2x8x8xbf16, #tpu.memory_space<vmem>>, %arg7: memref<64x64xbf16, #tpu.memory_space<vmem>>, %arg8: memref<1x64xf32, #tpu.memory_space<vmem>>, %arg9: memref<96x128xbf16, #tpu.memory_space<vmem>>, %arg10: memref<1x128xf32, #tpu.memory_space<vmem>>, %arg11: memref<64x64xbf16, #tpu.memory_space<vmem>>, %arg12: memref<1x64xf32, #tpu.memory_space<vmem>>, %arg13: memref<1x64xf32, #tpu.memory_space<vmem>>, %arg14: memref<1x64xf32, #tpu.memory_space<vmem>>, %arg15: memref<64x192xbf16, #tpu.memory_space<vmem>>, %arg16: memref<1x192xf32, #tpu.memory_space<vmem>>, %arg17: memref<64x64xbf16, #tpu.memory_space<vmem>>, %arg18: memref<1x64xf32, #tpu.memory_space<vmem>>, %arg19: memref<1x64xf32, #tpu.memory_space<vmem>>, %arg20: memref<1x64xf32, #tpu.memory_space<vmem>>, %arg21: memref<64x128xbf16, #tpu.memory_space<vmem>>, %arg22: memref<1x128xf32, #tpu.memory_space<vmem>>, %arg23: memref<128x64xbf16, #tpu.memory_space<vmem>>, %arg24: memref<1x64xf32, #tpu.memory_space<vmem>>, %arg25: memref<1x64xf32, #tpu.memory_space<vmem>>, %arg26: memref<1x64xf32, #tpu.memory_space<vmem>>, %arg27: memref<16x64xf32, #tpu.memory_space<vmem>>, %arg28: memref<16x64xf32, #tpu.memory_space<vmem>>, %arg29: memref<16x64xbf16, #tpu.memory_space<vmem>>, %arg30: memref<16x64xf32, #tpu.memory_space<vmem>>) attributes {dimension_semantics = [#tpu.dimension_semantics<parallel>, #tpu.dimension_semantics<arbitrary>], iteration_bounds = array<i64: 2, 1>, scalar_prefetch = 0 : i64, scratch_operands = 3 : i64, tpu.core_type = #tpu.core_type<tc>, window_params = [{transform_indices = @transform_0, window_bounds = array<i64: 16, 64>}, {transform_indices = @transform_1, window_bounds = array<i64: 16, 96>}, {transform_indices = @transform_2, window_bounds = array<i64: 2, 1, 8>}, {transform_indices = @transform_3, window_bounds = array<i64: 2, 1, 8>}, {transform_indices = @transform_4, window_bounds = array<i64: 2, 8, 8>}, {pipeline_mode = #tpu.pipeline_mode<synchronous>, transform_indices = @transform_5, window_bounds = array<i64: 64, 64>}, {pipeline_mode = #tpu.pipeline_mode<synchronous>, transform_indices = @transform_6, window_bounds = array<i64: 1, 64>}, {pipeline_mode = #tpu.pipeline_mode<synchronous>, transform_indices = @transform_7, window_bounds = array<i64: 96, 128>}, {pipeline_mode = #tpu.pipeline_mode<synchronous>, transform_indices = @transform_8, window_bounds = array<i64: 1, 128>}, {pipeline_mode = #tpu.pipeline_mode<synchronous>, transform_indices = @transform_9, window_bounds = array<i64: 64, 64>}, {pipeline_mode = #tpu.pipeline_mode<synchronous>, transform_indices = @transform_10, window_bounds = array<i64: 1, 64>}, {pipeline_mode = #tpu.pipeline_mode<synchronous>, transform_indices = @transform_11, window_bounds = array<i64: 1, 64>}, {pipeline_mode = #tpu.pipeline_mode<synchronous>, transform_indices = @transform_12, window_bounds = array<i64: 1, 64>}, {pipeline_mode = #tpu.pipeline_mode<synchronous>, transform_indices = @transform_13, window_bounds = array<i64: 64, 192>}, {pipeline_mode = #tpu.pipeline_mode<synchronous>, transform_indices = @transform_14, window_bounds = array<i64: 1, 192>}, {pipeline_mode = #tpu.pipeline_mode<synchronous>, transform_indices = @transform_15, window_bounds = array<i64: 64, 64>}, {pipeline_mode = #tpu.pipeline_mode<synchronous>, transform_indices = @transform_16, window_bounds = array<i64: 1, 64>}, {pipeline_mode = #tpu.pipeline_mode<synchronous>, transform_indices = @transform_17, window_bounds = array<i64: 1, 64>}, {pipeline_mode = #tpu.pipeline_mode<synchronous>, transform_indices = @transform_18, window_bounds = array<i64: 1, 64>}, {transform_indices = @transform_19, window_bounds = array<i64: 64, 128>}, {transform_indices = @transform_20, window_bounds = array<i64: 1, 128>}, {transform_indices = @transform_21, window_bounds = array<i64: 128, 64>}, {pipeline_mode = #tpu.pipeline_mode<synchronous>, transform_indices = @transform_22, window_bounds = array<i64: 1, 64>}, {pipeline_mode = #tpu.pipeline_mode<synchronous>, transform_indices = @transform_23, window_bounds = array<i64: 1, 64>}, {pipeline_mode = #tpu.pipeline_mode<synchronous>, transform_indices = @transform_24, window_bounds = array<i64: 1, 64>}, {transform_indices = @transform_25, window_bounds = array<i64: 16, 64>}]} {
    %c0_i32 = arith.constant 0 : i32
    %0 = arith.cmpi eq, %arg1, %c0_i32 : i32
    %1 = arith.extui %0 : i1 to i32
    %c0_i32_0 = arith.constant 0 : i32
    %2 = arith.cmpi ne, %1, %c0_i32_0 : i32
    scf.if %2 {
      %c0_19 = arith.constant 0 : index
      %c0_20 = arith.constant 0 : index
      %31 = vector.load %arg2[%c0_19, %c0_20] : memref<16x64xf32, #tpu.memory_space<vmem>>, vector<16x64xf32>
      %c0_21 = arith.constant 0 : index
      %c0_22 = arith.constant 0 : index
      %32 = vector.load %arg3[%c0_21, %c0_22] : memref<16x96xbf16, #tpu.memory_space<vmem>>, vector<16x96xbf16>
      %33 = arith.truncf %31 : vector<16x64xf32> to vector<16x64xbf16>
      %c0_23 = arith.constant 0 : index
      %c0_24 = arith.constant 0 : index
      %34 = vector.load %arg8[%c0_23, %c0_24] : memref<1x64xf32, #tpu.memory_space<vmem>>, vector<1x64xf32>
      %c0_25 = arith.constant 0 : index
      %c0_26 = arith.constant 0 : index
      %35 = vector.load %arg10[%c0_25, %c0_26] : memref<1x128xf32, #tpu.memory_space<vmem>>, vector<1x128xf32>
      %c0_27 = arith.constant 0 : index
      %c0_28 = arith.constant 0 : index
      %36 = vector.load %arg12[%c0_27, %c0_28] : memref<1x64xf32, #tpu.memory_space<vmem>>, vector<1x64xf32>
      %c0_29 = arith.constant 0 : index
      %c0_30 = arith.constant 0 : index
      %37 = vector.load %arg13[%c0_29, %c0_30] : memref<1x64xf32, #tpu.memory_space<vmem>>, vector<1x64xf32>
      %c0_31 = arith.constant 0 : index
      %c0_32 = arith.constant 0 : index
      %38 = vector.load %arg14[%c0_31, %c0_32] : memref<1x64xf32, #tpu.memory_space<vmem>>, vector<1x64xf32>
      %c0_33 = arith.constant 0 : index
      %c0_34 = arith.constant 0 : index
      %39 = vector.load %arg16[%c0_33, %c0_34] : memref<1x192xf32, #tpu.memory_space<vmem>>, vector<1x192xf32>
      %c0_35 = arith.constant 0 : index
      %c0_36 = arith.constant 0 : index
      %40 = vector.load %arg18[%c0_35, %c0_36] : memref<1x64xf32, #tpu.memory_space<vmem>>, vector<1x64xf32>
      %c0_37 = arith.constant 0 : index
      %c0_38 = arith.constant 0 : index
      %41 = vector.load %arg19[%c0_37, %c0_38] : memref<1x64xf32, #tpu.memory_space<vmem>>, vector<1x64xf32>
      %c0_39 = arith.constant 0 : index
      %c0_40 = arith.constant 0 : index
      %42 = vector.load %arg20[%c0_39, %c0_40] : memref<1x64xf32, #tpu.memory_space<vmem>>, vector<1x64xf32>
      %c0_41 = arith.constant 0 : index
      %c0_42 = arith.constant 0 : index
      %43 = vector.load %arg7[%c0_41, %c0_42] : memref<64x64xbf16, #tpu.memory_space<vmem>>, vector<64x64xbf16>
      %cst_43 = arith.constant dense<0.000000e+00> : vector<16x64xf32>
      %44 = tpu.matmul %33, %43, %cst_43 {dimension_numbers = #tpu.dot_dimension_numbers<[1], [0], [0], [1], [0, 0, 1, 1], [], []>} : vector<16x64xbf16>, vector<64x64xbf16>, vector<16x64xf32> -> vector<16x64xf32>
      %45 = vector.broadcast %34 : vector<1x64xf32> to vector<16x64xf32>
      %46 = arith.addf %44, %45 : vector<16x64xf32>
      %c0_44 = arith.constant 0 : index
      %c0_45 = arith.constant 0 : index
      %47 = vector.load %arg9[%c0_44, %c0_45] : memref<96x128xbf16, #tpu.memory_space<vmem>>, vector<96x128xbf16>
      %cst_46 = arith.constant dense<0.000000e+00> : vector<16x128xf32>
      %48 = tpu.matmul %32, %47, %cst_46 {dimension_numbers = #tpu.dot_dimension_numbers<[1], [0], [0], [1], [0, 0, 1, 1], [], []>} : vector<16x96xbf16>, vector<96x128xbf16>, vector<16x128xf32> -> vector<16x128xf32>
      %49 = vector.broadcast %35 : vector<1x128xf32> to vector<16x128xf32>
      %50 = arith.addf %48, %49 : vector<16x128xf32>
      %51 = vector.extract_strided_slice %50 {offsets = [0, 0], sizes = [16, 64], strides = [1, 1]} : vector<16x128xf32> to vector<16x64xf32>
      %52 = vector.extract_strided_slice %50 {offsets = [0, 64], sizes = [16, 64], strides = [1, 1]} : vector<16x128xf32> to vector<16x64xf32>
      %c0_47 = arith.constant 0 : index
      %c0_48 = arith.constant 0 : index
      %c0_49 = arith.constant 0 : index
      %53 = vector.load %arg4[%c0_47, %c0_48, %c0_49] : memref<2x1x8xbf16, #tpu.memory_space<vmem>>, vector<1x1x8xbf16>
      %54 = vector.shape_cast %53 : vector<1x1x8xbf16> to vector<1x8xbf16>
      %55 = arith.extf %54 : vector<1x8xbf16> to vector<1x8xf32>
      %56 = vector.shape_cast %55 : vector<1x8xf32> to vector<1x8xf32>
      %57 = vector.broadcast %56 : vector<1x8xf32> to vector<8x8xf32>
      %58 = vector.extract_strided_slice %46 {offsets = [0, 0], sizes = [8, 64], strides = [1, 1]} : vector<16x64xf32> to vector<8x64xf32>
      %59 = vector.extract_strided_slice %51 {offsets = [0, 0], sizes = [8, 64], strides = [1, 1]} : vector<16x64xf32> to vector<8x64xf32>
      %60 = vector.extract_strided_slice %52 {offsets = [0, 0], sizes = [8, 64], strides = [1, 1]} : vector<16x64xf32> to vector<8x64xf32>
      %61 = arith.truncf %58 : vector<8x64xf32> to vector<8x64xbf16>
      %62 = arith.truncf %59 : vector<8x64xf32> to vector<8x64xbf16>
      %63 = arith.truncf %60 : vector<8x64xf32> to vector<8x64xbf16>
      %64 = vector.extract_strided_slice %61 {offsets = [0, 0], sizes = [8, 16], strides = [1, 1]} : vector<8x64xbf16> to vector<8x16xbf16>
      %65 = vector.extract_strided_slice %62 {offsets = [0, 0], sizes = [8, 16], strides = [1, 1]} : vector<8x64xbf16> to vector<8x16xbf16>
      %66 = vector.extract_strided_slice %63 {offsets = [0, 0], sizes = [8, 16], strides = [1, 1]} : vector<8x64xbf16> to vector<8x16xbf16>
      %cst_50 = arith.constant dense<0.000000e+00> : vector<8x8xf32>
      %67 = tpu.matmul %64, %65, %cst_50 {dimension_numbers = #tpu.dot_dimension_numbers<[1], [1], [0], [0], [0, 0, 1, 0], [], []>} : vector<8x16xbf16>, vector<8x16xbf16>, vector<8x8xf32> -> vector<8x8xf32>
      %68 = arith.addf %67, %57 : vector<8x8xf32>
      %cst_51 = arith.constant dense<0xFF800000> : vector<8xf32>
      %69 = vector.multi_reduction <maximumf>, %68, %cst_51 [1] : vector<8x8xf32> to vector<8xf32>
      %70 = vector.shape_cast %69 : vector<8xf32> to vector<8x1xf32>
      %71 = vector.broadcast %70 : vector<8x1xf32> to vector<8x8xf32>
      %72 = arith.subf %68, %71 : vector<8x8xf32>
      %73 = math.exp %72 : vector<8x8xf32>
      %cst_52 = arith.constant dense<0.000000e+00> : vector<8xf32>
      %74 = vector.multi_reduction <add>, %73, %cst_52 [1] : vector<8x8xf32> to vector<8xf32>
      %75 = vector.shape_cast %74 : vector<8xf32> to vector<8x1xf32>
      %76 = tpu.reciprocal %75 {approx = true} : vector<8x1xf32> -> vector<8x1xf32>
      %77 = vector.broadcast %76 : vector<8x1xf32> to vector<8x8xf32>
      %78 = arith.mulf %73, %77 : vector<8x8xf32>
      %79 = arith.truncf %78 : vector<8x8xf32> to vector<8x8xbf16>
      %cst_53 = arith.constant dense<0.000000e+00> : vector<8x16xf32>
      %80 = tpu.matmul %79, %66, %cst_53 {dimension_numbers = #tpu.dot_dimension_numbers<[1], [0], [0], [1], [0, 0, 1, 1], [], []>} : vector<8x8xbf16>, vector<8x16xbf16>, vector<8x16xf32> -> vector<8x16xf32>
      %81 = arith.truncf %80 : vector<8x16xf32> to vector<8x16xbf16>
      %82 = vector.extract_strided_slice %61 {offsets = [0, 16], sizes = [8, 16], strides = [1, 1]} : vector<8x64xbf16> to vector<8x16xbf16>
      %83 = vector.extract_strided_slice %62 {offsets = [0, 16], sizes = [8, 16], strides = [1, 1]} : vector<8x64xbf16> to vector<8x16xbf16>
      %84 = vector.extract_strided_slice %63 {offsets = [0, 16], sizes = [8, 16], strides = [1, 1]} : vector<8x64xbf16> to vector<8x16xbf16>
      %cst_54 = arith.constant dense<0.000000e+00> : vector<8x8xf32>
      %85 = tpu.matmul %82, %83, %cst_54 {dimension_numbers = #tpu.dot_dimension_numbers<[1], [1], [0], [0], [0, 0, 1, 0], [], []>} : vector<8x16xbf16>, vector<8x16xbf16>, vector<8x8xf32> -> vector<8x8xf32>
      %86 = arith.addf %85, %57 : vector<8x8xf32>
      %cst_55 = arith.constant dense<0xFF800000> : vector<8xf32>
      %87 = vector.multi_reduction <maximumf>, %86, %cst_55 [1] : vector<8x8xf32> to vector<8xf32>
      %88 = vector.shape_cast %87 : vector<8xf32> to vector<8x1xf32>
      %89 = vector.broadcast %88 : vector<8x1xf32> to vector<8x8xf32>
      %90 = arith.subf %86, %89 : vector<8x8xf32>
      %91 = math.exp %90 : vector<8x8xf32>
      %cst_56 = arith.constant dense<0.000000e+00> : vector<8xf32>
      %92 = vector.multi_reduction <add>, %91, %cst_56 [1] : vector<8x8xf32> to vector<8xf32>
      %93 = vector.shape_cast %92 : vector<8xf32> to vector<8x1xf32>
      %94 = tpu.reciprocal %93 {approx = true} : vector<8x1xf32> -> vector<8x1xf32>
      %95 = vector.broadcast %94 : vector<8x1xf32> to vector<8x8xf32>
      %96 = arith.mulf %91, %95 : vector<8x8xf32>
      %97 = arith.truncf %96 : vector<8x8xf32> to vector<8x8xbf16>
      %cst_57 = arith.constant dense<0.000000e+00> : vector<8x16xf32>
      %98 = tpu.matmul %97, %84, %cst_57 {dimension_numbers = #tpu.dot_dimension_numbers<[1], [0], [0], [1], [0, 0, 1, 1], [], []>} : vector<8x8xbf16>, vector<8x16xbf16>, vector<8x16xf32> -> vector<8x16xf32>
      %99 = arith.truncf %98 : vector<8x16xf32> to vector<8x16xbf16>
      %100 = vector.extract_strided_slice %61 {offsets = [0, 32], sizes = [8, 16], strides = [1, 1]} : vector<8x64xbf16> to vector<8x16xbf16>
      %101 = vector.extract_strided_slice %62 {offsets = [0, 32], sizes = [8, 16], strides = [1, 1]} : vector<8x64xbf16> to vector<8x16xbf16>
      %102 = vector.extract_strided_slice %63 {offsets = [0, 32], sizes = [8, 16], strides = [1, 1]} : vector<8x64xbf16> to vector<8x16xbf16>
      %cst_58 = arith.constant dense<0.000000e+00> : vector<8x8xf32>
      %103 = tpu.matmul %100, %101, %cst_58 {dimension_numbers = #tpu.dot_dimension_numbers<[1], [1], [0], [0], [0, 0, 1, 0], [], []>} : vector<8x16xbf16>, vector<8x16xbf16>, vector<8x8xf32> -> vector<8x8xf32>
      %104 = arith.addf %103, %57 : vector<8x8xf32>
      %cst_59 = arith.constant dense<0xFF800000> : vector<8xf32>
      %105 = vector.multi_reduction <maximumf>, %104, %cst_59 [1] : vector<8x8xf32> to vector<8xf32>
      %106 = vector.shape_cast %105 : vector<8xf32> to vector<8x1xf32>
      %107 = vector.broadcast %106 : vector<8x1xf32> to vector<8x8xf32>
      %108 = arith.subf %104, %107 : vector<8x8xf32>
      %109 = math.exp %108 : vector<8x8xf32>
      %cst_60 = arith.constant dense<0.000000e+00> : vector<8xf32>
      %110 = vector.multi_reduction <add>, %109, %cst_60 [1] : vector<8x8xf32> to vector<8xf32>
      %111 = vector.shape_cast %110 : vector<8xf32> to vector<8x1xf32>
      %112 = tpu.reciprocal %111 {approx = true} : vector<8x1xf32> -> vector<8x1xf32>
      %113 = vector.broadcast %112 : vector<8x1xf32> to vector<8x8xf32>
      %114 = arith.mulf %109, %113 : vector<8x8xf32>
      %115 = arith.truncf %114 : vector<8x8xf32> to vector<8x8xbf16>
      %cst_61 = arith.constant dense<0.000000e+00> : vector<8x16xf32>
      %116 = tpu.matmul %115, %102, %cst_61 {dimension_numbers = #tpu.dot_dimension_numbers<[1], [0], [0], [1], [0, 0, 1, 1], [], []>} : vector<8x8xbf16>, vector<8x16xbf16>, vector<8x16xf32> -> vector<8x16xf32>
      %117 = arith.truncf %116 : vector<8x16xf32> to vector<8x16xbf16>
      %118 = vector.extract_strided_slice %61 {offsets = [0, 48], sizes = [8, 16], strides = [1, 1]} : vector<8x64xbf16> to vector<8x16xbf16>
      %119 = vector.extract_strided_slice %62 {offsets = [0, 48], sizes = [8, 16], strides = [1, 1]} : vector<8x64xbf16> to vector<8x16xbf16>
      %120 = vector.extract_strided_slice %63 {offsets = [0, 48], sizes = [8, 16], strides = [1, 1]} : vector<8x64xbf16> to vector<8x16xbf16>
      %cst_62 = arith.constant dense<0.000000e+00> : vector<8x8xf32>
      %121 = tpu.matmul %118, %119, %cst_62 {dimension_numbers = #tpu.dot_dimension_numbers<[1], [1], [0], [0], [0, 0, 1, 0], [], []>} : vector<8x16xbf16>, vector<8x16xbf16>, vector<8x8xf32> -> vector<8x8xf32>
      %122 = arith.addf %121, %57 : vector<8x8xf32>
      %cst_63 = arith.constant dense<0xFF800000> : vector<8xf32>
      %123 = vector.multi_reduction <maximumf>, %122, %cst_63 [1] : vector<8x8xf32> to vector<8xf32>
      %124 = vector.shape_cast %123 : vector<8xf32> to vector<8x1xf32>
      %125 = vector.broadcast %124 : vector<8x1xf32> to vector<8x8xf32>
      %126 = arith.subf %122, %125 : vector<8x8xf32>
      %127 = math.exp %126 : vector<8x8xf32>
      %cst_64 = arith.constant dense<0.000000e+00> : vector<8xf32>
      %128 = vector.multi_reduction <add>, %127, %cst_64 [1] : vector<8x8xf32> to vector<8xf32>
      %129 = vector.shape_cast %128 : vector<8xf32> to vector<8x1xf32>
      %130 = tpu.reciprocal %129 {approx = true} : vector<8x1xf32> -> vector<8x1xf32>
      %131 = vector.broadcast %130 : vector<8x1xf32> to vector<8x8xf32>
      %132 = arith.mulf %127, %131 : vector<8x8xf32>
      %133 = arith.truncf %132 : vector<8x8xf32> to vector<8x8xbf16>
      %cst_65 = arith.constant dense<0.000000e+00> : vector<8x16xf32>
      %134 = tpu.matmul %133, %120, %cst_65 {dimension_numbers = #tpu.dot_dimension_numbers<[1], [0], [0], [1], [0, 0, 1, 1], [], []>} : vector<8x8xbf16>, vector<8x16xbf16>, vector<8x16xf32> -> vector<8x16xf32>
      %135 = arith.truncf %134 : vector<8x16xf32> to vector<8x16xbf16>
      %136 = tpu.concatenate %81, %99, %117, %135 in 1 : vector<8x16xbf16>, vector<8x16xbf16>, vector<8x16xbf16>, vector<8x16xbf16> -> vector<8x64xbf16>
      %c1 = arith.constant 1 : index
      %c0_66 = arith.constant 0 : index
      %c0_67 = arith.constant 0 : index
      %137 = vector.load %arg4[%c1, %c0_66, %c0_67] : memref<2x1x8xbf16, #tpu.memory_space<vmem>>, vector<1x1x8xbf16>
      %138 = vector.shape_cast %137 : vector<1x1x8xbf16> to vector<1x8xbf16>
      %139 = arith.extf %138 : vector<1x8xbf16> to vector<1x8xf32>
      %140 = vector.shape_cast %139 : vector<1x8xf32> to vector<1x8xf32>
      %141 = vector.broadcast %140 : vector<1x8xf32> to vector<8x8xf32>
      %142 = vector.extract_strided_slice %46 {offsets = [8, 0], sizes = [8, 64], strides = [1, 1]} : vector<16x64xf32> to vector<8x64xf32>
      %143 = vector.extract_strided_slice %51 {offsets = [8, 0], sizes = [8, 64], strides = [1, 1]} : vector<16x64xf32> to vector<8x64xf32>
      %144 = vector.extract_strided_slice %52 {offsets = [8, 0], sizes = [8, 64], strides = [1, 1]} : vector<16x64xf32> to vector<8x64xf32>
      %145 = arith.truncf %142 : vector<8x64xf32> to vector<8x64xbf16>
      %146 = arith.truncf %143 : vector<8x64xf32> to vector<8x64xbf16>
      %147 = arith.truncf %144 : vector<8x64xf32> to vector<8x64xbf16>
      %148 = vector.extract_strided_slice %145 {offsets = [0, 0], sizes = [8, 16], strides = [1, 1]} : vector<8x64xbf16> to vector<8x16xbf16>
      %149 = vector.extract_strided_slice %146 {offsets = [0, 0], sizes = [8, 16], strides = [1, 1]} : vector<8x64xbf16> to vector<8x16xbf16>
      %150 = vector.extract_strided_slice %147 {offsets = [0, 0], sizes = [8, 16], strides = [1, 1]} : vector<8x64xbf16> to vector<8x16xbf16>
      %cst_68 = arith.constant dense<0.000000e+00> : vector<8x8xf32>
      %151 = tpu.matmul %148, %149, %cst_68 {dimension_numbers = #tpu.dot_dimension_numbers<[1], [1], [0], [0], [0, 0, 1, 0], [], []>} : vector<8x16xbf16>, vector<8x16xbf16>, vector<8x8xf32> -> vector<8x8xf32>
      %152 = arith.addf %151, %141 : vector<8x8xf32>
      %cst_69 = arith.constant dense<0xFF800000> : vector<8xf32>
      %153 = vector.multi_reduction <maximumf>, %152, %cst_69 [1] : vector<8x8xf32> to vector<8xf32>
      %154 = vector.shape_cast %153 : vector<8xf32> to vector<8x1xf32>
      %155 = vector.broadcast %154 : vector<8x1xf32> to vector<8x8xf32>
      %156 = arith.subf %152, %155 : vector<8x8xf32>
      %157 = math.exp %156 : vector<8x8xf32>
      %cst_70 = arith.constant dense<0.000000e+00> : vector<8xf32>
      %158 = vector.multi_reduction <add>, %157, %cst_70 [1] : vector<8x8xf32> to vector<8xf32>
      %159 = vector.shape_cast %158 : vector<8xf32> to vector<8x1xf32>
      %160 = tpu.reciprocal %159 {approx = true} : vector<8x1xf32> -> vector<8x1xf32>
      %161 = vector.broadcast %160 : vector<8x1xf32> to vector<8x8xf32>
      %162 = arith.mulf %157, %161 : vector<8x8xf32>
      %163 = arith.truncf %162 : vector<8x8xf32> to vector<8x8xbf16>
      %cst_71 = arith.constant dense<0.000000e+00> : vector<8x16xf32>
      %164 = tpu.matmul %163, %150, %cst_71 {dimension_numbers = #tpu.dot_dimension_numbers<[1], [0], [0], [1], [0, 0, 1, 1], [], []>} : vector<8x8xbf16>, vector<8x16xbf16>, vector<8x16xf32> -> vector<8x16xf32>
      %165 = arith.truncf %164 : vector<8x16xf32> to vector<8x16xbf16>
      %166 = vector.extract_strided_slice %145 {offsets = [0, 16], sizes = [8, 16], strides = [1, 1]} : vector<8x64xbf16> to vector<8x16xbf16>
      %167 = vector.extract_strided_slice %146 {offsets = [0, 16], sizes = [8, 16], strides = [1, 1]} : vector<8x64xbf16> to vector<8x16xbf16>
      %168 = vector.extract_strided_slice %147 {offsets = [0, 16], sizes = [8, 16], strides = [1, 1]} : vector<8x64xbf16> to vector<8x16xbf16>
      %cst_72 = arith.constant dense<0.000000e+00> : vector<8x8xf32>
      %169 = tpu.matmul %166, %167, %cst_72 {dimension_numbers = #tpu.dot_dimension_numbers<[1], [1], [0], [0], [0, 0, 1, 0], [], []>} : vector<8x16xbf16>, vector<8x16xbf16>, vector<8x8xf32> -> vector<8x8xf32>
      %170 = arith.addf %169, %141 : vector<8x8xf32>
      %cst_73 = arith.constant dense<0xFF800000> : vector<8xf32>
      %171 = vector.multi_reduction <maximumf>, %170, %cst_73 [1] : vector<8x8xf32> to vector<8xf32>
      %172 = vector.shape_cast %171 : vector<8xf32> to vector<8x1xf32>
      %173 = vector.broadcast %172 : vector<8x1xf32> to vector<8x8xf32>
      %174 = arith.subf %170, %173 : vector<8x8xf32>
      %175 = math.exp %174 : vector<8x8xf32>
      %cst_74 = arith.constant dense<0.000000e+00> : vector<8xf32>
      %176 = vector.multi_reduction <add>, %175, %cst_74 [1] : vector<8x8xf32> to vector<8xf32>
      %177 = vector.shape_cast %176 : vector<8xf32> to vector<8x1xf32>
      %178 = tpu.reciprocal %177 {approx = true} : vector<8x1xf32> -> vector<8x1xf32>
      %179 = vector.broadcast %178 : vector<8x1xf32> to vector<8x8xf32>
      %180 = arith.mulf %175, %179 : vector<8x8xf32>
      %181 = arith.truncf %180 : vector<8x8xf32> to vector<8x8xbf16>
      %cst_75 = arith.constant dense<0.000000e+00> : vector<8x16xf32>
      %182 = tpu.matmul %181, %168, %cst_75 {dimension_numbers = #tpu.dot_dimension_numbers<[1], [0], [0], [1], [0, 0, 1, 1], [], []>} : vector<8x8xbf16>, vector<8x16xbf16>, vector<8x16xf32> -> vector<8x16xf32>
      %183 = arith.truncf %182 : vector<8x16xf32> to vector<8x16xbf16>
      %184 = vector.extract_strided_slice %145 {offsets = [0, 32], sizes = [8, 16], strides = [1, 1]} : vector<8x64xbf16> to vector<8x16xbf16>
      %185 = vector.extract_strided_slice %146 {offsets = [0, 32], sizes = [8, 16], strides = [1, 1]} : vector<8x64xbf16> to vector<8x16xbf16>
      %186 = vector.extract_strided_slice %147 {offsets = [0, 32], sizes = [8, 16], strides = [1, 1]} : vector<8x64xbf16> to vector<8x16xbf16>
      %cst_76 = arith.constant dense<0.000000e+00> : vector<8x8xf32>
      %187 = tpu.matmul %184, %185, %cst_76 {dimension_numbers = #tpu.dot_dimension_numbers<[1], [1], [0], [0], [0, 0, 1, 0], [], []>} : vector<8x16xbf16>, vector<8x16xbf16>, vector<8x8xf32> -> vector<8x8xf32>
      %188 = arith.addf %187, %141 : vector<8x8xf32>
      %cst_77 = arith.constant dense<0xFF800000> : vector<8xf32>
      %189 = vector.multi_reduction <maximumf>, %188, %cst_77 [1] : vector<8x8xf32> to vector<8xf32>
      %190 = vector.shape_cast %189 : vector<8xf32> to vector<8x1xf32>
      %191 = vector.broadcast %190 : vector<8x1xf32> to vector<8x8xf32>
      %192 = arith.subf %188, %191 : vector<8x8xf32>
      %193 = math.exp %192 : vector<8x8xf32>
      %cst_78 = arith.constant dense<0.000000e+00> : vector<8xf32>
      %194 = vector.multi_reduction <add>, %193, %cst_78 [1] : vector<8x8xf32> to vector<8xf32>
      %195 = vector.shape_cast %194 : vector<8xf32> to vector<8x1xf32>
      %196 = tpu.reciprocal %195 {approx = true} : vector<8x1xf32> -> vector<8x1xf32>
      %197 = vector.broadcast %196 : vector<8x1xf32> to vector<8x8xf32>
      %198 = arith.mulf %193, %197 : vector<8x8xf32>
      %199 = arith.truncf %198 : vector<8x8xf32> to vector<8x8xbf16>
      %cst_79 = arith.constant dense<0.000000e+00> : vector<8x16xf32>
      %200 = tpu.matmul %199, %186, %cst_79 {dimension_numbers = #tpu.dot_dimension_numbers<[1], [0], [0], [1], [0, 0, 1, 1], [], []>} : vector<8x8xbf16>, vector<8x16xbf16>, vector<8x16xf32> -> vector<8x16xf32>
      %201 = arith.truncf %200 : vector<8x16xf32> to vector<8x16xbf16>
      %202 = vector.extract_strided_slice %145 {offsets = [0, 48], sizes = [8, 16], strides = [1, 1]} : vector<8x64xbf16> to vector<8x16xbf16>
      %203 = vector.extract_strided_slice %146 {offsets = [0, 48], sizes = [8, 16], strides = [1, 1]} : vector<8x64xbf16> to vector<8x16xbf16>
      %204 = vector.extract_strided_slice %147 {offsets = [0, 48], sizes = [8, 16], strides = [1, 1]} : vector<8x64xbf16> to vector<8x16xbf16>
      %cst_80 = arith.constant dense<0.000000e+00> : vector<8x8xf32>
      %205 = tpu.matmul %202, %203, %cst_80 {dimension_numbers = #tpu.dot_dimension_numbers<[1], [1], [0], [0], [0, 0, 1, 0], [], []>} : vector<8x16xbf16>, vector<8x16xbf16>, vector<8x8xf32> -> vector<8x8xf32>
      %206 = arith.addf %205, %141 : vector<8x8xf32>
      %cst_81 = arith.constant dense<0xFF800000> : vector<8xf32>
      %207 = vector.multi_reduction <maximumf>, %206, %cst_81 [1] : vector<8x8xf32> to vector<8xf32>
      %208 = vector.shape_cast %207 : vector<8xf32> to vector<8x1xf32>
      %209 = vector.broadcast %208 : vector<8x1xf32> to vector<8x8xf32>
      %210 = arith.subf %206, %209 : vector<8x8xf32>
      %211 = math.exp %210 : vector<8x8xf32>
      %cst_82 = arith.constant dense<0.000000e+00> : vector<8xf32>
      %212 = vector.multi_reduction <add>, %211, %cst_82 [1] : vector<8x8xf32> to vector<8xf32>
      %213 = vector.shape_cast %212 : vector<8xf32> to vector<8x1xf32>
      %214 = tpu.reciprocal %213 {approx = true} : vector<8x1xf32> -> vector<8x1xf32>
      %215 = vector.broadcast %214 : vector<8x1xf32> to vector<8x8xf32>
      %216 = arith.mulf %211, %215 : vector<8x8xf32>
      %217 = arith.truncf %216 : vector<8x8xf32> to vector<8x8xbf16>
      %cst_83 = arith.constant dense<0.000000e+00> : vector<8x16xf32>
      %218 = tpu.matmul %217, %204, %cst_83 {dimension_numbers = #tpu.dot_dimension_numbers<[1], [0], [0], [1], [0, 0, 1, 1], [], []>} : vector<8x8xbf16>, vector<8x16xbf16>, vector<8x16xf32> -> vector<8x16xf32>
      %219 = arith.truncf %218 : vector<8x16xf32> to vector<8x16xbf16>
      %220 = tpu.concatenate %165, %183, %201, %219 in 1 : vector<8x16xbf16>, vector<8x16xbf16>, vector<8x16xbf16>, vector<8x16xbf16> -> vector<8x64xbf16>
      %221 = tpu.concatenate %136, %220 in 0 : vector<8x64xbf16>, vector<8x64xbf16> -> vector<16x64xbf16>
      %c0_84 = arith.constant 0 : index
      %c0_85 = arith.constant 0 : index
      %222 = vector.load %arg11[%c0_84, %c0_85] : memref<64x64xbf16, #tpu.memory_space<vmem>>, vector<64x64xbf16>
      %cst_86 = arith.constant dense<0.000000e+00> : vector<16x64xf32>
      %223 = tpu.matmul %221, %222, %cst_86 {dimension_numbers = #tpu.dot_dimension_numbers<[1], [0], [0], [1], [0, 0, 1, 1], [], []>} : vector<16x64xbf16>, vector<64x64xbf16>, vector<16x64xf32> -> vector<16x64xf32>
      %224 = vector.broadcast %36 : vector<1x64xf32> to vector<16x64xf32>
      %225 = arith.addf %223, %224 : vector<16x64xf32>
      %226 = arith.addf %225, %31 : vector<16x64xf32>
      %cst_87 = arith.constant dense<0.000000e+00> : vector<16xf32>
      %227 = vector.multi_reduction <add>, %226, %cst_87 [1] : vector<16x64xf32> to vector<16xf32>
      %228 = vector.shape_cast %227 : vector<16xf32> to vector<16x1xf32>
      %cst_88 = arith.constant 6.400000e+01 : f32
      %229 = vector.broadcast %cst_88 : f32 to vector<16x1xf32>
      %230 = arith.divf %228, %229 : vector<16x1xf32>
      %231 = vector.broadcast %230 : vector<16x1xf32> to vector<16x64xf32>
      %232 = arith.subf %226, %231 : vector<16x64xf32>
      %233 = arith.mulf %232, %232 : vector<16x64xf32>
      %cst_89 = arith.constant dense<0.000000e+00> : vector<16xf32>
      %234 = vector.multi_reduction <add>, %233, %cst_89 [1] : vector<16x64xf32> to vector<16xf32>
      %235 = vector.shape_cast %234 : vector<16xf32> to vector<16x1xf32>
      %cst_90 = arith.constant 6.400000e+01 : f32
      %236 = vector.broadcast %cst_90 : f32 to vector<16x1xf32>
      %237 = arith.divf %235, %236 : vector<16x1xf32>
      %238 = vector.broadcast %230 : vector<16x1xf32> to vector<16x64xf32>
      %239 = arith.subf %226, %238 : vector<16x64xf32>
      %cst_91 = arith.constant 9.99999996E-13 : f32
      %240 = vector.broadcast %cst_91 : f32 to vector<16x1xf32>
      %241 = arith.addf %237, %240 : vector<16x1xf32>
      %242 = math.rsqrt %241 : vector<16x1xf32>
      %243 = vector.broadcast %242 : vector<16x1xf32> to vector<16x64xf32>
      %244 = arith.mulf %239, %243 : vector<16x64xf32>
      %245 = vector.broadcast %37 : vector<1x64xf32> to vector<16x64xf32>
      %246 = arith.mulf %244, %245 : vector<16x64xf32>
      %247 = vector.broadcast %38 : vector<1x64xf32> to vector<16x64xf32>
      %248 = arith.addf %246, %247 : vector<16x64xf32>
      %249 = arith.truncf %248 : vector<16x64xf32> to vector<16x64xbf16>
      %c0_92 = arith.constant 0 : index
      %c0_93 = arith.constant 0 : index
      %250 = vector.load %arg15[%c0_92, %c0_93] : memref<64x192xbf16, #tpu.memory_space<vmem>>, vector<64x192xbf16>
      %cst_94 = arith.constant dense<0.000000e+00> : vector<16x192xf32>
      %251 = tpu.matmul %249, %250, %cst_94 {dimension_numbers = #tpu.dot_dimension_numbers<[1], [0], [0], [1], [0, 0, 1, 1], [], []>} : vector<16x64xbf16>, vector<64x192xbf16>, vector<16x192xf32> -> vector<16x192xf32>
      %252 = vector.broadcast %39 : vector<1x192xf32> to vector<16x192xf32>
      %253 = arith.addf %251, %252 : vector<16x192xf32>
      %254 = vector.extract_strided_slice %253 {offsets = [0, 0], sizes = [16, 64], strides = [1, 1]} : vector<16x192xf32> to vector<16x64xf32>
      %255 = vector.extract_strided_slice %253 {offsets = [0, 64], sizes = [16, 64], strides = [1, 1]} : vector<16x192xf32> to vector<16x64xf32>
      %256 = vector.extract_strided_slice %253 {offsets = [0, 128], sizes = [16, 64], strides = [1, 1]} : vector<16x192xf32> to vector<16x64xf32>
      %c0_95 = arith.constant 0 : index
      %c0_96 = arith.constant 0 : index
      %c0_97 = arith.constant 0 : index
      %257 = vector.load %arg5[%c0_95, %c0_96, %c0_97] : memref<2x1x8xbf16, #tpu.memory_space<vmem>>, vector<1x1x8xbf16>
      %258 = vector.shape_cast %257 : vector<1x1x8xbf16> to vector<1x8xbf16>
      %259 = arith.extf %258 : vector<1x8xbf16> to vector<1x8xf32>
      %260 = vector.shape_cast %259 : vector<1x8xf32> to vector<1x8xf32>
      %261 = vector.broadcast %260 : vector<1x8xf32> to vector<8x8xf32>
      %c0_98 = arith.constant 0 : index
      %c0_99 = arith.constant 0 : index
      %c0_100 = arith.constant 0 : index
      %262 = vector.load %arg6[%c0_98, %c0_99, %c0_100] : memref<2x8x8xbf16, #tpu.memory_space<vmem>>, vector<1x8x8xbf16>
      %263 = vector.shape_cast %262 : vector<1x8x8xbf16> to vector<8x8xbf16>
      %264 = arith.extf %263 : vector<8x8xbf16> to vector<8x8xf32>
      %265 = arith.addf %261, %264 : vector<8x8xf32>
      %266 = vector.extract_strided_slice %254 {offsets = [0, 0], sizes = [8, 64], strides = [1, 1]} : vector<16x64xf32> to vector<8x64xf32>
      %267 = vector.extract_strided_slice %255 {offsets = [0, 0], sizes = [8, 64], strides = [1, 1]} : vector<16x64xf32> to vector<8x64xf32>
      %268 = vector.extract_strided_slice %256 {offsets = [0, 0], sizes = [8, 64], strides = [1, 1]} : vector<16x64xf32> to vector<8x64xf32>
      %269 = arith.truncf %266 : vector<8x64xf32> to vector<8x64xbf16>
      %270 = arith.truncf %267 : vector<8x64xf32> to vector<8x64xbf16>
      %271 = arith.truncf %268 : vector<8x64xf32> to vector<8x64xbf16>
      %272 = vector.extract_strided_slice %269 {offsets = [0, 0], sizes = [8, 16], strides = [1, 1]} : vector<8x64xbf16> to vector<8x16xbf16>
      %273 = vector.extract_strided_slice %270 {offsets = [0, 0], sizes = [8, 16], strides = [1, 1]} : vector<8x64xbf16> to vector<8x16xbf16>
      %274 = vector.extract_strided_slice %271 {offsets = [0, 0], sizes = [8, 16], strides = [1, 1]} : vector<8x64xbf16> to vector<8x16xbf16>
      %cst_101 = arith.constant dense<0.000000e+00> : vector<8x8xf32>
      %275 = tpu.matmul %272, %273, %cst_101 {dimension_numbers = #tpu.dot_dimension_numbers<[1], [1], [0], [0], [0, 0, 1, 0], [], []>} : vector<8x16xbf16>, vector<8x16xbf16>, vector<8x8xf32> -> vector<8x8xf32>
      %276 = arith.addf %275, %265 : vector<8x8xf32>
      %cst_102 = arith.constant dense<0xFF800000> : vector<8xf32>
      %277 = vector.multi_reduction <maximumf>, %276, %cst_102 [1] : vector<8x8xf32> to vector<8xf32>
      %278 = vector.shape_cast %277 : vector<8xf32> to vector<8x1xf32>
      %279 = vector.broadcast %278 : vector<8x1xf32> to vector<8x8xf32>
      %280 = arith.subf %276, %279 : vector<8x8xf32>
      %281 = math.exp %280 : vector<8x8xf32>
      %cst_103 = arith.constant dense<0.000000e+00> : vector<8xf32>
      %282 = vector.multi_reduction <add>, %281, %cst_103 [1] : vector<8x8xf32> to vector<8xf32>
      %283 = vector.shape_cast %282 : vector<8xf32> to vector<8x1xf32>
      %284 = tpu.reciprocal %283 {approx = true} : vector<8x1xf32> -> vector<8x1xf32>
      %285 = vector.broadcast %284 : vector<8x1xf32> to vector<8x8xf32>
      %286 = arith.mulf %281, %285 : vector<8x8xf32>
      %287 = arith.truncf %286 : vector<8x8xf32> to vector<8x8xbf16>
      %cst_104 = arith.constant dense<0.000000e+00> : vector<8x16xf32>
      %288 = tpu.matmul %287, %274, %cst_104 {dimension_numbers = #tpu.dot_dimension_numbers<[1], [0], [0], [1], [0, 0, 1, 1], [], []>} : vector<8x8xbf16>, vector<8x16xbf16>, vector<8x16xf32> -> vector<8x16xf32>
      %289 = arith.truncf %288 : vector<8x16xf32> to vector<8x16xbf16>
      %290 = vector.extract_strided_slice %269 {offsets = [0, 16], sizes = [8, 16], strides = [1, 1]} : vector<8x64xbf16> to vector<8x16xbf16>
      %291 = vector.extract_strided_slice %270 {offsets = [0, 16], sizes = [8, 16], strides = [1, 1]} : vector<8x64xbf16> to vector<8x16xbf16>
      %292 = vector.extract_strided_slice %271 {offsets = [0, 16], sizes = [8, 16], strides = [1, 1]} : vector<8x64xbf16> to vector<8x16xbf16>
      %cst_105 = arith.constant dense<0.000000e+00> : vector<8x8xf32>
      %293 = tpu.matmul %290, %291, %cst_105 {dimension_numbers = #tpu.dot_dimension_numbers<[1], [1], [0], [0], [0, 0, 1, 0], [], []>} : vector<8x16xbf16>, vector<8x16xbf16>, vector<8x8xf32> -> vector<8x8xf32>
      %294 = arith.addf %293, %265 : vector<8x8xf32>
      %cst_106 = arith.constant dense<0xFF800000> : vector<8xf32>
      %295 = vector.multi_reduction <maximumf>, %294, %cst_106 [1] : vector<8x8xf32> to vector<8xf32>
      %296 = vector.shape_cast %295 : vector<8xf32> to vector<8x1xf32>
      %297 = vector.broadcast %296 : vector<8x1xf32> to vector<8x8xf32>
      %298 = arith.subf %294, %297 : vector<8x8xf32>
      %299 = math.exp %298 : vector<8x8xf32>
      %cst_107 = arith.constant dense<0.000000e+00> : vector<8xf32>
      %300 = vector.multi_reduction <add>, %299, %cst_107 [1] : vector<8x8xf32> to vector<8xf32>
      %301 = vector.shape_cast %300 : vector<8xf32> to vector<8x1xf32>
      %302 = tpu.reciprocal %301 {approx = true} : vector<8x1xf32> -> vector<8x1xf32>
      %303 = vector.broadcast %302 : vector<8x1xf32> to vector<8x8xf32>
      %304 = arith.mulf %299, %303 : vector<8x8xf32>
      %305 = arith.truncf %304 : vector<8x8xf32> to vector<8x8xbf16>
      %cst_108 = arith.constant dense<0.000000e+00> : vector<8x16xf32>
      %306 = tpu.matmul %305, %292, %cst_108 {dimension_numbers = #tpu.dot_dimension_numbers<[1], [0], [0], [1], [0, 0, 1, 1], [], []>} : vector<8x8xbf16>, vector<8x16xbf16>, vector<8x16xf32> -> vector<8x16xf32>
      %307 = arith.truncf %306 : vector<8x16xf32> to vector<8x16xbf16>
      %308 = vector.extract_strided_slice %269 {offsets = [0, 32], sizes = [8, 16], strides = [1, 1]} : vector<8x64xbf16> to vector<8x16xbf16>
      %309 = vector.extract_strided_slice %270 {offsets = [0, 32], sizes = [8, 16], strides = [1, 1]} : vector<8x64xbf16> to vector<8x16xbf16>
      %310 = vector.extract_strided_slice %271 {offsets = [0, 32], sizes = [8, 16], strides = [1, 1]} : vector<8x64xbf16> to vector<8x16xbf16>
      %cst_109 = arith.constant dense<0.000000e+00> : vector<8x8xf32>
      %311 = tpu.matmul %308, %309, %cst_109 {dimension_numbers = #tpu.dot_dimension_numbers<[1], [1], [0], [0], [0, 0, 1, 0], [], []>} : vector<8x16xbf16>, vector<8x16xbf16>, vector<8x8xf32> -> vector<8x8xf32>
      %312 = arith.addf %311, %265 : vector<8x8xf32>
      %cst_110 = arith.constant dense<0xFF800000> : vector<8xf32>
      %313 = vector.multi_reduction <maximumf>, %312, %cst_110 [1] : vector<8x8xf32> to vector<8xf32>
      %314 = vector.shape_cast %313 : vector<8xf32> to vector<8x1xf32>
      %315 = vector.broadcast %314 : vector<8x1xf32> to vector<8x8xf32>
      %316 = arith.subf %312, %315 : vector<8x8xf32>
      %317 = math.exp %316 : vector<8x8xf32>
      %cst_111 = arith.constant dense<0.000000e+00> : vector<8xf32>
      %318 = vector.multi_reduction <add>, %317, %cst_111 [1] : vector<8x8xf32> to vector<8xf32>
      %319 = vector.shape_cast %318 : vector<8xf32> to vector<8x1xf32>
      %320 = tpu.reciprocal %319 {approx = true} : vector<8x1xf32> -> vector<8x1xf32>
      %321 = vector.broadcast %320 : vector<8x1xf32> to vector<8x8xf32>
      %322 = arith.mulf %317, %321 : vector<8x8xf32>
      %323 = arith.truncf %322 : vector<8x8xf32> to vector<8x8xbf16>
      %cst_112 = arith.constant dense<0.000000e+00> : vector<8x16xf32>
      %324 = tpu.matmul %323, %310, %cst_112 {dimension_numbers = #tpu.dot_dimension_numbers<[1], [0], [0], [1], [0, 0, 1, 1], [], []>} : vector<8x8xbf16>, vector<8x16xbf16>, vector<8x16xf32> -> vector<8x16xf32>
      %325 = arith.truncf %324 : vector<8x16xf32> to vector<8x16xbf16>
      %326 = vector.extract_strided_slice %269 {offsets = [0, 48], sizes = [8, 16], strides = [1, 1]} : vector<8x64xbf16> to vector<8x16xbf16>
      %327 = vector.extract_strided_slice %270 {offsets = [0, 48], sizes = [8, 16], strides = [1, 1]} : vector<8x64xbf16> to vector<8x16xbf16>
      %328 = vector.extract_strided_slice %271 {offsets = [0, 48], sizes = [8, 16], strides = [1, 1]} : vector<8x64xbf16> to vector<8x16xbf16>
      %cst_113 = arith.constant dense<0.000000e+00> : vector<8x8xf32>
      %329 = tpu.matmul %326, %327, %cst_113 {dimension_numbers = #tpu.dot_dimension_numbers<[1], [1], [0], [0], [0, 0, 1, 0], [], []>} : vector<8x16xbf16>, vector<8x16xbf16>, vector<8x8xf32> -> vector<8x8xf32>
      %330 = arith.addf %329, %265 : vector<8x8xf32>
      %cst_114 = arith.constant dense<0xFF800000> : vector<8xf32>
      %331 = vector.multi_reduction <maximumf>, %330, %cst_114 [1] : vector<8x8xf32> to vector<8xf32>
      %332 = vector.shape_cast %331 : vector<8xf32> to vector<8x1xf32>
      %333 = vector.broadcast %332 : vector<8x1xf32> to vector<8x8xf32>
      %334 = arith.subf %330, %333 : vector<8x8xf32>
      %335 = math.exp %334 : vector<8x8xf32>
      %cst_115 = arith.constant dense<0.000000e+00> : vector<8xf32>
      %336 = vector.multi_reduction <add>, %335, %cst_115 [1] : vector<8x8xf32> to vector<8xf32>
      %337 = vector.shape_cast %336 : vector<8xf32> to vector<8x1xf32>
      %338 = tpu.reciprocal %337 {approx = true} : vector<8x1xf32> -> vector<8x1xf32>
      %339 = vector.broadcast %338 : vector<8x1xf32> to vector<8x8xf32>
      %340 = arith.mulf %335, %339 : vector<8x8xf32>
      %341 = arith.truncf %340 : vector<8x8xf32> to vector<8x8xbf16>
      %cst_116 = arith.constant dense<0.000000e+00> : vector<8x16xf32>
      %342 = tpu.matmul %341, %328, %cst_116 {dimension_numbers = #tpu.dot_dimension_numbers<[1], [0], [0], [1], [0, 0, 1, 1], [], []>} : vector<8x8xbf16>, vector<8x16xbf16>, vector<8x16xf32> -> vector<8x16xf32>
      %343 = arith.truncf %342 : vector<8x16xf32> to vector<8x16xbf16>
      %344 = tpu.concatenate %289, %307, %325, %343 in 1 : vector<8x16xbf16>, vector<8x16xbf16>, vector<8x16xbf16>, vector<8x16xbf16> -> vector<8x64xbf16>
      %c1_117 = arith.constant 1 : index
      %c0_118 = arith.constant 0 : index
      %c0_119 = arith.constant 0 : index
      %345 = vector.load %arg5[%c1_117, %c0_118, %c0_119] : memref<2x1x8xbf16, #tpu.memory_space<vmem>>, vector<1x1x8xbf16>
      %346 = vector.shape_cast %345 : vector<1x1x8xbf16> to vector<1x8xbf16>
      %347 = arith.extf %346 : vector<1x8xbf16> to vector<1x8xf32>
      %348 = vector.shape_cast %347 : vector<1x8xf32> to vector<1x8xf32>
      %349 = vector.broadcast %348 : vector<1x8xf32> to vector<8x8xf32>
      %c1_120 = arith.constant 1 : index
      %c0_121 = arith.constant 0 : index
      %c0_122 = arith.constant 0 : index
      %350 = vector.load %arg6[%c1_120, %c0_121, %c0_122] : memref<2x8x8xbf16, #tpu.memory_space<vmem>>, vector<1x8x8xbf16>
      %351 = vector.shape_cast %350 : vector<1x8x8xbf16> to vector<8x8xbf16>
      %352 = arith.extf %351 : vector<8x8xbf16> to vector<8x8xf32>
      %353 = arith.addf %349, %352 : vector<8x8xf32>
      %354 = vector.extract_strided_slice %254 {offsets = [8, 0], sizes = [8, 64], strides = [1, 1]} : vector<16x64xf32> to vector<8x64xf32>
      %355 = vector.extract_strided_slice %255 {offsets = [8, 0], sizes = [8, 64], strides = [1, 1]} : vector<16x64xf32> to vector<8x64xf32>
      %356 = vector.extract_strided_slice %256 {offsets = [8, 0], sizes = [8, 64], strides = [1, 1]} : vector<16x64xf32> to vector<8x64xf32>
      %357 = arith.truncf %354 : vector<8x64xf32> to vector<8x64xbf16>
      %358 = arith.truncf %355 : vector<8x64xf32> to vector<8x64xbf16>
      %359 = arith.truncf %356 : vector<8x64xf32> to vector<8x64xbf16>
      %360 = vector.extract_strided_slice %357 {offsets = [0, 0], sizes = [8, 16], strides = [1, 1]} : vector<8x64xbf16> to vector<8x16xbf16>
      %361 = vector.extract_strided_slice %358 {offsets = [0, 0], sizes = [8, 16], strides = [1, 1]} : vector<8x64xbf16> to vector<8x16xbf16>
      %362 = vector.extract_strided_slice %359 {offsets = [0, 0], sizes = [8, 16], strides = [1, 1]} : vector<8x64xbf16> to vector<8x16xbf16>
      %cst_123 = arith.constant dense<0.000000e+00> : vector<8x8xf32>
      %363 = tpu.matmul %360, %361, %cst_123 {dimension_numbers = #tpu.dot_dimension_numbers<[1], [1], [0], [0], [0, 0, 1, 0], [], []>} : vector<8x16xbf16>, vector<8x16xbf16>, vector<8x8xf32> -> vector<8x8xf32>
      %364 = arith.addf %363, %353 : vector<8x8xf32>
      %cst_124 = arith.constant dense<0xFF800000> : vector<8xf32>
      %365 = vector.multi_reduction <maximumf>, %364, %cst_124 [1] : vector<8x8xf32> to vector<8xf32>
      %366 = vector.shape_cast %365 : vector<8xf32> to vector<8x1xf32>
      %367 = vector.broadcast %366 : vector<8x1xf32> to vector<8x8xf32>
      %368 = arith.subf %364, %367 : vector<8x8xf32>
      %369 = math.exp %368 : vector<8x8xf32>
      %cst_125 = arith.constant dense<0.000000e+00> : vector<8xf32>
      %370 = vector.multi_reduction <add>, %369, %cst_125 [1] : vector<8x8xf32> to vector<8xf32>
      %371 = vector.shape_cast %370 : vector<8xf32> to vector<8x1xf32>
      %372 = tpu.reciprocal %371 {approx = true} : vector<8x1xf32> -> vector<8x1xf32>
      %373 = vector.broadcast %372 : vector<8x1xf32> to vector<8x8xf32>
      %374 = arith.mulf %369, %373 : vector<8x8xf32>
      %375 = arith.truncf %374 : vector<8x8xf32> to vector<8x8xbf16>
      %cst_126 = arith.constant dense<0.000000e+00> : vector<8x16xf32>
      %376 = tpu.matmul %375, %362, %cst_126 {dimension_numbers = #tpu.dot_dimension_numbers<[1], [0], [0], [1], [0, 0, 1, 1], [], []>} : vector<8x8xbf16>, vector<8x16xbf16>, vector<8x16xf32> -> vector<8x16xf32>
      %377 = arith.truncf %376 : vector<8x16xf32> to vector<8x16xbf16>
      %378 = vector.extract_strided_slice %357 {offsets = [0, 16], sizes = [8, 16], strides = [1, 1]} : vector<8x64xbf16> to vector<8x16xbf16>
      %379 = vector.extract_strided_slice %358 {offsets = [0, 16], sizes = [8, 16], strides = [1, 1]} : vector<8x64xbf16> to vector<8x16xbf16>
      %380 = vector.extract_strided_slice %359 {offsets = [0, 16], sizes = [8, 16], strides = [1, 1]} : vector<8x64xbf16> to vector<8x16xbf16>
      %cst_127 = arith.constant dense<0.000000e+00> : vector<8x8xf32>
      %381 = tpu.matmul %378, %379, %cst_127 {dimension_numbers = #tpu.dot_dimension_numbers<[1], [1], [0], [0], [0, 0, 1, 0], [], []>} : vector<8x16xbf16>, vector<8x16xbf16>, vector<8x8xf32> -> vector<8x8xf32>
      %382 = arith.addf %381, %353 : vector<8x8xf32>
      %cst_128 = arith.constant dense<0xFF800000> : vector<8xf32>
      %383 = vector.multi_reduction <maximumf>, %382, %cst_128 [1] : vector<8x8xf32> to vector<8xf32>
      %384 = vector.shape_cast %383 : vector<8xf32> to vector<8x1xf32>
      %385 = vector.broadcast %384 : vector<8x1xf32> to vector<8x8xf32>
      %386 = arith.subf %382, %385 : vector<8x8xf32>
      %387 = math.exp %386 : vector<8x8xf32>
      %cst_129 = arith.constant dense<0.000000e+00> : vector<8xf32>
      %388 = vector.multi_reduction <add>, %387, %cst_129 [1] : vector<8x8xf32> to vector<8xf32>
      %389 = vector.shape_cast %388 : vector<8xf32> to vector<8x1xf32>
      %390 = tpu.reciprocal %389 {approx = true} : vector<8x1xf32> -> vector<8x1xf32>
      %391 = vector.broadcast %390 : vector<8x1xf32> to vector<8x8xf32>
      %392 = arith.mulf %387, %391 : vector<8x8xf32>
      %393 = arith.truncf %392 : vector<8x8xf32> to vector<8x8xbf16>
      %cst_130 = arith.constant dense<0.000000e+00> : vector<8x16xf32>
      %394 = tpu.matmul %393, %380, %cst_130 {dimension_numbers = #tpu.dot_dimension_numbers<[1], [0], [0], [1], [0, 0, 1, 1], [], []>} : vector<8x8xbf16>, vector<8x16xbf16>, vector<8x16xf32> -> vector<8x16xf32>
      %395 = arith.truncf %394 : vector<8x16xf32> to vector<8x16xbf16>
      %396 = vector.extract_strided_slice %357 {offsets = [0, 32], sizes = [8, 16], strides = [1, 1]} : vector<8x64xbf16> to vector<8x16xbf16>
      %397 = vector.extract_strided_slice %358 {offsets = [0, 32], sizes = [8, 16], strides = [1, 1]} : vector<8x64xbf16> to vector<8x16xbf16>
      %398 = vector.extract_strided_slice %359 {offsets = [0, 32], sizes = [8, 16], strides = [1, 1]} : vector<8x64xbf16> to vector<8x16xbf16>
      %cst_131 = arith.constant dense<0.000000e+00> : vector<8x8xf32>
      %399 = tpu.matmul %396, %397, %cst_131 {dimension_numbers = #tpu.dot_dimension_numbers<[1], [1], [0], [0], [0, 0, 1, 0], [], []>} : vector<8x16xbf16>, vector<8x16xbf16>, vector<8x8xf32> -> vector<8x8xf32>
      %400 = arith.addf %399, %353 : vector<8x8xf32>
      %cst_132 = arith.constant dense<0xFF800000> : vector<8xf32>
      %401 = vector.multi_reduction <maximumf>, %400, %cst_132 [1] : vector<8x8xf32> to vector<8xf32>
      %402 = vector.shape_cast %401 : vector<8xf32> to vector<8x1xf32>
      %403 = vector.broadcast %402 : vector<8x1xf32> to vector<8x8xf32>
      %404 = arith.subf %400, %403 : vector<8x8xf32>
      %405 = math.exp %404 : vector<8x8xf32>
      %cst_133 = arith.constant dense<0.000000e+00> : vector<8xf32>
      %406 = vector.multi_reduction <add>, %405, %cst_133 [1] : vector<8x8xf32> to vector<8xf32>
      %407 = vector.shape_cast %406 : vector<8xf32> to vector<8x1xf32>
      %408 = tpu.reciprocal %407 {approx = true} : vector<8x1xf32> -> vector<8x1xf32>
      %409 = vector.broadcast %408 : vector<8x1xf32> to vector<8x8xf32>
      %410 = arith.mulf %405, %409 : vector<8x8xf32>
      %411 = arith.truncf %410 : vector<8x8xf32> to vector<8x8xbf16>
      %cst_134 = arith.constant dense<0.000000e+00> : vector<8x16xf32>
      %412 = tpu.matmul %411, %398, %cst_134 {dimension_numbers = #tpu.dot_dimension_numbers<[1], [0], [0], [1], [0, 0, 1, 1], [], []>} : vector<8x8xbf16>, vector<8x16xbf16>, vector<8x16xf32> -> vector<8x16xf32>
      %413 = arith.truncf %412 : vector<8x16xf32> to vector<8x16xbf16>
      %414 = vector.extract_strided_slice %357 {offsets = [0, 48], sizes = [8, 16], strides = [1, 1]} : vector<8x64xbf16> to vector<8x16xbf16>
      %415 = vector.extract_strided_slice %358 {offsets = [0, 48], sizes = [8, 16], strides = [1, 1]} : vector<8x64xbf16> to vector<8x16xbf16>
      %416 = vector.extract_strided_slice %359 {offsets = [0, 48], sizes = [8, 16], strides = [1, 1]} : vector<8x64xbf16> to vector<8x16xbf16>
      %cst_135 = arith.constant dense<0.000000e+00> : vector<8x8xf32>
      %417 = tpu.matmul %414, %415, %cst_135 {dimension_numbers = #tpu.dot_dimension_numbers<[1], [1], [0], [0], [0, 0, 1, 0], [], []>} : vector<8x16xbf16>, vector<8x16xbf16>, vector<8x8xf32> -> vector<8x8xf32>
      %418 = arith.addf %417, %353 : vector<8x8xf32>
      %cst_136 = arith.constant dense<0xFF800000> : vector<8xf32>
      %419 = vector.multi_reduction <maximumf>, %418, %cst_136 [1] : vector<8x8xf32> to vector<8xf32>
      %420 = vector.shape_cast %419 : vector<8xf32> to vector<8x1xf32>
      %421 = vector.broadcast %420 : vector<8x1xf32> to vector<8x8xf32>
      %422 = arith.subf %418, %421 : vector<8x8xf32>
      %423 = math.exp %422 : vector<8x8xf32>
      %cst_137 = arith.constant dense<0.000000e+00> : vector<8xf32>
      %424 = vector.multi_reduction <add>, %423, %cst_137 [1] : vector<8x8xf32> to vector<8xf32>
      %425 = vector.shape_cast %424 : vector<8xf32> to vector<8x1xf32>
      %426 = tpu.reciprocal %425 {approx = true} : vector<8x1xf32> -> vector<8x1xf32>
      %427 = vector.broadcast %426 : vector<8x1xf32> to vector<8x8xf32>
      %428 = arith.mulf %423, %427 : vector<8x8xf32>
      %429 = arith.truncf %428 : vector<8x8xf32> to vector<8x8xbf16>
      %cst_138 = arith.constant dense<0.000000e+00> : vector<8x16xf32>
      %430 = tpu.matmul %429, %416, %cst_138 {dimension_numbers = #tpu.dot_dimension_numbers<[1], [0], [0], [1], [0, 0, 1, 1], [], []>} : vector<8x8xbf16>, vector<8x16xbf16>, vector<8x16xf32> -> vector<8x16xf32>
      %431 = arith.truncf %430 : vector<8x16xf32> to vector<8x16xbf16>
      %432 = tpu.concatenate %377, %395, %413, %431 in 1 : vector<8x16xbf16>, vector<8x16xbf16>, vector<8x16xbf16>, vector<8x16xbf16> -> vector<8x64xbf16>
      %433 = tpu.concatenate %344, %432 in 0 : vector<8x64xbf16>, vector<8x64xbf16> -> vector<16x64xbf16>
      %c0_139 = arith.constant 0 : index
      %c0_140 = arith.constant 0 : index
      %434 = vector.load %arg17[%c0_139, %c0_140] : memref<64x64xbf16, #tpu.memory_space<vmem>>, vector<64x64xbf16>
      %cst_141 = arith.constant dense<0.000000e+00> : vector<16x64xf32>
      %435 = tpu.matmul %433, %434, %cst_141 {dimension_numbers = #tpu.dot_dimension_numbers<[1], [0], [0], [1], [0, 0, 1, 1], [], []>} : vector<16x64xbf16>, vector<64x64xbf16>, vector<16x64xf32> -> vector<16x64xf32>
      %436 = vector.broadcast %40 : vector<1x64xf32> to vector<16x64xf32>
      %437 = arith.addf %435, %436 : vector<16x64xf32>
      %438 = arith.addf %437, %248 : vector<16x64xf32>
      %cst_142 = arith.constant dense<0.000000e+00> : vector<16xf32>
      %439 = vector.multi_reduction <add>, %438, %cst_142 [1] : vector<16x64xf32> to vector<16xf32>
      %440 = vector.shape_cast %439 : vector<16xf32> to vector<16x1xf32>
      %cst_143 = arith.constant 6.400000e+01 : f32
      %441 = vector.broadcast %cst_143 : f32 to vector<16x1xf32>
      %442 = arith.divf %440, %441 : vector<16x1xf32>
      %443 = vector.broadcast %442 : vector<16x1xf32> to vector<16x64xf32>
      %444 = arith.subf %438, %443 : vector<16x64xf32>
      %445 = arith.mulf %444, %444 : vector<16x64xf32>
      %cst_144 = arith.constant dense<0.000000e+00> : vector<16xf32>
      %446 = vector.multi_reduction <add>, %445, %cst_144 [1] : vector<16x64xf32> to vector<16xf32>
      %447 = vector.shape_cast %446 : vector<16xf32> to vector<16x1xf32>
      %cst_145 = arith.constant 6.400000e+01 : f32
      %448 = vector.broadcast %cst_145 : f32 to vector<16x1xf32>
      %449 = arith.divf %447, %448 : vector<16x1xf32>
      %450 = vector.broadcast %442 : vector<16x1xf32> to vector<16x64xf32>
      %451 = arith.subf %438, %450 : vector<16x64xf32>
      %cst_146 = arith.constant 9.99999996E-13 : f32
      %452 = vector.broadcast %cst_146 : f32 to vector<16x1xf32>
      %453 = arith.addf %449, %452 : vector<16x1xf32>
      %454 = math.rsqrt %453 : vector<16x1xf32>
      %455 = vector.broadcast %454 : vector<16x1xf32> to vector<16x64xf32>
      %456 = arith.mulf %451, %455 : vector<16x64xf32>
      %457 = vector.broadcast %41 : vector<1x64xf32> to vector<16x64xf32>
      %458 = arith.mulf %456, %457 : vector<16x64xf32>
      %459 = vector.broadcast %42 : vector<1x64xf32> to vector<16x64xf32>
      %460 = arith.addf %458, %459 : vector<16x64xf32>
      %c0_147 = arith.constant 0 : index
      %c0_148 = arith.constant 0 : index
      %461 = vector.load %arg28[%c0_147, %c0_148] : memref<16x64xf32, #tpu.memory_space<vmem>>, vector<16x64xf32>
      tpu.vector_store %arg28[%c0_147, %c0_148], %460 {strides = array<i32>} : memref<16x64xf32, #tpu.memory_space<vmem>>, vector<16x64xf32>,
      %462 = arith.truncf %460 : vector<16x64xf32> to vector<16x64xbf16>
      %c0_149 = arith.constant 0 : index
      %c0_150 = arith.constant 0 : index
      %463 = vector.load %arg29[%c0_149, %c0_150] : memref<16x64xbf16, #tpu.memory_space<vmem>>, vector<16x64xbf16>
      tpu.vector_store %arg29[%c0_149, %c0_150], %462 {strides = array<i32>} : memref<16x64xbf16, #tpu.memory_space<vmem>>, vector<16x64xbf16>,
      %cst_151 = arith.constant 0.000000e+00 : f32
      %464 = vector.broadcast %cst_151 : f32 to vector<16x64xf32>
      %c0_152 = arith.constant 0 : index
      %c0_153 = arith.constant 0 : index
      %465 = vector.load %arg30[%c0_152, %c0_153] : memref<16x64xf32, #tpu.memory_space<vmem>>, vector<16x64xf32>
      tpu.vector_store %arg30[%c0_152, %c0_153], %464 {strides = array<i32>} : memref<16x64xf32, #tpu.memory_space<vmem>>, vector<16x64xf32>,
    } else {
    }
    %c0 = arith.constant 0 : index
    %c0_1 = arith.constant 0 : index
    %3 = vector.load %arg29[%c0, %c0_1] : memref<16x64xbf16, #tpu.memory_space<vmem>>, vector<16x64xbf16>
    %c0_2 = arith.constant 0 : index
    %c0_3 = arith.constant 0 : index
    %4 = vector.load %arg21[%c0_2, %c0_3] : memref<64x128xbf16, #tpu.memory_space<vmem>>, vector<64x128xbf16>
    %cst = arith.constant dense<0.000000e+00> : vector<16x128xf32>
    %5 = tpu.matmul %3, %4, %cst {dimension_numbers = #tpu.dot_dimension_numbers<[1], [0], [0], [1], [0, 0, 1, 1], [], []>} : vector<16x64xbf16>, vector<64x128xbf16>, vector<16x128xf32> -> vector<16x128xf32>
    %c0_4 = arith.constant 0 : index
    %c0_5 = arith.constant 0 : index
    %6 = vector.load %arg22[%c0_4, %c0_5] : memref<1x128xf32, #tpu.memory_space<vmem>>, vector<1x128xf32>
    %7 = vector.broadcast %6 : vector<1x128xf32> to vector<16x128xf32>
    %8 = arith.addf %5, %7 : vector<16x128xf32>
    %cst_6 = arith.constant 5.000000e-01 : f32
    %9 = vector.broadcast %cst_6 : f32 to vector<16x128xf32>
    %10 = arith.mulf %9, %8 : vector<16x128xf32>
    %11 = arith.mulf %8, %8 : vector<16x128xf32>
    %12 = arith.mulf %11, %8 : vector<16x128xf32>
    %cst_7 = arith.constant 4.471500e-02 : f32
    %13 = vector.broadcast %cst_7 : f32 to vector<16x128xf32>
    %14 = arith.mulf %13, %12 : vector<16x128xf32>
    %15 = arith.addf %8, %14 : vector<16x128xf32>
    %cst_8 = arith.constant 0.797884583 : f32
    %16 = vector.broadcast %cst_8 : f32 to vector<16x128xf32>
    %17 = arith.mulf %16, %15 : vector<16x128xf32>
    %18 = math.tanh %17 : vector<16x128xf32>
    %cst_9 = arith.constant 1.000000e+00 : f32
    %19 = vector.broadcast %cst_9 : f32 to vector<16x128xf32>
    %20 = arith.addf %19, %18 : vector<16x128xf32>
    %21 = arith.mulf %10, %20 : vector<16x128xf32>
    %c0_10 = arith.constant 0 : index
    %c0_11 = arith.constant 0 : index
    %22 = vector.load %arg30[%c0_10, %c0_11] : memref<16x64xf32, #tpu.memory_space<vmem>>, vector<16x64xf32>
    %23 = arith.truncf %21 : vector<16x128xf32> to vector<16x128xbf16>
    %c0_12 = arith.constant 0 : index
    %c0_13 = arith.constant 0 : index
    %24 = vector.load %arg23[%c0_12, %c0_13] : memref<128x64xbf16, #tpu.memory_space<vmem>>, vector<128x64xbf16>
    %cst_14 = arith.constant dense<0.000000e+00> : vector<16x64xf32>
    %25 = tpu.matmul %23, %24, %cst_14 {dimension_numbers = #tpu.dot_dimension_numbers<[1], [0], [0], [1], [0, 0, 1, 1], [], []>} : vector<16x128xbf16>, vector<128x64xbf16>, vector<16x64xf32> -> vector<16x64xf32>
    %26 = arith.addf %22, %25 : vector<16x64xf32>
    %c0_15 = arith.constant 0 : index
    %c0_16 = arith.constant 0 : index
    %27 = vector.load %arg30[%c0_15, %c0_16] : memref<16x64xf32, #tpu.memory_space<vmem>>, vector<16x64xf32>
    tpu.vector_store %arg30[%c0_15, %c0_16], %26 {strides = array<i32>} : memref<16x64xf32, #tpu.memory_space<vmem>>, vector<16x64xf32>,
    %c0_i32_17 = arith.constant 0 : i32
    %28 = arith.cmpi eq, %arg1, %c0_i32_17 : i32
    %29 = arith.extui %28 : i1 to i32
    %c0_i32_18 = arith.constant 0 : i32
    %30 = arith.cmpi ne, %29, %c0_i32_18 : i32
    scf.if %30 {
      %c0_19 = arith.constant 0 : index
      %c0_20 = arith.constant 0 : index
      %31 = vector.load %arg30[%c0_19, %c0_20] : memref<16x64xf32, #tpu.memory_space<vmem>>, vector<16x64xf32>
      %c0_21 = arith.constant 0 : index
      %c0_22 = arith.constant 0 : index
      %32 = vector.load %arg24[%c0_21, %c0_22] : memref<1x64xf32, #tpu.memory_space<vmem>>, vector<1x64xf32>
      %33 = vector.broadcast %32 : vector<1x64xf32> to vector<16x64xf32>
      %34 = arith.addf %31, %33 : vector<16x64xf32>
      %c0_23 = arith.constant 0 : index
      %c0_24 = arith.constant 0 : index
      %35 = vector.load %arg28[%c0_23, %c0_24] : memref<16x64xf32, #tpu.memory_space<vmem>>, vector<16x64xf32>
      %36 = arith.addf %34, %35 : vector<16x64xf32>
      %c0_25 = arith.constant 0 : index
      %c0_26 = arith.constant 0 : index
      %37 = vector.load %arg25[%c0_25, %c0_26] : memref<1x64xf32, #tpu.memory_space<vmem>>, vector<1x64xf32>
      %c0_27 = arith.constant 0 : index
      %c0_28 = arith.constant 0 : index
      %38 = vector.load %arg26[%c0_27, %c0_28] : memref<1x64xf32, #tpu.memory_space<vmem>>, vector<1x64xf32>
      %cst_29 = arith.constant dense<0.000000e+00> : vector<16xf32>
      %39 = vector.multi_reduction <add>, %36, %cst_29 [1] : vector<16x64xf32> to vector<16xf32>
      %40 = vector.shape_cast %39 : vector<16xf32> to vector<16x1xf32>
      %cst_30 = arith.constant 6.400000e+01 : f32
      %41 = vector.broadcast %cst_30 : f32 to vector<16x1xf32>
      %42 = arith.divf %40, %41 : vector<16x1xf32>
      %43 = vector.broadcast %42 : vector<16x1xf32> to vector<16x64xf32>
      %44 = arith.subf %36, %43 : vector<16x64xf32>
      %45 = arith.mulf %44, %44 : vector<16x64xf32>
      %cst_31 = arith.constant dense<0.000000e+00> : vector<16xf32>
      %46 = vector.multi_reduction <add>, %45, %cst_31 [1] : vector<16x64xf32> to vector<16xf32>
      %47 = vector.shape_cast %46 : vector<16xf32> to vector<16x1xf32>
      %cst_32 = arith.constant 6.400000e+01 : f32
      %48 = vector.broadcast %cst_32 : f32 to vector<16x1xf32>
      %49 = arith.divf %47, %48 : vector<16x1xf32>
      %50 = vector.broadcast %42 : vector<16x1xf32> to vector<16x64xf32>
      %51 = arith.subf %36, %50 : vector<16x64xf32>
      %cst_33 = arith.constant 9.99999996E-13 : f32
      %52 = vector.broadcast %cst_33 : f32 to vector<16x1xf32>
      %53 = arith.addf %49, %52 : vector<16x1xf32>
      %54 = math.rsqrt %53 : vector<16x1xf32>
      %55 = vector.broadcast %54 : vector<16x1xf32> to vector<16x64xf32>
      %56 = arith.mulf %51, %55 : vector<16x64xf32>
      %57 = vector.broadcast %37 : vector<1x64xf32> to vector<16x64xf32>
      %58 = arith.mulf %56, %57 : vector<16x64xf32>
      %59 = vector.broadcast %38 : vector<1x64xf32> to vector<16x64xf32>
      %60 = arith.addf %58, %59 : vector<16x64xf32>
      %c0_34 = arith.constant 0 : index
      %c0_35 = arith.constant 0 : index
      %61 = vector.load %arg27[%c0_34, %c0_35] : memref<16x64xf32, #tpu.memory_space<vmem>>, vector<16x64xf32>
      tpu.vector_store %arg27[%c0_34, %c0_35], %60 {strides = array<i32>} : memref<16x64xf32, #tpu.memory_space<vmem>>, vector<16x64xf32>,
    } else {
    }
    return
  }
  func.func @transform_0(%arg0: i32, %arg1: i32) -> (i32, i32) {
    %c0_i32 = arith.constant 0 : i32
    %c0_i32_0 = arith.constant 0 : i32
    return %arg0, %c0_i32 : i32, i32
  }
  func.func @transform_1(%arg0: i32, %arg1: i32) -> (i32, i32) {
    %c0_i32 = arith.constant 0 : i32
    %c0_i32_0 = arith.constant 0 : i32
    return %arg0, %c0_i32 : i32, i32
  }
  func.func @transform_2(%arg0: i32, %arg1: i32) -> (i32, i32, i32) {
    %c0_i32 = arith.constant 0 : i32
    %c0_i32_0 = arith.constant 0 : i32
    %c0_i32_1 = arith.constant 0 : i32
    return %arg0, %c0_i32, %c0_i32_0 : i32, i32, i32
  }
  func.func @transform_3(%arg0: i32, %arg1: i32) -> (i32, i32, i32) {
    %c0_i32 = arith.constant 0 : i32
    %c0_i32_0 = arith.constant 0 : i32
    %c0_i32_1 = arith.constant 0 : i32
    return %arg0, %c0_i32, %c0_i32_0 : i32, i32, i32
  }
  func.func @transform_4(%arg0: i32, %arg1: i32) -> (i32, i32, i32) {
    %c0_i32 = arith.constant 0 : i32
    %c0_i32_0 = arith.constant 0 : i32
    %c0_i32_1 = arith.constant 0 : i32
    return %arg0, %c0_i32, %c0_i32_0 : i32, i32, i32
  }
  func.func @transform_5(%arg0: i32, %arg1: i32) -> (i32, i32) {
    %c0_i32 = arith.constant 0 : i32
    %c0_i32_0 = arith.constant 0 : i32
    %c0_i32_1 = arith.constant 0 : i32
    return %c0_i32, %c0_i32_0 : i32, i32
  }
  func.func @transform_6(%arg0: i32, %arg1: i32) -> (i32, i32) {
    %c0_i32 = arith.constant 0 : i32
    %c0_i32_0 = arith.constant 0 : i32
    %c0_i32_1 = arith.constant 0 : i32
    return %c0_i32, %c0_i32_0 : i32, i32
  }
  func.func @transform_7(%arg0: i32, %arg1: i32) -> (i32, i32) {
    %c0_i32 = arith.constant 0 : i32
    %c0_i32_0 = arith.constant 0 : i32
    %c0_i32_1 = arith.constant 0 : i32
    return %c0_i32, %c0_i32_0 : i32, i32
  }
  func.func @transform_8(%arg0: i32, %arg1: i32) -> (i32, i32) {
    %c0_i32 = arith.constant 0 : i32
    %c0_i32_0 = arith.constant 0 : i32
    %c0_i32_1 = arith.constant 0 : i32
    return %c0_i32, %c0_i32_0 : i32, i32
  }
  func.func @transform_9(%arg0: i32, %arg1: i32) -> (i32, i32) {
    %c0_i32 = arith.constant 0 : i32
    %c0_i32_0 = arith.constant 0 : i32
    %c0_i32_1 = arith.constant 0 : i32
    return %c0_i32, %c0_i32_0 : i32, i32
  }
  func.func @transform_10(%arg0: i32, %arg1: i32) -> (i32, i32) {
    %c0_i32 = arith.constant 0 : i32
    %c0_i32_0 = arith.constant 0 : i32
    %c0_i32_1 = arith.constant 0 : i32
    return %c0_i32, %c0_i32_0 : i32, i32
  }
  func.func @transform_11(%arg0: i32, %arg1: i32) -> (i32, i32) {
    %c0_i32 = arith.constant 0 : i32
    %c0_i32_0 = arith.constant 0 : i32
    %c0_i32_1 = arith.constant 0 : i32
    return %c0_i32, %c0_i32_0 : i32, i32
  }
  func.func @transform_12(%arg0: i32, %arg1: i32) -> (i32, i32) {
    %c0_i32 = arith.constant 0 : i32
    %c0_i32_0 = arith.constant 0 : i32
    %c0_i32_1 = arith.constant 0 : i32
    return %c0_i32, %c0_i32_0 : i32, i32
  }
  func.func @transform_13(%arg0: i32, %arg1: i32) -> (i32, i32) {
    %c0_i32 = arith.constant 0 : i32
    %c0_i32_0 = arith.constant 0 : i32
    %c0_i32_1 = arith.constant 0 : i32
    return %c0_i32, %c0_i32_0 : i32, i32
  }
  func.func @transform_14(%arg0: i32, %arg1: i32) -> (i32, i32) {
    %c0_i32 = arith.constant 0 : i32
    %c0_i32_0 = arith.constant 0 : i32
    %c0_i32_1 = arith.constant 0 : i32
    return %c0_i32, %c0_i32_0 : i32, i32
  }
  func.func @transform_15(%arg0: i32, %arg1: i32) -> (i32, i32) {
    %c0_i32 = arith.constant 0 : i32
    %c0_i32_0 = arith.constant 0 : i32
    %c0_i32_1 = arith.constant 0 : i32
    return %c0_i32, %c0_i32_0 : i32, i32
  }
  func.func @transform_16(%arg0: i32, %arg1: i32) -> (i32, i32) {
    %c0_i32 = arith.constant 0 : i32
    %c0_i32_0 = arith.constant 0 : i32
    %c0_i32_1 = arith.constant 0 : i32
    return %c0_i32, %c0_i32_0 : i32, i32
  }
  func.func @transform_17(%arg0: i32, %arg1: i32) -> (i32, i32) {
    %c0_i32 = arith.constant 0 : i32
    %c0_i32_0 = arith.constant 0 : i32
    %c0_i32_1 = arith.constant 0 : i32
    return %c0_i32, %c0_i32_0 : i32, i32
  }
  func.func @transform_18(%arg0: i32, %arg1: i32) -> (i32, i32) {
    %c0_i32 = arith.constant 0 : i32
    %c0_i32_0 = arith.constant 0 : i32
    %c0_i32_1 = arith.constant 0 : i32
    return %c0_i32, %c0_i32_0 : i32, i32
  }
  func.func @transform_19(%arg0: i32, %arg1: i32) -> (i32, i32) {
    %c0_i32 = arith.constant 0 : i32
    %c0_i32_0 = arith.constant 0 : i32
    return %c0_i32, %arg1 : i32, i32
  }
  func.func @transform_20(%arg0: i32, %arg1: i32) -> (i32, i32) {
    %c0_i32 = arith.constant 0 : i32
    %c0_i32_0 = arith.constant 0 : i32
    return %c0_i32, %arg1 : i32, i32
  }
  func.func @transform_21(%arg0: i32, %arg1: i32) -> (i32, i32) {
    %c0_i32 = arith.constant 0 : i32
    %c0_i32_0 = arith.constant 0 : i32
    return %arg1, %c0_i32 : i32, i32
  }
  func.func @transform_22(%arg0: i32, %arg1: i32) -> (i32, i32) {
    %c0_i32 = arith.constant 0 : i32
    %c0_i32_0 = arith.constant 0 : i32
    %c0_i32_1 = arith.constant 0 : i32
    return %c0_i32, %c0_i32_0 : i32, i32
  }
  func.func @transform_23(%arg0: i32, %arg1: i32) -> (i32, i32) {
    %c0_i32 = arith.constant 0 : i32
    %c0_i32_0 = arith.constant 0 : i32
    %c0_i32_1 = arith.constant 0 : i32
    return %c0_i32, %c0_i32_0 : i32, i32
  }
  func.func @transform_24(%arg0: i32, %arg1: i32) -> (i32, i32) {
    %c0_i32 = arith.constant 0 : i32
    %c0_i32_0 = arith.constant 0 : i32
    %c0_i32_1 = arith.constant 0 : i32
    return %c0_i32, %c0_i32_0 : i32, i32
  }
  func.func @transform_25(%arg0: i32, %arg1: i32) -> (i32, i32) {
    %c0_i32 = arith.constant 0 : i32
    %c0_i32_0 = arith.constant 0 : i32
    return %arg0, %c0_i32 : i32, i32
  }
}

</mosaic_0001>

<bundles_post_ra>
// kernel: tpu_custom_call.1
= control target key start
LH: loop header
LB: loop body
LE: loop exit
PB: predicated region body
PF: predicated region fallthrough
CT: control target
= control target key end

     0   :  { %s6693_s0 = inlined_call_operand.hbm [shape: f32[32,64], index: 0, kind: input, shape index: {}]   ;;  %s6694_s1 = inlined_call_operand.hbm [shape: bf16[32,96], index: 1, kind: input, shape index: {}]   ;;  %s6695_s2 = inlined_call_operand.vmem [shape: bf16[4,1,8], index: 2, kind: input, shape index: {}]   ;;  %s6696_s3 = inlined_call_operand.vmem [shape: bf16[4,1,8], index: 3, kind: input, shape index: {}]   ;;  %s6697_s4 = inlined_call_operand.hbm [shape: bf16[4,8,8], index: 4, kind: input, shape index: {}]   ;;  %s6698_s5 = inlined_call_operand.hbm [shape: bf16[64,64], index: 5, kind: input, shape index: {}]   ;;  %s6699_s6 = inlined_call_operand.hbm [shape: f32[1,64], index: 6, kind: input, shape index: {}]   ;;  %s6700_s7 = inlined_call_operand.vmem [shape: bf16[96,128], index: 7, kind: input, shape index: {}]   ;;  %s6701_s8 = inlined_call_operand.hbm [shape: f32[1,128], index: 8, kind: input, shape index: {}]   ;;  %s6702_s9 = inlined_call_operand.hbm [shape: bf16[64,64], index: 9, kind: input, shape index: {}]   ;;  %s6703_s10 = inlined_call_operand.hbm [shape: f32[1,64], index: 10, kind: input, shape index: {}]   ;;  %s6704_s11 = inlined_call_operand.hbm [shape: f32[1,64], index: 11, kind: input, shape index: {}]   ;;  %s6705_s12 = inlined_call_operand.hbm [shape: f32[1,64], index: 12, kind: input, shape index: {}]   ;;  %s6706_s13 = inlined_call_operand.vmem [shape: bf16[64,192], index: 13, kind: input, shape index: {}]   ;;  %s6707_s14 = inlined_call_operand.vmem [shape: f32[1,192], index: 14, kind: input, shape index: {}]   ;;  %s6708_s15 = inlined_call_operand.hbm [shape: bf16[64,64], index: 15, kind: input, shape index: {}]   ;;  %s6709_s16 = inlined_call_operand.hbm [shape: f32[1,64], index: 16, kind: input, shape index: {}]   ;;  %s6710_s17 = inlined_call_operand.hbm [shape: f32[1,64], index: 17, kind: input, shape index: {}]   ;;  %s6711_s18 = inlined_call_operand.hbm [shape: f32[1,64], index: 18, kind: input, shape index: {}]   ;;  %s6712_s19 = inlined_call_operand.hbm [shape: bf16[64,128], index: 19, kind: input, shape index: {}]   ;;  %s6713_s20 = inlined_call_operand.hbm [shape: f32[1,128], index: 20, kind: input, shape index: {}]   ;;  %s6714_s21 = inlined_call_operand.vmem [shape: bf16[128,64], index: 21, kind: input, shape index: {}]   ;;  %s6715_s22 = inlined_call_operand.vmem [shape: f32[1,64], index: 22, kind: input, shape index: {}]   ;;  %s6716_s23 = inlined_call_operand.vmem [shape: f32[1,64], index: 23, kind: input, shape index: {}]   ;;  %s6717_s24 = inlined_call_operand.vmem [shape: f32[1,64], index: 24, kind: input, shape index: {}]   ;;  %s6718_s25 = inlined_call_operand.hbm [shape: f32[32,64], index: 25, kind: output, shape index: {}]  }
   0x1   :  { %6745 = sst [smem:[#allocation51_spill]] %s6693_s0 }
   0x2   :  { %6746 = sst [smem:[#allocation52_spill]] %s6694_s1 }
   0x3   :  { %6747 = sst [smem:[#allocation53_spill]] %s6695_s2 }
   0x4   :  { %6748 = sst [smem:[#allocation54_spill]] %s6696_s3 }
   0x5   :  { %6749 = sst [smem:[#allocation55_spill]] %s6697_s4 }
   0x6   :  { %6750 = sst [smem:[#allocation56_spill]] %s6698_s5 }
   0x7   :  { %6751 = sst [smem:[#allocation57_spill]] %s6699_s6 }
   0x8   :  { %6752 = sst [smem:[#allocation58_spill]] %s6700_s7 }
   0x9   :  { %6753 = sst [smem:[#allocation59_spill]] %s6701_s8 }
   0xa   :  { %6754 = sst [smem:[#allocation60_spill]] %s6702_s9 }
   0xb   :  { %6755 = sst [smem:[#allocation61_spill]] %s6703_s10 }
   0xc   :  { %6756 = sst [smem:[#allocation62_spill]] %s6705_s12 }
   0xd   :  { %6757 = sst [smem:[#allocation63_spill]] %s6706_s13 }
   0xe   :  { %6758 = sst [smem:[#allocation64_spill]] %s6707_s14 }
   0xf   :  { %6759 = sst [smem:[#allocation65_spill]] %s6709_s16 }
  0x10   :  { %6760 = sst [smem:[#allocation66_spill]] %s6711_s18 }
  0x11   :  { %6761 = sst [smem:[#allocation67_spill]] %s6714_s21 }
  0x12   :  { %6762 = sst [smem:[#allocation68_spill]] %s6715_s22 }
  0x13   :  { %6763 = sst [smem:[#allocation69_spill]] %s6716_s23 }
  0x14   :  { %6764 = sst [smem:[#allocation70_spill]] %s6717_s24 }
  0x15   :  { %6765 = sst [smem:[#allocation71_spill]] %s6718_s25 }
  0x16   :  { %30 = vsyncpa [#allocation6], 0 }
  0x17   :  { %32 = vsyncpa [#allocation6 + $0x1], 0 }
  0x18   :  { %33 = vsyncpa [#allocation9], 0 }
  0x19   :  { %35 = vsyncpa [#allocation9 + $0x1], 0 }
  0x1a   :  { %36 = vsyncpa [#allocation12], 0 }
  0x1b   :  { %37 = vsyncpa [#allocation15], 0 }
  0x1c   :  { %38 = vsyncpa [#allocation18], 0 }
  0x1d   :  { %39 = vsyncpa [#allocation21], 0 }
  0x1e   :  { %40 = vsyncpa [#allocation24], 0 }
  0x1f   :  { %41 = vsyncpa [#allocation27], 0 }
  0x20   :  { %42 = vsyncpa [#allocation30], 0 }
  0x21   :  { %43 = vsyncpa [#allocation7], 0 }
  0x22   :  { %45 = vsyncpa [#allocation7 + $0x1], 0  ;;  %s5741_s29 = smov 0   ;;  %s5743_s2 = smov 0  }
  0x23   :  { %s5745_s6 = smov 0   ;;  %s5747_s30 = smov 0  }
  0x24   :  { %s5749_s7 = smov 0   ;;  %s5751_s3 = smov 0  }
  0x25 LB: > { %6766 = sst [smem:[#allocation42_spill]] %s5556_s29  ;;  %s5772_s26 = sadd.s32 4294967295, %s5576_s3   ;;  %s5576_s3 = sphi %s5751_s3, %s51_s3   ;;  %s5572_s7 = sphi %s5749_s7, %s6841_s7   ;;  %s5568_s30 = sphi %s5747_s30, %s6840_s30   ;;  %s5564_s6 = sphi %s5745_s6, %s6836_s6   ;;  %s5560_s2 = sphi %s5743_s2, %s6839_s2   ;;  %s5556_s29 = sphi %s5741_s29, %s6838_s29  }
  0x26   : > { %6767 = sst [smem:[#allocation43_spill]] %s5564_s6  ;;  %p4172_p0 = scmp.ge.s32.totalorder %s5576_s3, 1 }
  0x27   : > { %6768 = sst [smem:[#allocation44_spill]] %s5568_s30  ;;  %p6724_p1 = scmp.eq.s32.totalorder %s5772_s26, 0 }
  0x28   : > { %6769 = sst [smem:[#allocation45_spill]] %s5576_s3  ;;  %p659_p2 = scmp.lt.s32.totalorder %s5576_s3, 3 }
  0x29   : > { %6770 = sst [smem:[#allocation46_spill]] %s5772_s26  ;;  %s5578_s8 = smov [#allocation11]  }
  0x2a   : > { %p5777_p3 = pnand %p4172_p0, %p659_p2  ;;  %s671_s27 = sshll.u32 %s5578_s8, 4  ;;  %s672_s27 = int_to_ptr.vmem [resolvable:$true] %s671_s27 }
  0x2b   : > { %s5579_s28 = smov [#allocation14]   ;;  %s5580_s5 = smov [#allocation17]  }
  0x2c   : > { %s6771_s1 = scalar_select %p5777_p3, 1, 0 }
  0x2d   : > { %p4759_p4 = pneg %p5777_p3  ;;  %s699_s9 = sshll.u32 %s5579_s28, 4  ;;  %s700_s9 = int_to_ptr.vmem [resolvable:$true] %s699_s9 }
  0x2e   : > { %s723_s0 = sshll.u32 %s5580_s5, 4  ;;  %s5053_s8 = scalar_lea.vmem %s672_s27, 512  ;;  %s724_s0 = int_to_ptr.vmem [resolvable:$true] %s723_s0 }
  0x2f   : > { %p5786_p6 = pnand %p4759_p4, %p6724_p1  ;;  %p5054_p8 = scmp.ne.s32.totalorder %s672_s27, %s5053_s8 }
  0x30   : > { %p5061_p11 = scmp.lt.s32.totalorder %s672_s27, %s672_s27  ;;  %p5062_p12 = scmp.lt.s32.totalorder %s5053_s8, %s5053_s8 }
  0x31   : > { %p5792_p7 = pneg %p5786_p6 }
  0x32   : > { %p5063_p13 = por %p5062_p12, %p5061_p11 }
  0x33   : > { %p5056_p9 = pnand %p5054_p8, %p5792_p7 }
  0x35   : > { %p5057_p10 = pneg %p5056_p9 }
  0x37   : > { %p5064_p0 = pnand %p5063_p13, %p5057_p10 }
  0x39   : > { %5067 = shalt.err (!%p5064_p0)
}
  0x3a   : > { %s6725_s28 = smov 64   ;;  %s6727_s5 = smov 4  }
  0x3b   : > { %s6774_s22 = sld [smem:[#allocation56_spill]]  ;;  %s5079_s21 = scalar_lea.vmem %s700_s9, 16 }
  0x3c   : > { %p5080_p2 = scmp.ne.s32.totalorder %s700_s9, %s5079_s21  ;;  %s5086_s8 = scalar_lea.vmem %s700_s9, 32 }
  0x3d   : > { %p5087_p9 = scmp.lt.s32.totalorder %s700_s9, %s700_s9  ;;  %p5088_p10 = scmp.lt.s32.totalorder %s5086_s8, %s5079_s21 }
  0x3e   : > { %p5082_p4 = pnand %p5080_p2, %p5792_p7 }
  0x3f   : > { %p5089_p11 = por %p5088_p10, %p5087_p9 }
  0x40   : > { %p5083_p8 = pneg %p5082_p4 }
  0x41   : > { %4762 = dma.hbm_to_vmem [thread:$0]  (!%p5786_p6), %s6774_s22, 512, %s672_s27, [#allocation12], %s6725_s28, %s6725_s28, %s6727_s5  }
  0x42   : > { %p5090_p12 = pnand %p5089_p11, %p5083_p8 }
  0x44   : > { %5093 = shalt.err (!%p5090_p12)
}
  0x45   : > { %s6775_s30 = sld [smem:[#allocation59_spill]]  ;;  %s5105_s22 = scalar_lea.vmem %s724_s0, 16 }
  0x46   : > { %p5106_p13 = scmp.ne.s32.totalorder %s724_s0, %s5105_s22  ;;  %s5112_s23 = scalar_lea.vmem %s724_s0, 32 }
  0x47   : > { %p5113_p4 = scmp.lt.s32.totalorder %s724_s0, %s724_s0  ;;  %p5114_p5 = scmp.lt.s32.totalorder %s5112_s23, %s5105_s22 }
  0x48   : > { %p5108_p0 = pnand %p5106_p13, %p5792_p7 }
  0x49   : > { %p5115_p1 = por %p5114_p5, %p5113_p4 }
  0x4a   : > { %p5109_p2 = pneg %p5108_p0 }
  0x4b   : > { %4768 = dma.hbm_to_vmem [thread:$0]  (!%p5786_p6), %s6775_s30, 16, %s700_s9, [#allocation15]  }
  0x4c   : > { %p5116_p9 = pnand %p5115_p1, %p5109_p2 }
  0x4e   : > { %5119 = shalt.err (!%p5116_p9)
}
  0x4f   : > { %s6776_s10 = sld [smem:[#allocation61_spill]]  ;;  %s5583_s13 = smov [#allocation20]  }
  0x50   : > { %s745_s14 = sshll.u32 %s5583_s13, 4  ;;  %s5584_s30 = smov [#allocation23]   ;;  %s746_s14 = int_to_ptr.vmem [resolvable:$true] %s745_s14 }
  0x51   : > { %s775_s27 = sshll.u32 %s5584_s30, 4  ;;  %s5131_s9 = scalar_lea.vmem %s746_s14, 16  ;;  %s776_s27 = int_to_ptr.vmem [resolvable:$true] %s775_s27 }
  0x52   : > { %p5132_p8 = scmp.ne.s32.totalorder %s746_s14, %s5131_s9  ;;  %s5138_s8 = scalar_lea.vmem %s746_s14, 32 }
  0x53   : > { %p5139_p1 = scmp.lt.s32.totalorder %s746_s14, %s746_s14  ;;  %p5140_p5 = scmp.lt.s32.totalorder %s5138_s8, %s5131_s9 }
  0x54   : > { %p5134_p10 = pnand %p5132_p8, %p5792_p7 }
  0x55   : > { %4774 = dma.hbm_to_vmem [thread:$0]  (!%p5786_p6), %s6776_s10, 16, %s724_s0, [#allocation18]  }
  0x56   : > { %p5135_p11 = pneg %p5134_p10  ;;  %p5141_p12 = por %p5140_p5, %p5139_p1 }
  0x58   : > { %p5142_p13 = pnand %p5141_p12, %p5135_p11 }
  0x5a   : > { %5145 = shalt.err (!%p5142_p13)
}
  0x5b   : > { %s6777_s12 = sld [smem:[#allocation62_spill]]  ;;  %s5157_s23 = scalar_lea.vmem %s776_s27, 16 }
  0x5c   : > { %p5158_p0 = scmp.ne.s32.totalorder %s776_s27, %s5157_s23  ;;  %s5164_s21 = scalar_lea.vmem %s776_s27, 32 }
  0x5d   : > { %p5165_p9 = scmp.lt.s32.totalorder %s776_s27, %s776_s27  ;;  %p5166_p8 = scmp.lt.s32.totalorder %s5164_s21, %s5157_s23 }
  0x5e   : > { %p5160_p2 = pnand %p5158_p0, %p5792_p7 }
  0x5f   : > { %p5167_p10 = por %p5166_p8, %p5165_p9 }
  0x60   : > { %p5161_p4 = pneg %p5160_p2 }
  0x61   : > { %4780 = dma.hbm_to_vmem [thread:$0]  (!%p5786_p6), %s6777_s12, 16, %s746_s14, [#allocation21]  }
  0x62   : > { %p5168_p1 = pnand %p5167_p10, %p5161_p4 }
  0x64   : > { %5171 = shalt.err (!%p5168_p1)
}
  0x65   : > { %s6778_s16 = sld [smem:[#allocation65_spill]]  ;;  %s5585_s14 = smov [#allocation26]  }
  0x66   : > { %s797_s30 = sshll.u32 %s5585_s14, 4  ;;  %s798_s30 = int_to_ptr.vmem [resolvable:$true] %s797_s30 }
  0x67   : > { %s5183_s9 = scalar_lea.vmem %s798_s30, 16  ;;  %s5190_s8 = scalar_lea.vmem %s798_s30, 32 }
  0x68   : > { %p5184_p11 = scmp.ne.s32.totalorder %s798_s30, %s5183_s9  ;;  %p5191_p13 = scmp.lt.s32.totalorder %s798_s30, %s798_s30 }
  0x69   : > { %p5192_p0 = scmp.lt.s32.totalorder %s5190_s8, %s5183_s9 }
  0x6a   : > { %p5186_p5 = pnand %p5184_p11, %p5792_p7 }
  0x6b   : > { %4786 = dma.hbm_to_vmem [thread:$0]  (!%p5786_p6), %s6778_s16, 16, %s776_s27, [#allocation24]  }
  0x6c   : > { %p5187_p12 = pneg %p5186_p5  ;;  %p5193_p2 = por %p5192_p0, %p5191_p13 }
  0x6e   : > { %p5194_p4 = pnand %p5193_p2, %p5187_p12 }
  0x70   : > { %5197 = shalt.err (!%p5194_p4)
}
  0x71   : > { %s6779_s18 = sld [smem:[#allocation66_spill]]  ;;  %s4171_s27 = sadd.s32 4294967294, %s5576_s3  }
  0x72   : > { %s63_s23 = sadd.s32 1, %s5572_s7  ;;  %s70_s21 = sadd.s32 1, %s5564_s6 }
  0x73   : > { %p65_p9 = scmp.ge.s32.totalorder %s63_s23, 2  ;;  %p77_p8 = scmp.ne.s32.totalorder %s5564_s6, %s5560_s2 }
  0x74   : > { %p78_p10 = scmp.eq.s32.totalorder %s5576_s3, 0  ;;  %p83_p11 = scmp.ne.s32.totalorder %s5560_s2, %s5556_s29 }
  0x75   : > { %s6843_s23 = smov (%p65_p9, %s63_s23), 0  ;;  %p646_p5 = scmp.eq.s32.totalorder %s5772_s26, 1 }
  0x76   : > { %6780 = sst [smem:[#allocation47_spill]] %s6843_s23  ;;  %p5849_p1 = por %p78_p10, %p77_p8 }
  0x77   : > { %4792 = dma.hbm_to_vmem [thread:$0]  (!%p5786_p6), %s6779_s18, 16, %s798_s30, [#allocation27]  }
  0x78   : > { %s67_s13 = ssub.s32 %s5572_s7, %s6843_s23  ;;  %p6782_p13 = scmp.eq.s32.totalorder %s5772_s26, 0 }
  0x79   : > { %p68_p12 = scmp.eq.s32.totalorder %s67_s13, 0  ;;  %p5864_p2 = por %p646_p5, %p77_p8 }
  0x7a   : > { %p5860_p0 = por %p6782_p13, %p83_p11  ;;  %p652_p4 = scmp.eq.s32.totalorder %s4171_s27, 1 }
  0x7b   : > { %s6784_s30 = scalar_select %p5864_p2, 1, 0 }
  0x7c   : > { %s6783_s14 = scalar_select %p5860_p0, 1, 0 }
  0x7d   : > { %6785 = sst [smem:[#allocation48_spill]] %s6784_s30  ;;  %p5871_p9 = por %p652_p4, %p83_p11 }
  0x7e   : > { %s5869_s9 = scalar_select %p68_p12, %s5564_s6, %s70_s21  }
  0x7f   : > { %s6787_s8 = scalar_select %p5871_p9, 1, 0 }
  0x80   : > { %6786 = sst [smem:[#allocation49_spill]] %s5869_s9  ;;  %p4826_p10 = scmp.lt.s32.totalorder %s5576_s3, 2 }
  0x81   : > { %6788 = sst [smem:[#allocation50_spill]] %s6787_s8  ;;  %s5877_s22 = sand.u32 1, %s5564_s6  }
  0x82   : > { %s875_s0 = sand.u32 1, %s5576_s3   ;;  %p5882_p13 = pnand %p4826_p10, %p5849_p1 }
  0x83   : > { %s4191_s28 = sshll.u32 %s5877_s22, 3  ;;  %s4318_s27 = sshll.u32 %s5572_s7, 7 }
  0x84   : > { %s6789_s13 = scalar_select %p5882_p13, 1, 0 }
  0x85   : > { %s6790_s10 = sld [smem:[#allocation52_spill]]  ;;  %s879_s16 = scalar_lea.vmem [#allocation8], %s4191_s28 }
  0x86   : > { %s886_s18 = sshll.u32 %s879_s16, 4  ;;  %s5891_s23 = scalar_lea.sflag [#allocation9], %s875_s0  ;;  %s887_s18 = int_to_ptr.vmem [resolvable:$true] %s886_s18 }
  0x87   : > { %p6739_p8 = pneg %p5882_p13  ;;  %s5211_s24 = scalar_lea.vmem %s887_s18, 128 }
  0x88   : > { %p5212_p1 = scmp.ne.s32.totalorder %s887_s18, %s5211_s24  ;;  %s5586_s9 = smov [#allocation8]  }
  0x89   : > { %s5216_s6 = sshll.u32 %s5586_s9, 4  ;;  %s5217_s6 = int_to_ptr.vmem [resolvable:$false] %s5216_s6 }
  0x8a   : > { %p5214_p11 = pnand %p5212_p1, %p6739_p8  ;;  %s5218_s3 = scalar_lea.vmem %s5217_s6, 256 }
  0x8b   : > { %s885_s12 = scalar_lea.hbm %s6790_s10, %s4318_s27  ;;  %p5219_p12 = scmp.lt.s32.totalorder %s887_s18, %s5217_s6 }
  0x8c   : > { %p5215_p5 = pneg %p5214_p11  ;;  %p5220_p4 = scmp.lt.s32.totalorder %s5218_s3, %s5211_s24 }
  0x8e   : > { %p5221_p10 = por %p5220_p4, %p5219_p12 }
  0x90   : > { %p5222_p9 = pnand %p5221_p10, %p5215_p5 }
  0x92   : > { %5225 = shalt.err (!%p5222_p9)
}
  0x93   : > { %s6791_s10 = smov 4   ;;  %s6792_s16 = smov 64  }
  0x94   : > { %4805 = dma.hbm_to_vmem [thread:$0]  (!%p5882_p13), %s885_s12, 128, %s887_s18, %s5891_s23, %s6792_s16, %s6792_s16, %s6791_s10  }
  0x95   : > { %s6793_s21 = sld [smem:[#allocation55_spill]]  ;;  %s916_s9 = scalar_lea.vmem [#allocation10], %s4191_s28 }
  0x96   : > { %s923_s29 = sshll.u32 %s916_s9, 4  ;;  %s5587_s6 = smov [#allocation13]   ;;  %s5909_s29 = int_to_ptr.vmem [resolvable:$true] %s923_s29 }
  0x97   : > { %s685_s3 = sshll.u32 %s5587_s6, 4  ;;  %s5588_s24 = smov [#allocation16]   ;;  %s686_s3 = int_to_ptr.vmem [resolvable:$true] %s685_s3 }
  0x98   : > { %s709_s30 = sshll.u32 %s5588_s24, 4  ;;  %s5237_s26 = scalar_lea.vmem %s686_s3, 16  ;;  %s710_s30 = int_to_ptr.vmem [resolvable:$true] %s709_s30 }
  0x99   : > { %p5238_p9 = scmp.ne.s32.totalorder %s686_s3, %s5237_s26  ;;  %s5244_s12 = scalar_lea.vmem %s686_s3, 32 }
  0x9a   : > { %p5245_p5 = scmp.lt.s32.totalorder %s686_s3, %s686_s3  ;;  %p5246_p12 = scmp.lt.s32.totalorder %s5244_s12, %s5237_s26 }
  0x9b   : > { %s5907_s8 = scalar_lea.hbm %s6793_s21, %s4318_s27  ;;  %p5240_p1 = pnand %p5238_p9, %p5792_p7 }
  0x9c   : > { %p5247_p4 = por %p5246_p12, %p5245_p5 }
  0x9d   : > { %p5241_p11 = pneg %p5240_p1 }
  0x9f   : > { %p5248_p10 = pnand %p5247_p4, %p5241_p11 }
  0xa1   : > { %5251 = shalt.err (!%p5248_p10)
}
  0xa2   : > { %s6794_s27 = sld [smem:[#allocation57_spill]]  ;;  %s5263_s5 = scalar_lea.vmem %s710_s30, 512 }
  0xa3   : > { %p5264_p8 = scmp.ne.s32.totalorder %s710_s30, %s5263_s5  ;;  %p5271_p1 = scmp.lt.s32.totalorder %s710_s30, %s710_s30 }
  0xa4   : > { %p5272_p0 = scmp.lt.s32.totalorder %s5263_s5, %s5263_s5 }
  0xa5   : > { %p5266_p2 = pnand %p5264_p8, %p5792_p7 }
  0xa6   : > { %p5273_p3 = por %p5272_p0, %p5271_p1 }
  0xa7   : > { %p5267_p9 = pneg %p5266_p2 }
  0xa8   : > { %4765 = dma.hbm_to_vmem [thread:$0]  (!%p5786_p6), %s6794_s27, 16, %s686_s3, [#allocation12]  }
  0xa9   : > { %p5274_p13 = pnand %p5273_p3, %p5267_p9 }
  0xab   : > { %5277 = shalt.err (!%p5274_p13)
}
  0xac   : > { %s6795_s21 = sld [smem:[#allocation60_spill]]  ;;  %s5589_s9 = smov [#allocation19]  }
  0xad   : > { %s734_s6 = sshll.u32 %s5589_s9, 4  ;;  %s5590_s3 = smov [#allocation22]   ;;  %s735_s6 = int_to_ptr.vmem [resolvable:$true] %s734_s6 }
  0xae   : > { %s761_s24 = sshll.u32 %s5590_s3, 4  ;;  %s5289_s12 = scalar_lea.vmem %s735_s6, 16  ;;  %s762_s24 = int_to_ptr.vmem [resolvable:$true] %s761_s24 }
  0xaf   : > { %p5290_p2 = scmp.ne.s32.totalorder %s735_s6, %s5289_s12  ;;  %s5296_s18 = scalar_lea.vmem %s735_s6, 32 }
  0xb0   : > { %p5297_p13 = scmp.lt.s32.totalorder %s735_s6, %s735_s6  ;;  %p5298_p8 = scmp.lt.s32.totalorder %s5296_s18, %s5289_s12 }
  0xb1   : > { %p5292_p3 = pnand %p5290_p2, %p5792_p7 }
  0xb2   : > { %4771 = dma.hbm_to_vmem [thread:$0]  (!%p5786_p6), %s6795_s21, 512, %s710_s30, [#allocation15], %s6792_s16, %s6792_s16, %s6791_s10  }
  0xb3   : > { %p5293_p0 = pneg %p5292_p3  ;;  %p5299_p11 = por %p5298_p8, %p5297_p13 }
  0xb5   : > { %p5300_p5 = pnand %p5299_p11, %p5293_p0 }
  0xb7   : > { %5303 = shalt.err (!%p5300_p5)
}
  0xb8   : > { %4777 = dma.hbm_to_vmem [thread:$0]  (!%p5786_p6), %s6704_s11, 16, %s735_s6, [#allocation18]  }
  0xb9   : > { %s5315_s27 = scalar_lea.vmem %s762_s24, 512  ;;  %p5323_p9 = scmp.lt.s32.totalorder %s762_s24, %s762_s24 }
  0xba   : > { %p5316_p12 = scmp.ne.s32.totalorder %s762_s24, %s5315_s27  ;;  %p5324_p1 = scmp.lt.s32.totalorder %s5315_s27, %s5315_s27 }
  0xbc   : > { %p5318_p4 = pnand %p5316_p12, %p5792_p7  ;;  %p5325_p2 = por %p5324_p1, %p5323_p9 }
  0xbe   : > { %p5319_p10 = pneg %p5318_p4 }
  0xc0   : > { %p5326_p3 = pnand %p5325_p2, %p5319_p10 }
  0xc2   : > { %5329 = shalt.err (!%p5326_p3)
}
  0xc3   : > { %4783 = dma.hbm_to_vmem [thread:$0]  (!%p5786_p6), %s6708_s15, 512, %s762_s24, [#allocation21], %s6792_s16, %s6792_s16, %s6791_s10  }
  0xc4   : > { %s5591_s0 = smov [#allocation25]   ;;  %s5592_s9 = smov [#allocation28]  }
  0xc5   : > { %s786_s21 = sshll.u32 %s5591_s0, 4  ;;  %s809_s6 = sshll.u32 %s5592_s9, 4  ;;  %s787_s21 = int_to_ptr.vmem [resolvable:$true] %s786_s21  ;;  %s810_s6 = int_to_ptr.vmem [resolvable:$true] %s809_s6 }
  0xc6   : > { %s5341_s3 = scalar_lea.vmem %s787_s21, 16  ;;  %s5348_s12 = scalar_lea.vmem %s787_s21, 32 }
  0xc7   : > { %p5342_p0 = scmp.ne.s32.totalorder %s787_s21, %s5341_s3  ;;  %p5349_p11 = scmp.lt.s32.totalorder %s787_s21, %s787_s21 }
  0xc8   : > { %p5350_p5 = scmp.lt.s32.totalorder %s5348_s12, %s5341_s3 }
  0xc9   : > { %p5344_p13 = pnand %p5342_p0, %p5792_p7 }
  0xca   : > { %p5351_p12 = por %p5350_p5, %p5349_p11 }
  0xcb   : > { %p5345_p8 = pneg %p5344_p13 }
  0xcd   : > { %p5352_p4 = pnand %p5351_p12, %p5345_p8 }
  0xcf   : > { %5355 = shalt.err (!%p5352_p4)
}
  0xd0   : > { %4789 = dma.hbm_to_vmem [thread:$0]  (!%p5786_p6), %s6710_s17, 16, %s787_s21, [#allocation24]  }
  0xd1   : > { %s5367_s28 = scalar_lea.vmem %s810_s6, 512  ;;  %p5375_p2 = scmp.lt.s32.totalorder %s810_s6, %s810_s6 }
  0xd2   : > { %p5368_p10 = scmp.ne.s32.totalorder %s810_s6, %s5367_s28  ;;  %p5376_p3 = scmp.lt.s32.totalorder %s5367_s28, %s5367_s28 }
  0xd4   : > { %p5370_p9 = pnand %p5368_p10, %p5792_p7  ;;  %p5377_p0 = por %p5376_p3, %p5375_p2 }
  0xd6   : > { %p5371_p1 = pneg %p5370_p9 }
  0xd8   : > { %p5378_p13 = pnand %p5377_p0, %p5371_p1 }
  0xda   : > { %5381 = shalt.err (!%p5378_p13)
}
  0xdb   : > { %4795 = dma.hbm_to_vmem [thread:$0]  (!%p5786_p6), %s6712_s19, 512, %s810_s6, [#allocation27], %s6792_s16, %s6792_s16, %s6791_s10  }
  0xdc   : > { %s5593_s5 = smov [#allocation29]   ;;  %s4188_s0 = sshll.u32 %s5877_s22, 4 }
  0xdd   : > { %s825_s26 = sshll.u32 %s5593_s5, 4  ;;  %s826_s26 = int_to_ptr.vmem [resolvable:$true] %s825_s26 }
  0xde   : > { %s5393_s21 = scalar_lea.vmem %s826_s26, 16  ;;  %s5400_s9 = scalar_lea.vmem %s826_s26, 32 }
  0xdf   : > { %p5394_p8 = scmp.ne.s32.totalorder %s826_s26, %s5393_s21  ;;  %p5401_p12 = scmp.lt.s32.totalorder %s826_s26, %s826_s26 }
  0xe0   : > { %p5402_p4 = scmp.lt.s32.totalorder %s5400_s9, %s5393_s21 }
  0xe1   : > { %p5396_p11 = pnand %p5394_p8, %p5792_p7 }
  0xe2   : > { %p5403_p10 = por %p5402_p4, %p5401_p12 }
  0xe3   : > { %p5397_p5 = pneg %p5396_p11 }
  0xe5   : > { %p5404_p9 = pnand %p5403_p10, %p5397_p5 }
  0xe7   : > { %5407 = shalt.err (!%p5404_p9)
}
  0xe8   : > { %4798 = dma.hbm_to_vmem [thread:$0]  (!%p5786_p6), %s6713_s20, 16, %s826_s26, [#allocation30]  }
  0xe9   : > { %s4317_s6 = sshll.u32 %s5572_s7, 8  ;;  %s6796_s24 = sld [smem:[#allocation51_spill]] }
  0xea   : > { %s858_s30 = scalar_lea.vmem [#allocation5], %s4188_s0  ;;  %s855_s5 = scalar_lea.sflag [#allocation6], %s5877_s22 }
  0xeb   : > { %s865_s27 = sshll.u32 %s858_s30, 4  ;;  %p6797_p1 = scmp.ne.s32.totalorder %s6789_s13, 0  ;;  %s866_s27 = int_to_ptr.vmem [resolvable:$true] %s865_s27 }
  0xec   : > { %s5421_s21 = scalar_lea.vmem %s866_s27, 256  ;;  %s5594_s4 = smov [#allocation5]  }
  0xed   : > { %p5422_p7 = scmp.ne.s32.totalorder %s866_s27, %s5421_s21  ;;  %p6798_p2 = pneg %p6797_p1 }
  0xee   : > { %s5426_s9 = sshll.u32 %s5594_s4, 4  ;;  %s5427_s9 = int_to_ptr.vmem [resolvable:$false] %s5426_s9 }
  0xef   : > { %s864_s28 = scalar_lea.hbm %s6796_s24, %s4317_s6  ;;  %p5424_p3 = pnand %p5422_p7, %p6798_p2 }
  0xf0   : > { %s5428_s3 = scalar_lea.vmem %s5427_s9, 512  ;;  %p5429_p6 = scmp.lt.s32.totalorder %s866_s27, %s5427_s9 }
  0xf1   : > { %p5425_p0 = pneg %p5424_p3  ;;  %p5430_p13 = scmp.lt.s32.totalorder %s5428_s3, %s5421_s21 }
  0xf3   : > { %p5431_p8 = por %p5430_p13, %p5429_p6 }
  0xf5   : > { %p5432_p11 = pnand %p5431_p8, %p5425_p0 }
  0xf7   : > { %5435 = shalt.err (!%p5432_p11)
}
  0xf8   : > { %s5595_s26 = smov 128   ;;  %s5596_s22 = smov 8  }
  0xf9   : > { %4802 = dma.hbm_to_vmem [thread:$0]  (!%p6797_p1), %s864_s28, 256, %s866_s27, %s855_s5, %s5595_s26, %s5595_s26, %s5596_s22  }
  0xfa   : > { %s5449_s0 = scalar_lea.vmem %s5909_s29, 128  ;;  %p6799_p12 = pmov %p6798_p2 }
  0xfb   : > { %p5450_p5 = scmp.ne.s32.totalorder %s5909_s29, %s5449_s0  ;;  %s5597_s12 = smov [#allocation10]  }
  0xfc   : > { %s5454_s6 = sshll.u32 %s5597_s12, 4  ;;  %s5455_s6 = int_to_ptr.vmem [resolvable:$false] %s5454_s6 }
  0xfd   : > { %p5452_p4 = pnand %p5450_p5, %p6799_p12  ;;  %s5456_s18 = scalar_lea.vmem %s5455_s6, 256 }
  0xfe   : > { %p5457_p9 = scmp.lt.s32.totalorder %s5909_s29, %s5455_s6  ;;  %p5458_p7 = scmp.lt.s32.totalorder %s5456_s18, %s5449_s0 }
  0xff   : > { %p5453_p10 = pneg %p5452_p4 }
 0x100   : > { %p5459_p2 = por %p5458_p7, %p5457_p9 }
 0x102   : > { %p5460_p3 = pnand %p5459_p2, %p5453_p10 }
 0x104   : > { %5463 = shalt.err (!%p5460_p3)
}
 0x105   : > { %4808 = dma.hbm_to_vmem [thread:$0]  (!%p6797_p1), %s5907_s8, 128, %s5909_s29, %s5891_s23, %s6792_s16, %s6792_s16, %s6791_s10  }
 0x106   : > { %p6800_p0 = scmp.ne.s32.totalorder %s6771_s1, 0 }
 0x107   : > { %s5997_s25 = sand.u32 (!%p6800_p0), 1, %s5560_s2   ;;  %p6801_p6 = scmp.ne.s32.totalorder (!%p6800_p0), %s6783_s14, 0 }
 0x108   : > { %935 = sbr.rel (%p6800_p0) target bundleno = 4990 (0x137e), region = 120  ;;  %s4198_s24 = sshll.u32 (!%p6800_p0), %s5997_s25, 4 }
 0x109   : > { %s938_s28 = scalar_lea.sflag (!%p6800_p0), [#allocation6], %s5997_s25  ;;  %s6003_s13 = scalar_lea.vmem (!%p6800_p0), [#allocation5], %s4198_s24 }
 0x10d   : > { %5515 = dma.done.wait (%p6801_p6), %s938_s28, 256  }
 0x10e   : > { %5517 = vsyncadd (%p6801_p6), %s938_s28, 4294967040  ;;  %s6802_s29 = sld [smem:[#allocation46_spill]]  ;;  %s4199_s23 = sshll.u32 %s5997_s25, 3 }
 0x10f   : > { %s6011_s10 = scalar_lea.vmem [#allocation8], %s4199_s23 }
 0x114   : > { %s946_s1 = sand.u32 1, %s6802_s29  }
 0x115   : > { %s947_s8 = scalar_lea.sflag [#allocation9], %s946_s1 }
 0x116   : > { %5519 = dma.done.wait (%p6801_p6), %s947_s8, 256  }
 0x117   : > { %5521 = vsyncadd (%p6801_p6), %s947_s8, 4294967040  ;;  %s6017_s16 = scalar_lea.vmem [#allocation10], %s4199_s23  ;;  %p6803_p1 = scmp.eq.s32.totalorder %s6802_s29, 0 }
 0x119   : > { %5523 = dma.done.wait (%p6803_p1), [#allocation12], 528   ;;  %p6804_p13 = pmov %p6803_p1 }
 0x11a   : > { %p6805_p8 = pmov %p6803_p1 }
 0x11b   : > { %5525 = vsyncadd (%p6804_p13), [#allocation12], 4294966768 }
 0x11c   : > { %5527 = dma.done.wait (%p6805_p8), [#allocation15], 528   ;;  %p6806_p11 = pmov %p6803_p1 }
 0x11d   : > { %p6807_p5 = pmov %p6803_p1 }
 0x11e   : > { %5529 = vsyncadd (%p6806_p11), [#allocation15], 4294966768 }
 0x11f   : > { %5531 = dma.done.wait (%p6807_p5), [#allocation18], 32   ;;  %p6808_p12 = pmov %p6803_p1 }
 0x120   : > { %p6809_p4 = pmov %p6803_p1 }
 0x121   : > { %5533 = vsyncadd (%p6808_p12), [#allocation18], 4294967264 }
 0x122   : > { %5535 = dma.done.wait (%p6809_p4), [#allocation21], 528   ;;  %p6810_p10 = pmov %p6803_p1 }
 0x123   : > { %p6811_p9 = pmov %p6803_p1 }
 0x124   : > { %5537 = vsyncadd (%p6810_p10), [#allocation21], 4294966768 }
 0x125   : > { %5539 = dma.done.wait (%p6811_p9), [#allocation24], 32   ;;  %p6812_p7 = pmov %p6803_p1 }
 0x126   : > { %p6813_p2 = pmov %p6803_p1 }
 0x127   : > { %5541 = vsyncadd (%p6812_p7), [#allocation24], 4294967264 }
 0x128   : > { %5543 = dma.done.wait (%p6813_p2), [#allocation27], 528   ;;  %p6814_p3 = pmov %p6803_p1 }
 0x129   : > { %p6815_p0 = pmov %p6803_p1 }
 0x12a   : > { %5545 = vsyncadd (%p6814_p3), [#allocation27], 4294966768 }
 0x12b   : > { %5547 = dma.done.wait (%p6815_p0), [#allocation30], 16   ;;  %p6816_p6 = pmov %p6815_p0 }
 0x12c   : > { %vm1178_vm0 = vcmask 523264   ;;  %v5598_v0 = vmov 0.0   ;;  %vm5599_vm1 = vmmov 0   ;;  %s6817_s27 = sld [smem:[#allocation58_spill]]  ;;  %v4921_v3 = vld [vmem:[#allocation11 + $0x18] sm:$0xff]   ;;  %v4923_v4 = vld [vmem:[#allocation11 + $0x10] sm:$0xff]   ;;  %v1329_v47 = vlaneseq }
 0x12d   : > { %5549 = vsyncadd (%p6816_p6), [#allocation30], 4294967280  ;;  %4435 = vmatprep.subr.bf16.mxu1 %v5598_v0  ;;  %4423 = vmatprep.subr.bf16.mxu0 %v5598_v0  ;;  %3583 = vst.msk [vmem:[#allocation4] sm:$0xff] %vm1178_vm0, %v5598_v0  ;;  %v4925_v6 = vld [vmem:[#allocation11 + $0x8] sm:$0xff]   ;;  %v4927_v8 = vld [vmem:[#allocation11] sm:$0xff]   ;;  %vm1282_vm2 = vcmask 785408  }
 0x12e   : > { %3584 = vst.msk [vmem:[#allocation4 + $0x8] sm:$0xff] %vm1178_vm0, %v5598_v0  ;;  %4447 = vmatprep.mubr.msk.bf16.mxu1 %vm5599_vm1, %v5598_v0  ;;  %4431 = vmatprep.mubr.msk.bf16.mxu0 %vm5599_vm1, %v5598_v0  ;;  %v6075_v9 = vld [vmem:[%s6003_s13] sm:$0xff]  ;;  %v6078_v10 = vld [vmem:[%s6003_s13 + $0x8] sm:$0xff]  ;;  %vm1335_vm3 = vcmask 130048   ;;  %s5600_s18 = smov 64   ;;  %s5601_s28 = smov 112  }
 0x12f   : > { %4424 = vmatpush3.bf16.msra.mxu0 %v4921_v3  ;;  %v1130_v13 = vpack.c.bf16 %v6078_v10, %v6075_v9  ;;  %v4928_v14 = vld [vmem:[%s6011_s10] sm:$0xff]   ;;  %s5602_s13 = smov 96   ;;  %s5603_s29 = smov 80   ;;  %vm1401_vm4 = vcmask 1043456   ;;  %v6161_v48 = vshrl.u32 %v1329_v47, 7  ;;  %vm1382_vm5 = vcmask 64512  }
 0x130   : > { %4425 = vmatprep.subr.bf16.mxu0 %v5598_v0  ;;  %v4223_v17 = vld [vmem:[#allocation14] ss:$0 sm:$0xff]  ;;  %v4217_v22 = vld [vmem:[#allocation13] ss:$0 sm:$0xff]  ;;  %s6818_s1 = sld [smem:[#allocation44_spill]]  ;;  %s5604_s5 = smov 32  }
 0x131   : > { %s6819_s14 = sld [smem:[#allocation53_spill]]  ;;  %v6164_v51 = vsub.s32 0, %v6161_v48  ;;  %s5605_s21 = smov 48   ;;  %vm1795_vm6 = vcmask 392192   ;;  %vm1792_vm7 = vcmask 261120   ;;  %vm3580_vm8 = vcmask 519168  }
 0x132   : > { %v4918_v1 = vld [vmem:[%s6817_s27 + $0x28] sm:$0xff]   ;;  %v4919_v2 = vld [vmem:[%s6817_s27 + $0x20] sm:$0xff]   ;;  %v4920_v5 = vld [vmem:[%s6817_s27 + $0x18] sm:$0xff]   ;;  %s5606_s4 = smov 16   ;;  %s6820_s26 = sld [smem:[#allocation63_spill]] }
 0x133   : > { %4436 = vmatpush3.bf16.msra.mxu1 %v4918_v1  ;;  %4426 = vmatpush3.bf16.msra.mxu0 %v4923_v4  ;;  %v4922_v7 = vld [vmem:[%s6817_s27 + $0x10] sm:$0xff]   ;;  %v4924_v11 = vld [vmem:[%s6817_s27 + $0x8] sm:$0xff]   ;;  %v4926_v12 = vld [vmem:[%s6817_s27] sm:$0xff]   ;;  %s6822_s9 = sld [smem:[#allocation54_spill]]  ;;  %s1100_s12 = scalar_lea.vmem [#allocation31], %s4198_s24 }
 0x134   : > { %4437 = vmatprep.subr.bf16.mxu1 %v5598_v0  ;;  %4427 = vmatprep.subr.bf16.mxu0 %v5598_v0  ;;  %s6827_s22 = sld [smem:[#allocation48_spill]]  ;;  %s3885_s6 = sshll.u32 %s1100_s12, 4  ;;  %s6644_s6 = int_to_ptr.vmem [resolvable:$true] %s3885_s6 }
 0x135   : > { %s5608_s24 = smov [#allocation31]  }
 0x136   : > { %s4215_s23 = sshll.u32 %s6818_s1, 1  ;;  %s4322_s0 = sshll.u32 %s6818_s1, 8 }
 0x137   : > { %4438 = vmatpush3.bf16.msra.mxu1 %v4919_v2  ;;  %4428 = vmatpush3.bf16.msra.mxu0 %v4925_v6  ;;  %p1104_p1 = scmp.lt.s32.totalorder %s4215_s23, 3  ;;  %s3872_s1 = scalar_lea.sflag [#allocation7], %s5997_s25 }
 0x138   : > { %4439 = vmatprep.subr.bf16.mxu1 %v5598_v0  ;;  %4429 = vmatprep.subr.bf16.mxu0 %v5598_v0 }
 0x139   : > { %s6845_s23 = smov (!%p1104_p1, %s4215_s23), 3 }
 0x13a   : > { %s1106_s30 = scalar_lea.vmem %s6819_s14, %s6845_s23  ;;  %s6821_s14 = sld [smem:[#allocation64_spill]] }
 0x13b   : > { %4440 = vmatpush3.bf16.msra.mxu1 %v4920_v5  ;;  %4430 = vmatpush3.bf16.msra.mxu0 %v4927_v8  ;;  %v1327_v49 = vld [vmem:[%s1106_s30] sm:$0x1]  ;;  %v4240_v6 = vld [vmem:[%s1106_s30 + $0x1] sm:$0x1]  ;;  %s1111_s3 = scalar_lea.vmem %s6822_s9, %s6845_s23  ;;  %s6825_s23 = sld [smem:[#allocation69_spill]] }
 0x13c   : > { %4441 = vmatprep.subr.bf16.mxu1 %v5598_v0  ;;  %4451 = vmatprep.subr.bf16.mxu0 %v5598_v0  ;;  %v1328_v50 = vunpack.c.l.bf16 %v1327_v49  ;;  %s5464_s30 = scalar_lea.vmem %s6644_s6, 256  ;;  %p6829_p8 = scmp.ne.s32.totalorder %s6827_s22, 0 }
 0x13d   : > { %p5465_p13 = scmp.ne.s32.totalorder %s6644_s6, %s5464_s30  ;;  %s5468_s9 = sshll.u32 %s5608_s24, 4  ;;  %s5469_s9 = int_to_ptr.vmem [resolvable:$false] %s5468_s9 }
 0x13e   : > { %4432 = vmatmul.mubr.msk.bf16.vlgmr.msra.gmra.mxu0 %vm1178_vm0, %v1130_v13  ;;  %v6167_v52 = vrot.slane %v1328_v50, %v6164_v51  ;;  %p5471_p12 = scmp.lt.s32.totalorder %s6644_s6, %s5469_s9 }
 0x13f   : > { %4442 = vmatpush3.bf16.msra.mxu1 %v4922_v7  ;;  %4453 = vmatprep.mubr.msk.bf16.mxu0 %vm5599_vm1, %v5598_v0  ;;  %p5466_p11 = pnand %p5465_p13, %p6829_p8 }
 0x140   : > { %4443 = vmatprep.subr.bf16.mxu1 %v5598_v0 }
 0x141   : > { %p5467_p5 = pneg %p5466_p11 }
 0x143   : > { %4444 = vmatpush3.bf16.msra.mxu1 %v4924_v11 }
 0x144   : > { %4445 = vmatprep.subr.bf16.mxu1 %v5598_v0 }
 0x147   : > { %4446 = vmatpush3.bf16.msra.mxu1 %v4926_v12  ;;  %v1800_v12 = vunpack.c.l.bf16 %v4240_v6 }
 0x148   : > { %4475 = vmatprep.subr.bf16.mxu1 %v5598_v0 }
 0x14a   : > { %4448 = vmatmul.mubr.msk.bf16.vlgmr.msra.gmra.mxu1 %vm1282_vm2, %v4928_v14 }
 0x14b   : > { %4477 = vmatprep.mubr.msk.bf16.mxu1 %vm5599_vm1, %v5598_v0 }
 0x1fe   : > { %v1216_v15 = vpop.f32.mrf.mxu0 }
 0x1ff   : > { %v1217_v26 = vadd.f32 %v4217_v22, %v1216_v15 }
 0x200   : > { %v4433_v16 = vpop.f32.mrf.mxu0 }
 0x201   : > { %v6106_v29 = vpack.c.bf16 %v1217_v26, %v1217_v26 }
 0x202   : > { %v1219_v18 = vpop.f32.mrf.mxu0 }
 0x203   : > { %v1220_v32 = vadd.f32 %v4217_v22, %v1219_v18 }
 0x204   : > { %v4434_v21 = vpop.f32.mrf.mxu0 }
 0x205   : > { %v1805_v33 = vpack.c.bf16 %v1220_v32, %v1220_v32 }
 0x20a   : > { %v1320_v19 = vpop.f32.mrf.mxu1 }
 0x20b   : > { %v1321_v20 = vadd.f32 %v4223_v17, %v1320_v19 }
 0x20c   : > { %v4449_v23 = vpop.f32.mrf.mxu1 }
 0x20d   : > { %v6099_v24 = vpack.c.bf16 %v1321_v20, %v1321_v20 }
 0x20e   : > { %v1323_v25 = vpop.f32.mrf.mxu1 }
 0x20f   : > { %1396 = vrot.lane.b32.xlu1 %v6099_v24, %s5600_s18  ;;  %v1340_v27 = vsel %vm1335_vm3, %v6099_v24, 0  ;;  %v1324_v30 = vadd.f32 %v4223_v17, %v1323_v25  ;;  %v6181_v17 = vrot.slane %v1800_v12, %v6164_v51 }
 0x210   : > { %v4450_v28 = vpop.f32.mrf.mxu1  ;;  %4452 = vmatpush3.bf16.xpose.msra.mxu0 %v1340_v27 }
 0x211   : > { %4457 = vmatprep.subr.bf16.mxu0 %v5598_v0  ;;  %v6122_v31 = vpack.c.bf16 %v1324_v30, %v1324_v30 }
 0x213   : > { %1449 = vrot.lane.b32.xlu1 %v6099_v24, %s5601_s28  ;;  %v1811_v43 = vsel %vm1335_vm3, %v6122_v31, 0 }
 0x217   : > { %1560 = vrot.lane.b32.xlu1 %v6099_v24, %s5602_s13  ;;  %4454 = vmatmul.mubr.msk.bf16.vlgmr.msra.gmra.mxu0 %vm1335_vm3, %v6106_v29 }
 0x218   : > { %4459 = vmatprep.mubr.msk.bf16.mxu0 %vm5599_vm1, %v5598_v0 }
 0x21b   : > { %1558 = vrot.lane.b32.xlu1 %v6106_v29, %s5602_s13 }
 0x21f   : > { %1671 = vrot.lane.b32.xlu1 %v6099_v24, %s5603_s29 }
 0x223   : > { %1669 = vrot.lane.b32.xlu1 %v6106_v29, %s5603_s29 }
 0x227   : > { %1918 = vrot.lane.b32.xlu1 %v6122_v31, %s5601_s28 }
 0x22b   : > { %1916 = vrot.lane.b32.xlu1 %v1805_v33, %s5601_s28 }
 0x22f   : > { %2027 = vrot.lane.b32.xlu1 %v1805_v33, %s5602_s13 }
 0x233   : > { %2138 = vrot.lane.b32.xlu1 %v1805_v33, %s5603_s29 }
 0x281   : > { %v1397_v34 = vpop.permute.xlu1 %1396 }
 0x282   : > { %v1403_v35 = vsel %vm1401_vm4, %v1397_v34, 0 }
 0x283   : > { %4458 = vmatpush3.bf16.msra.mxu0 %v1403_v35 }
 0x284   : > { %4463 = vmatprep.subr.bf16.mxu0 %v5598_v0 }
 0x285   : > { %v6131_v36 = vpop.permute.xlu1 %1449 }
 0x289   : > { %v1561_v37 = vpop.permute.xlu1 %1560 }
 0x28a   : > { %v1566_v38 = vsel %vm1335_vm3, %v1561_v37, 0 }
 0x28b   : > { %4476 = vmatpush3.bf16.xpose.msra.mxu1 %v1566_v38 }
 0x28c   : > { %4487 = vmatprep.subr.bf16.mxu1 %v5598_v0 }
 0x28d   : > { %v1559_v39 = vpop.permute.xlu1 %1558 }
 0x291   : > { %v1672_v40 = vpop.permute.xlu1 %1671 }
 0x292   : > { %v1677_v41 = vsel %vm1335_vm3, %v1672_v40, 0  ;;  %4478 = vmatmul.mubr.msk.bf16.vlgmr.msra.gmra.mxu1 %vm1335_vm3, %v1559_v39  ;;  %v1455_v39 = vsel %vm1335_vm3, %v6131_v36, 0 }
 0x293   : > { %4488 = vmatpush3.bf16.xpose.msra.mxu1 %v1677_v41  ;;  %4489 = vmatprep.mubr.msk.bf16.mxu1 %vm5599_vm1, %v5598_v0 }
 0x294   : > { %4499 = vmatprep.subr.bf16.mxu1 %v5598_v0 }
 0x295   : > { %v1670_v42 = vpop.permute.xlu1 %1669 }
 0x299   : > { %v1919_v44 = vpop.permute.xlu1 %1918 }
 0x29a   : > { %4490 = vmatmul.mubr.msk.bf16.vlgmr.msra.gmra.mxu1 %vm1335_vm3, %v1670_v42  ;;  %v1924_v45 = vsel %vm1335_vm3, %v1919_v44, 0 }
 0x29b   : > { %4500 = vmatpush3.bf16.xpose.msra.mxu1 %v1811_v43  ;;  %4501 = vmatprep.mubr.msk.bf16.mxu1 %vm5599_vm1, %v5598_v0 }
 0x29c   : > { %4511 = vmatprep.subr.bf16.mxu1 %v5598_v0 }
 0x29d   : > { %v1917_v46 = vpop.permute.xlu1 %1916 }
 0x2a1   : > { %v2028_v37 = vpop.permute.xlu1 %2027 }
 0x2a2   : > { %4502 = vmatmul.mubr.msk.bf16.vlgmr.msra.gmra.mxu1 %vm1335_vm3, %v1805_v33 }
 0x2a3   : > { %4512 = vmatpush3.bf16.xpose.msra.mxu1 %v1924_v45  ;;  %4513 = vmatprep.mubr.msk.bf16.mxu1 %vm5599_vm1, %v5598_v0 }
 0x2a4   : > { %4523 = vmatprep.subr.bf16.mxu1 %v5598_v0 }
 0x2a5   : > { %v2139_v40 = vpop.permute.xlu1 %2138 }
 0x2aa   : > { %4514 = vmatmul.mubr.msk.bf16.vlgmr.msra.gmra.mxu1 %vm1335_vm3, %v1917_v46 }
 0x2ab   : > { %4525 = vmatprep.mubr.msk.bf16.mxu1 %vm5599_vm1, %v5598_v0 }
 0x2d7   : > { %v1376_v53 = vpop.f32.mrf.mxu0 }
 0x2d8   : > { %v1377_v54 = vadd.f32 %v1376_v53, %v6167_v52 }
 0x2d9   : > { %v4455_v55 = vpop.f32.mrf.mxu0 }
 0x2da   : > { %v1383_v56 = vsel %vm1382_vm5, %v1377_v54, -inf }
 0x2db   : > { %1384 = vmax.xlane.f32.xlu0 %v1383_v56  ;;  %v1379_v57 = vpop.f32.mrf.mxu0 }
 0x2dd   : > { %v4456_v58 = vpop.f32.mrf.mxu0 }
 0x352   : > { %v1602_v59 = vpop.f32.mrf.mxu1 }
 0x353   : > { %v6172_v60 = vadd.f32 %v1602_v59, %v6167_v52 }
 0x354   : > { %v4479_v61 = vpop.f32.mrf.mxu1 }
 0x355   : > { %v1608_v62 = vsel %vm1382_vm5, %v6172_v60, -inf }
 0x356   : > { %v1605_v63 = vpop.f32.mrf.mxu1  ;;  %1609 = vmax.xlane.f32.xlu1 %v1608_v62 }
 0x358   : > { %v4480_v1 = vpop.f32.mrf.mxu1 }
 0x35a   : > { %v6176_v2 = vpop.f32.mrf.mxu1 }
 0x35b   : > { %v1714_v63 = vadd.f32 %v6176_v2, %v6167_v52 }
 0x35c   : > { %v4491_v3 = vpop.f32.mrf.mxu1 }
 0x35e   : > { %v1716_v4 = vpop.f32.mrf.mxu1 }
 0x360   : > { %v4492_v5 = vpop.f32.mrf.mxu1 }
 0x362   : > { %v6178_v7 = vpop.f32.mrf.mxu1 }
 0x364   : > { %v4503_v8 = vpop.f32.mrf.mxu1  ;;  %v1385_v11 = vpop.xlane.xlu0 %1384 }
 0x365   : > { %v1386_v13 = vsub.f32 %v1377_v54, %v1385_v11  ;;  %v1848_v8 = vadd.f32 %v6178_v7, %v6181_v17  ;;  %v1719_v11 = vsel %vm1382_vm5, %v1714_v63, -inf }
 0x366   : > { %v1850_v14 = vpop.f32.mrf.mxu1 }
 0x367   : > { %v1387_v15 = vmul.f32 1.442695, %v1386_v13 }
 0x368   : > { %v4504_v16 = vpop.f32.mrf.mxu1 }
 0x369   : > { %4962 = vpow2.f32 %v1387_v15 }
 0x36a   : > { %v1960_v18 = vpop.f32.mrf.mxu1 }
 0x36b   : > { %v6184_v19 = vadd.f32 %v1960_v18, %v6181_v17 }
 0x36c   : > { %v4515_v20 = vpop.f32.mrf.mxu1 }
 0x36d   : > { %v1966_v21 = vsel %vm1382_vm5, %v6184_v19, -inf }
 0x36e   : > { %1967 = vmax.xlane.f32.xlu1 %v1966_v21  ;;  %v1963_v22 = vpop.f32.mrf.mxu1 }
 0x370   : > { %v4516_v23 = vpop.f32.mrf.mxu1 }
 0x376   : > { %v4963_v25 = vpop.eup %4962 }
 0x377   : > { %v1389_v26 = vsel %vm1382_vm5, %v4963_v25, 0.0 }
 0x378   : > { %1390 = vadd.xlane.f32.xlu0 %v1389_v26 }
 0x38e   : > { %1447 = vrot.lane.b32.xlu0 %v6106_v29, %s5601_s28 }
 0x392   : > { %2029 = vrot.lane.b32.xlu0 %v6122_v31, %s5602_s13 }
 0x396   : > { %2140 = vrot.lane.b32.xlu0 %v6122_v31, %s5603_s29 }
 0x3df   : > { %v1610_v36 = vpop.xlane.xlu1 %1609 }
 0x3e0   : > { %v1611_v41 = vsub.f32 %v6172_v60, %v1610_v36 }
 0x3e2   : > { %v1612_v42 = vmul.f32 1.442695, %v1611_v41 }
 0x3f7   : > { %v1968_v15 = vpop.xlane.xlu1 %1967 }
 0x3f8   : > { %v1969_v20 = vsub.f32 %v6184_v19, %v1968_v15 }
 0x401   : > { %v1391_v27 = vpop.xlane.xlu0 %1390 }
 0x402   : > { %4964 = vrcp.f32 %v1391_v27 }
 0x403   : > { %4966 = vpow2.f32 %v1612_v42 }
 0x405   : > { %v1448_v28 = vpop.permute.xlu0 %1447 }
 0x409   : > { %v2030_v30 = vpop.permute.xlu0 %2029 }
 0x40a   : > { %v2035_v32 = vsel %vm1335_vm3, %v2030_v30, 0 }
 0x40b   : > { %4524 = vmatpush3.bf16.xpose.msra.mxu1 %v2035_v32 }
 0x40c   : > { %4535 = vmatprep.subr.bf16.mxu1 %v5598_v0 }
 0x40d   : > { %v2141_v34 = vpop.permute.xlu0 %2140 }
 0x40e   : > { %v2146_v29 = vsel %vm1335_vm3, %v2141_v34, 0 }
 0x40f   : > { %v4965_v33 = vpop.eup %4964 }
 0x410   : > { %v1393_v35 = vmul.f32 %v4965_v33, %v4963_v25  ;;  %v6223_v60 = vpop.eup %4966  ;;  %v1970_v25 = vmul.f32 1.442695, %v1969_v20 }
 0x411   : > { %v1614_v5 = vsel %vm1382_vm5, %v6223_v60, 0.0 }
 0x412   : > { %4526 = vmatmul.mubr.msk.bf16.vlgmr.msra.gmra.mxu1 %vm1335_vm3, %v2028_v37  ;;  %v1394_v38 = vpack.c.bf16 %v1393_v35, %v1393_v35 }
 0x413   : > { %4536 = vmatpush3.bf16.xpose.msra.mxu1 %v2146_v29  ;;  %4537 = vmatprep.mubr.msk.bf16.mxu1 %vm5599_vm1, %v5598_v0 }
 0x414   : > { %4460 = vmatmul.mubr.msk.bf16.vlgmr.msra.gmra.mxu0 %vm1382_vm5, %v1394_v38  ;;  %4547 = vmatprep.subr.bf16.mxu1 %v5598_v0 }
 0x415   : > { %4464 = vmatpush3.bf16.xpose.msra.mxu0 %v1455_v39  ;;  %4465 = vmatprep.mubr.msk.bf16.mxu0 %vm5599_vm1, %v5598_v0 }
 0x416   : > { %4469 = vmatprep.subr.bf16.mxu0 %v5598_v0 }
 0x41a   : > { %4538 = vmatmul.mubr.msk.bf16.vlgmr.msra.gmra.mxu1 %vm1335_vm3, %v2139_v40 }
 0x41b   : > { %4555 = vmatprep.mubr.msk.bf16.mxu1 %vm5599_vm1, %v5598_v0 }
 0x41c   : > { %4466 = vmatmul.mubr.msk.bf16.vlgmr.msra.gmra.mxu0 %vm1335_vm3, %v1448_v28 }
 0x41d   : > { %4471 = vmatprep.mubr.msk.bf16.mxu0 %vm5599_vm1, %v5598_v0 }
 0x4d2   : > { %v2071_v43 = vpop.f32.mrf.mxu1 }
 0x4d3   : > { %v2072_v12 = vadd.f32 %v2071_v43, %v6181_v17 }
 0x4d4   : > { %v6215_v44 = vpop.f32.mrf.mxu0  ;;  %v4527_v45 = vpop.f32.mrf.mxu1 }
 0x4d5   : > { %v2077_v2 = vsel %vm1382_vm5, %v2072_v12, -inf }
 0x4d6   : > { %v4461_v46 = vpop.f32.mrf.mxu0  ;;  %v2074_v47 = vpop.f32.mrf.mxu1 }
 0x4d8   : > { %v1442_v49 = vpop.f32.mrf.mxu0  ;;  %v4528_v50 = vpop.f32.mrf.mxu1 }
 0x4da   : > { %v4462_v53 = vpop.f32.mrf.mxu0  ;;  %v2182_v54 = vpop.f32.mrf.mxu1 }
 0x4db   : > { %v6218_v55 = vadd.f32 %v2182_v54, %v6181_v17 }
 0x4dc   : > { %v1491_v56 = vpop.f32.mrf.mxu0  ;;  %v4539_v57 = vpop.f32.mrf.mxu1 }
 0x4dd   : > { %v1492_v58 = vadd.f32 %v1491_v56, %v6167_v52  ;;  %v2188_v59 = vsel %vm1382_vm5, %v6218_v55, -inf  ;;  %v1853_v52 = vsel %vm1382_vm5, %v1848_v8, -inf }
 0x4de   : > { %2189 = vmax.xlane.f32.xlu1 %v2188_v59  ;;  %v4467_v61 = vpop.f32.mrf.mxu0  ;;  %v2185_v62 = vpop.f32.mrf.mxu1 }
 0x4df   : > { %v1497_v1 = vsel %vm1382_vm5, %v1492_v58, -inf }
 0x4e0   : > { %v4540_v3 = vpop.f32.mrf.mxu1  ;;  %1498 = vmax.xlane.f32.xlu0 %v1497_v1  ;;  %v1494_v4 = vpop.f32.mrf.mxu0 }
 0x4e2   : > { %1615 = vadd.xlane.f32.xlu1 %v1614_v5  ;;  %v4468_v6 = vpop.f32.mrf.mxu0 }
 0x4e4   : > { %1720 = vmax.xlane.f32.xlu0 %v1719_v11 }
 0x4e8   : > { %1854 = vmax.xlane.f32.xlu0 %v1853_v52 }
 0x4ec   : > { %2078 = vmax.xlane.f32.xlu0 %v2077_v2 }
 0x567   : > { %v2190_v38 = vpop.xlane.xlu1 %2189 }
 0x568   : > { %v2191_v39 = vsub.f32 %v6218_v55, %v2190_v38 }
 0x569   : > { %v1499_v13 = vpop.xlane.xlu0 %1498 }
 0x56a   : > { %v1500_v14 = vsub.f32 %v1492_v58, %v1499_v13  ;;  %v2192_v40 = vmul.f32 1.442695, %v2191_v39 }
 0x56b   : > { %v1616_v46 = vpop.xlane.xlu1 %1615 }
 0x56c   : > { %v1501_v21 = vmul.f32 1.442695, %v1500_v14 }
 0x56d   : > { %v1721_v16 = vpop.xlane.xlu0 %1720 }
 0x56e   : > { %v1722_v18 = vsub.f32 %v1714_v63, %v1721_v16 }
 0x570   : > { %v1723_v7 = vmul.f32 1.442695, %v1722_v18 }
 0x571   : > { %v1855_v22 = vpop.xlane.xlu0 %1854 }
 0x572   : > { %4968 = vpow2.f32 %v1723_v7  ;;  %v1856_v23 = vsub.f32 %v1848_v8, %v1855_v22 }
 0x573   : > { %4970 = vpow2.f32 %v1501_v21 }
 0x574   : > { %v1857_v17 = vmul.f32 1.442695, %v1856_v23 }
 0x575   : > { %v2079_v35 = vpop.xlane.xlu0 %2078 }
 0x576   : > { %4972 = vpow2.f32 %v1857_v17  ;;  %v2080_v37 = vsub.f32 %v2072_v12, %v2079_v35 }
 0x577   : > { %4974 = vpow2.f32 %v1970_v25 }
 0x578   : > { %v2081_v29 = vmul.f32 1.442695, %v2080_v37 }
 0x57a   : > { %4976 = vpow2.f32 %v2081_v29 }
 0x57b   : > { %4978 = vpow2.f32 %v2192_v40 }
 0x57f   : > { %v6237_v26 = vpop.eup %4968 }
 0x580   : > { %v1725_v27 = vsel %vm1382_vm5, %v6237_v26, 0.0  ;;  %v4971_v28 = vpop.eup %4970 }
 0x581   : > { %1726 = vadd.xlane.f32.xlu0 %v1725_v27  ;;  %v1503_v19 = vsel %vm1382_vm5, %v4971_v28, 0.0 }
 0x583   : > { %v6241_v30 = vpop.eup %4972 }
 0x584   : > { %v1859_v32 = vsel %vm1382_vm5, %v6241_v30, 0.0  ;;  %v6246_v33 = vpop.eup %4974 }
 0x585   : > { %1504 = vadd.xlane.f32.xlu0 %v1503_v19  ;;  %1860 = vadd.xlane.f32.xlu1 %v1859_v32  ;;  %v1972_v34 = vsel %vm1382_vm5, %v6246_v33, 0.0 }
 0x587   : > { %v6257_v36 = vpop.eup %4976 }
 0x588   : > { %v2083_v41 = vsel %vm1382_vm5, %v6257_v36, 0.0  ;;  %v6261_v42 = vpop.eup %4978 }
 0x589   : > { %1973 = vadd.xlane.f32.xlu1 %v1972_v34  ;;  %v2194_v43 = vsel %vm1382_vm5, %v6261_v42, 0.0 }
 0x59a   : > { %1620 = vrot.lane.b32.xlu1 %v6099_v24, %s5604_s5 }
 0x59b   : > { %1509 = vrot.lane.b32.xlu0 %v6099_v24, %s5605_s21 }
 0x59e   : > { %1731 = vrot.lane.b32.xlu1 %v6099_v24, %s5606_s4 }
 0x5ba   : > { %2084 = vadd.xlane.f32.xlu0 %v2083_v41 }
 0x5c2   : > { %2195 = vadd.xlane.f32.xlu1 %v2194_v43  ;;  %v4929_v43 = vld [vmem:[#allocation16 + $0x18] sm:$0xff]  }
 0x5c3   : > { %4548 = vmatpush3.bf16.msra.mxu1 %v4929_v43  ;;  %v4933_v43 = vld [vmem:[%s6820_s26 + $0x30] ss:$8 sps:$4 sm:$0xff]  }
 0x5c4   : > { %4549 = vmatprep.subr.bf16.mxu1 %v5598_v0 }
 0x5d0   : > { %1866 = vrot.lane.b32.xlu0 %v6122_v31, %s5600_s18 }
 0x5d3   : > { %1978 = vrot.lane.b32.xlu1 %v6122_v31, %s5605_s21 }
 0x5d4   : > { %2089 = vrot.lane.b32.xlu0 %v6122_v31, %s5604_s5 }
 0x5d8   : > { %2200 = vrot.lane.b32.xlu0 %v6122_v31, %s5606_s4 }
 0x60a   : > { %v1727_v24 = vpop.xlane.xlu0 %1726 }
 0x60e   : > { %v1505_v45 = vpop.xlane.xlu0 %1504  ;;  %v1861_v49 = vpop.xlane.xlu1 %1860 }
 0x60f   : > { %4980 = vrcp.f32 %v1505_v45 }
 0x610   : > { %4982 = vrcp.f32 %v1616_v46  ;;  %v4930_v46 = vld [vmem:[#allocation16 + $0x10] sm:$0xff]  }
 0x611   : > { %4984 = vrcp.f32 %v1727_v24  ;;  %4550 = vmatpush3.bf16.msra.mxu1 %v4930_v46  ;;  %v4939_v46 = vld [vmem:[%s6820_s26 + $0x10] ss:$8 sps:$4 sm:$0xff]  }
 0x612   : > { %v1510_v47 = vpop.permute.xlu0 %1509  ;;  %v1974_v53 = vpop.xlane.xlu1 %1973  ;;  %4986 = vrcp.f32 %v1861_v49  ;;  %v4931_v49 = vld [vmem:[#allocation16 + $0x8] sm:$0xff]   ;;  %4551 = vmatprep.subr.bf16.mxu1 %v5598_v0 }
 0x613   : > { %v1515_v50 = vsel %vm1401_vm4, %v1510_v47, 0  ;;  %4988 = vrcp.f32 %v1974_v53 }
 0x614   : > { %4470 = vmatpush3.bf16.msra.mxu0 %v1515_v50 }
 0x615   : > { %4481 = vmatprep.subr.bf16.mxu0 %v5598_v0  ;;  %4552 = vmatpush3.bf16.msra.mxu1 %v4931_v49  ;;  %v4944_v49 = vld [vmem:[%s6820_s26 + $0x4] ss:$8 sps:$4 sm:$0xff]  }
 0x616   : > { %v1621_v56 = vpop.permute.xlu1 %1620  ;;  %4553 = vmatprep.subr.bf16.mxu1 %v5598_v0 }
 0x617   : > { %v1626_v31 = vsel %vm1401_vm4, %v1621_v56, 0 }
 0x61a   : > { %v1732_v61 = vpop.permute.xlu1 %1731 }
 0x61b   : > { %v1737_v1 = vsel %vm1401_vm4, %v1732_v61, 0 }
 0x61c   : > { %v4981_v54 = vpop.eup %4980 }
 0x61d   : > { %v1507_v55 = vmul.f32 %v4981_v54, %v4971_v28  ;;  %v4983_v58 = vpop.eup %4982 }
 0x61e   : > { %v1618_v59 = vmul.f32 %v4983_v58, %v6223_v60  ;;  %v4985_v63 = vpop.eup %4984 }
 0x61f   : > { %v1508_v57 = vpack.c.bf16 %v1507_v55, %v1507_v55  ;;  %v1729_v3 = vmul.f32 %v4985_v63, %v6237_v26  ;;  %v4987_v60 = vpop.eup %4986 }
 0x620   : > { %v1619_v62 = vpack.c.bf16 %v1618_v59, %v1618_v59  ;;  %v1863_v6 = vmul.f32 %v4987_v60, %v6241_v30  ;;  %v4989_v52 = vpop.eup %4988 }
 0x621   : > { %4472 = vmatmul.mubr.msk.bf16.vlgmr.msra.gmra.mxu0 %vm1382_vm5, %v1508_v57  ;;  %v1730_v4 = vpack.c.bf16 %v1729_v3, %v1729_v3  ;;  %v1976_v13 = vmul.f32 %v4989_v52, %v6246_v33  ;;  %v4932_v57 = vld [vmem:[#allocation16] sm:$0xff]  }
 0x622   : > { %4482 = vmatpush3.bf16.msra.mxu0 %v1626_v31  ;;  %4483 = vmatprep.mubr.msk.bf16.mxu0 %vm5599_vm1, %v5598_v0  ;;  %v1864_v12 = vpack.c.bf16 %v1863_v6, %v1863_v6 }
 0x623   : > { %4493 = vmatprep.subr.bf16.mxu0 %v5598_v0  ;;  %v1977_v18 = vpack.c.bf16 %v1976_v13, %v1976_v13  ;;  %4554 = vmatpush3.bf16.msra.mxu1 %v4932_v57 }
 0x624   : > { %4559 = vmatprep.subr.bf16.mxu1 %v5598_v0 }
 0x629   : > { %4484 = vmatmul.mubr.msk.bf16.vlgmr.msra.gmra.mxu0 %vm1382_vm5, %v1619_v62 }
 0x62a   : > { %4494 = vmatpush3.bf16.msra.mxu0 %v1737_v1  ;;  %4495 = vmatprep.mubr.msk.bf16.mxu0 %vm5599_vm1, %v5598_v0 }
 0x62b   : > { %4505 = vmatprep.subr.bf16.mxu0 %v5598_v0 }
 0x631   : > { %4496 = vmatmul.mubr.msk.bf16.vlgmr.msra.gmra.mxu0 %vm1382_vm5, %v1730_v4 }
 0x632   : > { %4507 = vmatprep.mubr.msk.bf16.mxu0 %vm5599_vm1, %v5598_v0 }
 0x643   : > { %v2085_v5 = vpop.xlane.xlu0 %2084 }
 0x644   : > { %4990 = vrcp.f32 %v2085_v5 }
 0x647   : > { %v1867_v8 = vpop.permute.xlu0 %1866 }
 0x648   : > { %v1872_v11 = vsel %vm1401_vm4, %v1867_v8, 0 }
 0x649   : > { %4506 = vmatpush3.bf16.msra.mxu0 %v1872_v11 }
 0x64a   : > { %4517 = vmatprep.subr.bf16.mxu0 %v5598_v0 }
 0x64b   : > { %v2196_v2 = vpop.xlane.xlu1 %2195  ;;  %v2090_v16 = vpop.permute.xlu0 %2089 }
 0x64c   : > { %4508 = vmatmul.mubr.msk.bf16.vlgmr.msra.gmra.mxu0 %vm1382_vm5, %v1864_v12  ;;  %4992 = vrcp.f32 %v2196_v2  ;;  %v2095_v21 = vsel %vm1401_vm4, %v2090_v16, 0 }
 0x64d   : > { %4519 = vmatprep.mubr.msk.bf16.mxu0 %vm5599_vm1, %v5598_v0 }
 0x64f   : > { %v1979_v14 = vpop.permute.xlu1 %1978  ;;  %v2201_v22 = vpop.permute.xlu0 %2200 }
 0x650   : > { %v1984_v15 = vsel %vm1401_vm4, %v1979_v14, 0  ;;  %v2206_v17 = vsel %vm1401_vm4, %v2201_v22, 0  ;;  %v1445_v14 = vpack.c.bf16 %v6215_v44, %v6215_v44 }
 0x651   : > { %4518 = vmatpush3.bf16.msra.mxu0 %v1984_v15  ;;  %v4991_v20 = vpop.eup %4990 }
 0x652   : > { %4529 = vmatprep.subr.bf16.mxu0 %v5598_v0  ;;  %v2087_v7 = vmul.f32 %v4991_v20, %v6257_v36 }
 0x654   : > { %4520 = vmatmul.mubr.msk.bf16.vlgmr.msra.gmra.mxu0 %vm1382_vm5, %v1977_v18  ;;  %v2088_v23 = vpack.c.bf16 %v2087_v7, %v2087_v7 }
 0x655   : > { %4530 = vmatpush3.bf16.msra.mxu0 %v2095_v21  ;;  %4531 = vmatprep.mubr.msk.bf16.mxu0 %vm5599_vm1, %v5598_v0 }
 0x656   : > { %4541 = vmatprep.subr.bf16.mxu0 %v5598_v0 }
 0x659   : > { %v4993_v25 = vpop.eup %4992 }
 0x65a   : > { %v2198_v26 = vmul.f32 %v4993_v25, %v6261_v42  ;;  %v4249_v25 = vld [vmem:[#allocation17] ss:$0 sm:$0xff] }
 0x65c   : > { %4532 = vmatmul.mubr.msk.bf16.vlgmr.msra.gmra.mxu0 %vm1382_vm5, %v2088_v23  ;;  %v2199_v27 = vpack.c.bf16 %v2198_v26, %v2198_v26 }
 0x65d   : > { %4542 = vmatpush3.bf16.msra.mxu0 %v2206_v17  ;;  %4543 = vmatprep.mubr.msk.bf16.mxu0 %vm5599_vm1, %v5598_v0 }
 0x664   : > { %4544 = vmatmul.mubr.msk.bf16.vlgmr.msra.gmra.mxu0 %vm1382_vm5, %v2199_v27 }
 0x6e1   : > { %v1551_v28 = vpop.f32.mrf.mxu0 }
 0x6e2   : > { %v1557_v30 = vpack.c.bf16 %v1551_v28, %v1551_v28 }
 0x6e3   : > { %v4473_v19 = vpop.f32.mrf.mxu0 }
 0x6e4   : > { %1781 = vrot.lane.b32.xlu1 %v1557_v30, %s5606_s4 }
 0x6e5   : > { %v1554_v32 = vpop.f32.mrf.mxu0 }
 0x6e7   : > { %v4474_v33 = vpop.f32.mrf.mxu0 }
 0x6e9   : > { %v1662_v34 = vpop.f32.mrf.mxu0 }
 0x6ea   : > { %v1668_v55 = vpack.c.bf16 %v1662_v34, %v1662_v34 }
 0x6eb   : > { %v4485_v35 = vpop.f32.mrf.mxu0 }
 0x6ed   : > { %v1665_v37 = vpop.f32.mrf.mxu0 }
 0x6ef   : > { %v4486_v29 = vpop.f32.mrf.mxu0 }
 0x6f1   : > { %v1773_v38 = vpop.f32.mrf.mxu0 }
 0x6f2   : > { %v1779_v60 = vpack.c.bf16 %v1773_v38, %v1773_v38 }
 0x6f3   : > { %v4497_v39 = vpop.f32.mrf.mxu0 }
 0x6f5   : > { %v1776_v40 = vpop.f32.mrf.mxu0 }
 0x6f7   : > { %v4498_v36 = vpop.f32.mrf.mxu0 }
 0x70c   : > { %v1908_v41 = vpop.f32.mrf.mxu0 }
 0x70d   : > { %v1914_v12 = vpack.c.bf16 %v1908_v41, %v1908_v41 }
 0x70e   : > { %v4509_v42 = vpop.f32.mrf.mxu0 }
 0x710   : > { %v1911_v24 = vpop.f32.mrf.mxu0 }
 0x711   : > { %v4938_v24 = vld [vmem:[%s6820_s26 + $0x24] ss:$8 sps:$4 sm:$0xff]  }
 0x712   : > { %v4510_v45 = vpop.f32.mrf.mxu0 }
 0x713   : > { %v4936_v45 = vld [vmem:[%s6820_s26 + $0x20] ss:$8 sps:$4 sm:$0xff]  }
 0x714   : > { %v2020_v47 = vpop.f32.mrf.mxu0 }
 0x715   : > { %v2026_v50 = vpack.c.bf16 %v2020_v47, %v2020_v47  ;;  %v4941_v47 = vld [vmem:[%s6820_s26 + $0x14] ss:$8 sps:$4 sm:$0xff]  }
 0x716   : > { %v4521_v53 = vpop.f32.mrf.mxu0 }
 0x717   : > { %2250 = vrot.lane.b32.xlu1 %v2026_v50, %s5606_s4  ;;  %v5607_v50 = vmov 0   ;;  %v4942_v53 = vld [vmem:[%s6820_s26] ss:$8 sps:$4 sm:$0xff]  }
 0x718   : > { %v2023_v54 = vpop.f32.mrf.mxu0  ;;  %2490 = vmatprep.mubr.bf16.mxu0 %v5607_v50 }
 0x71a   : > { %v4522_v56 = vpop.f32.mrf.mxu0 }
 0x71b   : > { %1784 = vrot.lane.b32.xlu1 %v1668_v55, %s5604_s5 }
 0x71c   : > { %v2131_v58 = vpop.f32.mrf.mxu0 }
 0x71d   : > { %v2137_v31 = vpack.c.bf16 %v2131_v58, %v2131_v58 }
 0x71e   : > { %v4533_v59 = vpop.f32.mrf.mxu0 }
 0x71f   : > { %2253 = vrot.lane.b32.xlu0 %v2137_v31, %s5604_s5 }
 0x720   : > { %v2134_v61 = vpop.f32.mrf.mxu0 }
 0x722   : > { %v4534_v62 = vpop.f32.mrf.mxu0 }
 0x723   : > { %v4255_v62 = vld [vmem:[#allocation19] ss:$0 sm:$0xff] }
 0x724   : > { %v2242_v63 = vpop.f32.mrf.mxu0 }
 0x725   : > { %v2248_v1 = vpack.c.bf16 %v2242_v63, %v2242_v63 }
 0x726   : > { %v4545_v3 = vpop.f32.mrf.mxu0 }
 0x727   : > { %2256 = vrot.lane.b32.xlu0 %v2248_v1, %s5605_s21 }
 0x728   : > { %v2245_v4 = vpop.f32.mrf.mxu0 }
 0x729   : > { %v4256_v4 = vld [vmem:[#allocation20] ss:$0 sm:$0xff] }
 0x72a   : > { %v4546_v5 = vpop.f32.mrf.mxu0 }
 0x72b   : > { %1787 = vrot.lane.b32.xlu0 %v1779_v60, %s5605_s21 }
 0x756   : > { %v1782_v6 = vpop.permute.xlu1 %1781 }
 0x757   : > { %v1791_v18 = vsel %vm1335_vm3, %v1445_v14, %v1782_v6 }
 0x789   : > { %v2251_v8 = vpop.permute.xlu1 %2250 }
 0x78a   : > { %v2260_v52 = vsel %vm1335_vm3, %v1914_v12, %v2251_v8  ;;  %v2411_v12 = vsub.s32 1, %v6161_v48 }
 0x78d   : > { %v1785_v15 = vpop.permute.xlu1 %1784 }
 0x78e   : > { %v1794_v20 = vsel %vm1792_vm7, %v1791_v18, %v1785_v15 }
 0x791   : > { %v2254_v11 = vpop.permute.xlu0 %2253 }
 0x792   : > { %v2262_v2 = vsel %vm1792_vm7, %v2260_v52, %v2254_v11  ;;  %v1136_v11 = vld [vmem:[%s6821_s14] sm:$0x3]  ;;  %s6828_s14 = sld [smem:[#allocation71_spill]] }
 0x793   : > { %v2408_v52 = vrot.slane %v1136_v11, %v6164_v51 }
 0x799   : > { %v2257_v13 = vpop.permute.xlu0 %2256 }
 0x79a   : > { %v2264_v16 = vsel %vm1795_vm6, %v2262_v2, %v2257_v13  ;;  %v6378_v2 = vrot.slane %v1136_v11, %v2411_v12 }
 0x79b   : > { %v2266_v21 = vrot.slane %v2264_v16, 4 }
 0x79d   : > { %v1788_v7 = vpop.permute.xlu0 %1787 }
 0x79e   : > { %v1797_v22 = vsel %vm1795_vm6, %v1794_v20, %v1788_v7 }
 0x79f   : > { %v2268_v23 = vsel %vm1401_vm4, %v1797_v22, %v2266_v21 }
 0x7a0   : > { %4556 = vmatmul.mubr.msk.bf16.vlgmr.msra.gmra.mxu1 %vm1178_vm0, %v2268_v23 }
 0x7a1   : > { %4561 = vmatprep.mubr.msk.bf16.mxu1 %vm5599_vm1, %v5598_v0 }
 0x860   : > { %v2343_v44 = vpop.f32.mrf.mxu1 }
 0x861   : > { %v2344_v17 = vadd.f32 %v4249_v25, %v2343_v44 }
 0x862   : > { %v4557_v26 = vpop.f32.mrf.mxu1 }
 0x863   : > { %v2350_v27 = vadd.f32 %v2344_v17, %v6075_v9 }
 0x864   : > { %v2346_v28 = vpop.f32.mrf.mxu1 }
 0x865   : > { %v2347_v30 = vadd.f32 %v4249_v25, %v2346_v28  ;;  %v2352_v19 = vsel %vm1178_vm0, %v2350_v27, 0.0 }
 0x866   : > { %2353 = vadd.xlane.f32.xlu1 %v2352_v19  ;;  %v4558_v32 = vpop.f32.mrf.mxu1 }
 0x867   : > { %v2351_v33 = vadd.f32 %v2347_v30, %v6078_v10  ;;  %v4935_v10 = vld [vmem:[%s6820_s26 + $0x34] ss:$8 sps:$4 sm:$0xff]  }
 0x868   : > { %2466 = vmatprep.subr.bf16.mxu0 %v4935_v10  ;;  %v2501_v10 = vld [vmem:[%s1111_s3] sm:$0x1] }
 0x869   : > { %v2355_v34 = vsel %vm1178_vm0, %v2351_v33, 0.0  ;;  %2467 = vmatpush1.bf16.msra.mxu0 %v4933_v43  ;;  %v2502_v43 = vunpack.c.l.bf16 %v2501_v10 }
 0x86a   : > { %2356 = vadd.xlane.f32.xlu0 %v2355_v34  ;;  %2468 = vmatprep.subr.bf16.mxu0 %v4938_v24  ;;  %v2507_v24 = vld [vmem:[%s6017_s16] sm:$0xff]   ;;  %s6824_s16 = sld [smem:[#allocation68_spill]] }
 0x86d   : > { %2469 = vmatpush1.bf16.msra.mxu0 %v4936_v45  ;;  %v2506_v45 = vrot.slane %v2502_v43, %v6164_v51 }
 0x86e   : > { %2470 = vmatprep.subr.bf16.mxu0 %v4941_v47 }
 0x871   : > { %2471 = vmatpush1.bf16.msra.mxu0 %v4939_v46  ;;  %v2508_v46 = vunpack.c.l.bf16 %v2507_v24 }
 0x872   : > { %2472 = vmatprep.subr.bf16.mxu0 %v4944_v49 }
 0x873   : > { %v2509_v47 = vadd.f32 %v2508_v46, %v2506_v45 }
 0x875   : > { %2473 = vmatpush1.bf16.msra.mxu0 %v4942_v53 }
 0x876   : > { %4565 = vmatprep.subr.bf16.mxu0 %v5598_v0 }
 0x8ef   : > { %v2354_v35 = vpop.xlane.xlu1 %2353 }
 0x8f0   : > { %v2359_v37 = vmul.f32 0.015625, %v2354_v35 }
 0x8f2   : > { %v2361_v29 = vsub.f32 %v2350_v27, %v2359_v37 }
 0x8f3   : > { %v2357_v38 = vpop.xlane.xlu0 %2356 }
 0x8f4   : > { %v2360_v39 = vmul.f32 0.015625, %v2357_v38  ;;  %v2363_v40 = vmul.f32 %v2361_v29, %v2361_v29 }
 0x8f6   : > { %v2362_v36 = vsub.f32 %v2351_v33, %v2360_v39  ;;  %v2365_v9 = vsel %vm1178_vm0, %v2363_v40, 0.0 }
 0x8f7   : > { %2366 = vadd.xlane.f32.xlu0 %v2365_v9 }
 0x8f8   : > { %v2364_v41 = vmul.f32 %v2362_v36, %v2362_v36 }
 0x8fa   : > { %v2368_v42 = vsel %vm1178_vm0, %v2364_v41, 0.0 }
 0x8fb   : > { %2369 = vadd.xlane.f32.xlu1 %v2368_v42 }
 0x980   : > { %v2367_v54 = vpop.xlane.xlu0 %2366 }
 0x981   : > { %v2371_v55 = vmul.f32 0.015625, %v2367_v54 }
 0x983   : > { %v2373_v56 = vadd.f32 1e-12, %v2371_v55 }
 0x984   : > { %v2370_v57 = vpop.xlane.xlu1 %2369 }
 0x985   : > { %4994 = vrsqrt.f32 %v2373_v56  ;;  %v2372_v58 = vmul.f32 0.015625, %v2370_v57 }
 0x987   : > { %v2374_v31 = vadd.f32 1e-12, %v2372_v58 }
 0x989   : > { %4996 = vrsqrt.f32 %v2374_v31 }
 0x992   : > { %v4995_v59 = vpop.eup %4994 }
 0x993   : > { %v2377_v61 = vmul.f32 %v4995_v59, %v2361_v29 }
 0x995   : > { %v2385_v3 = vmul.f32 %v4255_v62, %v2377_v61 }
 0x996   : > { %v4997_v63 = vpop.eup %4996 }
 0x997   : > { %v2378_v1 = vmul.f32 %v4997_v63, %v2362_v36  ;;  %v6364_v5 = vadd.f32 %v4256_v4, %v2385_v3 }
 0x999   : > { %v2386_v60 = vmul.f32 %v4255_v62, %v2378_v1 }
 0x99b   : > { %v6366_v6 = vadd.f32 %v4256_v4, %v2386_v60  ;;  %v4274_v4 = vld [vmem:[%s1111_s3 + $0x1] sm:$0x1]  ;;  %s5470_s3 = scalar_lea.vmem %s5469_s9, 512 }
 0x99c   : > { %v2972_v11 = vunpack.c.l.bf16 %v4274_v4  ;;  %p5472_p4 = scmp.lt.s32.totalorder %s5470_s3, %s5464_s30 }
 0x99d   : > { %v2395_v8 = vpack.c.bf16 %v6366_v6, %v6364_v5 }
 0x99e   : > { %p5473_p10 = por %p5472_p4, %p5471_p12 }
 0x99f   : > { %4265 = vmatmul.mubr.msk.bf16.vlgmr.msra.gmra.mxu0 %vm1178_vm0, %v2395_v8 }
 0x9a0   : > { %4567 = vmatprep.mubr.msk.bf16.mxu0 %vm5599_vm1, %v5598_v0  ;;  %p5474_p9 = pnand %p5473_p10, %p5467_p5 }
 0xa5f   : > { %v2492_v13 = vpop.f32.mrf.mxu0 }
 0xa60   : > { %v2493_v14 = vadd.f32 %v2492_v13, %v2408_v52 }
 0xa61   : > { %v2494_v15 = vpop.f32.mrf.mxu0 }
 0xa62   : > { %v2510_v16 = vpack.c.bf16 %v2493_v14, %v2493_v14  ;;  %v2495_v18 = vadd.f32 %v2494_v15, %v6378_v2  ;;  %v2976_v14 = vrot.slane %v2972_v11, %v6164_v51  ;;  %v2979_v15 = vunpack.c.h.bf16 %v2507_v24 }
 0xa63   : > { %v2496_v48 = vpop.f32.mrf.mxu0 }
 0xa64   : > { %v6381_v20 = vpack.c.bf16 %v2495_v18, %v2495_v18  ;;  %2622 = vrot.lane.b32.xlu1 %v2510_v16, %s5605_s21  ;;  %2513 = vrot.lane.b32.xlu0 %v2510_v16, %s5600_s18  ;;  %v2497_v7 = vadd.f32 %v2496_v48, %v2408_v52  ;;  %v2980_v48 = vadd.f32 %v2979_v15, %v2976_v14 }
 0xa66   : > { %v2577_v21 = vsel %vm1401_vm4, %v6381_v20, 0  ;;  %v2981_v22 = vpack.c.bf16 %v2497_v7, %v2497_v7 }
 0xa67   : > { %4566 = vmatpush3.bf16.msra.mxu0 %v2577_v21 }
 0xa68   : > { %2620 = vrot.lane.b32.xlu1 %v2510_v16, %s5601_s28  ;;  %2734 = vrot.lane.b32.xlu0 %v2510_v16, %s5604_s5 }
 0xa69   : > { %4577 = vmatprep.subr.bf16.mxu0 %v5598_v0 }
 0xa6c   : > { %2732 = vrot.lane.b32.xlu1 %v2510_v16, %s5602_s13  ;;  %2845 = vrot.lane.b32.xlu0 %v2510_v16, %s5606_s4 }
 0xa70   : > { %2843 = vrot.lane.b32.xlu1 %v2510_v16, %s5603_s29  ;;  %2984 = vrot.lane.b32.xlu0 %v2981_v22, %s5600_s18  ;;  %s6642_s18 = scalar_lea.hbm %s6828_s14, %s4322_s0 }
 0xa74   : > { %3093 = vrot.lane.b32.xlu1 %v2981_v22, %s5605_s21  ;;  %3091 = vrot.lane.b32.xlu0 %v2981_v22, %s5601_s28 }
 0xa78   : > { %3205 = vrot.lane.b32.xlu1 %v2981_v22, %s5604_s5  ;;  %3203 = vrot.lane.b32.xlu0 %v2981_v22, %s5602_s13 }
 0xa7c   : > { %3316 = vrot.lane.b32.xlu1 %v2981_v22, %s5606_s4  ;;  %3314 = vrot.lane.b32.xlu0 %v2981_v22, %s5603_s29 }
 0xad6   : > { %v2514_v23 = vpop.permute.xlu0 %2513  ;;  %v2623_v44 = vpop.permute.xlu1 %2622 }
 0xad7   : > { %v2519_v25 = vsel %vm1335_vm3, %v2514_v23, 0  ;;  %v2628_v17 = vsel %vm1335_vm3, %v2623_v44, 0 }
 0xad8   : > { %4560 = vmatpush3.bf16.xpose.msra.mxu1 %v2519_v25 }
 0xad9   : > { %4571 = vmatprep.subr.bf16.mxu1 %v5598_v0 }
 0xada   : > { %v2735_v26 = vpop.permute.xlu0 %2734  ;;  %v2621_v27 = vpop.permute.xlu1 %2620 }
 0xadb   : > { %v2740_v28 = vsel %vm1335_vm3, %v2735_v26, 0 }
 0xade   : > { %v2846_v30 = vpop.permute.xlu0 %2845  ;;  %v2733_v19 = vpop.permute.xlu1 %2732 }
 0xadf   : > { %4562 = vmatmul.mubr.msk.bf16.vlgmr.msra.gmra.mxu1 %vm1335_vm3, %v2510_v16  ;;  %v2851_v32 = vsel %vm1335_vm3, %v2846_v30, 0 }
 0xae0   : > { %4572 = vmatpush3.bf16.xpose.msra.mxu1 %v2628_v17  ;;  %4573 = vmatprep.mubr.msk.bf16.mxu1 %vm5599_vm1, %v5598_v0 }
 0xae1   : > { %4583 = vmatprep.subr.bf16.mxu1 %v5598_v0 }
 0xae2   : > { %v2985_v33 = vpop.permute.xlu0 %2984  ;;  %v2844_v34 = vpop.permute.xlu1 %2843 }
 0xae3   : > { %v2990_v35 = vsel %vm1335_vm3, %v2985_v33, 0 }
 0xae6   : > { %v3094_v37 = vpop.permute.xlu1 %3093  ;;  %v3092_v39 = vpop.permute.xlu0 %3091 }
 0xae7   : > { %4574 = vmatmul.mubr.msk.bf16.vlgmr.msra.gmra.mxu1 %vm1335_vm3, %v2621_v27  ;;  %v3099_v29 = vsel %vm1335_vm3, %v3094_v37, 0 }
 0xae8   : > { %4584 = vmatpush3.bf16.xpose.msra.mxu1 %v2740_v28  ;;  %4585 = vmatprep.mubr.msk.bf16.mxu1 %vm5599_vm1, %v5598_v0 }
 0xae9   : > { %4595 = vmatprep.subr.bf16.mxu1 %v5598_v0 }
 0xaea   : > { %v3206_v38 = vpop.permute.xlu1 %3205  ;;  %v3204_v9 = vpop.permute.xlu0 %3203 }
 0xaeb   : > { %v3211_v40 = vsel %vm1335_vm3, %v3206_v38, 0 }
 0xaee   : > { %v3317_v36 = vpop.permute.xlu1 %3316  ;;  %v3315_v42 = vpop.permute.xlu0 %3314 }
 0xaef   : > { %4586 = vmatmul.mubr.msk.bf16.vlgmr.msra.gmra.mxu1 %vm1335_vm3, %v2733_v19  ;;  %v3322_v41 = vsel %vm1335_vm3, %v3317_v36, 0 }
 0xaf0   : > { %4596 = vmatpush3.bf16.xpose.msra.mxu1 %v2851_v32  ;;  %4597 = vmatprep.mubr.msk.bf16.mxu1 %vm5599_vm1, %v5598_v0 }
 0xaf1   : > { %4607 = vmatprep.subr.bf16.mxu1 %v5598_v0 }
 0xaf7   : > { %4598 = vmatmul.mubr.msk.bf16.vlgmr.msra.gmra.mxu1 %vm1335_vm3, %v2844_v34 }
 0xaf8   : > { %4608 = vmatpush3.bf16.xpose.msra.mxu1 %v2990_v35  ;;  %4609 = vmatprep.mubr.msk.bf16.mxu1 %vm5599_vm1, %v5598_v0 }
 0xaf9   : > { %4619 = vmatprep.subr.bf16.mxu1 %v5598_v0 }
 0xaff   : > { %4610 = vmatmul.mubr.msk.bf16.vlgmr.msra.gmra.mxu1 %vm1335_vm3, %v2981_v22 }
 0xb00   : > { %4620 = vmatpush3.bf16.xpose.msra.mxu1 %v3099_v29  ;;  %4621 = vmatprep.mubr.msk.bf16.mxu1 %vm5599_vm1, %v5598_v0 }
 0xb01   : > { %4631 = vmatprep.subr.bf16.mxu1 %v5598_v0 }
 0xb07   : > { %4622 = vmatmul.mubr.msk.bf16.vlgmr.msra.gmra.mxu1 %vm1335_vm3, %v3092_v39 }
 0xb08   : > { %4632 = vmatpush3.bf16.xpose.msra.mxu1 %v3211_v40  ;;  %4633 = vmatprep.mubr.msk.bf16.mxu1 %vm5599_vm1, %v5598_v0 }
 0xb09   : > { %4643 = vmatprep.subr.bf16.mxu1 %v5598_v0 }
 0xb0f   : > { %4634 = vmatmul.mubr.msk.bf16.vlgmr.msra.gmra.mxu1 %vm1335_vm3, %v3204_v9 }
 0xb10   : > { %4644 = vmatpush3.bf16.xpose.msra.mxu1 %v3322_v41  ;;  %4645 = vmatprep.mubr.msk.bf16.mxu1 %vm5599_vm1, %v5598_v0 }
 0xb11   : > { %4655 = vmatprep.subr.bf16.mxu1 %v5598_v0 }
 0xb17   : > { %4646 = vmatmul.mubr.msk.bf16.vlgmr.msra.gmra.mxu1 %vm1335_vm3, %v3315_v42 }
 0xb18   : > { %4663 = vmatprep.mubr.msk.bf16.mxu1 %vm5599_vm1, %v5598_v0 }
 0xb9f   : > { %v2555_v49 = vpop.f32.mrf.mxu1 }
 0xba0   : > { %v6446_v50 = vadd.f32 %v2555_v49, %v2509_v47 }
 0xba1   : > { %v4563_v53 = vpop.f32.mrf.mxu1 }
 0xba2   : > { %v2561_v54 = vsel %vm1382_vm5, %v6446_v50, -inf }
 0xba3   : > { %2562 = vmax.xlane.f32.xlu1 %v2561_v54  ;;  %v2558_v55 = vpop.f32.mrf.mxu1 }
 0xba5   : > { %v4564_v56 = vpop.f32.mrf.mxu1 }
 0xba7   : > { %v2664_v57 = vpop.f32.mrf.mxu1 }
 0xba8   : > { %v2665_v58 = vadd.f32 %v2664_v57, %v2509_v47 }
 0xba9   : > { %v4575_v31 = vpop.f32.mrf.mxu1 }
 0xbaa   : > { %v2670_v59 = vsel %vm1382_vm5, %v2665_v58, -inf }
 0xbab   : > { %2671 = vmax.xlane.f32.xlu0 %v2670_v59  ;;  %v2667_v61 = vpop.f32.mrf.mxu1 }
 0xbad   : > { %v4576_v62 = vpop.f32.mrf.mxu1 }
 0xbaf   : > { %v2776_v63 = vpop.f32.mrf.mxu1 }
 0xbb0   : > { %v2777_v1 = vadd.f32 %v2776_v63, %v2509_v47 }
 0xbb1   : > { %v4587_v3 = vpop.f32.mrf.mxu1 }
 0xbb2   : > { %v2782_v60 = vsel %vm1382_vm5, %v2777_v1, -inf }
 0xbb3   : > { %2783 = vmax.xlane.f32.xlu0 %v2782_v60  ;;  %v2779_v8 = vpop.f32.mrf.mxu1 }
 0xbb5   : > { %v4588_v12 = vpop.f32.mrf.mxu1 }
 0xbb6   : > { %v2498_v12 = vpop.f32.mrf.mxu0 }
 0xbb7   : > { %v2887_v52 = vpop.f32.mrf.mxu1 }
 0xbb8   : > { %v2888_v13 = vadd.f32 %v2887_v52, %v2509_v47  ;;  %v2499_v52 = vadd.f32 %v2498_v12, %v6378_v2 }
 0xbb9   : > { %v4599_v16 = vpop.f32.mrf.mxu1 }
 0xbba   : > { %v2893_v18 = vsel %vm1382_vm5, %v2888_v13, -inf }
 0xbbb   : > { %2894 = vmax.xlane.f32.xlu1 %v2893_v18  ;;  %v2890_v21 = vpop.f32.mrf.mxu1 }
 0xbbd   : > { %v4600_v7 = vpop.f32.mrf.mxu1 }
 0xbbf   : > { %v3026_v22 = vpop.f32.mrf.mxu1 }
 0xbc0   : > { %v3027_v23 = vadd.f32 %v3026_v22, %v2980_v48 }
 0xbc1   : > { %v4611_v25 = vpop.f32.mrf.mxu1 }
 0xbc2   : > { %v3032_v44 = vsel %vm1382_vm5, %v3027_v23, -inf }
 0xbc3   : > { %3033 = vmax.xlane.f32.xlu0 %v3032_v44  ;;  %v3029_v17 = vpop.f32.mrf.mxu1 }
 0xbc5   : > { %v4612_v26 = vpop.f32.mrf.mxu1 }
 0xbc7   : > { %v3135_v27 = vpop.f32.mrf.mxu1 }
 0xbc8   : > { %v6455_v28 = vadd.f32 %v3135_v27, %v2980_v48 }
 0xbc9   : > { %v4623_v51 = vpop.f32.mrf.mxu1 }
 0xbca   : > { %v3141_v30 = vsel %vm1382_vm5, %v6455_v28, -inf }
 0xbcb   : > { %3142 = vmax.xlane.f32.xlu1 %v3141_v30  ;;  %v3138_v19 = vpop.f32.mrf.mxu1 }
 0xbcd   : > { %v4624_v32 = vpop.f32.mrf.mxu1 }
 0xbcf   : > { %v3247_v33 = vpop.f32.mrf.mxu1 }
 0xbd0   : > { %v3248_v34 = vadd.f32 %v3247_v33, %v2980_v48 }
 0xbd1   : > { %v4635_v35 = vpop.f32.mrf.mxu1 }
 0xbd2   : > { %v3253_v37 = vsel %vm1382_vm5, %v3248_v34, -inf }
 0xbd3   : > { %3254 = vmax.xlane.f32.xlu0 %v3253_v37  ;;  %v3250_v29 = vpop.f32.mrf.mxu1 }
 0xbd5   : > { %v4636_v38 = vpop.f32.mrf.mxu1 }
 0xbd7   : > { %v3358_v39 = vpop.f32.mrf.mxu1 }
 0xbd8   : > { %v3359_v40 = vadd.f32 %v3358_v39, %v2980_v48 }
 0xbd9   : > { %v4647_v36 = vpop.f32.mrf.mxu1 }
 0xbda   : > { %v3364_v9 = vsel %vm1382_vm5, %v3359_v40, -inf }
 0xbdb   : > { %3365 = vmax.xlane.f32.xlu1 %v3364_v9  ;;  %v3361_v41 = vpop.f32.mrf.mxu1 }
 0xbdd   : > { %v4648_v42 = vpop.f32.mrf.mxu1 }
 0xbe9   : > { %2794 = vrot.lane.b32.xlu0 %v6381_v20, %s5602_s13 }
 0xbec   : > { %2683 = vrot.lane.b32.xlu1 %v6381_v20, %s5601_s28 }
 0xc2c   : > { %v2563_v10 = vpop.xlane.xlu1 %2562 }
 0xc2d   : > { %v2564_v43 = vsub.f32 %v6446_v50, %v2563_v10 }
 0xc2f   : > { %v2565_v24 = vmul.f32 1.442695, %v2564_v43 }
 0xc31   : > { %4998 = vpow2.f32 %v2565_v24 }
 0xc34   : > { %v2672_v45 = vpop.xlane.xlu0 %2671 }
 0xc35   : > { %v2673_v46 = vsub.f32 %v2665_v58, %v2672_v45 }
 0xc37   : > { %v2674_v47 = vmul.f32 1.442695, %v2673_v46 }
 0xc39   : > { %5000 = vpow2.f32 %v2674_v47 }
 0xc3c   : > { %v2784_v49 = vpop.xlane.xlu0 %2783 }
 0xc3d   : > { %v2785_v53 = vsub.f32 %v2777_v1, %v2784_v49 }
 0xc3e   : > { %v4999_v54 = vpop.eup %4998 }
 0xc3f   : > { %v2786_v55 = vmul.f32 1.442695, %v2785_v53  ;;  %v2567_v56 = vsel %vm1382_vm5, %v4999_v54, 0.0 }
 0xc40   : > { %2568 = vadd.xlane.f32.xlu0 %v2567_v56 }
 0xc41   : > { %5002 = vpow2.f32 %v2786_v55 }
 0xc44   : > { %v2895_v57 = vpop.xlane.xlu1 %2894 }
 0xc45   : > { %v2896_v31 = vsub.f32 %v2888_v13, %v2895_v57  ;;  %v6484_v13 = vpack.c.bf16 %v2499_v52, %v2499_v52 }
 0xc46   : > { %v6467_v59 = vpop.eup %5000 }
 0xc47   : > { %v2897_v61 = vmul.f32 1.442695, %v2896_v31  ;;  %v2676_v50 = vsel %vm1382_vm5, %v6467_v59, 0.0  ;;  %v3048_v47 = vsel %vm1401_vm4, %v6484_v13, 0 }
 0xc48   : > { %2677 = vadd.xlane.f32.xlu1 %v2676_v50 }
 0xc49   : > { %5004 = vpow2.f32 %v2897_v61 }
 0xc4c   : > { %v3034_v58 = vpop.xlane.xlu0 %3033 }
 0xc4d   : > { %v3035_v62 = vsub.f32 %v3027_v23, %v3034_v58 }
 0xc4e   : > { %v6471_v63 = vpop.eup %5002 }
 0xc4f   : > { %v3036_v1 = vmul.f32 1.442695, %v3035_v62  ;;  %v2788_v3 = vsel %vm1382_vm5, %v6471_v63, 0.0 }
 0xc50   : > { %2789 = vadd.xlane.f32.xlu0 %v2788_v3 }
 0xc51   : > { %5006 = vpow2.f32 %v3036_v1 }
 0xc54   : > { %v3143_v18 = vpop.xlane.xlu1 %3142 }
 0xc55   : > { %v3144_v21 = vsub.f32 %v6455_v28, %v3143_v18 }
 0xc56   : > { %v6475_v4 = vpop.eup %5004 }
 0xc57   : > { %v2899_v60 = vsel %vm1382_vm5, %v6475_v4, 0.0  ;;  %v3145_v7 = vmul.f32 1.442695, %v3144_v21 }
 0xc58   : > { %2900 = vadd.xlane.f32.xlu1 %v2899_v60 }
 0xc5c   : > { %v3255_v14 = vpop.xlane.xlu0 %3254 }
 0xc5d   : > { %v3256_v15 = vsub.f32 %v3248_v34, %v3255_v14 }
 0xc5e   : > { %v6479_v8 = vpop.eup %5006 }
 0xc5f   : > { %v3038_v11 = vsel %vm1382_vm5, %v6479_v8, 0.0  ;;  %v3257_v16 = vmul.f32 1.442695, %v3256_v15 }
 0xc60   : > { %3039 = vadd.xlane.f32.xlu0 %v3038_v11  ;;  %v2795_v27 = vpop.permute.xlu0 %2794 }
 0xc61   : > { %5008 = vpow2.f32 %v3257_v16 }
 0xc62   : > { %5010 = vpow2.f32 %v3145_v7 }
 0xc64   : > { %v3366_v48 = vpop.xlane.xlu1 %3365 }
 0xc65   : > { %v3367_v22 = vsub.f32 %v3359_v40, %v3366_v48  ;;  %v2800_v40 = vsel %vm1401_vm4, %v2795_v27, 0 }
 0xc67   : > { %v3368_v2 = vmul.f32 1.442695, %v3367_v22 }
 0xc68   : > { %v2684_v51 = vpop.permute.xlu1 %2683 }
 0xc69   : > { %3154 = vrot.lane.b32.xlu1 %v6484_v13, %s5601_s28  ;;  %5012 = vpow2.f32 %v3368_v2  ;;  %v2689_v35 = vsel %vm1401_vm4, %v2684_v51, 0 }
 0xc6e   : > { %v6491_v23 = vpop.eup %5008 }
 0xc6f   : > { %v3259_v25 = vsel %vm1382_vm5, %v6491_v23, 0.0  ;;  %v6495_v44 = vpop.eup %5010 }
 0xc76   : > { %2905 = vrot.lane.b32.xlu0 %v6381_v20, %s5603_s29  ;;  %v3147_v20 = vsel %vm1382_vm5, %v6495_v44, 0.0  ;;  %v6499_v17 = vpop.eup %5012 }
 0xc77   : > { %v3370_v26 = vsel %vm1382_vm5, %v6499_v17, 0.0 }
 0xc8d   : > { %3260 = vadd.xlane.f32.xlu1 %v3259_v25 }
 0xc95   : > { %3148 = vadd.xlane.f32.xlu0 %v3147_v20 }
 0xc99   : > { %3371 = vadd.xlane.f32.xlu0 %v3370_v26 }
 0xc9e   : > { %3376 = vrot.lane.b32.xlu1 %v6484_v13, %s5603_s29 }
 0xcaf   : > { %3265 = vrot.lane.b32.xlu0 %v6484_v13, %s5602_s13  ;;  %s6823_s13 = sld [smem:[#allocation67_spill]] }
 0xcc9   : > { %v2569_v28 = vpop.xlane.xlu0 %2568 }
 0xcca   : > { %5014 = vrcp.f32 %v2569_v28 }
 0xcd1   : > { %v2678_v30 = vpop.xlane.xlu1 %2677 }
 0xcd2   : > { %5016 = vrcp.f32 %v2678_v30 }
 0xcd7   : > { %v5015_v19 = vpop.eup %5014 }
 0xcd8   : > { %v2571_v32 = vmul.f32 %v5015_v19, %v4999_v54 }
 0xcd9   : > { %v2790_v33 = vpop.xlane.xlu0 %2789 }
 0xcda   : > { %5018 = vrcp.f32 %v2790_v33  ;;  %v2572_v34 = vpack.c.bf16 %v2571_v32, %v2571_v32  ;;  %v4945_v32 = vld [vmem:[#allocation22 + $0x18] sm:$0xff]   ;;  %v4946_v33 = vld [vmem:[#allocation22 + $0x10] sm:$0xff]  }
 0xcdb   : > { %4656 = vmatpush3.bf16.msra.mxu1 %v4945_v32 }
 0xcdc   : > { %4568 = vmatmul.mubr.msk.bf16.vlgmr.msra.gmra.mxu0 %vm1382_vm5, %v2572_v34  ;;  %4657 = vmatprep.subr.bf16.mxu1 %v5598_v0 }
 0xcdd   : > { %4578 = vmatpush3.bf16.msra.mxu0 %v2689_v35  ;;  %4579 = vmatprep.mubr.msk.bf16.mxu0 %vm5599_vm1, %v5598_v0 }
 0xcde   : > { %4589 = vmatprep.subr.bf16.mxu0 %v5598_v0 }
 0xcdf   : > { %v5017_v37 = vpop.eup %5016  ;;  %4658 = vmatpush3.bf16.msra.mxu1 %v4946_v33 }
 0xce0   : > { %v2680_v29 = vmul.f32 %v5017_v37, %v6467_v59  ;;  %4659 = vmatprep.subr.bf16.mxu1 %v5598_v0 }
 0xce1   : > { %v2901_v38 = vpop.xlane.xlu1 %2900 }
 0xce2   : > { %5020 = vrcp.f32 %v2901_v38  ;;  %v2681_v39 = vpack.c.bf16 %v2680_v29, %v2680_v29  ;;  %v4947_v29 = vld [vmem:[#allocation22 + $0x8] sm:$0xff]  }
 0xce3   : > { %4660 = vmatpush3.bf16.msra.mxu1 %v4947_v29 }
 0xce4   : > { %4580 = vmatmul.mubr.msk.bf16.vlgmr.msra.gmra.mxu0 %vm1382_vm5, %v2681_v39  ;;  %4661 = vmatprep.subr.bf16.mxu1 %v5598_v0 }
 0xce5   : > { %4590 = vmatpush3.bf16.msra.mxu0 %v2800_v40  ;;  %4591 = vmatprep.mubr.msk.bf16.mxu0 %vm5599_vm1, %v5598_v0  ;;  %v3155_v54 = vpop.permute.xlu1 %3154  ;;  %v4948_v40 = vld [vmem:[#allocation22] sm:$0xff]  }
 0xce6   : > { %4601 = vmatprep.subr.bf16.mxu0 %v5598_v0  ;;  %v3160_v56 = vsel %vm1401_vm4, %v3155_v54, 0 }
 0xce7   : > { %v5019_v36 = vpop.eup %5018  ;;  %4662 = vmatpush3.bf16.msra.mxu1 %v4948_v40  ;;  %v4291_v40 = vld [vmem:[#allocation26] ss:$0 sm:$0xff] }
 0xce8   : > { %v2792_v9 = vmul.f32 %v5019_v36, %v6471_v63  ;;  %4679 = vmatprep.subr.bf16.mxu1 %v5598_v0 }
 0xce9   : > { %v3040_v41 = vpop.xlane.xlu0 %3039 }
 0xcea   : > { %5022 = vrcp.f32 %v3040_v41  ;;  %v2793_v42 = vpack.c.bf16 %v2792_v9, %v2792_v9 }
 0xcec   : > { %4592 = vmatmul.mubr.msk.bf16.vlgmr.msra.gmra.mxu0 %vm1382_vm5, %v2793_v42 }
 0xced   : > { %v2906_v10 = vpop.permute.xlu0 %2905  ;;  %4603 = vmatprep.mubr.msk.bf16.mxu0 %vm5599_vm1, %v5598_v0 }
 0xcee   : > { %v2911_v43 = vsel %vm1401_vm4, %v2906_v10, 0 }
 0xcef   : > { %v5021_v24 = vpop.eup %5020  ;;  %4602 = vmatpush3.bf16.msra.mxu0 %v2911_v43 }
 0xcf0   : > { %4613 = vmatprep.subr.bf16.mxu0 %v5598_v0  ;;  %v2903_v45 = vmul.f32 %v5021_v24, %v6475_v4 }
 0xcf2   : > { %v2904_v46 = vpack.c.bf16 %v2903_v45, %v2903_v45 }
 0xcf4   : > { %4604 = vmatmul.mubr.msk.bf16.vlgmr.msra.gmra.mxu0 %vm1382_vm5, %v2904_v46 }
 0xcf5   : > { %4614 = vmatpush3.bf16.msra.mxu0 %v3048_v47  ;;  %4615 = vmatprep.mubr.msk.bf16.mxu0 %vm5599_vm1, %v5598_v0 }
 0xcf6   : > { %4625 = vmatprep.subr.bf16.mxu0 %v5598_v0 }
 0xcf7   : > { %v5023_v49 = vpop.eup %5022 }
 0xcf8   : > { %v3042_v53 = vmul.f32 %v5023_v49, %v6479_v8 }
 0xcfa   : > { %v3043_v55 = vpack.c.bf16 %v3042_v53, %v3042_v53 }
 0xcfc   : > { %4616 = vmatmul.mubr.msk.bf16.vlgmr.msra.gmra.mxu0 %vm1382_vm5, %v3043_v55 }
 0xcfd   : > { %4626 = vmatpush3.bf16.msra.mxu0 %v3160_v56  ;;  %4627 = vmatprep.mubr.msk.bf16.mxu0 %vm5599_vm1, %v5598_v0 }
 0xcfe   : > { %4637 = vmatprep.subr.bf16.mxu0 %v5598_v0 }
 0xd16   : > { %v3261_v31 = vpop.xlane.xlu1 %3260 }
 0xd1a   : > { %v3377_v4 = vpop.permute.xlu1 %3376 }
 0xd1b   : > { %v3382_v11 = vsel %vm1401_vm4, %v3377_v4, 0 }
 0xd1e   : > { %v3149_v57 = vpop.xlane.xlu0 %3148 }
 0xd1f   : > { %5024 = vrcp.f32 %v3149_v57 }
 0xd20   : > { %5026 = vrcp.f32 %v3261_v31 }
 0xd22   : > { %v3372_v59 = vpop.xlane.xlu0 %3371 }
 0xd23   : > { %5028 = vrcp.f32 %v3372_v59 }
 0xd26   : > { %v3266_v58 = vpop.permute.xlu0 %3265 }
 0xd27   : > { %v3271_v1 = vsel %vm1401_vm4, %v3266_v58, 0 }
 0xd2c   : > { %v5025_v61 = vpop.eup %5024 }
 0xd2d   : > { %v3151_v50 = vmul.f32 %v5025_v61, %v6495_v44  ;;  %v5027_v63 = vpop.eup %5026 }
 0xd2e   : > { %v3263_v3 = vmul.f32 %v5027_v63, %v6491_v23 }
 0xd2f   : > { %v3152_v62 = vpack.c.bf16 %v3151_v50, %v3151_v50 }
 0xd30   : > { %v3264_v60 = vpack.c.bf16 %v3263_v3, %v3263_v3  ;;  %v5029_v8 = vpop.eup %5028 }
 0xd31   : > { %4628 = vmatmul.mubr.msk.bf16.vlgmr.msra.gmra.mxu0 %vm1382_vm5, %v3152_v62  ;;  %v3374_v12 = vmul.f32 %v5029_v8, %v6499_v17 }
 0xd32   : > { %4638 = vmatpush3.bf16.msra.mxu0 %v3271_v1  ;;  %4639 = vmatprep.mubr.msk.bf16.mxu0 %vm5599_vm1, %v5598_v0 }
 0xd33   : > { %4649 = vmatprep.subr.bf16.mxu0 %v5598_v0  ;;  %v3375_v52 = vpack.c.bf16 %v3374_v12, %v3374_v12 }
 0xd39   : > { %4640 = vmatmul.mubr.msk.bf16.vlgmr.msra.gmra.mxu0 %vm1382_vm5, %v3264_v60 }
 0xd3a   : > { %4650 = vmatpush3.bf16.msra.mxu0 %v3382_v11  ;;  %4651 = vmatprep.mubr.msk.bf16.mxu0 %vm5599_vm1, %v5598_v0  ;;  %v4284_v11 = vld [vmem:[#allocation23] ss:$0 sm:$0xff] }
 0xd3b   : > { %4667 = vmatprep.subr.bf16.mxu0 %v5598_v0 }
 0xd41   : > { %4652 = vmatmul.mubr.msk.bf16.vlgmr.msra.gmra.mxu0 %vm1382_vm5, %v3375_v52 }
 0xd42   : > { %4675 = vmatprep.mubr.msk.bf16.mxu0 %vm5599_vm1, %v5598_v0 }
 0xd9c   : > { %v6553_v13 = vpop.f32.mrf.mxu0 }
 0xd9d   : > { %v2619_v50 = vpack.c.bf16 %v6553_v13, %v6553_v13 }
 0xd9e   : > { %v4569_v14 = vpop.f32.mrf.mxu0 }
 0xda0   : > { %v2616_v15 = vpop.f32.mrf.mxu0 }
 0xda2   : > { %v4570_v16 = vpop.f32.mrf.mxu0 }
 0xda4   : > { %v2725_v18 = vpop.f32.mrf.mxu0 }
 0xda5   : > { %v2731_v21 = vpack.c.bf16 %v2725_v18, %v2725_v18 }
 0xda6   : > { %v4581_v48 = vpop.f32.mrf.mxu0 }
 0xda7   : > { %2955 = vrot.lane.b32.xlu1 %v2731_v21, %s5606_s4 }
 0xda8   : > { %v2728_v7 = vpop.f32.mrf.mxu0 }
 0xdaa   : > { %v4582_v22 = vpop.f32.mrf.mxu0 }
 0xdac   : > { %v2836_v2 = vpop.f32.mrf.mxu0 }
 0xdad   : > { %v2842_v10 = vpack.c.bf16 %v2836_v2, %v2836_v2 }
 0xdae   : > { %v4593_v23 = vpop.f32.mrf.mxu0 }
 0xdb0   : > { %v2839_v25 = vpop.f32.mrf.mxu0 }
 0xdb2   : > { %v4594_v44 = vpop.f32.mrf.mxu0 }
 0xdb4   : > { %v2947_v20 = vpop.f32.mrf.mxu0 }
 0xdb5   : > { %v2953_v49 = vpack.c.bf16 %v2947_v20, %v2947_v20 }
 0xdb6   : > { %v4605_v17 = vpop.f32.mrf.mxu0 }
 0xdb8   : > { %v2950_v26 = vpop.f32.mrf.mxu0 }
 0xdba   : > { %v4606_v27 = vpop.f32.mrf.mxu0 }
 0xdbc   : > { %v3084_v28 = vpop.f32.mrf.mxu0 }
 0xdbd   : > { %v3090_v57 = vpack.c.bf16 %v3084_v28, %v3084_v28  ;;  %v4949_v28 = vld [vmem:[#allocation28 + $0x18] sm:$0xff]  }
 0xdbe   : > { %v4617_v51 = vpop.f32.mrf.mxu0  ;;  %4668 = vmatpush3.bf16.msra.mxu0 %v4949_v28 }
 0xdbf   : > { %4669 = vmatprep.subr.bf16.mxu0 %v5598_v0  ;;  %v4951_v51 = vld [vmem:[#allocation28 + $0x8] sm:$0xff]  }
 0xdc0   : > { %v3087_v30 = vpop.f32.mrf.mxu0 }
 0xdc1   : > { %v4952_v30 = vld [vmem:[#allocation28] sm:$0xff]  }
 0xdc2   : > { %v4618_v19 = vpop.f32.mrf.mxu0 }
 0xdf1   : > { %v3196_v34 = vpop.f32.mrf.mxu0 }
 0xdf2   : > { %v3202_v35 = vpack.c.bf16 %v3196_v34, %v3196_v34 }
 0xdf3   : > { %v4629_v37 = vpop.f32.mrf.mxu0 }
 0xdf4   : > { %3426 = vrot.lane.b32.xlu1 %v3202_v35, %s5606_s4  ;;  %s6826_s4 = sld [smem:[#allocation70_spill]] }
 0xdf5   : > { %v3199_v38 = vpop.f32.mrf.mxu0 }
 0xdf6   : > { %v4290_v38 = vld [vmem:[#allocation25] ss:$0 sm:$0xff] }
 0xdf7   : > { %v4630_v39 = vpop.f32.mrf.mxu0 }
 0xdf9   : > { %v3307_v36 = vpop.f32.mrf.mxu0 }
 0xdfa   : > { %v3313_v9 = vpack.c.bf16 %v3307_v36, %v3307_v36 }
 0xdfb   : > { %v4641_v41 = vpop.f32.mrf.mxu0 }
 0xdfc   : > { %3429 = vrot.lane.b32.xlu1 %v3313_v9, %s5604_s5 }
 0xdfd   : > { %v3310_v42 = vpop.f32.mrf.mxu0 }
 0xdff   : > { %v4642_v43 = vpop.f32.mrf.mxu0 }
 0xe00   : > { %2958 = vrot.lane.b32.xlu1 %v2842_v10, %s5604_s5 }
 0xe01   : > { %v3418_v24 = vpop.f32.mrf.mxu0 }
 0xe02   : > { %v3424_v45 = vpack.c.bf16 %v3418_v24, %v3418_v24 }
 0xe03   : > { %v4653_v46 = vpop.f32.mrf.mxu0 }
 0xe04   : > { %3432 = vrot.lane.b32.xlu0 %v3424_v45, %s5605_s21 }
 0xe05   : > { %v3421_v47 = vpop.f32.mrf.mxu0 }
 0xe06   : > { %v4954_v47 = vld [vmem:[%s6823_s13 + $0x38] sm:$0xff]  }
 0xe07   : > { %v4654_v53 = vpop.f32.mrf.mxu0 }
 0xe08   : > { %2961 = vrot.lane.b32.xlu0 %v2953_v49, %s5605_s21  ;;  %v4955_v49 = vld [vmem:[%s6823_s13 + $0x30] sm:$0xff]   ;;  %v4956_v53 = vld [vmem:[%s6823_s13 + $0x28] sm:$0xff]  }
 0xe19   : > { %v2956_v54 = vpop.permute.xlu1 %2955 }
 0xe1a   : > { %v2965_v63 = vsel %vm1335_vm3, %v2619_v50, %v2956_v54  ;;  %v4957_v54 = vld [vmem:[%s6823_s13 + $0x20] sm:$0xff]  }
 0xe66   : > { %v3427_v55 = vpop.permute.xlu1 %3426 }
 0xe67   : > { %v3436_v31 = vsel %vm1335_vm3, %v3090_v57, %v3427_v55  ;;  %v4958_v55 = vld [vmem:[%s6823_s13 + $0x18] sm:$0xff]   ;;  %v4960_v57 = vld [vmem:[%s6823_s13 + $0x8] sm:$0xff]  }
 0xe6e   : > { %v3430_v56 = vpop.permute.xlu1 %3429 }
 0xe6f   : > { %v3438_v59 = vsel %vm1792_vm7, %v3436_v31, %v3430_v56  ;;  %v4959_v56 = vld [vmem:[%s6823_s13 + $0x10] sm:$0xff]   ;;  %v4961_v31 = vld [vmem:[%s6823_s13] sm:$0xff]  }
 0xe72   : > { %v2959_v58 = vpop.permute.xlu1 %2958 }
 0xe73   : > { %v2967_v1 = vsel %vm1792_vm7, %v2965_v63, %v2959_v58 }
 0xe76   : > { %v3433_v61 = vpop.permute.xlu0 %3432 }
 0xe77   : > { %v3440_v62 = vsel %vm1795_vm6, %v3438_v59, %v3433_v61  ;;  %v4294_v59 = vld [vmem:[#allocation29] ss:$0 sm:$0xff] }
 0xe78   : > { %v3442_v3 = vrot.slane %v3440_v62, 4 }
 0xe7a   : > { %v2962_v4 = vpop.permute.xlu0 %2961 }
 0xe7b   : > { %v2969_v60 = vsel %vm1795_vm6, %v2967_v1, %v2962_v4 }
 0xe7c   : > { %v3444_v8 = vsel %vm1401_vm4, %v2969_v60, %v3442_v3 }
 0xe7d   : > { %4664 = vmatmul.mubr.msk.bf16.vlgmr.msra.gmra.mxu1 %vm1178_vm0, %v3444_v8 }
 0xe7e   : > { %4695 = vmatprep.mubr.msk.bf16.mxu1 %vm5599_vm1, %v5598_v0  ;;  %4680 = vmatpush3.bf16.msra.mxu1 %v4954_v47 }
 0xe7f   : > { %4681 = vmatprep.subr.bf16.mxu1 %v5598_v0 }
 0xe82   : > { %4682 = vmatpush3.bf16.msra.mxu1 %v4955_v49 }
 0xe83   : > { %4683 = vmatprep.subr.bf16.mxu1 %v5598_v0 }
 0xe86   : > { %4684 = vmatpush3.bf16.msra.mxu1 %v4956_v53 }
 0xe87   : > { %4685 = vmatprep.subr.bf16.mxu1 %v5598_v0 }
 0xe8a   : > { %4686 = vmatpush3.bf16.msra.mxu1 %v4957_v54 }
 0xe8b   : > { %4687 = vmatprep.subr.bf16.mxu1 %v5598_v0 }
 0xe8e   : > { %4688 = vmatpush3.bf16.msra.mxu1 %v4958_v55 }
 0xe8f   : > { %4689 = vmatprep.subr.bf16.mxu1 %v5598_v0 }
 0xe92   : > { %4690 = vmatpush3.bf16.msra.mxu1 %v4959_v56 }
 0xe93   : > { %4691 = vmatprep.subr.bf16.mxu1 %v5598_v0 }
 0xe96   : > { %4692 = vmatpush3.bf16.msra.mxu1 %v4960_v57  ;;  %v4310_v57 = vld [vmem:[%s6825_s23] ss:$0 sm:$0xff] }
 0xe97   : > { %4693 = vmatprep.subr.bf16.mxu1 %v5598_v0 }
 0xe9a   : > { %4694 = vmatpush3.bf16.msra.mxu1 %v4961_v31 }
 0xf3d   : > { %v3519_v12 = vpop.f32.mrf.mxu1 }
 0xf3e   : > { %v3520_v52 = vadd.f32 %v4284_v11, %v3519_v12 }
 0xf3f   : > { %v4665_v13 = vpop.f32.mrf.mxu1 }
 0xf40   : > { %v3526_v14 = vadd.f32 %v3520_v52, %v6364_v5 }
 0xf41   : > { %v3522_v15 = vpop.f32.mrf.mxu1 }
 0xf42   : > { %v3523_v16 = vadd.f32 %v4284_v11, %v3522_v15  ;;  %v3528_v18 = vsel %vm1178_vm0, %v3526_v14, 0.0 }
 0xf43   : > { %3529 = vadd.xlane.f32.xlu1 %v3528_v18  ;;  %v4666_v21 = vpop.f32.mrf.mxu1 }
 0xf44   : > { %v3527_v48 = vadd.f32 %v3523_v16, %v6366_v6  ;;  %v4950_v6 = vld [vmem:[#allocation28 + $0x10] sm:$0xff]  }
 0xf45   : > { %4670 = vmatpush3.bf16.msra.mxu0 %v4950_v6  ;;  %v4309_v6 = vld [vmem:[%s6824_s16] ss:$0 sm:$0xff] }
 0xf46   : > { %v3531_v7 = vsel %vm1178_vm0, %v3527_v48, 0.0  ;;  %4671 = vmatprep.subr.bf16.mxu0 %v5598_v0 }
 0xf47   : > { %3532 = vadd.xlane.f32.xlu0 %v3531_v7 }
 0xf49   : > { %4672 = vmatpush3.bf16.msra.mxu0 %v4951_v51 }
 0xf4a   : > { %4673 = vmatprep.subr.bf16.mxu0 %v5598_v0 }
 0xf4d   : > { %4674 = vmatpush3.bf16.msra.mxu0 %v4952_v30 }
 0xfcc   : > { %v3530_v22 = vpop.xlane.xlu1 %3529 }
 0xfcd   : > { %v3534_v2 = vmul.f32 0.015625, %v3530_v22 }
 0xfcf   : > { %v3536_v23 = vsub.f32 %v3526_v14, %v3534_v2 }
 0xfd0   : > { %v3533_v25 = vpop.xlane.xlu0 %3532 }
 0xfd1   : > { %v3535_v44 = vmul.f32 0.015625, %v3533_v25  ;;  %v3538_v20 = vmul.f32 %v3536_v23, %v3536_v23  ;;  %v3694_v25 = vld [vmem:[#allocation4] sm:$0xff] }
 0xfd3   : > { %v3537_v17 = vsub.f32 %v3527_v48, %v3535_v44  ;;  %v3540_v5 = vsel %vm1178_vm0, %v3538_v20, 0.0 }
 0xfd4   : > { %3541 = vadd.xlane.f32.xlu0 %v3540_v5  ;;  %v3695_v5 = vld [vmem:[#allocation4 + $0x8] sm:$0xff] }
 0xfd5   : > { %v3539_v26 = vmul.f32 %v3537_v17, %v3537_v17 }
 0xfd7   : > { %v3543_v27 = vsel %vm1178_vm0, %v3539_v26, 0.0 }
 0xfd8   : > { %3544 = vadd.xlane.f32.xlu1 %v3543_v27 }
0x105d   : > { %v3542_v19 = vpop.xlane.xlu0 %3541 }
0x105e   : > { %v3546_v32 = vmul.f32 0.015625, %v3542_v19 }
0x1060   : > { %v3548_v33 = vadd.f32 1e-12, %v3546_v32 }
0x1061   : > { %v3545_v34 = vpop.xlane.xlu1 %3544 }
0x1062   : > { %5030 = vrsqrt.f32 %v3548_v33  ;;  %v3547_v35 = vmul.f32 0.015625, %v3545_v34 }
0x1064   : > { %v3549_v37 = vadd.f32 1e-12, %v3547_v35 }
0x1066   : > { %5032 = vrsqrt.f32 %v3549_v37 }
0x106f   : > { %v5031_v29 = vpop.eup %5030 }
0x1070   : > { %v3552_v39 = vmul.f32 %v5031_v29, %v3536_v23 }
0x1072   : > { %v3560_v36 = vmul.f32 %v4290_v38, %v3552_v39 }
0x1073   : > { %v5033_v9 = vpop.eup %5032 }
0x1074   : > { %v3568_v41 = vadd.f32 %v4291_v40, %v3560_v36  ;;  %v3553_v42 = vmul.f32 %v5033_v9, %v3537_v17 }
0x1076   : > { %3570 = vst.msk [vmem:[#allocation2] sm:$0xff] %vm1178_vm0, %v3568_v41  ;;  %v4320_v10 = vpack.c.bf16 %v3568_v41, %v3568_v41  ;;  %v3561_v43 = vmul.f32 %v4290_v38, %v3553_v42 }
0x1078   : > { %3581 = vst.msk [vmem:[#allocation3] sm:$0xf] %vm3580_vm8, %v4320_v10  ;;  %v3569_v24 = vadd.f32 %v4291_v40, %v3561_v43 }
0x107a   : > { %3571 = vst.msk [vmem:[#allocation2 + $0x8] sm:$0xff] %vm1178_vm0, %v3569_v24  ;;  %v4321_v45 = vpack.c.bf16 %v3569_v24, %v3569_v24 }
0x107c   : > { %3582 = vst.msk [vmem:[#allocation3 + $0x4] sm:$0xf] %vm3580_vm8, %v4321_v45 }
0x107d   : > { %v3820_v19 = vld [vmem:[#allocation2] sm:$0xff] }
0x1081   : > { %v3821_v37 = vld [vmem:[#allocation2 + $0x8] sm:$0xff] }
0x1083   : > { %v4953_v46 = vld [vmem:[#allocation3] sm:$0xff]  }
0x1084   : > { %4676 = vmatmul.mubr.msk.bf16.vlgmr.msra.gmra.mxu0 %vm1178_vm0, %v4953_v46 }
0x1144   : > { %v3669_v61 = vpop.f32.mrf.mxu0 }
0x1145   : > { %v3670_v50 = vadd.f32 %v4294_v59, %v3669_v61 }
0x1146   : > { %v4677_v58 = vpop.f32.mrf.mxu0 }
0x1147   : > { %v3678_v62 = vmul.f32 %v3670_v50, %v3670_v50  ;;  %v3676_v21 = vmul.f32 0.5, %v3670_v50 }
0x1148   : > { %v3672_v63 = vpop.f32.mrf.mxu0 }
0x1149   : > { %v3680_v1 = vmul.f32 %v3678_v62, %v3670_v50  ;;  %v3673_v3 = vadd.f32 %v4294_v59, %v3672_v63  ;;  %v4311_v59 = vld [vmem:[%s6826_s4] ss:$0 sm:$0xff] }
0x114a   : > { %v4678_v4 = vpop.f32.mrf.mxu0 }
0x114b   : > { %v3682_v60 = vmul.f32 0.044715, %v3680_v1  ;;  %v3679_v8 = vmul.f32 %v3673_v3, %v3673_v3  ;;  %v3677_v48 = vmul.f32 0.5, %v3673_v3 }
0x114d   : > { %v3684_v11 = vadd.f32 %v3682_v60, %v3670_v50  ;;  %v3681_v12 = vmul.f32 %v3679_v8, %v3673_v3 }
0x114f   : > { %v3686_v52 = vmul.f32 0.7978846, %v3684_v11  ;;  %v3683_v13 = vmul.f32 0.044715, %v3681_v12 }
0x1151   : > { %5034 = vtanh.f32 %v3686_v52  ;;  %v3685_v14 = vadd.f32 %v3683_v13, %v3673_v3 }
0x1153   : > { %v3687_v15 = vmul.f32 0.7978846, %v3685_v14 }
0x1155   : > { %5036 = vtanh.f32 %v3687_v15 }
0x115e   : > { %v5035_v0 = vpop.eup %5034 }
0x115f   : > { %v3690_v16 = vadd.f32 1.0, %v5035_v0 }
0x1161   : > { %v3692_v22 = vmul.f32 %v3690_v16, %v3676_v21 }
0x1162   : > { %v5037_v18 = vpop.eup %5036 }
0x1163   : > { %v3691_v7 = vadd.f32 1.0, %v5037_v18 }
0x1165   : > { %v3693_v2 = vmul.f32 %v3691_v7, %v3677_v48 }
0x1167   : > { %v3696_v23 = vpack.c.bf16 %v3693_v2, %v3692_v22 }
0x1169   : > { %4696 = vmatmul.mubr.bf16.vlgmr.msra.gmra.mxu1 %v3696_v23 }
0x1229   : > { %v3795_v44 = vpop.f32.mrf.mxu1 }
0x122a   : > { %v3802_v20 = vadd.f32 %v3795_v44, %v3694_v25 }
0x122b   : > { %v4697_v17 = vpop.f32.mrf.mxu1 }
0x122c   : > { %3804 = vst.msk [vmem:[#allocation4] sm:$0xff] %vm1178_vm0, %v3802_v20 }
0x122d   : > { %v3798_v26 = vpop.f32.mrf.mxu1 }
0x122e   : > { %v3803_v27 = vadd.f32 %v3798_v26, %v3695_v5 }
0x122f   : > { %v4698_v28 = vpop.f32.mrf.mxu1 }
0x1230   : > { %3805 = vst.msk [vmem:[#allocation4 + $0x8] sm:$0xff] %vm1178_vm0, %v3803_v27 }
0x1233   : > { %v3809_v51 = vld [vmem:[#allocation4] sm:$0xff] }
0x1234   : > { %v3818_v30 = vadd.f32 %v4309_v6, %v3809_v51 }
0x1236   : > { %v3822_v32 = vadd.f32 %v3820_v19, %v3818_v30 }
0x1237   : > { %v3810_v33 = vld [vmem:[#allocation4 + $0x8] sm:$0xff] }
0x1238   : > { %v3826_v34 = vsel %vm1178_vm0, %v3822_v32, 0.0  ;;  %v3819_v35 = vadd.f32 %v4309_v6, %v3810_v33 }
0x1239   : > { %3827 = vadd.xlane.f32.xlu0 %v3826_v34 }
0x123a   : > { %v3823_v29 = vadd.f32 %v3821_v37, %v3819_v35 }
0x123c   : > { %v3829_v38 = vsel %vm1178_vm0, %v3823_v29, 0.0 }
0x123d   : > { %3830 = vadd.xlane.f32.xlu1 %v3829_v38 }
0x12c2   : > { %v3828_v39 = vpop.xlane.xlu0 %3827 }
0x12c3   : > { %v3833_v40 = vmul.f32 0.015625, %v3828_v39 }
0x12c5   : > { %v3835_v36 = vsub.f32 %v3822_v32, %v3833_v40 }
0x12c6   : > { %v3831_v9 = vpop.xlane.xlu1 %3830 }
0x12c7   : > { %v3834_v41 = vmul.f32 0.015625, %v3831_v9  ;;  %v3837_v42 = vmul.f32 %v3835_v36, %v3835_v36 }
0x12c9   : > { %v3836_v10 = vsub.f32 %v3823_v29, %v3834_v41  ;;  %v3839_v43 = vsel %vm1178_vm0, %v3837_v42, 0.0 }
0x12ca   : > { %3840 = vadd.xlane.f32.xlu0 %v3839_v43 }
0x12cb   : > { %v3838_v24 = vmul.f32 %v3836_v10, %v3836_v10 }
0x12cd   : > { %v3842_v45 = vsel %vm1178_vm0, %v3838_v24, 0.0 }
0x12ce   : > { %3843 = vadd.xlane.f32.xlu1 %v3842_v45 }
0x1353   : > { %v3841_v46 = vpop.xlane.xlu0 %3840 }
0x1354   : > { %v3845_v47 = vmul.f32 0.015625, %v3841_v46 }
0x1356   : > { %v3847_v49 = vadd.f32 1e-12, %v3845_v47 }
0x1357   : > { %v3844_v53 = vpop.xlane.xlu1 %3843 }
0x1358   : > { %5038 = vrsqrt.f32 %v3847_v49  ;;  %v3846_v54 = vmul.f32 0.015625, %v3844_v53 }
0x135a   : > { %v3848_v55 = vadd.f32 1e-12, %v3846_v54 }
0x135c   : > { %5040 = vrsqrt.f32 %v3848_v55 }
0x1365   : > { %v5039_v56 = vpop.eup %5038 }
0x1366   : > { %v3851_v31 = vmul.f32 %v5039_v56, %v3835_v36 }
0x1368   : > { %v3859_v61 = vmul.f32 %v4310_v57, %v3851_v31 }
0x1369   : > { %v5041_v50 = vpop.eup %5040 }
0x136a   : > { %v3867_v58 = vadd.f32 %v4311_v59, %v3859_v61  ;;  %v3852_v62 = vmul.f32 %v5041_v50, %v3836_v10 }
0x136c   : > { %v3860_v63 = vmul.f32 %v4310_v57, %v3852_v62  ;;  %3869 = vst.msk [vmem:[%s1100_s12] sm:$0xff] %vm1178_vm0, %v3867_v58 }
0x136e   : > { %v3868_v1 = vadd.f32 %v4311_v59, %v3860_v63 }
0x1370   : > { %3870 = vst.msk [vmem:[%s1100_s12 + $0x8] sm:$0xff] %vm1178_vm0, %v3868_v1 }
0x1371   : > { %5477 = shalt.err (!%p5474_p9)
}
0x1372   : > { %s5478_s16 = scalar_lea.hbm %s6642_s18, 256  ;;  %s5482_s23 = scalar_lea.hbm %s6828_s14, 512 }
0x1373   : > { %p5479_p7 = scmp.ne.s32.totalorder %s6642_s18, %s5478_s16  ;;  %p5483_p0 = scmp.lt.s32.totalorder %s6642_s18, %s6828_s14 }
0x1374   : > { %p5484_p6 = scmp.lt.s32.totalorder %s5482_s23, %s5478_s16 }
0x1375   : > { %p5480_p2 = pnand %p5479_p7, %p6829_p8 }
0x1376   : > { %p5485_p1 = por %p5484_p6, %p5483_p0 }
0x1377   : > { %p5481_p3 = pneg %p5480_p2 }
0x1379   : > { %p5486_p13 = pnand %p5485_p1, %p5481_p3 }
0x137b   : > { %5489 = shalt.err (!%p5486_p13)
}
0x137c   : > { %s5609_s4 = smov 128   ;;  %s5610_s0 = smov 8  }
0x137d   : > { %4757 = dma.vmem_to_hbm [thread:$0]  (%p6829_p8), %s6644_s6, 256, %s6642_s18, %s3872_s1, %s5609_s4, %s5609_s4, %s5610_s0  }
0x137e PF: > { %s6830_s12 = sld [smem:[#allocation42_spill]] }
0x137f   : > { %s6831_s8 = sld [smem:[#allocation50_spill]] }
0x1380   : > { %s6832_s10 = sld [smem:[#allocation45_spill]] }
0x1384   : > { %s3900_s30 = sand.u32 1, %s6830_s12  }
0x1385   : > { %p6833_p11 = scmp.ne.s32.totalorder %s6831_s8, 0  ;;  %s3901_s24 = scalar_lea.sflag [#allocation7], %s3900_s30 }
0x1386   : > { %p6834_p5 = scmp.ge.s32.totalorder %s6832_s10, 2 }
0x1388   : > { %p4810_p12 = pnand %p6834_p5, %p6833_p11 }
0x138a   : > { %p4811_p4 = pneg %p4810_p12 }
0x138c   : > { %5551 = dma.done.wait (%p4811_p4), %s3901_s24, 256  }
0x138d   : > { %5553 = vsyncadd (%p4811_p4), %s3901_s24, 4294967040  ;;  %s51_s3 = sadd.s32 1, %s6832_s10   ;;  %s6835_s9 = sld [smem:[#allocation43_spill]] }
0x138e   : > { %p48_p10 = scmp.ge.s32.totalorder %s51_s3, 4   ;;  %s6836_s6 = sld [smem:[#allocation49_spill]] }
0x138f   : > { %s6837_s25 = sld [smem:[#allocation47_spill]]  ;;  %s6838_s29 = smov %s5560_s2 }
0x1390   : > { %s6840_s30 = smov %s5572_s7 }
0x1391   :  { %50 = sbr.rel (!%p48_p10) target bundleno = 37 (0x25), region = 263 }
0x1393   : > { %s6839_s2 = smov %s6835_s9 }
0x1395   : > { %s6841_s7 = smov %s6837_s25 }
0x1396   :  { %3906 = vsyncpa [#allocation6], 1 }
0x1397   :  { %3908 = vsyncpa [#allocation6 + $0x1], 1 }
0x1398   :  { %3909 = vsyncpa [#allocation9], 1 }
0x1399   :  { %3911 = vsyncpa [#allocation9 + $0x1], 1 }
0x139a   :  { %3912 = vsyncpa [#allocation12], 1 }
0x139b   :  { %3913 = vsyncpa [#allocation15], 1 }
0x139c   :  { %3914 = vsyncpa [#allocation18], 1 }
0x139d   :  { %3915 = vsyncpa [#allocation21], 1 }
0x139e   :  { %3916 = vsyncpa [#allocation24], 1 }
0x139f   :  { %3917 = vsyncpa [#allocation27], 1 }
0x13a0   :  { %3918 = vsyncpa [#allocation30], 1 }
0x13a1   :  { %3919 = vsyncpa [#allocation7], 1 }
0x13a2   :  { %3921 = vsyncpa [#allocation7 + $0x1], 1 }

// kernel: tpu_custom_call.1
= control target key start
LH: loop header
LB: loop body
LE: loop exit
PB: predicated region body
PF: predicated region fallthrough
CT: control target
= control target key end

     0   :  { %s6693_s0 = inlined_call_operand.hbm [shape: f32[32,64], index: 0, kind: input, shape index: {}]   ;;  %s6694_s1 = inlined_call_operand.hbm [shape: bf16[32,96], index: 1, kind: input, shape index: {}]   ;;  %s6695_s2 = inlined_call_operand.vmem [shape: bf16[4,1,8], index: 2, kind: input, shape index: {}]   ;;  %s6696_s3 = inlined_call_operand.vmem [shape: bf16[4,1,8], index: 3, kind: input, shape index: {}]   ;;  %s6697_s4 = inlined_call_operand.hbm [shape: bf16[4,8,8], index: 4, kind: input, shape index: {}]   ;;  %s6698_s5 = inlined_call_operand.hbm [shape: bf16[64,64], index: 5, kind: input, shape index: {}]   ;;  %s6699_s6 = inlined_call_operand.hbm [shape: f32[1,64], index: 6, kind: input, shape index: {}]   ;;  %s6700_s7 = inlined_call_operand.vmem [shape: bf16[96,128], index: 7, kind: input, shape index: {}]   ;;  %s6701_s8 = inlined_call_operand.hbm [shape: f32[1,128], index: 8, kind: input, shape index: {}]   ;;  %s6702_s9 = inlined_call_operand.hbm [shape: bf16[64,64], index: 9, kind: input, shape index: {}]   ;;  %s6703_s10 = inlined_call_operand.hbm [shape: f32[1,64], index: 10, kind: input, shape index: {}]   ;;  %s6704_s11 = inlined_call_operand.hbm [shape: f32[1,64], index: 11, kind: input, shape index: {}]   ;;  %s6705_s12 = inlined_call_operand.hbm [shape: f32[1,64], index: 12, kind: input, shape index: {}]   ;;  %s6706_s13 = inlined_call_operand.vmem [shape: bf16[64,192], index: 13, kind: input, shape index: {}]   ;;  %s6707_s14 = inlined_call_operand.vmem [shape: f32[1,192], index: 14, kind: input, shape index: {}]   ;;  %s6708_s15 = inlined_call_operand.hbm [shape: bf16[64,64], index: 15, kind: input, shape index: {}]   ;;  %s6709_s16 = inlined_call_operand.hbm [shape: f32[1,64], index: 16, kind: input, shape index: {}]   ;;  %s6710_s17 = inlined_call_operand.hbm [shape: f32[1,64], index: 17, kind: input, shape index: {}]   ;;  %s6711_s18 = inlined_call_operand.hbm [shape: f32[1,64], index: 18, kind: input, shape index: {}]   ;;  %s6712_s19 = inlined_call_operand.hbm [shape: bf16[64,128], index: 19, kind: input, shape index: {}]   ;;  %s6713_s20 = inlined_call_operand.hbm [shape: f32[1,128], index: 20, kind: input, shape index: {}]   ;;  %s6714_s21 = inlined_call_operand.vmem [shape: bf16[128,64], index: 21, kind: input, shape index: {}]   ;;  %s6715_s22 = inlined_call_operand.vmem [shape: f32[1,64], index: 22, kind: input, shape index: {}]   ;;  %s6716_s23 = inlined_call_operand.vmem [shape: f32[1,64], index: 23, kind: input, shape index: {}]   ;;  %s6717_s24 = inlined_call_operand.vmem [shape: f32[1,64], index: 24, kind: input, shape index: {}]   ;;  %s6718_s25 = inlined_call_operand.hbm [shape: f32[32,64], index: 25, kind: output, shape index: {}]  }
   0x1   :  { %6745 = sst [smem:[#allocation51_spill]] %s6693_s0 }
   0x2   :  { %6746 = sst [smem:[#allocation52_spill]] %s6694_s1 }
   0x3   :  { %6747 = sst [smem:[#allocation53_spill]] %s6695_s2 }
   0x4   :  { %6748 = sst [smem:[#allocation54_spill]] %s6696_s3 }
   0x5   :  { %6749 = sst [smem:[#allocation55_spill]] %s6697_s4 }
   0x6   :  { %6750 = sst [smem:[#allocation56_spill]] %s6698_s5 }
   0x7   :  { %6751 = sst [smem:[#allocation57_spill]] %s6699_s6 }
   0x8   :  { %6752 = sst [smem:[#allocation58_spill]] %s6700_s7 }
   0x9   :  { %6753 = sst [smem:[#allocation59_spill]] %s6701_s8 }
   0xa   :  { %6754 = sst [smem:[#allocation60_spill]] %s6702_s9 }
   0xb   :  { %6755 = sst [smem:[#allocation61_spill]] %s6703_s10 }
   0xc   :  { %6756 = sst [smem:[#allocation62_spill]] %s6705_s12 }
   0xd   :  { %6757 = sst [smem:[#allocation63_spill]] %s6706_s13 }
   0xe   :  { %6758 = sst [smem:[#allocation64_spill]] %s6707_s14 }
   0xf   :  { %6759 = sst [smem:[#allocation65_spill]] %s6709_s16 }
  0x10   :  { %6760 = sst [smem:[#allocation66_spill]] %s6711_s18 }
  0x11   :  { %6761 = sst [smem:[#allocation67_spill]] %s6714_s21 }
  0x12   :  { %6762 = sst [smem:[#allocation68_spill]] %s6715_s22 }
  0x13   :  { %6763 = sst [smem:[#allocation69_spill]] %s6716_s23 }
  0x14   :  { %6764 = sst [smem:[#allocation70_spill]] %s6717_s24 }
  0x15   :  { %6765 = sst [smem:[#allocation71_spill]] %s6718_s25 }
  0x16   :  { %30 = vsyncpa [#allocation6], 0 }
  0x17   :  { %32 = vsyncpa [#allocation6 + $0x1], 0 }
  0x18   :  { %33 = vsyncpa [#allocation9], 0 }
  0x19   :  { %35 = vsyncpa [#allocation9 + $0x1], 0 }
  0x1a   :  { %36 = vsyncpa [#allocation12], 0 }
  0x1b   :  { %37 = vsyncpa [#allocation15], 0 }
  0x1c   :  { %38 = vsyncpa [#allocation18], 0 }
  0x1d   :  { %39 = vsyncpa [#allocation21], 0 }
  0x1e   :  { %40 = vsyncpa [#allocation24], 0 }
  0x1f   :  { %41 = vsyncpa [#allocation27], 0 }
  0x20   :  { %42 = vsyncpa [#allocation30], 0 }
  0x21   :  { %43 = vsyncpa [#allocation7], 0 }
  0x22   :  { %45 = vsyncpa [#allocation7 + $0x1], 0  ;;  %s5741_s29 = smov 0   ;;  %s5743_s2 = smov 0  }
  0x23   :  { %s5745_s6 = smov 0   ;;  %s5747_s30 = smov 0  }
  0x24   :  { %s5749_s7 = smov 0   ;;  %s5751_s3 = smov 0  }
  0x25 LB: > { %6766 = sst [smem:[#allocation42_spill]] %s5556_s29  ;;  %s5772_s26 = sadd.s32 4294967295, %s5576_s3   ;;  %s5576_s3 = sphi %s5751_s3, %s51_s3   ;;  %s5572_s7 = sphi %s5749_s7, %s6841_s7   ;;  %s5568_s30 = sphi %s5747_s30, %s6840_s30   ;;  %s5564_s6 = sphi %s5745_s6, %s6836_s6   ;;  %s5560_s2 = sphi %s5743_s2, %s6839_s2   ;;  %s5556_s29 = sphi %s5741_s29, %s6838_s29  }
  0x26   : > { %6767 = sst [smem:[#allocation43_spill]] %s5564_s6  ;;  %p4172_p0 = scmp.ge.s32.totalorder %s5576_s3, 1 }
  0x27   : > { %6768 = sst [smem:[#allocation44_spill]] %s5568_s30  ;;  %p6724_p1 = scmp.eq.s32.totalorder %s5772_s26, 0 }
  0x28   : > { %6769 = sst [smem:[#allocation45_spill]] %s5576_s3  ;;  %p659_p2 = scmp.lt.s32.totalorder %s5576_s3, 3 }
  0x29   : > { %6770 = sst [smem:[#allocation46_spill]] %s5772_s26  ;;  %s5578_s8 = smov [#allocation11]  }
  0x2a   : > { %p5777_p3 = pnand %p4172_p0, %p659_p2  ;;  %s671_s27 = sshll.u32 %s5578_s8, 4  ;;  %s672_s27 = int_to_ptr.vmem [resolvable:$true] %s671_s27 }
  0x2b   : > { %s5579_s28 = smov [#allocation14]   ;;  %s5580_s5 = smov [#allocation17]  }
  0x2c   : > { %s6771_s1 = scalar_select %p5777_p3, 1, 0 }
  0x2d   : > { %p4759_p4 = pneg %p5777_p3  ;;  %s699_s9 = sshll.u32 %s5579_s28, 4  ;;  %s700_s9 = int_to_ptr.vmem [resolvable:$true] %s699_s9 }
  0x2e   : > { %s723_s0 = sshll.u32 %s5580_s5, 4  ;;  %s5053_s8 = scalar_lea.vmem %s672_s27, 512  ;;  %s724_s0 = int_to_ptr.vmem [resolvable:$true] %s723_s0 }
  0x2f   : > { %p5786_p6 = pnand %p4759_p4, %p6724_p1  ;;  %p5054_p8 = scmp.ne.s32.totalorder %s672_s27, %s5053_s8 }
  0x30   : > { %p5061_p11 = scmp.lt.s32.totalorder %s672_s27, %s672_s27  ;;  %p5062_p12 = scmp.lt.s32.totalorder %s5053_s8, %s5053_s8 }
  0x31   : > { %p5792_p7 = pneg %p5786_p6 }
  0x32   : > { %p5063_p13 = por %p5062_p12, %p5061_p11 }
  0x33   : > { %p5056_p9 = pnand %p5054_p8, %p5792_p7 }
  0x35   : > { %p5057_p10 = pneg %p5056_p9 }
  0x37   : > { %p5064_p0 = pnand %p5063_p13, %p5057_p10 }
  0x39   : > { %5067 = shalt.err (!%p5064_p0)
}
  0x3a   : > { %s6725_s28 = smov 64   ;;  %s6727_s5 = smov 4  }
  0x3b   : > { %s6774_s22 = sld [smem:[#allocation56_spill]]  ;;  %s5079_s21 = scalar_lea.vmem %s700_s9, 16 }
  0x3c   : > { %p5080_p2 = scmp.ne.s32.totalorder %s700_s9, %s5079_s21  ;;  %s5086_s8 = scalar_lea.vmem %s700_s9, 32 }
  0x3d   : > { %p5087_p9 = scmp.lt.s32.totalorder %s700_s9, %s700_s9  ;;  %p5088_p10 = scmp.lt.s32.totalorder %s5086_s8, %s5079_s21 }
  0x3e   : > { %p5082_p4 = pnand %p5080_p2, %p5792_p7 }
  0x3f   : > { %p5089_p11 = por %p5088_p10, %p5087_p9 }
  0x40   : > { %p5083_p8 = pneg %p5082_p4 }
  0x41   : > { %4762 = dma.hbm_to_vmem [thread:$0]  (!%p5786_p6), %s6774_s22, 512, %s672_s27, [#allocation12], %s6725_s28, %s6725_s28, %s6727_s5  }
  0x42   : > { %p5090_p12 = pnand %p5089_p11, %p5083_p8 }
  0x44   : > { %5093 = shalt.err (!%p5090_p12)
}
  0x45   : > { %s6775_s30 = sld [smem:[#allocation59_spill]]  ;;  %s5105_s22 = scalar_lea.vmem %s724_s0, 16 }
  0x46   : > { %p5106_p13 = scmp.ne.s32.totalorder %s724_s0, %s5105_s22  ;;  %s5112_s23 = scalar_lea.vmem %s724_s0, 32 }
  0x47   : > { %p5113_p4 = scmp.lt.s32.totalorder %s724_s0, %s724_s0  ;;  %p5114_p5 = scmp.lt.s32.totalorder %s5112_s23, %s5105_s22 }
  0x48   : > { %p5108_p0 = pnand %p5106_p13, %p5792_p7 }
  0x49   : > { %p5115_p1 = por %p5114_p5, %p5113_p4 }
  0x4a   : > { %p5109_p2 = pneg %p5108_p0 }
  0x4b   : > { %4768 = dma.hbm_to_vmem [thread:$0]  (!%p5786_p6), %s6775_s30, 16, %s700_s9, [#allocation15]  }
  0x4c   : > { %p5116_p9 = pnand %p5115_p1, %p5109_p2 }
  0x4e   : > { %5119 = shalt.err (!%p5116_p9)
}
  0x4f   : > { %s6776_s10 = sld [smem:[#allocation61_spill]]  ;;  %s5583_s13 = smov [#allocation20]  }
  0x50   : > { %s745_s14 = sshll.u32 %s5583_s13, 4  ;;  %s5584_s30 = smov [#allocation23]   ;;  %s746_s14 = int_to_ptr.vmem [resolvable:$true] %s745_s14 }
  0x51   : > { %s775_s27 = sshll.u32 %s5584_s30, 4  ;;  %s5131_s9 = scalar_lea.vmem %s746_s14, 16  ;;  %s776_s27 = int_to_ptr.vmem [resolvable:$true] %s775_s27 }
  0x52   : > { %p5132_p8 = scmp.ne.s32.totalorder %s746_s14, %s5131_s9  ;;  %s5138_s8 = scalar_lea.vmem %s746_s14, 32 }
  0x53   : > { %p5139_p1 = scmp.lt.s32.totalorder %s746_s14, %s746_s14  ;;  %p5140_p5 = scmp.lt.s32.totalorder %s5138_s8, %s5131_s9 }
  0x54   : > { %p5134_p10 = pnand %p5132_p8, %p5792_p7 }
  0x55   : > { %4774 = dma.hbm_to_vmem [thread:$0]  (!%p5786_p6), %s6776_s10, 16, %s724_s0, [#allocation18]  }
  0x56   : > { %p5135_p11 = pneg %p5134_p10  ;;  %p5141_p12 = por %p5140_p5, %p5139_p1 }
  0x58   : > { %p5142_p13 = pnand %p5141_p12, %p5135_p11 }
  0x5a   : > { %5145 = shalt.err (!%p5142_p13)
}
  0x5b   : > { %s6777_s12 = sld [smem:[#allocation62_spill]]  ;;  %s5157_s23 = scalar_lea.vmem %s776_s27, 16 }
  0x5c   : > { %p5158_p0 = scmp.ne.s32.totalorder %s776_s27, %s5157_s23  ;;  %s5164_s21 = scalar_lea.vmem %s776_s27, 32 }
  0x5d   : > { %p5165_p9 = scmp.lt.s32.totalorder %s776_s27, %s776_s27  ;;  %p5166_p8 = scmp.lt.s32.totalorder %s5164_s21, %s5157_s23 }
  0x5e   : > { %p5160_p2 = pnand %p5158_p0, %p5792_p7 }
  0x5f   : > { %p5167_p10 = por %p5166_p8, %p5165_p9 }
  0x60   : > { %p5161_p4 = pneg %p5160_p2 }
  0x61   : > { %4780 = dma.hbm_to_vmem [thread:$0]  (!%p5786_p6), %s6777_s12, 16, %s746_s14, [#allocation21]  }
  0x62   : > { %p5168_p1 = pnand %p5167_p10, %p5161_p4 }
  0x64   : > { %5171 = shalt.err (!%p5168_p1)
}
  0x65   : > { %s6778_s16 = sld [smem:[#allocation65_spill]]  ;;  %s5585_s14 = smov [#allocation26]  }
  0x66   : > { %s797_s30 = sshll.u32 %s5585_s14, 4  ;;  %s798_s30 = int_to_ptr.vmem [resolvable:$true] %s797_s30 }
  0x67   : > { %s5183_s9 = scalar_lea.vmem %s798_s30, 16  ;;  %s5190_s8 = scalar_lea.vmem %s798_s30, 32 }
  0x68   : > { %p5184_p11 = scmp.ne.s32.totalorder %s798_s30, %s5183_s9  ;;  %p5191_p13 = scmp.lt.s32.totalorder %s798_s30, %s798_s30 }
  0x69   : > { %p5192_p0 = scmp.lt.s32.totalorder %s5190_s8, %s5183_s9 }
  0x6a   : > { %p5186_p5 = pnand %p5184_p11, %p5792_p7 }
  0x6b   : > { %4786 = dma.hbm_to_vmem [thread:$0]  (!%p5786_p6), %s6778_s16, 16, %s776_s27, [#allocation24]  }
  0x6c   : > { %p5187_p12 = pneg %p5186_p5  ;;  %p5193_p2 = por %p5192_p0, %p5191_p13 }
  0x6e   : > { %p5194_p4 = pnand %p5193_p2, %p5187_p12 }
  0x70   : > { %5197 = shalt.err (!%p5194_p4)
}
  0x71   : > { %s6779_s18 = sld [smem:[#allocation66_spill]]  ;;  %s4171_s27 = sadd.s32 4294967294, %s5576_s3  }
  0x72   : > { %s63_s23 = sadd.s32 1, %s5572_s7  ;;  %s70_s21 = sadd.s32 1, %s5564_s6 }
  0x73   : > { %p65_p9 = scmp.ge.s32.totalorder %s63_s23, 2  ;;  %p77_p8 = scmp.ne.s32.totalorder %s5564_s6, %s5560_s2 }
  0x74   : > { %p78_p10 = scmp.eq.s32.totalorder %s5576_s3, 0  ;;  %p83_p11 = scmp.ne.s32.totalorder %s5560_s2, %s5556_s29 }
  0x75   : > { %s6843_s23 = smov (%p65_p9, %s63_s23), 0  ;;  %p646_p5 = scmp.eq.s32.totalorder %s5772_s26, 1 }
  0x76   : > { %6780 = sst [smem:[#allocation47_spill]] %s6843_s23  ;;  %p5849_p1 = por %p78_p10, %p77_p8 }
  0x77   : > { %4792 = dma.hbm_to_vmem [thread:$0]  (!%p5786_p6), %s6779_s18, 16, %s798_s30, [#allocation27]  }
  0x78   : > { %s67_s13 = ssub.s32 %s5572_s7, %s6843_s23  ;;  %p6782_p13 = scmp.eq.s32.totalorder %s5772_s26, 0 }
  0x79   : > { %p68_p12 = scmp.eq.s32.totalorder %s67_s13, 0  ;;  %p5864_p2 = por %p646_p5, %p77_p8 }
  0x7a   : > { %p5860_p0 = por %p6782_p13, %p83_p11  ;;  %p652_p4 = scmp.eq.s32.totalorder %s4171_s27, 1 }
  0x7b   : > { %s6784_s30 = scalar_select %p5864_p2, 1, 0 }
  0x7c   : > { %s6783_s14 = scalar_select %p5860_p0, 1, 0 }
  0x7d   : > { %6785 = sst [smem:[#allocation48_spill]] %s6784_s30  ;;  %p5871_p9 = por %p652_p4, %p83_p11 }
  0x7e   : > { %s5869_s9 = scalar_select %p68_p12, %s5564_s6, %s70_s21  }
  0x7f   : > { %s6787_s8 = scalar_select %p5871_p9, 1, 0 }
  0x80   : > { %6786 = sst [smem:[#allocation49_spill]] %s5869_s9  ;;  %p4826_p10 = scmp.lt.s32.totalorder %s5576_s3, 2 }
  0x81   : > { %6788 = sst [smem:[#allocation50_spill]] %s6787_s8  ;;  %s5877_s22 = sand.u32 1, %s5564_s6  }
  0x82   : > { %s875_s0 = sand.u32 1, %s5576_s3   ;;  %p5882_p13 = pnand %p4826_p10, %p5849_p1 }
  0x83   : > { %s4191_s28 = sshll.u32 %s5877_s22, 3  ;;  %s4318_s27 = sshll.u32 %s5572_s7, 7 }
  0x84   : > { %s6789_s13 = scalar_select %p5882_p13, 1, 0 }
  0x85   : > { %s6790_s10 = sld [smem:[#allocation52_spill]]  ;;  %s879_s16 = scalar_lea.vmem [#allocation8], %s4191_s28 }
  0x86   : > { %s886_s18 = sshll.u32 %s879_s16, 4  ;;  %s5891_s23 = scalar_lea.sflag [#allocation9], %s875_s0  ;;  %s887_s18 = int_to_ptr.vmem [resolvable:$true] %s886_s18 }
  0x87   : > { %p6739_p8 = pneg %p5882_p13  ;;  %s5211_s24 = scalar_lea.vmem %s887_s18, 128 }
  0x88   : > { %p5212_p1 = scmp.ne.s32.totalorder %s887_s18, %s5211_s24  ;;  %s5586_s9 = smov [#allocation8]  }
  0x89   : > { %s5216_s6 = sshll.u32 %s5586_s9, 4  ;;  %s5217_s6 = int_to_ptr.vmem [resolvable:$false] %s5216_s6 }
  0x8a   : > { %p5214_p11 = pnand %p5212_p1, %p6739_p8  ;;  %s5218_s3 = scalar_lea.vmem %s5217_s6, 256 }
  0x8b   : > { %s885_s12 = scalar_lea.hbm %s6790_s10, %s4318_s27  ;;  %p5219_p12 = scmp.lt.s32.totalorder %s887_s18, %s5217_s6 }
  0x8c   : > { %p5215_p5 = pneg %p5214_p11  ;;  %p5220_p4 = scmp.lt.s32.totalorder %s5218_s3, %s5211_s24 }
  0x8e   : > { %p5221_p10 = por %p5220_p4, %p5219_p12 }
  0x90   : > { %p5222_p9 = pnand %p5221_p10, %p5215_p5 }
  0x92   : > { %5225 = shalt.err (!%p5222_p9)
}
  0x93   : > { %s6791_s10 = smov 4   ;;  %s6792_s16 = smov 64  }
  0x94   : > { %4805 = dma.hbm_to_vmem [thread:$0]  (!%p5882_p13), %s885_s12, 128, %s887_s18, %s5891_s23, %s6792_s16, %s6792_s16, %s6791_s10  }
  0x95   : > { %s6793_s21 = sld [smem:[#allocation55_spill]]  ;;  %s916_s9 = scalar_lea.vmem [#allocation10], %s4191_s28 }
  0x96   : > { %s923_s29 = sshll.u32 %s916_s9, 4  ;;  %s5587_s6 = smov [#allocation13]   ;;  %s5909_s29 = int_to_ptr.vmem [resolvable:$true] %s923_s29 }
  0x97   : > { %s685_s3 = sshll.u32 %s5587_s6, 4  ;;  %s5588_s24 = smov [#allocation16]   ;;  %s686_s3 = int_to_ptr.vmem [resolvable:$true] %s685_s3 }
  0x98   : > { %s709_s30 = sshll.u32 %s5588_s24, 4  ;;  %s5237_s26 = scalar_lea.vmem %s686_s3, 16  ;;  %s710_s30 = int_to_ptr.vmem [resolvable:$true] %s709_s30 }
  0x99   : > { %p5238_p9 = scmp.ne.s32.totalorder %s686_s3, %s5237_s26  ;;  %s5244_s12 = scalar_lea.vmem %s686_s3, 32 }
  0x9a   : > { %p5245_p5 = scmp.lt.s32.totalorder %s686_s3, %s686_s3  ;;  %p5246_p12 = scmp.lt.s32.totalorder %s5244_s12, %s5237_s26 }
  0x9b   : > { %s5907_s8 = scalar_lea.hbm %s6793_s21, %s4318_s27  ;;  %p5240_p1 = pnand %p5238_p9, %p5792_p7 }
  0x9c   : > { %p5247_p4 = por %p5246_p12, %p5245_p5 }
  0x9d   : > { %p5241_p11 = pneg %p5240_p1 }
  0x9f   : > { %p5248_p10 = pnand %p5247_p4, %p5241_p11 }
  0xa1   : > { %5251 = shalt.err (!%p5248_p10)
}
  0xa2   : > { %s6794_s27 = sld [smem:[#allocation57_spill]]  ;;  %s5263_s5 = scalar_lea.vmem %s710_s30, 512 }
  0xa3   : > { %p5264_p8 = scmp.ne.s32.totalorder %s710_s30, %s5263_s5  ;;  %p5271_p1 = scmp.lt.s32.totalorder %s710_s30, %s710_s30 }
  0xa4   : > { %p5272_p0 = scmp.lt.s32.totalorder %s5263_s5, %s5263_s5 }
  0xa5   : > { %p5266_p2 = pnand %p5264_p8, %p5792_p7 }
  0xa6   : > { %p5273_p3 = por %p5272_p0, %p5271_p1 }
  0xa7   : > { %p5267_p9 = pneg %p5266_p2 }
  0xa8   : > { %4765 = dma.hbm_to_vmem [thread:$0]  (!%p5786_p6), %s6794_s27, 16, %s686_s3, [#allocation12]  }
  0xa9   : > { %p5274_p13 = pnand %p5273_p3, %p5267_p9 }
  0xab   : > { %5277 = shalt.err (!%p5274_p13)
}
  0xac   : > { %s6795_s21 = sld [smem:[#allocation60_spill]]  ;;  %s5589_s9 = smov [#allocation19]  }
  0xad   : > { %s734_s6 = sshll.u32 %s5589_s9, 4  ;;  %s5590_s3 = smov [#allocation22]   ;;  %s735_s6 = int_to_ptr.vmem [resolvable:$true] %s734_s6 }
  0xae   : > { %s761_s24 = sshll.u32 %s5590_s3, 4  ;;  %s5289_s12 = scalar_lea.vmem %s735_s6, 16  ;;  %s762_s24 = int_to_ptr.vmem [resolvable:$true] %s761_s24 }
  0xaf   : > { %p5290_p2 = scmp.ne.s32.totalorder %s735_s6, %s5289_s12  ;;  %s5296_s18 = scalar_lea.vmem %s735_s6, 32 }
  0xb0   : > { %p5297_p13 = scmp.lt.s32.totalorder %s735_s6, %s735_s6  ;;  %p5298_p8 = scmp.lt.s32.totalorder %s5296_s18, %s5289_s12 }
  0xb1   : > { %p5292_p3 = pnand %p5290_p2, %p5792_p7 }
  0xb2   : > { %4771 = dma.hbm_to_vmem [thread:$0]  (!%p5786_p6), %s6795_s21, 512, %s710_s30, [#allocation15], %s6792_s16, %s6792_s16, %s6791_s10  }
  0xb3   : > { %p5293_p0 = pneg %p5292_p3  ;;  %p5299_p11 = por %p5298_p8, %p5297_p13 }
  0xb5   : > { %p5300_p5 = pnand %p5299_p11, %p5293_p0 }
  0xb7   : > { %5303 = shalt.err (!%p5300_p5)
}
  0xb8   : > { %4777 = dma.hbm_to_vmem [thread:$0]  (!%p5786_p6), %s6704_s11, 16, %s735_s6, [#allocation18]  }
  0xb9   : > { %s5315_s27 = scalar_lea.vmem %s762_s24, 512  ;;  %p5323_p9 = scmp.lt.s32.totalorder %s762_s24, %s762_s24 }
  0xba   : > { %p5316_p12 = scmp.ne.s32.totalorder %s762_s24, %s5315_s27  ;;  %p5324_p1 = scmp.lt.s32.totalorder %s5315_s27, %s5315_s27 }
  0xbc   : > { %p5318_p4 = pnand %p5316_p12, %p5792_p7  ;;  %p5325_p2 = por %p5324_p1, %p5323_p9 }
  0xbe   : > { %p5319_p10 = pneg %p5318_p4 }
  0xc0   : > { %p5326_p3 = pnand %p5325_p2, %p5319_p10 }
  0xc2   : > { %5329 = shalt.err (!%p5326_p3)
}
  0xc3   : > { %4783 = dma.hbm_to_vmem [thread:$0]  (!%p5786_p6), %s6708_s15, 512, %s762_s24, [#allocation21], %s6792_s16, %s6792_s16, %s6791_s10  }
  0xc4   : > { %s5591_s0 = smov [#allocation25]   ;;  %s5592_s9 = smov [#allocation28]  }
  0xc5   : > { %s786_s21 = sshll.u32 %s5591_s0, 4  ;;  %s809_s6 = sshll.u32 %s5592_s9, 4  ;;  %s787_s21 = int_to_ptr.vmem [resolvable:$true] %s786_s21  ;;  %s810_s6 = int_to_ptr.vmem [resolvable:$true] %s809_s6 }
  0xc6   : > { %s5341_s3 = scalar_lea.vmem %s787_s21, 16  ;;  %s5348_s12 = scalar_lea.vmem %s787_s21, 32 }
  0xc7   : > { %p5342_p0 = scmp.ne.s32.totalorder %s787_s21, %s5341_s3  ;;  %p5349_p11 = scmp.lt.s32.totalorder %s787_s21, %s787_s21 }
  0xc8   : > { %p5350_p5 = scmp.lt.s32.totalorder %s5348_s12, %s5341_s3 }
  0xc9   : > { %p5344_p13 = pnand %p5342_p0, %p5792_p7 }
  0xca   : > { %p5351_p12 = por %p5350_p5, %p5349_p11 }
  0xcb   : > { %p5345_p8 = pneg %p5344_p13 }
  0xcd   : > { %p5352_p4 = pnand %p5351_p12, %p5345_p8 }
  0xcf   : > { %5355 = shalt.err (!%p5352_p4)
}
  0xd0   : > { %4789 = dma.hbm_to_vmem [thread:$0]  (!%p5786_p6), %s6710_s17, 16, %s787_s21, [#allocation24]  }
  0xd1   : > { %s5367_s28 = scalar_lea.vmem %s810_s6, 512  ;;  %p5375_p2 = scmp.lt.s32.totalorder %s810_s6, %s810_s6 }
  0xd2   : > { %p5368_p10 = scmp.ne.s32.totalorder %s810_s6, %s5367_s28  ;;  %p5376_p3 = scmp.lt.s32.totalorder %s5367_s28, %s5367_s28 }
  0xd4   : > { %p5370_p9 = pnand %p5368_p10, %p5792_p7  ;;  %p5377_p0 = por %p5376_p3, %p5375_p2 }
  0xd6   : > { %p5371_p1 = pneg %p5370_p9 }
  0xd8   : > { %p5378_p13 = pnand %p5377_p0, %p5371_p1 }
  0xda   : > { %5381 = shalt.err (!%p5378_p13)
}
  0xdb   : > { %4795 = dma.hbm_to_vmem [thread:$0]  (!%p5786_p6), %s6712_s19, 512, %s810_s6, [#allocation27], %s6792_s16, %s6792_s16, %s6791_s10  }
  0xdc   : > { %s5593_s5 = smov [#allocation29]   ;;  %s4188_s0 = sshll.u32 %s5877_s22, 4 }
  0xdd   : > { %s825_s26 = sshll.u32 %s5593_s5, 4  ;;  %s826_s26 = int_to_ptr.vmem [resolvable:$true] %s825_s26 }
  0xde   : > { %s5393_s21 = scalar_lea.vmem %s826_s26, 16  ;;  %s5400_s9 = scalar_lea.vmem %s826_s26, 32 }
  0xdf   : > { %p5394_p8 = scmp.ne.s32.totalorder %s826_s26, %s5393_s21  ;;  %p5401_p12 = scmp.lt.s32.totalorder %s826_s26, %s826_s26 }
  0xe0   : > { %p5402_p4 = scmp.lt.s32.totalorder %s5400_s9, %s5393_s21 }
  0xe1   : > { %p5396_p11 = pnand %p5394_p8, %p5792_p7 }
  0xe2   : > { %p5403_p10 = por %p5402_p4, %p5401_p12 }
  0xe3   : > { %p5397_p5 = pneg %p5396_p11 }
  0xe5   : > { %p5404_p9 = pnand %p5403_p10, %p5397_p5 }
  0xe7   : > { %5407 = shalt.err (!%p5404_p9)
}
  0xe8   : > { %4798 = dma.hbm_to_vmem [thread:$0]  (!%p5786_p6), %s6713_s20, 16, %s826_s26, [#allocation30]  }
  0xe9   : > { %s4317_s6 = sshll.u32 %s5572_s7, 8  ;;  %s6796_s24 = sld [smem:[#allocation51_spill]] }
  0xea   : > { %s858_s30 = scalar_lea.vmem [#allocation5], %s4188_s0  ;;  %s855_s5 = scalar_lea.sflag [#allocation6], %s5877_s22 }
  0xeb   : > { %s865_s27 = sshll.u32 %s858_s30, 4  ;;  %p6797_p1 = scmp.ne.s32.totalorder %s6789_s13, 0  ;;  %s866_s27 = int_to_ptr.vmem [resolvable:$true] %s865_s27 }
  0xec   : > { %s5421_s21 = scalar_lea.vmem %s866_s27, 256  ;;  %s5594_s4 = smov [#allocation5]  }
  0xed   : > { %p5422_p7 = scmp.ne.s32.totalorder %s866_s27, %s5421_s21  ;;  %p6798_p2 = pneg %p6797_p1 }
  0xee   : > { %s5426_s9 = sshll.u32 %s5594_s4, 4  ;;  %s5427_s9 = int_to_ptr.vmem [resolvable:$false] %s5426_s9 }
  0xef   : > { %s864_s28 = scalar_lea.hbm %s6796_s24, %s4317_s6  ;;  %p5424_p3 = pnand %p5422_p7, %p6798_p2 }
  0xf0   : > { %s5428_s3 = scalar_lea.vmem %s5427_s9, 512  ;;  %p5429_p6 = scmp.lt.s32.totalorder %s866_s27, %s5427_s9 }
  0xf1   : > { %p5425_p0 = pneg %p5424_p3  ;;  %p5430_p13 = scmp.lt.s32.totalorder %s5428_s3, %s5421_s21 }
  0xf3   : > { %p5431_p8 = por %p5430_p13, %p5429_p6 }
  0xf5   : > { %p5432_p11 = pnand %p5431_p8, %p5425_p0 }
  0xf7   : > { %5435 = shalt.err (!%p5432_p11)
}
  0xf8   : > { %s5595_s26 = smov 128   ;;  %s5596_s22 = smov 8  }
  0xf9   : > { %4802 = dma.hbm_to_vmem [thread:$0]  (!%p6797_p1), %s864_s28, 256, %s866_s27, %s855_s5, %s5595_s26, %s5595_s26, %s5596_s22  }
  0xfa   : > { %s5449_s0 = scalar_lea.vmem %s5909_s29, 128  ;;  %p6799_p12 = pmov %p6798_p2 }
  0xfb   : > { %p5450_p5 = scmp.ne.s32.totalorder %s5909_s29, %s5449_s0  ;;  %s5597_s12 = smov [#allocation10]  }
  0xfc   : > { %s5454_s6 = sshll.u32 %s5597_s12, 4  ;;  %s5455_s6 = int_to_ptr.vmem [resolvable:$false] %s5454_s6 }
  0xfd   : > { %p5452_p4 = pnand %p5450_p5, %p6799_p12  ;;  %s5456_s18 = scalar_lea.vmem %s5455_s6, 256 }
  0xfe   : > { %p5457_p9 = scmp.lt.s32.totalorder %s5909_s29, %s5455_s6  ;;  %p5458_p7 = scmp.lt.s32.totalorder %s5456_s18, %s5449_s0 }
  0xff   : > { %p5453_p10 = pneg %p5452_p4 }
 0x100   : > { %p5459_p2 = por %p5458_p7, %p5457_p9 }
 0x102   : > { %p5460_p3 = pnand %p5459_p2, %p5453_p10 }
 0x104   : > { %5463 = shalt.err (!%p5460_p3)
}
 0x105   : > { %4808 = dma.hbm_to_vmem [thread:$0]  (!%p6797_p1), %s5907_s8, 128, %s5909_s29, %s5891_s23, %s6792_s16, %s6792_s16, %s6791_s10  }
 0x106   : > { %p6800_p0 = scmp.ne.s32.totalorder %s6771_s1, 0 }
 0x107   : > { %s5997_s25 = sand.u32 (!%p6800_p0), 1, %s5560_s2   ;;  %p6801_p6 = scmp.ne.s32.totalorder (!%p6800_p0), %s6783_s14, 0 }
 0x108   : > { %935 = sbr.rel (%p6800_p0) target bundleno = 4990 (0x137e), region = 120  ;;  %s4198_s24 = sshll.u32 (!%p6800_p0), %s5997_s25, 4 }
 0x109   : > { %s938_s28 = scalar_lea.sflag (!%p6800_p0), [#allocation6], %s5997_s25  ;;  %s6003_s13 = scalar_lea.vmem (!%p6800_p0), [#allocation5], %s4198_s24 }
 0x10d   : > { %5515 = dma.done.wait (%p6801_p6), %s938_s28, 256  }
 0x10e   : > { %5517 = vsyncadd (%p6801_p6), %s938_s28, 4294967040  ;;  %s6802_s29 = sld [smem:[#allocation46_spill]]  ;;  %s4199_s23 = sshll.u32 %s5997_s25, 3 }
 0x10f   : > { %s6011_s10 = scalar_lea.vmem [#allocation8], %s4199_s23 }
 0x114   : > { %s946_s1 = sand.u32 1, %s6802_s29  }
 0x115   : > { %s947_s8 = scalar_lea.sflag [#allocation9], %s946_s1 }
 0x116   : > { %5519 = dma.done.wait (%p6801_p6), %s947_s8, 256  }
 0x117   : > { %5521 = vsyncadd (%p6801_p6), %s947_s8, 4294967040  ;;  %s6017_s16 = scalar_lea.vmem [#allocation10], %s4199_s23  ;;  %p6803_p1 = scmp.eq.s32.totalorder %s6802_s29, 0 }
 0x119   : > { %5523 = dma.done.wait (%p6803_p1), [#allocation12], 528   ;;  %p6804_p13 = pmov %p6803_p1 }
 0x11a   : > { %p6805_p8 = pmov %p6803_p1 }
 0x11b   : > { %5525 = vsyncadd (%p6804_p13), [#allocation12], 4294966768 }
 0x11c   : > { %5527 = dma.done.wait (%p6805_p8), [#allocation15], 528   ;;  %p6806_p11 = pmov %p6803_p1 }
 0x11d   : > { %p6807_p5 = pmov %p6803_p1 }
 0x11e   : > { %5529 = vsyncadd (%p6806_p11), [#allocation15], 4294966768 }
 0x11f   : > { %5531 = dma.done.wait (%p6807_p5), [#allocation18], 32   ;;  %p6808_p12 = pmov %p6803_p1 }
 0x120   : > { %p6809_p4 = pmov %p6803_p1 }
 0x121   : > { %5533 = vsyncadd (%p6808_p12), [#allocation18], 4294967264 }
 0x122   : > { %5535 = dma.done.wait (%p6809_p4), [#allocation21], 528   ;;  %p6810_p10 = pmov %p6803_p1 }
 0x123   : > { %p6811_p9 = pmov %p6803_p1 }
 0x124   : > { %5537 = vsyncadd (%p6810_p10), [#allocation21], 4294966768 }
 0x125   : > { %5539 = dma.done.wait (%p6811_p9), [#allocation24], 32   ;;  %p6812_p7 = pmov %p6803_p1 }
 0x126   : > { %p6813_p2 = pmov %p6803_p1 }
 0x127   : > { %5541 = vsyncadd (%p6812_p7), [#allocation24], 4294967264 }
 0x128   : > { %5543 = dma.done.wait (%p6813_p2), [#allocation27], 528   ;;  %p6814_p3 = pmov %p6803_p1 }
 0x129   : > { %p6815_p0 = pmov %p6803_p1 }
 0x12a   : > { %5545 = vsyncadd (%p6814_p3), [#allocation27], 4294966768 }
 0x12b   : > { %5547 = dma.done.wait (%p6815_p0), [#allocation30], 16   ;;  %p6816_p6 = pmov %p6815_p0 }
 0x12c   : > { %vm1178_vm0 = vcmask 523264   ;;  %v5598_v0 = vmov 0.0   ;;  %vm5599_vm1 = vmmov 0   ;;  %s6817_s27 = sld [smem:[#allocation58_spill]]  ;;  %v4921_v3 = vld [vmem:[#allocation11 + $0x18] sm:$0xff]   ;;  %v4923_v4 = vld [vmem:[#allocation11 + $0x10] sm:$0xff]   ;;  %v1329_v47 = vlaneseq }
 0x12d   : > { %5549 = vsyncadd (%p6816_p6), [#allocation30], 4294967280  ;;  %4435 = vmatprep.subr.bf16.mxu1 %v5598_v0  ;;  %4423 = vmatprep.subr.bf16.mxu0 %v5598_v0  ;;  %3583 = vst.msk [vmem:[#allocation4] sm:$0xff] %vm1178_vm0, %v5598_v0  ;;  %v4925_v6 = vld [vmem:[#allocation11 + $0x8] sm:$0xff]   ;;  %v4927_v8 = vld [vmem:[#allocation11] sm:$0xff]   ;;  %vm1282_vm2 = vcmask 785408  }
 0x12e   : > { %3584 = vst.msk [vmem:[#allocation4 + $0x8] sm:$0xff] %vm1178_vm0, %v5598_v0  ;;  %4447 = vmatprep.mubr.msk.bf16.mxu1 %vm5599_vm1, %v5598_v0  ;;  %4431 = vmatprep.mubr.msk.bf16.mxu0 %vm5599_vm1, %v5598_v0  ;;  %v6075_v9 = vld [vmem:[%s6003_s13] sm:$0xff]  ;;  %v6078_v10 = vld [vmem:[%s6003_s13 + $0x8] sm:$0xff]  ;;  %vm1335_vm3 = vcmask 130048   ;;  %s5600_s18 = smov 64   ;;  %s5601_s28 = smov 112  }
 0x12f   : > { %4424 = vmatpush3.bf16.msra.mxu0 %v4921_v3  ;;  %v1130_v13 = vpack.c.bf16 %v6078_v10, %v6075_v9  ;;  %v4928_v14 = vld [vmem:[%s6011_s10] sm:$0xff]   ;;  %s5602_s13 = smov 96   ;;  %s5603_s29 = smov 80   ;;  %vm1401_vm4 = vcmask 1043456   ;;  %v6161_v48 = vshrl.u32 %v1329_v47, 7  ;;  %vm1382_vm5 = vcmask 64512  }
 0x130   : > { %4425 = vmatprep.subr.bf16.mxu0 %v5598_v0  ;;  %v4223_v17 = vld [vmem:[#allocation14] ss:$0 sm:$0xff]  ;;  %v4217_v22 = vld [vmem:[#allocation13] ss:$0 sm:$0xff]  ;;  %s6818_s1 = sld [smem:[#allocation44_spill]]  ;;  %s5604_s5 = smov 32  }
 0x131   : > { %s6819_s14 = sld [smem:[#allocation53_spill]]  ;;  %v6164_v51 = vsub.s32 0, %v6161_v48  ;;  %s5605_s21 = smov 48   ;;  %vm1795_vm6 = vcmask 392192   ;;  %vm1792_vm7 = vcmask 261120   ;;  %vm3580_vm8 = vcmask 519168  }
 0x132   : > { %v4918_v1 = vld [vmem:[%s6817_s27 + $0x28] sm:$0xff]   ;;  %v4919_v2 = vld [vmem:[%s6817_s27 + $0x20] sm:$0xff]   ;;  %v4920_v5 = vld [vmem:[%s6817_s27 + $0x18] sm:$0xff]   ;;  %s5606_s4 = smov 16   ;;  %s6820_s26 = sld [smem:[#allocation63_spill]] }
 0x133   : > { %4436 = vmatpush3.bf16.msra.mxu1 %v4918_v1  ;;  %4426 = vmatpush3.bf16.msra.mxu0 %v4923_v4  ;;  %v4922_v7 = vld [vmem:[%s6817_s27 + $0x10] sm:$0xff]   ;;  %v4924_v11 = vld [vmem:[%s6817_s27 + $0x8] sm:$0xff]   ;;  %v4926_v12 = vld [vmem:[%s6817_s27] sm:$0xff]   ;;  %s6822_s9 = sld [smem:[#allocation54_spill]]  ;;  %s1100_s12 = scalar_lea.vmem [#allocation31], %s4198_s24 }
 0x134   : > { %4437 = vmatprep.subr.bf16.mxu1 %v5598_v0  ;;  %4427 = vmatprep.subr.bf16.mxu0 %v5598_v0  ;;  %s6827_s22 = sld [smem:[#allocation48_spill]]  ;;  %s3885_s6 = sshll.u32 %s1100_s12, 4  ;;  %s6644_s6 = int_to_ptr.vmem [resolvable:$true] %s3885_s6 }
 0x135   : > { %s5608_s24 = smov [#allocation31]  }
 0x136   : > { %s4215_s23 = sshll.u32 %s6818_s1, 1  ;;  %s4322_s0 = sshll.u32 %s6818_s1, 8 }
 0x137   : > { %4438 = vmatpush3.bf16.msra.mxu1 %v4919_v2  ;;  %4428 = vmatpush3.bf16.msra.mxu0 %v4925_v6  ;;  %p1104_p1 = scmp.lt.s32.totalorder %s4215_s23, 3  ;;  %s3872_s1 = scalar_lea.sflag [#allocation7], %s5997_s25 }
 0x138   : > { %4439 = vmatprep.subr.bf16.mxu1 %v5598_v0  ;;  %4429 = vmatprep.subr.bf16.mxu0 %v5598_v0 }
 0x139   : > { %s6845_s23 = smov (!%p1104_p1, %s4215_s23), 3 }
 0x13a   : > { %s1106_s30 = scalar_lea.vmem %s6819_s14, %s6845_s23  ;;  %s6821_s14 = sld [smem:[#allocation64_spill]] }
 0x13b   : > { %4440 = vmatpush3.bf16.msra.mxu1 %v4920_v5  ;;  %4430 = vmatpush3.bf16.msra.mxu0 %v4927_v8  ;;  %v1327_v49 = vld [vmem:[%s1106_s30] sm:$0x1]  ;;  %v4240_v6 = vld [vmem:[%s1106_s30 + $0x1] sm:$0x1]  ;;  %s1111_s3 = scalar_lea.vmem %s6822_s9, %s6845_s23  ;;  %s6825_s23 = sld [smem:[#allocation69_spill]] }
 0x13c   : > { %4441 = vmatprep.subr.bf16.mxu1 %v5598_v0  ;;  %4451 = vmatprep.subr.bf16.mxu0 %v5598_v0  ;;  %v1328_v50 = vunpack.c.l.bf16 %v1327_v49  ;;  %s5464_s30 = scalar_lea.vmem %s6644_s6, 256  ;;  %p6829_p8 = scmp.ne.s32.totalorder %s6827_s22, 0 }
 0x13d   : > { %p5465_p13 = scmp.ne.s32.totalorder %s6644_s6, %s5464_s30  ;;  %s5468_s9 = sshll.u32 %s5608_s24, 4  ;;  %s5469_s9 = int_to_ptr.vmem [resolvable:$false] %s5468_s9 }
 0x13e   : > { %4432 = vmatmul.mubr.msk.bf16.vlgmr.msra.gmra.mxu0 %vm1178_vm0, %v1130_v13  ;;  %v6167_v52 = vrot.slane %v1328_v50, %v6164_v51  ;;  %p5471_p12 = scmp.lt.s32.totalorder %s6644_s6, %s5469_s9 }
 0x13f   : > { %4442 = vmatpush3.bf16.msra.mxu1 %v4922_v7  ;;  %4453 = vmatprep.mubr.msk.bf16.mxu0 %vm5599_vm1, %v5598_v0  ;;  %p5466_p11 = pnand %p5465_p13, %p6829_p8 }
 0x140   : > { %4443 = vmatprep.subr.bf16.mxu1 %v5598_v0 }
 0x141   : > { %p5467_p5 = pneg %p5466_p11 }
 0x143   : > { %4444 = vmatpush3.bf16.msra.mxu1 %v4924_v11 }
 0x144   : > { %4445 = vmatprep.subr.bf16.mxu1 %v5598_v0 }
 0x147   : > { %4446 = vmatpush3.bf16.msra.mxu1 %v4926_v12  ;;  %v1800_v12 = vunpack.c.l.bf16 %v4240_v6 }
 0x148   : > { %4475 = vmatprep.subr.bf16.mxu1 %v5598_v0 }
 0x14a   : > { %4448 = vmatmul.mubr.msk.bf16.vlgmr.msra.gmra.mxu1 %vm1282_vm2, %v4928_v14 }
 0x14b   : > { %4477 = vmatprep.mubr.msk.bf16.mxu1 %vm5599_vm1, %v5598_v0 }
 0x1fe   : > { %v1216_v15 = vpop.f32.mrf.mxu0 }
 0x1ff   : > { %v1217_v26 = vadd.f32 %v4217_v22, %v1216_v15 }
 0x200   : > { %v4433_v16 = vpop.f32.mrf.mxu0 }
 0x201   : > { %v6106_v29 = vpack.c.bf16 %v1217_v26, %v1217_v26 }
 0x202   : > { %v1219_v18 = vpop.f32.mrf.mxu0 }
 0x203   : > { %v1220_v32 = vadd.f32 %v4217_v22, %v1219_v18 }
 0x204   : > { %v4434_v21 = vpop.f32.mrf.mxu0 }
 0x205   : > { %v1805_v33 = vpack.c.bf16 %v1220_v32, %v1220_v32 }
 0x20a   : > { %v1320_v19 = vpop.f32.mrf.mxu1 }
 0x20b   : > { %v1321_v20 = vadd.f32 %v4223_v17, %v1320_v19 }
 0x20c   : > { %v4449_v23 = vpop.f32.mrf.mxu1 }
 0x20d   : > { %v6099_v24 = vpack.c.bf16 %v1321_v20, %v1321_v20 }
 0x20e   : > { %v1323_v25 = vpop.f32.mrf.mxu1 }
 0x20f   : > { %1396 = vrot.lane.b32.xlu1 %v6099_v24, %s5600_s18  ;;  %v1340_v27 = vsel %vm1335_vm3, %v6099_v24, 0  ;;  %v1324_v30 = vadd.f32 %v4223_v17, %v1323_v25  ;;  %v6181_v17 = vrot.slane %v1800_v12, %v6164_v51 }
 0x210   : > { %v4450_v28 = vpop.f32.mrf.mxu1  ;;  %4452 = vmatpush3.bf16.xpose.msra.mxu0 %v1340_v27 }
 0x211   : > { %4457 = vmatprep.subr.bf16.mxu0 %v5598_v0  ;;  %v6122_v31 = vpack.c.bf16 %v1324_v30, %v1324_v30 }
 0x213   : > { %1449 = vrot.lane.b32.xlu1 %v6099_v24, %s5601_s28  ;;  %v1811_v43 = vsel %vm1335_vm3, %v6122_v31, 0 }
 0x217   : > { %1560 = vrot.lane.b32.xlu1 %v6099_v24, %s5602_s13  ;;  %4454 = vmatmul.mubr.msk.bf16.vlgmr.msra.gmra.mxu0 %vm1335_vm3, %v6106_v29 }
 0x218   : > { %4459 = vmatprep.mubr.msk.bf16.mxu0 %vm5599_vm1, %v5598_v0 }
 0x21b   : > { %1558 = vrot.lane.b32.xlu1 %v6106_v29, %s5602_s13 }
 0x21f   : > { %1671 = vrot.lane.b32.xlu1 %v6099_v24, %s5603_s29 }
 0x223   : > { %1669 = vrot.lane.b32.xlu1 %v6106_v29, %s5603_s29 }
 0x227   : > { %1918 = vrot.lane.b32.xlu1 %v6122_v31, %s5601_s28 }
 0x22b   : > { %1916 = vrot.lane.b32.xlu1 %v1805_v33, %s5601_s28 }
 0x22f   : > { %2027 = vrot.lane.b32.xlu1 %v1805_v33, %s5602_s13 }
 0x233   : > { %2138 = vrot.lane.b32.xlu1 %v1805_v33, %s5603_s29 }
 0x281   : > { %v1397_v34 = vpop.permute.xlu1 %1396 }
 0x282   : > { %v1403_v35 = vsel %vm1401_vm4, %v1397_v34, 0 }
 0x283   : > { %4458 = vmatpush3.bf16.msra.mxu0 %v1403_v35 }
 0x284   : > { %4463 = vmatprep.subr.bf16.mxu0 %v5598_v0 }
 0x285   : > { %v6131_v36 = vpop.permute.xlu1 %1449 }
 0x289   : > { %v1561_v37 = vpop.permute.xlu1 %1560 }
 0x28a   : > { %v1566_v38 = vsel %vm1335_vm3, %v1561_v37, 0 }
 0x28b   : > { %4476 = vmatpush3.bf16.xpose.msra.mxu1 %v1566_v38 }
 0x28c   : > { %4487 = vmatprep.subr.bf16.mxu1 %v5598_v0 }
 0x28d   : > { %v1559_v39 = vpop.permute.xlu1 %1558 }
 0x291   : > { %v1672_v40 = vpop.permute.xlu1 %1671 }
 0x292   : > { %v1677_v41 = vsel %vm1335_vm3, %v1672_v40, 0  ;;  %4478 = vmatmul.mubr.msk.bf16.vlgmr.msra.gmra.mxu1 %vm1335_vm3, %v1559_v39  ;;  %v1455_v39 = vsel %vm1335_vm3, %v6131_v36, 0 }
 0x293   : > { %4488 = vmatpush3.bf16.xpose.msra.mxu1 %v1677_v41  ;;  %4489 = vmatprep.mubr.msk.bf16.mxu1 %vm5599_vm1, %v5598_v0 }
 0x294   : > { %4499 = vmatprep.subr.bf16.mxu1 %v5598_v0 }
 0x295   : > { %v1670_v42 = vpop.permute.xlu1 %1669 }
 0x299   : > { %v1919_v44 = vpop.permute.xlu1 %1918 }
 0x29a   : > { %4490 = vmatmul.mubr.msk.bf16.vlgmr.msra.gmra.mxu1 %vm1335_vm3, %v1670_v42  ;;  %v1924_v45 = vsel %vm1335_vm3, %v1919_v44, 0 }
 0x29b   : > { %4500 = vmatpush3.bf16.xpose.msra.mxu1 %v1811_v43  ;;  %4501 = vmatprep.mubr.msk.bf16.mxu1 %vm5599_vm1, %v5598_v0 }
 0x29c   : > { %4511 = vmatprep.subr.bf16.mxu1 %v5598_v0 }
 0x29d   : > { %v1917_v46 = vpop.permute.xlu1 %1916 }
 0x2a1   : > { %v2028_v37 = vpop.permute.xlu1 %2027 }
 0x2a2   : > { %4502 = vmatmul.mubr.msk.bf16.vlgmr.msra.gmra.mxu1 %vm1335_vm3, %v1805_v33 }
 0x2a3   : > { %4512 = vmatpush3.bf16.xpose.msra.mxu1 %v1924_v45  ;;  %4513 = vmatprep.mubr.msk.bf16.mxu1 %vm5599_vm1, %v5598_v0 }
 0x2a4   : > { %4523 = vmatprep.subr.bf16.mxu1 %v5598_v0 }
 0x2a5   : > { %v2139_v40 = vpop.permute.xlu1 %2138 }
 0x2aa   : > { %4514 = vmatmul.mubr.msk.bf16.vlgmr.msra.gmra.mxu1 %vm1335_vm3, %v1917_v46 }
 0x2ab   : > { %4525 = vmatprep.mubr.msk.bf16.mxu1 %vm5599_vm1, %v5598_v0 }
 0x2d7   : > { %v1376_v53 = vpop.f32.mrf.mxu0 }
 0x2d8   : > { %v1377_v54 = vadd.f32 %v1376_v53, %v6167_v52 }
 0x2d9   : > { %v4455_v55 = vpop.f32.mrf.mxu0 }
 0x2da   : > { %v1383_v56 = vsel %vm1382_vm5, %v1377_v54, -inf }
 0x2db   : > { %1384 = vmax.xlane.f32.xlu0 %v1383_v56  ;;  %v1379_v57 = vpop.f32.mrf.mxu0 }
 0x2dd   : > { %v4456_v58 = vpop.f32.mrf.mxu0 }
 0x352   : > { %v1602_v59 = vpop.f32.mrf.mxu1 }
 0x353   : > { %v6172_v60 = vadd.f32 %v1602_v59, %v6167_v52 }
 0x354   : > { %v4479_v61 = vpop.f32.mrf.mxu1 }
 0x355   : > { %v1608_v62 = vsel %vm1382_vm5, %v6172_v60, -inf }
 0x356   : > { %v1605_v63 = vpop.f32.mrf.mxu1  ;;  %1609 = vmax.xlane.f32.xlu1 %v1608_v62 }
 0x358   : > { %v4480_v1 = vpop.f32.mrf.mxu1 }
 0x35a   : > { %v6176_v2 = vpop.f32.mrf.mxu1 }
 0x35b   : > { %v1714_v63 = vadd.f32 %v6176_v2, %v6167_v52 }
 0x35c   : > { %v4491_v3 = vpop.f32.mrf.mxu1 }
 0x35e   : > { %v1716_v4 = vpop.f32.mrf.mxu1 }
 0x360   : > { %v4492_v5 = vpop.f32.mrf.mxu1 }
 0x362   : > { %v6178_v7 = vpop.f32.mrf.mxu1 }
 0x364   : > { %v4503_v8 = vpop.f32.mrf.mxu1  ;;  %v1385_v11 = vpop.xlane.xlu0 %1384 }
 0x365   : > { %v1386_v13 = vsub.f32 %v1377_v54, %v1385_v11  ;;  %v1848_v8 = vadd.f32 %v6178_v7, %v6181_v17  ;;  %v1719_v11 = vsel %vm1382_vm5, %v1714_v63, -inf }
 0x366   : > { %v1850_v14 = vpop.f32.mrf.mxu1 }
 0x367   : > { %v1387_v15 = vmul.f32 1.442695, %v1386_v13 }
 0x368   : > { %v4504_v16 = vpop.f32.mrf.mxu1 }
 0x369   : > { %4962 = vpow2.f32 %v1387_v15 }
 0x36a   : > { %v1960_v18 = vpop.f32.mrf.mxu1 }
 0x36b   : > { %v6184_v19 = vadd.f32 %v1960_v18, %v6181_v17 }
 0x36c   : > { %v4515_v20 = vpop.f32.mrf.mxu1 }
 0x36d   : > { %v1966_v21 = vsel %vm1382_vm5, %v6184_v19, -inf }
 0x36e   : > { %1967 = vmax.xlane.f32.xlu1 %v1966_v21  ;;  %v1963_v22 = vpop.f32.mrf.mxu1 }
 0x370   : > { %v4516_v23 = vpop.f32.mrf.mxu1 }
 0x376   : > { %v4963_v25 = vpop.eup %4962 }
 0x377   : > { %v1389_v26 = vsel %vm1382_vm5, %v4963_v25, 0.0 }
 0x378   : > { %1390 = vadd.xlane.f32.xlu0 %v1389_v26 }
 0x38e   : > { %1447 = vrot.lane.b32.xlu0 %v6106_v29, %s5601_s28 }
 0x392   : > { %2029 = vrot.lane.b32.xlu0 %v6122_v31, %s5602_s13 }
 0x396   : > { %2140 = vrot.lane.b32.xlu0 %v6122_v31, %s5603_s29 }
 0x3df   : > { %v1610_v36 = vpop.xlane.xlu1 %1609 }
 0x3e0   : > { %v1611_v41 = vsub.f32 %v6172_v60, %v1610_v36 }
 0x3e2   : > { %v1612_v42 = vmul.f32 1.442695, %v1611_v41 }
 0x3f7   : > { %v1968_v15 = vpop.xlane.xlu1 %1967 }
 0x3f8   : > { %v1969_v20 = vsub.f32 %v6184_v19, %v1968_v15 }
 0x401   : > { %v1391_v27 = vpop.xlane.xlu0 %1390 }
 0x402   : > { %4964 = vrcp.f32 %v1391_v27 }
 0x403   : > { %4966 = vpow2.f32 %v1612_v42 }
 0x405   : > { %v1448_v28 = vpop.permute.xlu0 %1447 }
 0x409   : > { %v2030_v30 = vpop.permute.xlu0 %2029 }
 0x40a   : > { %v2035_v32 = vsel %vm1335_vm3, %v2030_v30, 0 }
 0x40b   : > { %4524 = vmatpush3.bf16.xpose.msra.mxu1 %v2035_v32 }
 0x40c   : > { %4535 = vmatprep.subr.bf16.mxu1 %v5598_v0 }
 0x40d   : > { %v2141_v34 = vpop.permute.xlu0 %2140 }
 0x40e   : > { %v2146_v29 = vsel %vm1335_vm3, %v2141_v34, 0 }
 0x40f   : > { %v4965_v33 = vpop.eup %4964 }
 0x410   : > { %v1393_v35 = vmul.f32 %v4965_v33, %v4963_v25  ;;  %v6223_v60 = vpop.eup %4966  ;;  %v1970_v25 = vmul.f32 1.442695, %v1969_v20 }
 0x411   : > { %v1614_v5 = vsel %vm1382_vm5, %v6223_v60, 0.0 }
 0x412   : > { %4526 = vmatmul.mubr.msk.bf16.vlgmr.msra.gmra.mxu1 %vm1335_vm3, %v2028_v37  ;;  %v1394_v38 = vpack.c.bf16 %v1393_v35, %v1393_v35 }
 0x413   : > { %4536 = vmatpush3.bf16.xpose.msra.mxu1 %v2146_v29  ;;  %4537 = vmatprep.mubr.msk.bf16.mxu1 %vm5599_vm1, %v5598_v0 }
 0x414   : > { %4460 = vmatmul.mubr.msk.bf16.vlgmr.msra.gmra.mxu0 %vm1382_vm5, %v1394_v38  ;;  %4547 = vmatprep.subr.bf16.mxu1 %v5598_v0 }
 0x415   : > { %4464 = vmatpush3.bf16.xpose.msra.mxu0 %v1455_v39  ;;  %4465 = vmatprep.mubr.msk.bf16.mxu0 %vm5599_vm1, %v5598_v0 }
 0x416   : > { %4469 = vmatprep.subr.bf16.mxu0 %v5598_v0 }
 0x41a   : > { %4538 = vmatmul.mubr.msk.bf16.vlgmr.msra.gmra.mxu1 %vm1335_vm3, %v2139_v40 }
 0x41b   : > { %4555 = vmatprep.mubr.msk.bf16.mxu1 %vm5599_vm1, %v5598_v0 }
 0x41c   : > { %4466 = vmatmul.mubr.msk.bf16.vlgmr.msra.gmra.mxu0 %vm1335_vm3, %v1448_v28 }
 0x41d   : > { %4471 = vmatprep.mubr.msk.bf16.mxu0 %vm5599_vm1, %v5598_v0 }
 0x4d2   : > { %v2071_v43 = vpop.f32.mrf.mxu1 }
 0x4d3   : > { %v2072_v12 = vadd.f32 %v2071_v43, %v6181_v17 }
 0x4d4   : > { %v6215_v44 = vpop.f32.mrf.mxu0  ;;  %v4527_v45 = vpop.f32.mrf.mxu1 }
 0x4d5   : > { %v2077_v2 = vsel %vm1382_vm5, %v2072_v12, -inf }
 0x4d6   : > { %v4461_v46 = vpop.f32.mrf.mxu0  ;;  %v2074_v47 = vpop.f32.mrf.mxu1 }
 0x4d8   : > { %v1442_v49 = vpop.f32.mrf.mxu0  ;;  %v4528_v50 = vpop.f32.mrf.mxu1 }
 0x4da   : > { %v4462_v53 = vpop.f32.mrf.mxu0  ;;  %v2182_v54 = vpop.f32.mrf.mxu1 }
 0x4db   : > { %v6218_v55 = vadd.f32 %v2182_v54, %v6181_v17 }
 0x4dc   : > { %v1491_v56 = vpop.f32.mrf.mxu0  ;;  %v4539_v57 = vpop.f32.mrf.mxu1 }
 0x4dd   : > { %v1492_v58 = vadd.f32 %v1491_v56, %v6167_v52  ;;  %v2188_v59 = vsel %vm1382_vm5, %v6218_v55, -inf  ;;  %v1853_v52 = vsel %vm1382_vm5, %v1848_v8, -inf }
 0x4de   : > { %2189 = vmax.xlane.f32.xlu1 %v2188_v59  ;;  %v4467_v61 = vpop.f32.mrf.mxu0  ;;  %v2185_v62 = vpop.f32.mrf.mxu1 }
 0x4df   : > { %v1497_v1 = vsel %vm1382_vm5, %v1492_v58, -inf }
 0x4e0   : > { %v4540_v3 = vpop.f32.mrf.mxu1  ;;  %1498 = vmax.xlane.f32.xlu0 %v1497_v1  ;;  %v1494_v4 = vpop.f32.mrf.mxu0 }
 0x4e2   : > { %1615 = vadd.xlane.f32.xlu1 %v1614_v5  ;;  %v4468_v6 = vpop.f32.mrf.mxu0 }
 0x4e4   : > { %1720 = vmax.xlane.f32.xlu0 %v1719_v11 }
 0x4e8   : > { %1854 = vmax.xlane.f32.xlu0 %v1853_v52 }
 0x4ec   : > { %2078 = vmax.xlane.f32.xlu0 %v2077_v2 }
 0x567   : > { %v2190_v38 = vpop.xlane.xlu1 %2189 }
 0x568   : > { %v2191_v39 = vsub.f32 %v6218_v55, %v2190_v38 }
 0x569   : > { %v1499_v13 = vpop.xlane.xlu0 %1498 }
 0x56a   : > { %v1500_v14 = vsub.f32 %v1492_v58, %v1499_v13  ;;  %v2192_v40 = vmul.f32 1.442695, %v2191_v39 }
 0x56b   : > { %v1616_v46 = vpop.xlane.xlu1 %1615 }
 0x56c   : > { %v1501_v21 = vmul.f32 1.442695, %v1500_v14 }
 0x56d   : > { %v1721_v16 = vpop.xlane.xlu0 %1720 }
 0x56e   : > { %v1722_v18 = vsub.f32 %v1714_v63, %v1721_v16 }
 0x570   : > { %v1723_v7 = vmul.f32 1.442695, %v1722_v18 }
 0x571   : > { %v1855_v22 = vpop.xlane.xlu0 %1854 }
 0x572   : > { %4968 = vpow2.f32 %v1723_v7  ;;  %v1856_v23 = vsub.f32 %v1848_v8, %v1855_v22 }
 0x573   : > { %4970 = vpow2.f32 %v1501_v21 }
 0x574   : > { %v1857_v17 = vmul.f32 1.442695, %v1856_v23 }
 0x575   : > { %v2079_v35 = vpop.xlane.xlu0 %2078 }
 0x576   : > { %4972 = vpow2.f32 %v1857_v17  ;;  %v2080_v37 = vsub.f32 %v2072_v12, %v2079_v35 }
 0x577   : > { %4974 = vpow2.f32 %v1970_v25 }
 0x578   : > { %v2081_v29 = vmul.f32 1.442695, %v2080_v37 }
 0x57a   : > { %4976 = vpow2.f32 %v2081_v29 }
 0x57b   : > { %4978 = vpow2.f32 %v2192_v40 }
 0x57f   : > { %v6237_v26 = vpop.eup %4968 }
 0x580   : > { %v1725_v27 = vsel %vm1382_vm5, %v6237_v26, 0.0  ;;  %v4971_v28 = vpop.eup %4970 }
 0x581   : > { %1726 = vadd.xlane.f32.xlu0 %v1725_v27  ;;  %v1503_v19 = vsel %vm1382_vm5, %v4971_v28, 0.0 }
 0x583   : > { %v6241_v30 = vpop.eup %4972 }
 0x584   : > { %v1859_v32 = vsel %vm1382_vm5, %v6241_v30, 0.0  ;;  %v6246_v33 = vpop.eup %4974 }
 0x585   : > { %1504 = vadd.xlane.f32.xlu0 %v1503_v19  ;;  %1860 = vadd.xlane.f32.xlu1 %v1859_v32  ;;  %v1972_v34 = vsel %vm1382_vm5, %v6246_v33, 0.0 }
 0x587   : > { %v6257_v36 = vpop.eup %4976 }
 0x588   : > { %v2083_v41 = vsel %vm1382_vm5, %v6257_v36, 0.0  ;;  %v6261_v42 = vpop.eup %4978 }
 0x589   : > { %1973 = vadd.xlane.f32.xlu1 %v1972_v34  ;;  %v2194_v43 = vsel %vm1382_vm5, %v6261_v42, 0.0 }
 0x59a   : > { %1620 = vrot.lane.b32.xlu1 %v6099_v24, %s5604_s5 }
 0x59b   : > { %1509 = vrot.lane.b32.xlu0 %v6099_v24, %s5605_s21 }
 0x59e   : > { %1731 = vrot.lane.b32.xlu1 %v6099_v24, %s5606_s4 }
 0x5ba   : > { %2084 = vadd.xlane.f32.xlu0 %v2083_v41 }
 0x5c2   : > { %2195 = vadd.xlane.f32.xlu1 %v2194_v43  ;;  %v4929_v43 = vld [vmem:[#allocation16 + $0x18] sm:$0xff]  }
 0x5c3   : > { %4548 = vmatpush3.bf16.msra.mxu1 %v4929_v43  ;;  %v4933_v43 = vld [vmem:[%s6820_s26 + $0x30] ss:$8 sps:$4 sm:$0xff]  }
 0x5c4   : > { %4549 = vmatprep.subr.bf16.mxu1 %v5598_v0 }
 0x5d0   : > { %1866 = vrot.lane.b32.xlu0 %v6122_v31, %s5600_s18 }
 0x5d3   : > { %1978 = vrot.lane.b32.xlu1 %v6122_v31, %s5605_s21 }
 0x5d4   : > { %2089 = vrot.lane.b32.xlu0 %v6122_v31, %s5604_s5 }
 0x5d8   : > { %2200 = vrot.lane.b32.xlu0 %v6122_v31, %s5606_s4 }
 0x60a   : > { %v1727_v24 = vpop.xlane.xlu0 %1726 }
 0x60e   : > { %v1505_v45 = vpop.xlane.xlu0 %1504  ;;  %v1861_v49 = vpop.xlane.xlu1 %1860 }
 0x60f   : > { %4980 = vrcp.f32 %v1505_v45 }
 0x610   : > { %4982 = vrcp.f32 %v1616_v46  ;;  %v4930_v46 = vld [vmem:[#allocation16 + $0x10] sm:$0xff]  }
 0x611   : > { %4984 = vrcp.f32 %v1727_v24  ;;  %4550 = vmatpush3.bf16.msra.mxu1 %v4930_v46  ;;  %v4939_v46 = vld [vmem:[%s6820_s26 + $0x10] ss:$8 sps:$4 sm:$0xff]  }
 0x612   : > { %v1510_v47 = vpop.permute.xlu0 %1509  ;;  %v1974_v53 = vpop.xlane.xlu1 %1973  ;;  %4986 = vrcp.f32 %v1861_v49  ;;  %v4931_v49 = vld [vmem:[#allocation16 + $0x8] sm:$0xff]   ;;  %4551 = vmatprep.subr.bf16.mxu1 %v5598_v0 }
 0x613   : > { %v1515_v50 = vsel %vm1401_vm4, %v1510_v47, 0  ;;  %4988 = vrcp.f32 %v1974_v53 }
 0x614   : > { %4470 = vmatpush3.bf16.msra.mxu0 %v1515_v50 }
 0x615   : > { %4481 = vmatprep.subr.bf16.mxu0 %v5598_v0  ;;  %4552 = vmatpush3.bf16.msra.mxu1 %v4931_v49  ;;  %v4944_v49 = vld [vmem:[%s6820_s26 + $0x4] ss:$8 sps:$4 sm:$0xff]  }
 0x616   : > { %v1621_v56 = vpop.permute.xlu1 %1620  ;;  %4553 = vmatprep.subr.bf16.mxu1 %v5598_v0 }
 0x617   : > { %v1626_v31 = vsel %vm1401_vm4, %v1621_v56, 0 }
 0x61a   : > { %v1732_v61 = vpop.permute.xlu1 %1731 }
 0x61b   : > { %v1737_v1 = vsel %vm1401_vm4, %v1732_v61, 0 }
 0x61c   : > { %v4981_v54 = vpop.eup %4980 }
 0x61d   : > { %v1507_v55 = vmul.f32 %v4981_v54, %v4971_v28  ;;  %v4983_v58 = vpop.eup %4982 }
 0x61e   : > { %v1618_v59 = vmul.f32 %v4983_v58, %v6223_v60  ;;  %v4985_v63 = vpop.eup %4984 }
 0x61f   : > { %v1508_v57 = vpack.c.bf16 %v1507_v55, %v1507_v55  ;;  %v1729_v3 = vmul.f32 %v4985_v63, %v6237_v26  ;;  %v4987_v60 = vpop.eup %4986 }
 0x620   : > { %v1619_v62 = vpack.c.bf16 %v1618_v59, %v1618_v59  ;;  %v1863_v6 = vmul.f32 %v4987_v60, %v6241_v30  ;;  %v4989_v52 = vpop.eup %4988 }
 0x621   : > { %4472 = vmatmul.mubr.msk.bf16.vlgmr.msra.gmra.mxu0 %vm1382_vm5, %v1508_v57  ;;  %v1730_v4 = vpack.c.bf16 %v1729_v3, %v1729_v3  ;;  %v1976_v13 = vmul.f32 %v4989_v52, %v6246_v33  ;;  %v4932_v57 = vld [vmem:[#allocation16] sm:$0xff]  }
 0x622   : > { %4482 = vmatpush3.bf16.msra.mxu0 %v1626_v31  ;;  %4483 = vmatprep.mubr.msk.bf16.mxu0 %vm5599_vm1, %v5598_v0  ;;  %v1864_v12 = vpack.c.bf16 %v1863_v6, %v1863_v6 }
 0x623   : > { %4493 = vmatprep.subr.bf16.mxu0 %v5598_v0  ;;  %v1977_v18 = vpack.c.bf16 %v1976_v13, %v1976_v13  ;;  %4554 = vmatpush3.bf16.msra.mxu1 %v4932_v57 }
 0x624   : > { %4559 = vmatprep.subr.bf16.mxu1 %v5598_v0 }
 0x629   : > { %4484 = vmatmul.mubr.msk.bf16.vlgmr.msra.gmra.mxu0 %vm1382_vm5, %v1619_v62 }
 0x62a   : > { %4494 = vmatpush3.bf16.msra.mxu0 %v1737_v1  ;;  %4495 = vmatprep.mubr.msk.bf16.mxu0 %vm5599_vm1, %v5598_v0 }
 0x62b   : > { %4505 = vmatprep.subr.bf16.mxu0 %v5598_v0 }
 0x631   : > { %4496 = vmatmul.mubr.msk.bf16.vlgmr.msra.gmra.mxu0 %vm1382_vm5, %v1730_v4 }
 0x632   : > { %4507 = vmatprep.mubr.msk.bf16.mxu0 %vm5599_vm1, %v5598_v0 }
 0x643   : > { %v2085_v5 = vpop.xlane.xlu0 %2084 }
 0x644   : > { %4990 = vrcp.f32 %v2085_v5 }
 0x647   : > { %v1867_v8 = vpop.permute.xlu0 %1866 }
 0x648   : > { %v1872_v11 = vsel %vm1401_vm4, %v1867_v8, 0 }
 0x649   : > { %4506 = vmatpush3.bf16.msra.mxu0 %v1872_v11 }
 0x64a   : > { %4517 = vmatprep.subr.bf16.mxu0 %v5598_v0 }
 0x64b   : > { %v2196_v2 = vpop.xlane.xlu1 %2195  ;;  %v2090_v16 = vpop.permute.xlu0 %2089 }
 0x64c   : > { %4508 = vmatmul.mubr.msk.bf16.vlgmr.msra.gmra.mxu0 %vm1382_vm5, %v1864_v12  ;;  %4992 = vrcp.f32 %v2196_v2  ;;  %v2095_v21 = vsel %vm1401_vm4, %v2090_v16, 0 }
 0x64d   : > { %4519 = vmatprep.mubr.msk.bf16.mxu0 %vm5599_vm1, %v5598_v0 }
 0x64f   : > { %v1979_v14 = vpop.permute.xlu1 %1978  ;;  %v2201_v22 = vpop.permute.xlu0 %2200 }
 0x650   : > { %v1984_v15 = vsel %vm1401_vm4, %v1979_v14, 0  ;;  %v2206_v17 = vsel %vm1401_vm4, %v2201_v22, 0  ;;  %v1445_v14 = vpack.c.bf16 %v6215_v44, %v6215_v44 }
 0x651   : > { %4518 = vmatpush3.bf16.msra.mxu0 %v1984_v15  ;;  %v4991_v20 = vpop.eup %4990 }
 0x652   : > { %4529 = vmatprep.subr.bf16.mxu0 %v5598_v0  ;;  %v2087_v7 = vmul.f32 %v4991_v20, %v6257_v36 }
 0x654   : > { %4520 = vmatmul.mubr.msk.bf16.vlgmr.msra.gmra.mxu0 %vm1382_vm5, %v1977_v18  ;;  %v2088_v23 = vpack.c.bf16 %v2087_v7, %v2087_v7 }
 0x655   : > { %4530 = vmatpush3.bf16.msra.mxu0 %v2095_v21  ;;  %4531 = vmatprep.mubr.msk.bf16.mxu0 %vm5599_vm1, %v5598_v0 }
 0x656   : > { %4541 = vmatprep.subr.bf16.mxu0 %v5598_v0 }
 0x659   : > { %v4993_v25 = vpop.eup %4992 }
 0x65a   : > { %v2198_v26 = vmul.f32 %v4993_v25, %v6261_v42  ;;  %v4249_v25 = vld [vmem:[#allocation17] ss:$0 sm:$0xff] }
 0x65c   : > { %4532 = vmatmul.mubr.msk.bf16.vlgmr.msra.gmra.mxu0 %vm1382_vm5, %v2088_v23  ;;  %v2199_v27 = vpack.c.bf16 %v2198_v26, %v2198_v26 }
 0x65d   : > { %4542 = vmatpush3.bf16.msra.mxu0 %v2206_v17  ;;  %4543 = vmatprep.mubr.msk.bf16.mxu0 %vm5599_vm1, %v5598_v0 }
 0x664   : > { %4544 = vmatmul.mubr.msk.bf16.vlgmr.msra.gmra.mxu0 %vm1382_vm5, %v2199_v27 }
 0x6e1   : > { %v1551_v28 = vpop.f32.mrf.mxu0 }
 0x6e2   : > { %v1557_v30 = vpack.c.bf16 %v1551_v28, %v1551_v28 }
 0x6e3   : > { %v4473_v19 = vpop.f32.mrf.mxu0 }
 0x6e4   : > { %1781 = vrot.lane.b32.xlu1 %v1557_v30, %s5606_s4 }
 0x6e5   : > { %v1554_v32 = vpop.f32.mrf.mxu0 }
 0x6e7   : > { %v4474_v33 = vpop.f32.mrf.mxu0 }
 0x6e9   : > { %v1662_v34 = vpop.f32.mrf.mxu0 }
 0x6ea   : > { %v1668_v55 = vpack.c.bf16 %v1662_v34, %v1662_v34 }
 0x6eb   : > { %v4485_v35 = vpop.f32.mrf.mxu0 }
 0x6ed   : > { %v1665_v37 = vpop.f32.mrf.mxu0 }
 0x6ef   : > { %v4486_v29 = vpop.f32.mrf.mxu0 }
 0x6f1   : > { %v1773_v38 = vpop.f32.mrf.mxu0 }
 0x6f2   : > { %v1779_v60 = vpack.c.bf16 %v1773_v38, %v1773_v38 }
 0x6f3   : > { %v4497_v39 = vpop.f32.mrf.mxu0 }
 0x6f5   : > { %v1776_v40 = vpop.f32.mrf.mxu0 }
 0x6f7   : > { %v4498_v36 = vpop.f32.mrf.mxu0 }
 0x70c   : > { %v1908_v41 = vpop.f32.mrf.mxu0 }
 0x70d   : > { %v1914_v12 = vpack.c.bf16 %v1908_v41, %v1908_v41 }
 0x70e   : > { %v4509_v42 = vpop.f32.mrf.mxu0 }
 0x710   : > { %v1911_v24 = vpop.f32.mrf.mxu0 }
 0x711   : > { %v4938_v24 = vld [vmem:[%s6820_s26 + $0x24] ss:$8 sps:$4 sm:$0xff]  }
 0x712   : > { %v4510_v45 = vpop.f32.mrf.mxu0 }
 0x713   : > { %v4936_v45 = vld [vmem:[%s6820_s26 + $0x20] ss:$8 sps:$4 sm:$0xff]  }
 0x714   : > { %v2020_v47 = vpop.f32.mrf.mxu0 }
 0x715   : > { %v2026_v50 = vpack.c.bf16 %v2020_v47, %v2020_v47  ;;  %v4941_v47 = vld [vmem:[%s6820_s26 + $0x14] ss:$8 sps:$4 sm:$0xff]  }
 0x716   : > { %v4521_v53 = vpop.f32.mrf.mxu0 }
 0x717   : > { %2250 = vrot.lane.b32.xlu1 %v2026_v50, %s5606_s4  ;;  %v5607_v50 = vmov 0   ;;  %v4942_v53 = vld [vmem:[%s6820_s26] ss:$8 sps:$4 sm:$0xff]  }
 0x718   : > { %v2023_v54 = vpop.f32.mrf.mxu0  ;;  %2490 = vmatprep.mubr.bf16.mxu0 %v5607_v50 }
 0x71a   : > { %v4522_v56 = vpop.f32.mrf.mxu0 }
 0x71b   : > { %1784 = vrot.lane.b32.xlu1 %v1668_v55, %s5604_s5 }
 0x71c   : > { %v2131_v58 = vpop.f32.mrf.mxu0 }
 0x71d   : > { %v2137_v31 = vpack.c.bf16 %v2131_v58, %v2131_v58 }
 0x71e   : > { %v4533_v59 = vpop.f32.mrf.mxu0 }
 0x71f   : > { %2253 = vrot.lane.b32.xlu0 %v2137_v31, %s5604_s5 }
 0x720   : > { %v2134_v61 = vpop.f32.mrf.mxu0 }
 0x722   : > { %v4534_v62 = vpop.f32.mrf.mxu0 }
 0x723   : > { %v4255_v62 = vld [vmem:[#allocation19] ss:$0 sm:$0xff] }
 0x724   : > { %v2242_v63 = vpop.f32.mrf.mxu0 }
 0x725   : > { %v2248_v1 = vpack.c.bf16 %v2242_v63, %v2242_v63 }
 0x726   : > { %v4545_v3 = vpop.f32.mrf.mxu0 }
 0x727   : > { %2256 = vrot.lane.b32.xlu0 %v2248_v1, %s5605_s21 }
 0x728   : > { %v2245_v4 = vpop.f32.mrf.mxu0 }
 0x729   : > { %v4256_v4 = vld [vmem:[#allocation20] ss:$0 sm:$0xff] }
 0x72a   : > { %v4546_v5 = vpop.f32.mrf.mxu0 }
 0x72b   : > { %1787 = vrot.lane.b32.xlu0 %v1779_v60, %s5605_s21 }
 0x756   : > { %v1782_v6 = vpop.permute.xlu1 %1781 }
 0x757   : > { %v1791_v18 = vsel %vm1335_vm3, %v1445_v14, %v1782_v6 }
 0x789   : > { %v2251_v8 = vpop.permute.xlu1 %2250 }
 0x78a   : > { %v2260_v52 = vsel %vm1335_vm3, %v1914_v12, %v2251_v8  ;;  %v2411_v12 = vsub.s32 1, %v6161_v48 }
 0x78d   : > { %v1785_v15 = vpop.permute.xlu1 %1784 }
 0x78e   : > { %v1794_v20 = vsel %vm1792_vm7, %v1791_v18, %v1785_v15 }
 0x791   : > { %v2254_v11 = vpop.permute.xlu0 %2253 }
 0x792   : > { %v2262_v2 = vsel %vm1792_vm7, %v2260_v52, %v2254_v11  ;;  %v1136_v11 = vld [vmem:[%s6821_s14] sm:$0x3]  ;;  %s6828_s14 = sld [smem:[#allocation71_spill]] }
 0x793   : > { %v2408_v52 = vrot.slane %v1136_v11, %v6164_v51 }
 0x799   : > { %v2257_v13 = vpop.permute.xlu0 %2256 }
 0x79a   : > { %v2264_v16 = vsel %vm1795_vm6, %v2262_v2, %v2257_v13  ;;  %v6378_v2 = vrot.slane %v1136_v11, %v2411_v12 }
 0x79b   : > { %v2266_v21 = vrot.slane %v2264_v16, 4 }
 0x79d   : > { %v1788_v7 = vpop.permute.xlu0 %1787 }
 0x79e   : > { %v1797_v22 = vsel %vm1795_vm6, %v1794_v20, %v1788_v7 }
 0x79f   : > { %v2268_v23 = vsel %vm1401_vm4, %v1797_v22, %v2266_v21 }
 0x7a0   : > { %4556 = vmatmul.mubr.msk.bf16.vlgmr.msra.gmra.mxu1 %vm1178_vm0, %v2268_v23 }
 0x7a1   : > { %4561 = vmatprep.mubr.msk.bf16.mxu1 %vm5599_vm1, %v5598_v0 }
 0x860   : > { %v2343_v44 = vpop.f32.mrf.mxu1 }
 0x861   : > { %v2344_v17 = vadd.f32 %v4249_v25, %v2343_v44 }
 0x862   : > { %v4557_v26 = vpop.f32.mrf.mxu1 }
 0x863   : > { %v2350_v27 = vadd.f32 %v2344_v17, %v6075_v9 }
 0x864   : > { %v2346_v28 = vpop.f32.mrf.mxu1 }
 0x865   : > { %v2347_v30 = vadd.f32 %v4249_v25, %v2346_v28  ;;  %v2352_v19 = vsel %vm1178_vm0, %v2350_v27, 0.0 }
 0x866   : > { %2353 = vadd.xlane.f32.xlu1 %v2352_v19  ;;  %v4558_v32 = vpop.f32.mrf.mxu1 }
 0x867   : > { %v2351_v33 = vadd.f32 %v2347_v30, %v6078_v10  ;;  %v4935_v10 = vld [vmem:[%s6820_s26 + $0x34] ss:$8 sps:$4 sm:$0xff]  }
 0x868   : > { %2466 = vmatprep.subr.bf16.mxu0 %v4935_v10  ;;  %v2501_v10 = vld [vmem:[%s1111_s3] sm:$0x1] }
 0x869   : > { %v2355_v34 = vsel %vm1178_vm0, %v2351_v33, 0.0  ;;  %2467 = vmatpush1.bf16.msra.mxu0 %v4933_v43  ;;  %v2502_v43 = vunpack.c.l.bf16 %v2501_v10 }
 0x86a   : > { %2356 = vadd.xlane.f32.xlu0 %v2355_v34  ;;  %2468 = vmatprep.subr.bf16.mxu0 %v4938_v24  ;;  %v2507_v24 = vld [vmem:[%s6017_s16] sm:$0xff]   ;;  %s6824_s16 = sld [smem:[#allocation68_spill]] }
 0x86d   : > { %2469 = vmatpush1.bf16.msra.mxu0 %v4936_v45  ;;  %v2506_v45 = vrot.slane %v2502_v43, %v6164_v51 }
 0x86e   : > { %2470 = vmatprep.subr.bf16.mxu0 %v4941_v47 }
 0x871   : > { %2471 = vmatpush1.bf16.msra.mxu0 %v4939_v46  ;;  %v2508_v46 = vunpack.c.l.bf16 %v2507_v24 }
 0x872   : > { %2472 = vmatprep.subr.bf16.mxu0 %v4944_v49 }
 0x873   : > { %v2509_v47 = vadd.f32 %v2508_v46, %v2506_v45 }
 0x875   : > { %2473 = vmatpush1.bf16.msra.mxu0 %v4942_v53 }
 0x876   : > { %4565 = vmatprep.subr.bf16.mxu0 %v5598_v0 }
 0x8ef   : > { %v2354_v35 = vpop.xlane.xlu1 %2353 }
 0x8f0   : > { %v2359_v37 = vmul.f32 0.015625, %v2354_v35 }
 0x8f2   : > { %v2361_v29 = vsub.f32 %v2350_v27, %v2359_v37 }
 0x8f3   : > { %v2357_v38 = vpop.xlane.xlu0 %2356 }
 0x8f4   : > { %v2360_v39 = vmul.f32 0.015625, %v2357_v38  ;;  %v2363_v40 = vmul.f32 %v2361_v29, %v2361_v29 }
 0x8f6   : > { %v2362_v36 = vsub.f32 %v2351_v33, %v2360_v39  ;;  %v2365_v9 = vsel %vm1178_vm0, %v2363_v40, 0.0 }
 0x8f7   : > { %2366 = vadd.xlane.f32.xlu0 %v2365_v9 }
 0x8f8   : > { %v2364_v41 = vmul.f32 %v2362_v36, %v2362_v36 }
 0x8fa   : > { %v2368_v42 = vsel %vm1178_vm0, %v2364_v41, 0.0 }
 0x8fb   : > { %2369 = vadd.xlane.f32.xlu1 %v2368_v42 }
 0x980   : > { %v2367_v54 = vpop.xlane.xlu0 %2366 }
 0x981   : > { %v2371_v55 = vmul.f32 0.015625, %v2367_v54 }
 0x983   : > { %v2373_v56 = vadd.f32 1e-12, %v2371_v55 }
 0x984   : > { %v2370_v57 = vpop.xlane.xlu1 %2369 }
 0x985   : > { %4994 = vrsqrt.f32 %v2373_v56  ;;  %v2372_v58 = vmul.f32 0.015625, %v2370_v57 }
 0x987   : > { %v2374_v31 = vadd.f32 1e-12, %v2372_v58 }
 0x989   : > { %4996 = vrsqrt.f32 %v2374_v31 }
 0x992   : > { %v4995_v59 = vpop.eup %4994 }
 0x993   : > { %v2377_v61 = vmul.f32 %v4995_v59, %v2361_v29 }
 0x995   : > { %v2385_v3 = vmul.f32 %v4255_v62, %v2377_v61 }
 0x996   : > { %v4997_v63 = vpop.eup %4996 }
 0x997   : > { %v2378_v1 = vmul.f32 %v4997_v63, %v2362_v36  ;;  %v6364_v5 = vadd.f32 %v4256_v4, %v2385_v3 }
 0x999   : > { %v2386_v60 = vmul.f32 %v4255_v62, %v2378_v1 }
 0x99b   : > { %v6366_v6 = vadd.f32 %v4256_v4, %v2386_v60  ;;  %v4274_v4 = vld [vmem:[%s1111_s3 + $0x1] sm:$0x1]  ;;  %s5470_s3 = scalar_lea.vmem %s5469_s9, 512 }
 0x99c   : > { %v2972_v11 = vunpack.c.l.bf16 %v4274_v4  ;;  %p5472_p4 = scmp.lt.s32.totalorder %s5470_s3, %s5464_s30 }
 0x99d   : > { %v2395_v8 = vpack.c.bf16 %v6366_v6, %v6364_v5 }
 0x99e   : > { %p5473_p10 = por %p5472_p4, %p5471_p12 }
 0x99f   : > { %4265 = vmatmul.mubr.msk.bf16.vlgmr.msra.gmra.mxu0 %vm1178_vm0, %v2395_v8 }
 0x9a0   : > { %4567 = vmatprep.mubr.msk.bf16.mxu0 %vm5599_vm1, %v5598_v0  ;;  %p5474_p9 = pnand %p5473_p10, %p5467_p5 }
 0xa5f   : > { %v2492_v13 = vpop.f32.mrf.mxu0 }
 0xa60   : > { %v2493_v14 = vadd.f32 %v2492_v13, %v2408_v52 }
 0xa61   : > { %v2494_v15 = vpop.f32.mrf.mxu0 }
 0xa62   : > { %v2510_v16 = vpack.c.bf16 %v2493_v14, %v2493_v14  ;;  %v2495_v18 = vadd.f32 %v2494_v15, %v6378_v2  ;;  %v2976_v14 = vrot.slane %v2972_v11, %v6164_v51  ;;  %v2979_v15 = vunpack.c.h.bf16 %v2507_v24 }
 0xa63   : > { %v2496_v48 = vpop.f32.mrf.mxu0 }
 0xa64   : > { %v6381_v20 = vpack.c.bf16 %v2495_v18, %v2495_v18  ;;  %2622 = vrot.lane.b32.xlu1 %v2510_v16, %s5605_s21  ;;  %2513 = vrot.lane.b32.xlu0 %v2510_v16, %s5600_s18  ;;  %v2497_v7 = vadd.f32 %v2496_v48, %v2408_v52  ;;  %v2980_v48 = vadd.f32 %v2979_v15, %v2976_v14 }
 0xa66   : > { %v2577_v21 = vsel %vm1401_vm4, %v6381_v20, 0  ;;  %v2981_v22 = vpack.c.bf16 %v2497_v7, %v2497_v7 }
 0xa67   : > { %4566 = vmatpush3.bf16.msra.mxu0 %v2577_v21 }
 0xa68   : > { %2620 = vrot.lane.b32.xlu1 %v2510_v16, %s5601_s28  ;;  %2734 = vrot.lane.b32.xlu0 %v2510_v16, %s5604_s5 }
 0xa69   : > { %4577 = vmatprep.subr.bf16.mxu0 %v5598_v0 }
 0xa6c   : > { %2732 = vrot.lane.b32.xlu1 %v2510_v16, %s5602_s13  ;;  %2845 = vrot.lane.b32.xlu0 %v2510_v16, %s5606_s4 }
 0xa70   : > { %2843 = vrot.lane.b32.xlu1 %v2510_v16, %s5603_s29  ;;  %2984 = vrot.lane.b32.xlu0 %v2981_v22, %s5600_s18  ;;  %s6642_s18 = scalar_lea.hbm %s6828_s14, %s4322_s0 }
 0xa74   : > { %3093 = vrot.lane.b32.xlu1 %v2981_v22, %s5605_s21  ;;  %3091 = vrot.lane.b32.xlu0 %v2981_v22, %s5601_s28 }
 0xa78   : > { %3205 = vrot.lane.b32.xlu1 %v2981_v22, %s5604_s5  ;;  %3203 = vrot.lane.b32.xlu0 %v2981_v22, %s5602_s13 }
 0xa7c   : > { %3316 = vrot.lane.b32.xlu1 %v2981_v22, %s5606_s4  ;;  %3314 = vrot.lane.b32.xlu0 %v2981_v22, %s5603_s29 }
 0xad6   : > { %v2514_v23 = vpop.permute.xlu0 %2513  ;;  %v2623_v44 = vpop.permute.xlu1 %2622 }
 0xad7   : > { %v2519_v25 = vsel %vm1335_vm3, %v2514_v23, 0  ;;  %v2628_v17 = vsel %vm1335_vm3, %v2623_v44, 0 }
 0xad8   : > { %4560 = vmatpush3.bf16.xpose.msra.mxu1 %v2519_v25 }
 0xad9   : > { %4571 = vmatprep.subr.bf16.mxu1 %v5598_v0 }
 0xada   : > { %v2735_v26 = vpop.permute.xlu0 %2734  ;;  %v2621_v27 = vpop.permute.xlu1 %2620 }
 0xadb   : > { %v2740_v28 = vsel %vm1335_vm3, %v2735_v26, 0 }
 0xade   : > { %v2846_v30 = vpop.permute.xlu0 %2845  ;;  %v2733_v19 = vpop.permute.xlu1 %2732 }
 0xadf   : > { %4562 = vmatmul.mubr.msk.bf16.vlgmr.msra.gmra.mxu1 %vm1335_vm3, %v2510_v16  ;;  %v2851_v32 = vsel %vm1335_vm3, %v2846_v30, 0 }
 0xae0   : > { %4572 = vmatpush3.bf16.xpose.msra.mxu1 %v2628_v17  ;;  %4573 = vmatprep.mubr.msk.bf16.mxu1 %vm5599_vm1, %v5598_v0 }
 0xae1   : > { %4583 = vmatprep.subr.bf16.mxu1 %v5598_v0 }
 0xae2   : > { %v2985_v33 = vpop.permute.xlu0 %2984  ;;  %v2844_v34 = vpop.permute.xlu1 %2843 }
 0xae3   : > { %v2990_v35 = vsel %vm1335_vm3, %v2985_v33, 0 }
 0xae6   : > { %v3094_v37 = vpop.permute.xlu1 %3093  ;;  %v3092_v39 = vpop.permute.xlu0 %3091 }
 0xae7   : > { %4574 = vmatmul.mubr.msk.bf16.vlgmr.msra.gmra.mxu1 %vm1335_vm3, %v2621_v27  ;;  %v3099_v29 = vsel %vm1335_vm3, %v3094_v37, 0 }
 0xae8   : > { %4584 = vmatpush3.bf16.xpose.msra.mxu1 %v2740_v28  ;;  %4585 = vmatprep.mubr.msk.bf16.mxu1 %vm5599_vm1, %v5598_v0 }
 0xae9   : > { %4595 = vmatprep.subr.bf16.mxu1 %v5598_v0 }
 0xaea   : > { %v3206_v38 = vpop.permute.xlu1 %3205  ;;  %v3204_v9 = vpop.permute.xlu0 %3203 }
 0xaeb   : > { %v3211_v40 = vsel %vm1335_vm3, %v3206_v38, 0 }
 0xaee   : > { %v3317_v36 = vpop.permute.xlu1 %3316  ;;  %v3315_v42 = vpop.permute.xlu0 %3314 }
 0xaef   : > { %4586 = vmatmul.mubr.msk.bf16.vlgmr.msra.gmra.mxu1 %vm1335_vm3, %v2733_v19  ;;  %v3322_v41 = vsel %vm1335_vm3, %v3317_v36, 0 }
 0xaf0   : > { %4596 = vmatpush3.bf16.xpose.msra.mxu1 %v2851_v32  ;;  %4597 = vmatprep.mubr.msk.bf16.mxu1 %vm5599_vm1, %v5598_v0 }
 0xaf1   : > { %4607 = vmatprep.subr.bf16.mxu1 %v5598_v0 }
 0xaf7   : > { %4598 = vmatmul.mubr.msk.bf16.vlgmr.msra.gmra.mxu1 %vm1335_vm3, %v2844_v34 }
 0xaf8   : > { %4608 = vmatpush3.bf16.xpose.msra.mxu1 %v2990_v35  ;;  %4609 = vmatprep.mubr.msk.bf16.mxu1 %vm5599_vm1, %v5598_v0 }
 0xaf9   : > { %4619 = vmatprep.subr.bf16.mxu1 %v5598_v0 }
 0xaff   : > { %4610 = vmatmul.mubr.msk.bf16.vlgmr.msra.gmra.mxu1 %vm1335_vm3, %v2981_v22 }
 0xb00   : > { %4620 = vmatpush3.bf16.xpose.msra.mxu1 %v3099_v29  ;;  %4621 = vmatprep.mubr.msk.bf16.mxu1 %vm5599_vm1, %v5598_v0 }
 0xb01   : > { %4631 = vmatprep.subr.bf16.mxu1 %v5598_v0 }
 0xb07   : > { %4622 = vmatmul.mubr.msk.bf16.vlgmr.msra.gmra.mxu1 %vm1335_vm3, %v3092_v39 }
 0xb08   : > { %4632 = vmatpush3.bf16.xpose.msra.mxu1 %v3211_v40  ;;  %4633 = vmatprep.mubr.msk.bf16.mxu1 %vm5599_vm1, %v5598_v0 }
 0xb09   : > { %4643 = vmatprep.subr.bf16.mxu1 %v5598_v0 }
 0xb0f   : > { %4634 = vmatmul.mubr.msk.bf16.vlgmr.msra.gmra.mxu1 %vm1335_vm3, %v3204_v9 }
 0xb10   : > { %4644 = vmatpush3.bf16.xpose.msra.mxu1 %v3322_v41  ;;  %4645 = vmatprep.mubr.msk.bf16.mxu1 %vm5599_vm1, %v5598_v0 }
 0xb11   : > { %4655 = vmatprep.subr.bf16.mxu1 %v5598_v0 }
 0xb17   : > { %4646 = vmatmul.mubr.msk.bf16.vlgmr.msra.gmra.mxu1 %vm1335_vm3, %v3315_v42 }
 0xb18   : > { %4663 = vmatprep.mubr.msk.bf16.mxu1 %vm5599_vm1, %v5598_v0 }
 0xb9f   : > { %v2555_v49 = vpop.f32.mrf.mxu1 }
 0xba0   : > { %v6446_v50 = vadd.f32 %v2555_v49, %v2509_v47 }
 0xba1   : > { %v4563_v53 = vpop.f32.mrf.mxu1 }
 0xba2   : > { %v2561_v54 = vsel %vm1382_vm5, %v6446_v50, -inf }
 0xba3   : > { %2562 = vmax.xlane.f32.xlu1 %v2561_v54  ;;  %v2558_v55 = vpop.f32.mrf.mxu1 }
 0xba5   : > { %v4564_v56 = vpop.f32.mrf.mxu1 }
 0xba7   : > { %v2664_v57 = vpop.f32.mrf.mxu1 }
 0xba8   : > { %v2665_v58 = vadd.f32 %v2664_v57, %v2509_v47 }
 0xba9   : > { %v4575_v31 = vpop.f32.mrf.mxu1 }
 0xbaa   : > { %v2670_v59 = vsel %vm1382_vm5, %v2665_v58, -inf }
 0xbab   : > { %2671 = vmax.xlane.f32.xlu0 %v2670_v59  ;;  %v2667_v61 = vpop.f32.mrf.mxu1 }
 0xbad   : > { %v4576_v62 = vpop.f32.mrf.mxu1 }
 0xbaf   : > { %v2776_v63 = vpop.f32.mrf.mxu1 }
 0xbb0   : > { %v2777_v1 = vadd.f32 %v2776_v63, %v2509_v47 }
 0xbb1   : > { %v4587_v3 = vpop.f32.mrf.mxu1 }
 0xbb2   : > { %v2782_v60 = vsel %vm1382_vm5, %v2777_v1, -inf }
 0xbb3   : > { %2783 = vmax.xlane.f32.xlu0 %v2782_v60  ;;  %v2779_v8 = vpop.f32.mrf.mxu1 }
 0xbb5   : > { %v4588_v12 = vpop.f32.mrf.mxu1 }
 0xbb6   : > { %v2498_v12 = vpop.f32.mrf.mxu0 }
 0xbb7   : > { %v2887_v52 = vpop.f32.mrf.mxu1 }
 0xbb8   : > { %v2888_v13 = vadd.f32 %v2887_v52, %v2509_v47  ;;  %v2499_v52 = vadd.f32 %v2498_v12, %v6378_v2 }
 0xbb9   : > { %v4599_v16 = vpop.f32.mrf.mxu1 }
 0xbba   : > { %v2893_v18 = vsel %vm1382_vm5, %v2888_v13, -inf }
 0xbbb   : > { %2894 = vmax.xlane.f32.xlu1 %v2893_v18  ;;  %v2890_v21 = vpop.f32.mrf.mxu1 }
 0xbbd   : > { %v4600_v7 = vpop.f32.mrf.mxu1 }
 0xbbf   : > { %v3026_v22 = vpop.f32.mrf.mxu1 }
 0xbc0   : > { %v3027_v23 = vadd.f32 %v3026_v22, %v2980_v48 }
 0xbc1   : > { %v4611_v25 = vpop.f32.mrf.mxu1 }
 0xbc2   : > { %v3032_v44 = vsel %vm1382_vm5, %v3027_v23, -inf }
 0xbc3   : > { %3033 = vmax.xlane.f32.xlu0 %v3032_v44  ;;  %v3029_v17 = vpop.f32.mrf.mxu1 }
 0xbc5   : > { %v4612_v26 = vpop.f32.mrf.mxu1 }
 0xbc7   : > { %v3135_v27 = vpop.f32.mrf.mxu1 }
 0xbc8   : > { %v6455_v28 = vadd.f32 %v3135_v27, %v2980_v48 }
 0xbc9   : > { %v4623_v51 = vpop.f32.mrf.mxu1 }
 0xbca   : > { %v3141_v30 = vsel %vm1382_vm5, %v6455_v28, -inf }
 0xbcb   : > { %3142 = vmax.xlane.f32.xlu1 %v3141_v30  ;;  %v3138_v19 = vpop.f32.mrf.mxu1 }
 0xbcd   : > { %v4624_v32 = vpop.f32.mrf.mxu1 }
 0xbcf   : > { %v3247_v33 = vpop.f32.mrf.mxu1 }
 0xbd0   : > { %v3248_v34 = vadd.f32 %v3247_v33, %v2980_v48 }
 0xbd1   : > { %v4635_v35 = vpop.f32.mrf.mxu1 }
 0xbd2   : > { %v3253_v37 = vsel %vm1382_vm5, %v3248_v34, -inf }
 0xbd3   : > { %3254 = vmax.xlane.f32.xlu0 %v3253_v37  ;;  %v3250_v29 = vpop.f32.mrf.mxu1 }
 0xbd5   : > { %v4636_v38 = vpop.f32.mrf.mxu1 }
 0xbd7   : > { %v3358_v39 = vpop.f32.mrf.mxu1 }
 0xbd8   : > { %v3359_v40 = vadd.f32 %v3358_v39, %v2980_v48 }
 0xbd9   : > { %v4647_v36 = vpop.f32.mrf.mxu1 }
 0xbda   : > { %v3364_v9 = vsel %vm1382_vm5, %v3359_v40, -inf }
 0xbdb   : > { %3365 = vmax.xlane.f32.xlu1 %v3364_v9  ;;  %v3361_v41 = vpop.f32.mrf.mxu1 }
 0xbdd   : > { %v4648_v42 = vpop.f32.mrf.mxu1 }
 0xbe9   : > { %2794 = vrot.lane.b32.xlu0 %v6381_v20, %s5602_s13 }
 0xbec   : > { %2683 = vrot.lane.b32.xlu1 %v6381_v20, %s5601_s28 }
 0xc2c   : > { %v2563_v10 = vpop.xlane.xlu1 %2562 }
 0xc2d   : > { %v2564_v43 = vsub.f32 %v6446_v50, %v2563_v10 }
 0xc2f   : > { %v2565_v24 = vmul.f32 1.442695, %v2564_v43 }
 0xc31   : > { %4998 = vpow2.f32 %v2565_v24 }
 0xc34   : > { %v2672_v45 = vpop.xlane.xlu0 %2671 }
 0xc35   : > { %v2673_v46 = vsub.f32 %v2665_v58, %v2672_v45 }
 0xc37   : > { %v2674_v47 = vmul.f32 1.442695, %v2673_v46 }
 0xc39   : > { %5000 = vpow2.f32 %v2674_v47 }
 0xc3c   : > { %v2784_v49 = vpop.xlane.xlu0 %2783 }
 0xc3d   : > { %v2785_v53 = vsub.f32 %v2777_v1, %v2784_v49 }
 0xc3e   : > { %v4999_v54 = vpop.eup %4998 }
 0xc3f   : > { %v2786_v55 = vmul.f32 1.442695, %v2785_v53  ;;  %v2567_v56 = vsel %vm1382_vm5, %v4999_v54, 0.0 }
 0xc40   : > { %2568 = vadd.xlane.f32.xlu0 %v2567_v56 }
 0xc41   : > { %5002 = vpow2.f32 %v2786_v55 }
 0xc44   : > { %v2895_v57 = vpop.xlane.xlu1 %2894 }
 0xc45   : > { %v2896_v31 = vsub.f32 %v2888_v13, %v2895_v57  ;;  %v6484_v13 = vpack.c.bf16 %v2499_v52, %v2499_v52 }
 0xc46   : > { %v6467_v59 = vpop.eup %5000 }
 0xc47   : > { %v2897_v61 = vmul.f32 1.442695, %v2896_v31  ;;  %v2676_v50 = vsel %vm1382_vm5, %v6467_v59, 0.0  ;;  %v3048_v47 = vsel %vm1401_vm4, %v6484_v13, 0 }
 0xc48   : > { %2677 = vadd.xlane.f32.xlu1 %v2676_v50 }
 0xc49   : > { %5004 = vpow2.f32 %v2897_v61 }
 0xc4c   : > { %v3034_v58 = vpop.xlane.xlu0 %3033 }
 0xc4d   : > { %v3035_v62 = vsub.f32 %v3027_v23, %v3034_v58 }
 0xc4e   : > { %v6471_v63 = vpop.eup %5002 }
 0xc4f   : > { %v3036_v1 = vmul.f32 1.442695, %v3035_v62  ;;  %v2788_v3 = vsel %vm1382_vm5, %v6471_v63, 0.0 }
 0xc50   : > { %2789 = vadd.xlane.f32.xlu0 %v2788_v3 }
 0xc51   : > { %5006 = vpow2.f32 %v3036_v1 }
 0xc54   : > { %v3143_v18 = vpop.xlane.xlu1 %3142 }
 0xc55   : > { %v3144_v21 = vsub.f32 %v6455_v28, %v3143_v18 }
 0xc56   : > { %v6475_v4 = vpop.eup %5004 }
 0xc57   : > { %v2899_v60 = vsel %vm1382_vm5, %v6475_v4, 0.0  ;;  %v3145_v7 = vmul.f32 1.442695, %v3144_v21 }
 0xc58   : > { %2900 = vadd.xlane.f32.xlu1 %v2899_v60 }
 0xc5c   : > { %v3255_v14 = vpop.xlane.xlu0 %3254 }
 0xc5d   : > { %v3256_v15 = vsub.f32 %v3248_v34, %v3255_v14 }
 0xc5e   : > { %v6479_v8 = vpop.eup %5006 }
 0xc5f   : > { %v3038_v11 = vsel %vm1382_vm5, %v6479_v8, 0.0  ;;  %v3257_v16 = vmul.f32 1.442695, %v3256_v15 }
 0xc60   : > { %3039 = vadd.xlane.f32.xlu0 %v3038_v11  ;;  %v2795_v27 = vpop.permute.xlu0 %2794 }
 0xc61   : > { %5008 = vpow2.f32 %v3257_v16 }
 0xc62   : > { %5010 = vpow2.f32 %v3145_v7 }
 0xc64   : > { %v3366_v48 = vpop.xlane.xlu1 %3365 }
 0xc65   : > { %v3367_v22 = vsub.f32 %v3359_v40, %v3366_v48  ;;  %v2800_v40 = vsel %vm1401_vm4, %v2795_v27, 0 }
 0xc67   : > { %v3368_v2 = vmul.f32 1.442695, %v3367_v22 }
 0xc68   : > { %v2684_v51 = vpop.permute.xlu1 %2683 }
 0xc69   : > { %3154 = vrot.lane.b32.xlu1 %v6484_v13, %s5601_s28  ;;  %5012 = vpow2.f32 %v3368_v2  ;;  %v2689_v35 = vsel %vm1401_vm4, %v2684_v51, 0 }
 0xc6e   : > { %v6491_v23 = vpop.eup %5008 }
 0xc6f   : > { %v3259_v25 = vsel %vm1382_vm5, %v6491_v23, 0.0  ;;  %v6495_v44 = vpop.eup %5010 }
 0xc76   : > { %2905 = vrot.lane.b32.xlu0 %v6381_v20, %s5603_s29  ;;  %v3147_v20 = vsel %vm1382_vm5, %v6495_v44, 0.0  ;;  %v6499_v17 = vpop.eup %5012 }
 0xc77   : > { %v3370_v26 = vsel %vm1382_vm5, %v6499_v17, 0.0 }
 0xc8d   : > { %3260 = vadd.xlane.f32.xlu1 %v3259_v25 }
 0xc95   : > { %3148 = vadd.xlane.f32.xlu0 %v3147_v20 }
 0xc99   : > { %3371 = vadd.xlane.f32.xlu0 %v3370_v26 }
 0xc9e   : > { %3376 = vrot.lane.b32.xlu1 %v6484_v13, %s5603_s29 }
 0xcaf   : > { %3265 = vrot.lane.b32.xlu0 %v6484_v13, %s5602_s13  ;;  %s6823_s13 = sld [smem:[#allocation67_spill]] }
 0xcc9   : > { %v2569_v28 = vpop.xlane.xlu0 %2568 }
 0xcca   : > { %5014 = vrcp.f32 %v2569_v28 }
 0xcd1   : > { %v2678_v30 = vpop.xlane.xlu1 %2677 }
 0xcd2   : > { %5016 = vrcp.f32 %v2678_v30 }
 0xcd7   : > { %v5015_v19 = vpop.eup %5014 }
 0xcd8   : > { %v2571_v32 = vmul.f32 %v5015_v19, %v4999_v54 }
 0xcd9   : > { %v2790_v33 = vpop.xlane.xlu0 %2789 }
 0xcda   : > { %5018 = vrcp.f32 %v2790_v33  ;;  %v2572_v34 = vpack.c.bf16 %v2571_v32, %v2571_v32  ;;  %v4945_v32 = vld [vmem:[#allocation22 + $0x18] sm:$0xff]   ;;  %v4946_v33 = vld [vmem:[#allocation22 + $0x10] sm:$0xff]  }
 0xcdb   : > { %4656 = vmatpush3.bf16.msra.mxu1 %v4945_v32 }
 0xcdc   : > { %4568 = vmatmul.mubr.msk.bf16.vlgmr.msra.gmra.mxu0 %vm1382_vm5, %v2572_v34  ;;  %4657 = vmatprep.subr.bf16.mxu1 %v5598_v0 }
 0xcdd   : > { %4578 = vmatpush3.bf16.msra.mxu0 %v2689_v35  ;;  %4579 = vmatprep.mubr.msk.bf16.mxu0 %vm5599_vm1, %v5598_v0 }
 0xcde   : > { %4589 = vmatprep.subr.bf16.mxu0 %v5598_v0 }
 0xcdf   : > { %v5017_v37 = vpop.eup %5016  ;;  %4658 = vmatpush3.bf16.msra.mxu1 %v4946_v33 }
 0xce0   : > { %v2680_v29 = vmul.f32 %v5017_v37, %v6467_v59  ;;  %4659 = vmatprep.subr.bf16.mxu1 %v5598_v0 }
 0xce1   : > { %v2901_v38 = vpop.xlane.xlu1 %2900 }
 0xce2   : > { %5020 = vrcp.f32 %v2901_v38  ;;  %v2681_v39 = vpack.c.bf16 %v2680_v29, %v2680_v29  ;;  %v4947_v29 = vld [vmem:[#allocation22 + $0x8] sm:$0xff]  }
 0xce3   : > { %4660 = vmatpush3.bf16.msra.mxu1 %v4947_v29 }
 0xce4   : > { %4580 = vmatmul.mubr.msk.bf16.vlgmr.msra.gmra.mxu0 %vm1382_vm5, %v2681_v39  ;;  %4661 = vmatprep.subr.bf16.mxu1 %v5598_v0 }
 0xce5   : > { %4590 = vmatpush3.bf16.msra.mxu0 %v2800_v40  ;;  %4591 = vmatprep.mubr.msk.bf16.mxu0 %vm5599_vm1, %v5598_v0  ;;  %v3155_v54 = vpop.permute.xlu1 %3154  ;;  %v4948_v40 = vld [vmem:[#allocation22] sm:$0xff]  }
 0xce6   : > { %4601 = vmatprep.subr.bf16.mxu0 %v5598_v0  ;;  %v3160_v56 = vsel %vm1401_vm4, %v3155_v54, 0 }
 0xce7   : > { %v5019_v36 = vpop.eup %5018  ;;  %4662 = vmatpush3.bf16.msra.mxu1 %v4948_v40  ;;  %v4291_v40 = vld [vmem:[#allocation26] ss:$0 sm:$0xff] }
 0xce8   : > { %v2792_v9 = vmul.f32 %v5019_v36, %v6471_v63  ;;  %4679 = vmatprep.subr.bf16.mxu1 %v5598_v0 }
 0xce9   : > { %v3040_v41 = vpop.xlane.xlu0 %3039 }
 0xcea   : > { %5022 = vrcp.f32 %v3040_v41  ;;  %v2793_v42 = vpack.c.bf16 %v2792_v9, %v2792_v9 }
 0xcec   : > { %4592 = vmatmul.mubr.msk.bf16.vlgmr.msra.gmra.mxu0 %vm1382_vm5, %v2793_v42 }
 0xced   : > { %v2906_v10 = vpop.permute.xlu0 %2905  ;;  %4603 = vmatprep.mubr.msk.bf16.mxu0 %vm5599_vm1, %v5598_v0 }
 0xcee   : > { %v2911_v43 = vsel %vm1401_vm4, %v2906_v10, 0 }
 0xcef   : > { %v5021_v24 = vpop.eup %5020  ;;  %4602 = vmatpush3.bf16.msra.mxu0 %v2911_v43 }
 0xcf0   : > { %4613 = vmatprep.subr.bf16.mxu0 %v5598_v0  ;;  %v2903_v45 = vmul.f32 %v5021_v24, %v6475_v4 }
 0xcf2   : > { %v2904_v46 = vpack.c.bf16 %v2903_v45, %v2903_v45 }
 0xcf4   : > { %4604 = vmatmul.mubr.msk.bf16.vlgmr.msra.gmra.mxu0 %vm1382_vm5, %v2904_v46 }
 0xcf5   : > { %4614 = vmatpush3.bf16.msra.mxu0 %v3048_v47  ;;  %4615 = vmatprep.mubr.msk.bf16.mxu0 %vm5599_vm1, %v5598_v0 }
 0xcf6   : > { %4625 = vmatprep.subr.bf16.mxu0 %v5598_v0 }
 0xcf7   : > { %v5023_v49 = vpop.eup %5022 }
 0xcf8   : > { %v3042_v53 = vmul.f32 %v5023_v49, %v6479_v8 }
 0xcfa   : > { %v3043_v55 = vpack.c.bf16 %v3042_v53, %v3042_v53 }
 0xcfc   : > { %4616 = vmatmul.mubr.msk.bf16.vlgmr.msra.gmra.mxu0 %vm1382_vm5, %v3043_v55 }
 0xcfd   : > { %4626 = vmatpush3.bf16.msra.mxu0 %v3160_v56  ;;  %4627 = vmatprep.mubr.msk.bf16.mxu0 %vm5599_vm1, %v5598_v0 }
 0xcfe   : > { %4637 = vmatprep.subr.bf16.mxu0 %v5598_v0 }
 0xd16   : > { %v3261_v31 = vpop.xlane.xlu1 %3260 }
 0xd1a   : > { %v3377_v4 = vpop.permute.xlu1 %3376 }
 0xd1b   : > { %v3382_v11 = vsel %vm1401_vm4, %v3377_v4, 0 }
 0xd1e   : > { %v3149_v57 = vpop.xlane.xlu0 %3148 }
 0xd1f   : > { %5024 = vrcp.f32 %v3149_v57 }
 0xd20   : > { %5026 = vrcp.f32 %v3261_v31 }
 0xd22   : > { %v3372_v59 = vpop.xlane.xlu0 %3371 }
 0xd23   : > { %5028 = vrcp.f32 %v3372_v59 }
 0xd26   : > { %v3266_v58 = vpop.permute.xlu0 %3265 }
 0xd27   : > { %v3271_v1 = vsel %vm1401_vm4, %v3266_v58, 0 }
 0xd2c   : > { %v5025_v61 = vpop.eup %5024 }
 0xd2d   : > { %v3151_v50 = vmul.f32 %v5025_v61, %v6495_v44  ;;  %v5027_v63 = vpop.eup %5026 }
 0xd2e   : > { %v3263_v3 = vmul.f32 %v5027_v63, %v6491_v23 }
 0xd2f   : > { %v3152_v62 = vpack.c.bf16 %v3151_v50, %v3151_v50 }
 0xd30   : > { %v3264_v60 = vpack.c.bf16 %v3263_v3, %v3263_v3  ;;  %v5029_v8 = vpop.eup %5028 }
 0xd31   : > { %4628 = vmatmul.mubr.msk.bf16.vlgmr.msra.gmra.mxu0 %vm1382_vm5, %v3152_v62  ;;  %v3374_v12 = vmul.f32 %v5029_v8, %v6499_v17 }
 0xd32   : > { %4638 = vmatpush3.bf16.msra.mxu0 %v3271_v1  ;;  %4639 = vmatprep.mubr.msk.bf16.mxu0 %vm5599_vm1, %v5598_v0 }
 0xd33   : > { %4649 = vmatprep.subr.bf16.mxu0 %v5598_v0  ;;  %v3375_v52 = vpack.c.bf16 %v3374_v12, %v3374_v12 }
 0xd39   : > { %4640 = vmatmul.mubr.msk.bf16.vlgmr.msra.gmra.mxu0 %vm1382_vm5, %v3264_v60 }
 0xd3a   : > { %4650 = vmatpush3.bf16.msra.mxu0 %v3382_v11  ;;  %4651 = vmatprep.mubr.msk.bf16.mxu0 %vm5599_vm1, %v5598_v0  ;;  %v4284_v11 = vld [vmem:[#allocation23] ss:$0 sm:$0xff] }
 0xd3b   : > { %4667 = vmatprep.subr.bf16.mxu0 %v5598_v0 }
 0xd41   : > { %4652 = vmatmul.mubr.msk.bf16.vlgmr.msra.gmra.mxu0 %vm1382_vm5, %v3375_v52 }
 0xd42   : > { %4675 = vmatprep.mubr.msk.bf16.mxu0 %vm5599_vm1, %v5598_v0 }
 0xd9c   : > { %v6553_v13 = vpop.f32.mrf.mxu0 }
 0xd9d   : > { %v2619_v50 = vpack.c.bf16 %v6553_v13, %v6553_v13 }
 0xd9e   : > { %v4569_v14 = vpop.f32.mrf.mxu0 }
 0xda0   : > { %v2616_v15 = vpop.f32.mrf.mxu0 }
 0xda2   : > { %v4570_v16 = vpop.f32.mrf.mxu0 }
 0xda4   : > { %v2725_v18 = vpop.f32.mrf.mxu0 }
 0xda5   : > { %v2731_v21 = vpack.c.bf16 %v2725_v18, %v2725_v18 }
 0xda6   : > { %v4581_v48 = vpop.f32.mrf.mxu0 }
 0xda7   : > { %2955 = vrot.lane.b32.xlu1 %v2731_v21, %s5606_s4 }
 0xda8   : > { %v2728_v7 = vpop.f32.mrf.mxu0 }
 0xdaa   : > { %v4582_v22 = vpop.f32.mrf.mxu0 }
 0xdac   : > { %v2836_v2 = vpop.f32.mrf.mxu0 }
 0xdad   : > { %v2842_v10 = vpack.c.bf16 %v2836_v2, %v2836_v2 }
 0xdae   : > { %v4593_v23 = vpop.f32.mrf.mxu0 }
 0xdb0   : > { %v2839_v25 = vpop.f32.mrf.mxu0 }
 0xdb2   : > { %v4594_v44 = vpop.f32.mrf.mxu0 }
 0xdb4   : > { %v2947_v20 = vpop.f32.mrf.mxu0 }
 0xdb5   : > { %v2953_v49 = vpack.c.bf16 %v2947_v20, %v2947_v20 }
 0xdb6   : > { %v4605_v17 = vpop.f32.mrf.mxu0 }
 0xdb8   : > { %v2950_v26 = vpop.f32.mrf.mxu0 }
 0xdba   : > { %v4606_v27 = vpop.f32.mrf.mxu0 }
 0xdbc   : > { %v3084_v28 = vpop.f32.mrf.mxu0 }
 0xdbd   : > { %v3090_v57 = vpack.c.bf16 %v3084_v28, %v3084_v28  ;;  %v4949_v28 = vld [vmem:[#allocation28 + $0x18] sm:$0xff]  }
 0xdbe   : > { %v4617_v51 = vpop.f32.mrf.mxu0  ;;  %4668 = vmatpush3.bf16.msra.mxu0 %v4949_v28 }
 0xdbf   : > { %4669 = vmatprep.subr.bf16.mxu0 %v5598_v0  ;;  %v4951_v51 = vld [vmem:[#allocation28 + $0x8] sm:$0xff]  }
 0xdc0   : > { %v3087_v30 = vpop.f32.mrf.mxu0 }
 0xdc1   : > { %v4952_v30 = vld [vmem:[#allocation28] sm:$0xff]  }
 0xdc2   : > { %v4618_v19 = vpop.f32.mrf.mxu0 }
 0xdf1   : > { %v3196_v34 = vpop.f32.mrf.mxu0 }
 0xdf2   : > { %v3202_v35 = vpack.c.bf16 %v3196_v34, %v3196_v34 }
 0xdf3   : > { %v4629_v37 = vpop.f32.mrf.mxu0 }
 0xdf4   : > { %3426 = vrot.lane.b32.xlu1 %v3202_v35, %s5606_s4  ;;  %s6826_s4 = sld [smem:[#allocation70_spill]] }
 0xdf5   : > { %v3199_v38 = vpop.f32.mrf.mxu0 }
 0xdf6   : > { %v4290_v38 = vld [vmem:[#allocation25] ss:$0 sm:$0xff] }
 0xdf7   : > { %v4630_v39 = vpop.f32.mrf.mxu0 }
 0xdf9   : > { %v3307_v36 = vpop.f32.mrf.mxu0 }
 0xdfa   : > { %v3313_v9 = vpack.c.bf16 %v3307_v36, %v3307_v36 }
 0xdfb   : > { %v4641_v41 = vpop.f32.mrf.mxu0 }
 0xdfc   : > { %3429 = vrot.lane.b32.xlu1 %v3313_v9, %s5604_s5 }
 0xdfd   : > { %v3310_v42 = vpop.f32.mrf.mxu0 }
 0xdff   : > { %v4642_v43 = vpop.f32.mrf.mxu0 }
 0xe00   : > { %2958 = vrot.lane.b32.xlu1 %v2842_v10, %s5604_s5 }
 0xe01   : > { %v3418_v24 = vpop.f32.mrf.mxu0 }
 0xe02   : > { %v3424_v45 = vpack.c.bf16 %v3418_v24, %v3418_v24 }
 0xe03   : > { %v4653_v46 = vpop.f32.mrf.mxu0 }
 0xe04   : > { %3432 = vrot.lane.b32.xlu0 %v3424_v45, %s5605_s21 }
 0xe05   : > { %v3421_v47 = vpop.f32.mrf.mxu0 }
 0xe06   : > { %v4954_v47 = vld [vmem:[%s6823_s13 + $0x38] sm:$0xff]  }
 0xe07   : > { %v4654_v53 = vpop.f32.mrf.mxu0 }
 0xe08   : > { %2961 = vrot.lane.b32.xlu0 %v2953_v49, %s5605_s21  ;;  %v4955_v49 = vld [vmem:[%s6823_s13 + $0x30] sm:$0xff]   ;;  %v4956_v53 = vld [vmem:[%s6823_s13 + $0x28] sm:$0xff]  }
 0xe19   : > { %v2956_v54 = vpop.permute.xlu1 %2955 }
 0xe1a   : > { %v2965_v63 = vsel %vm1335_vm3, %v2619_v50, %v2956_v54  ;;  %v4957_v54 = vld [vmem:[%s6823_s13 + $0x20] sm:$0xff]  }
 0xe66   : > { %v3427_v55 = vpop.permute.xlu1 %3426 }
 0xe67   : > { %v3436_v31 = vsel %vm1335_vm3, %v3090_v57, %v3427_v55  ;;  %v4958_v55 = vld [vmem:[%s6823_s13 + $0x18] sm:$0xff]   ;;  %v4960_v57 = vld [vmem:[%s6823_s13 + $0x8] sm:$0xff]  }
 0xe6e   : > { %v3430_v56 = vpop.permute.xlu1 %3429 }
 0xe6f   : > { %v3438_v59 = vsel %vm1792_vm7, %v3436_v31, %v3430_v56  ;;  %v4959_v56 = vld [vmem:[%s6823_s13 + $0x10] sm:$0xff]   ;;  %v4961_v31 = vld [vmem:[%s6823_s13] sm:$0xff]  }
 0xe72   : > { %v2959_v58 = vpop.permute.xlu1 %2958 }
 0xe73   : > { %v2967_v1 = vsel %vm1792_vm7, %v2965_v63, %v2959_v58 }
 0xe76   : > { %v3433_v61 = vpop.permute.xlu0 %3432 }
 0xe77   : > { %v3440_v62 = vsel %vm1795_vm6, %v3438_v59, %v3433_v61  ;;  %v4294_v59 = vld [vmem:[#allocation29] ss:$0 sm:$0xff] }
 0xe78   : > { %v3442_v3 = vrot.slane %v3440_v62, 4 }
 0xe7a   : > { %v2962_v4 = vpop.permute.xlu0 %2961 }
 0xe7b   : > { %v2969_v60 = vsel %vm1795_vm6, %v2967_v1, %v2962_v4 }
 0xe7c   : > { %v3444_v8 = vsel %vm1401_vm4, %v2969_v60, %v3442_v3 }
 0xe7d   : > { %4664 = vmatmul.mubr.msk.bf16.vlgmr.msra.gmra.mxu1 %vm1178_vm0, %v3444_v8 }
 0xe7e   : > { %4695 = vmatprep.mubr.msk.bf16.mxu1 %vm5599_vm1, %v5598_v0  ;;  %4680 = vmatpush3.bf16.msra.mxu1 %v4954_v47 }
 0xe7f   : > { %4681 = vmatprep.subr.bf16.mxu1 %v5598_v0 }
 0xe82   : > { %4682 = vmatpush3.bf16.msra.mxu1 %v4955_v49 }
 0xe83   : > { %4683 = vmatprep.subr.bf16.mxu1 %v5598_v0 }
 0xe86   : > { %4684 = vmatpush3.bf16.msra.mxu1 %v4956_v53 }
 0xe87   : > { %4685 = vmatprep.subr.bf16.mxu1 %v5598_v0 }
 0xe8a   : > { %4686 = vmatpush3.bf16.msra.mxu1 %v4957_v54 }
 0xe8b   : > { %4687 = vmatprep.subr.bf16.mxu1 %v5598_v0 }
 0xe8e   : > { %4688 = vmatpush3.bf16.msra.mxu1 %v4958_v55 }
 0xe8f   : > { %4689 = vmatprep.subr.bf16.mxu1 %v5598_v0 }
 0xe92   : > { %4690 = vmatpush3.bf16.msra.mxu1 %v4959_v56 }
 0xe93   : > { %4691 = vmatprep.subr.bf16.mxu1 %v5598_v0 }
 0xe96   : > { %4692 = vmatpush3.bf16.msra.mxu1 %v4960_v57  ;;  %v4310_v57 = vld [vmem:[%s6825_s23] ss:$0 sm:$0xff] }
 0xe97   : > { %4693 = vmatprep.subr.bf16.mxu1 %v5598_v0 }
 0xe9a   : > { %4694 = vmatpush3.bf16.msra.mxu1 %v4961_v31 }
 0xf3d   : > { %v3519_v12 = vpop.f32.mrf.mxu1 }
 0xf3e   : > { %v3520_v52 = vadd.f32 %v4284_v11, %v3519_v12 }
 0xf3f   : > { %v4665_v13 = vpop.f32.mrf.mxu1 }
 0xf40   : > { %v3526_v14 = vadd.f32 %v3520_v52, %v6364_v5 }
 0xf41   : > { %v3522_v15 = vpop.f32.mrf.mxu1 }
 0xf42   : > { %v3523_v16 = vadd.f32 %v4284_v11, %v3522_v15  ;;  %v3528_v18 = vsel %vm1178_vm0, %v3526_v14, 0.0 }
 0xf43   : > { %3529 = vadd.xlane.f32.xlu1 %v3528_v18  ;;  %v4666_v21 = vpop.f32.mrf.mxu1 }
 0xf44   : > { %v3527_v48 = vadd.f32 %v3523_v16, %v6366_v6  ;;  %v4950_v6 = vld [vmem:[#allocation28 + $0x10] sm:$0xff]  }
 0xf45   : > { %4670 = vmatpush3.bf16.msra.mxu0 %v4950_v6  ;;  %v4309_v6 = vld [vmem:[%s6824_s16] ss:$0 sm:$0xff] }
 0xf46   : > { %v3531_v7 = vsel %vm1178_vm0, %v3527_v48, 0.0  ;;  %4671 = vmatprep.subr.bf16.mxu0 %v5598_v0 }
 0xf47   : > { %3532 = vadd.xlane.f32.xlu0 %v3531_v7 }
 0xf49   : > { %4672 = vmatpush3.bf16.msra.mxu0 %v4951_v51 }
 0xf4a   : > { %4673 = vmatprep.subr.bf16.mxu0 %v5598_v0 }
 0xf4d   : > { %4674 = vmatpush3.bf16.msra.mxu0 %v4952_v30 }
 0xfcc   : > { %v3530_v22 = vpop.xlane.xlu1 %3529 }
 0xfcd   : > { %v3534_v2 = vmul.f32 0.015625, %v3530_v22 }
 0xfcf   : > { %v3536_v23 = vsub.f32 %v3526_v14, %v3534_v2 }
 0xfd0   : > { %v3533_v25 = vpop.xlane.xlu0 %3532 }
 0xfd1   : > { %v3535_v44 = vmul.f32 0.015625, %v3533_v25  ;;  %v3538_v20 = vmul.f32 %v3536_v23, %v3536_v23  ;;  %v3694_v25 = vld [vmem:[#allocation4] sm:$0xff] }
 0xfd3   : > { %v3537_v17 = vsub.f32 %v3527_v48, %v3535_v44  ;;  %v3540_v5 = vsel %vm1178_vm0, %v3538_v20, 0.0 }
 0xfd4   : > { %3541 = vadd.xlane.f32.xlu0 %v3540_v5  ;;  %v3695_v5 = vld [vmem:[#allocation4 + $0x8] sm:$0xff] }
 0xfd5   : > { %v3539_v26 = vmul.f32 %v3537_v17, %v3537_v17 }
 0xfd7   : > { %v3543_v27 = vsel %vm1178_vm0, %v3539_v26, 0.0 }
 0xfd8   : > { %3544 = vadd.xlane.f32.xlu1 %v3543_v27 }
0x105d   : > { %v3542_v19 = vpop.xlane.xlu0 %3541 }
0x105e   : > { %v3546_v32 = vmul.f32 0.015625, %v3542_v19 }
0x1060   : > { %v3548_v33 = vadd.f32 1e-12, %v3546_v32 }
0x1061   : > { %v3545_v34 = vpop.xlane.xlu1 %3544 }
0x1062   : > { %5030 = vrsqrt.f32 %v3548_v33  ;;  %v3547_v35 = vmul.f32 0.015625, %v3545_v34 }
0x1064   : > { %v3549_v37 = vadd.f32 1e-12, %v3547_v35 }
0x1066   : > { %5032 = vrsqrt.f32 %v3549_v37 }
0x106f   : > { %v5031_v29 = vpop.eup %5030 }
0x1070   : > { %v3552_v39 = vmul.f32 %v5031_v29, %v3536_v23 }
0x1072   : > { %v3560_v36 = vmul.f32 %v4290_v38, %v3552_v39 }
0x1073   : > { %v5033_v9 = vpop.eup %5032 }
0x1074   : > { %v3568_v41 = vadd.f32 %v4291_v40, %v3560_v36  ;;  %v3553_v42 = vmul.f32 %v5033_v9, %v3537_v17 }
0x1076   : > { %3570 = vst.msk [vmem:[#allocation2] sm:$0xff] %vm1178_vm0, %v3568_v41  ;;  %v4320_v10 = vpack.c.bf16 %v3568_v41, %v3568_v41  ;;  %v3561_v43 = vmul.f32 %v4290_v38, %v3553_v42 }
0x1078   : > { %3581 = vst.msk [vmem:[#allocation3] sm:$0xf] %vm3580_vm8, %v4320_v10  ;;  %v3569_v24 = vadd.f32 %v4291_v40, %v3561_v43 }
0x107a   : > { %3571 = vst.msk [vmem:[#allocation2 + $0x8] sm:$0xff] %vm1178_vm0, %v3569_v24  ;;  %v4321_v45 = vpack.c.bf16 %v3569_v24, %v3569_v24 }
0x107c   : > { %3582 = vst.msk [vmem:[#allocation3 + $0x4] sm:$0xf] %vm3580_vm8, %v4321_v45 }
0x107d   : > { %v3820_v19 = vld [vmem:[#allocation2] sm:$0xff] }
0x1081   : > { %v3821_v37 = vld [vmem:[#allocation2 + $0x8] sm:$0xff] }
0x1083   : > { %v4953_v46 = vld [vmem:[#allocation3] sm:$0xff]  }
0x1084   : > { %4676 = vmatmul.mubr.msk.bf16.vlgmr.msra.gmra.mxu0 %vm1178_vm0, %v4953_v46 }
0x1144   : > { %v3669_v61 = vpop.f32.mrf.mxu0 }
0x1145   : > { %v3670_v50 = vadd.f32 %v4294_v59, %v3669_v61 }
0x1146   : > { %v4677_v58 = vpop.f32.mrf.mxu0 }
0x1147   : > { %v3678_v62 = vmul.f32 %v3670_v50, %v3670_v50  ;;  %v3676_v21 = vmul.f32 0.5, %v3670_v50 }
0x1148   : > { %v3672_v63 = vpop.f32.mrf.mxu0 }
0x1149   : > { %v3680_v1 = vmul.f32 %v3678_v62, %v3670_v50  ;;  %v3673_v3 = vadd.f32 %v4294_v59, %v3672_v63  ;;  %v4311_v59 = vld [vmem:[%s6826_s4] ss:$0 sm:$0xff] }
0x114a   : > { %v4678_v4 = vpop.f32.mrf.mxu0 }
0x114b   : > { %v3682_v60 = vmul.f32 0.044715, %v3680_v1  ;;  %v3679_v8 = vmul.f32 %v3673_v3, %v3673_v3  ;;  %v3677_v48 = vmul.f32 0.5, %v3673_v3 }
0x114d   : > { %v3684_v11 = vadd.f32 %v3682_v60, %v3670_v50  ;;  %v3681_v12 = vmul.f32 %v3679_v8, %v3673_v3 }
0x114f   : > { %v3686_v52 = vmul.f32 0.7978846, %v3684_v11  ;;  %v3683_v13 = vmul.f32 0.044715, %v3681_v12 }
0x1151   : > { %5034 = vtanh.f32 %v3686_v52  ;;  %v3685_v14 = vadd.f32 %v3683_v13, %v3673_v3 }
0x1153   : > { %v3687_v15 = vmul.f32 0.7978846, %v3685_v14 }
0x1155   : > { %5036 = vtanh.f32 %v3687_v15 }
0x115e   : > { %v5035_v0 = vpop.eup %5034 }
0x115f   : > { %v3690_v16 = vadd.f32 1.0, %v5035_v0 }
0x1161   : > { %v3692_v22 = vmul.f32 %v3690_v16, %v3676_v21 }
0x1162   : > { %v5037_v18 = vpop.eup %5036 }
0x1163   : > { %v3691_v7 = vadd.f32 1.0, %v5037_v18 }
0x1165   : > { %v3693_v2 = vmul.f32 %v3691_v7, %v3677_v48 }
0x1167   : > { %v3696_v23 = vpack.c.bf16 %v3693_v2, %v3692_v22 }
0x1169   : > { %4696 = vmatmul.mubr.bf16.vlgmr.msra.gmra.mxu1 %v3696_v23 }
0x1229   : > { %v3795_v44 = vpop.f32.mrf.mxu1 }
0x122a   : > { %v3802_v20 = vadd.f32 %v3795_v44, %v3694_v25 }
0x122b   : > { %v4697_v17 = vpop.f32.mrf.mxu1 }
0x122c   : > { %3804 = vst.msk [vmem:[#allocation4] sm:$0xff] %vm1178_vm0, %v3802_v20 }
0x122d   : > { %v3798_v26 = vpop.f32.mrf.mxu1 }
0x122e   : > { %v3803_v27 = vadd.f32 %v3798_v26, %v3695_v5 }
0x122f   : > { %v4698_v28 = vpop.f32.mrf.mxu1 }
0x1230   : > { %3805 = vst.msk [vmem:[#allocation4 + $0x8] sm:$0xff] %vm1178_vm0, %v3803_v27 }
0x1233   : > { %v3809_v51 = vld [vmem:[#allocation4] sm:$0xff] }
0x1234   : > { %v3818_v30 = vadd.f32 %v4309_v6, %v3809_v51 }
0x1236   : > { %v3822_v32 = vadd.f32 %v3820_v19, %v3818_v30 }
0x1237   : > { %v3810_v33 = vld [vmem:[#allocation4 + $0x8] sm:$0xff] }
0x1238   : > { %v3826_v34 = vsel %vm1178_vm0, %v3822_v32, 0.0  ;;  %v3819_v35 = vadd.f32 %v4309_v6, %v3810_v33 }
0x1239   : > { %3827 = vadd.xlane.f32.xlu0 %v3826_v34 }
0x123a   : > { %v3823_v29 = vadd.f32 %v3821_v37, %v3819_v35 }
0x123c   : > { %v3829_v38 = vsel %vm1178_vm0, %v3823_v29, 0.0 }
0x123d   : > { %3830 = vadd.xlane.f32.xlu1 %v3829_v38 }
0x12c2   : > { %v3828_v39 = vpop.xlane.xlu0 %3827 }
0x12c3   : > { %v3833_v40 = vmul.f32 0.015625, %v3828_v39 }
0x12c5   : > { %v3835_v36 = vsub.f32 %v3822_v32, %v3833_v40 }
0x12c6   : > { %v3831_v9 = vpop.xlane.xlu1 %3830 }
0x12c7   : > { %v3834_v41 = vmul.f32 0.015625, %v3831_v9  ;;  %v3837_v42 = vmul.f32 %v3835_v36, %v3835_v36 }
0x12c9   : > { %v3836_v10 = vsub.f32 %v3823_v29, %v3834_v41  ;;  %v3839_v43 = vsel %vm1178_vm0, %v3837_v42, 0.0 }
0x12ca   : > { %3840 = vadd.xlane.f32.xlu0 %v3839_v43 }
0x12cb   : > { %v3838_v24 = vmul.f32 %v3836_v10, %v3836_v10 }
0x12cd   : > { %v3842_v45 = vsel %vm1178_vm0, %v3838_v24, 0.0 }
0x12ce   : > { %3843 = vadd.xlane.f32.xlu1 %v3842_v45 }
0x1353   : > { %v3841_v46 = vpop.xlane.xlu0 %3840 }
0x1354   : > { %v3845_v47 = vmul.f32 0.015625, %v3841_v46 }
0x1356   : > { %v3847_v49 = vadd.f32 1e-12, %v3845_v47 }
0x1357   : > { %v3844_v53 = vpop.xlane.xlu1 %3843 }
0x1358   : > { %5038 = vrsqrt.f32 %v3847_v49  ;;  %v3846_v54 = vmul.f32 0.015625, %v3844_v53 }
0x135a   : > { %v3848_v55 = vadd.f32 1e-12, %v3846_v54 }
0x135c   : > { %5040 = vrsqrt.f32 %v3848_v55 }
0x1365   : > { %v5039_v56 = vpop.eup %5038 }
0x1366   : > { %v3851_v31 = vmul.f32 %v5039_v56, %v3835_v36 }
0x1368   : > { %v3859_v61 = vmul.f32 %v4310_v57, %v3851_v31 }
0x1369   : > { %v5041_v50 = vpop.eup %5040 }
0x136a   : > { %v3867_v58 = vadd.f32 %v4311_v59, %v3859_v61  ;;  %v3852_v62 = vmul.f32 %v5041_v50, %v3836_v10 }
0x136c   : > { %v3860_v63 = vmul.f32 %v4310_v57, %v3852_v62  ;;  %3869 = vst.msk [vmem:[%s1100_s12] sm:$0xff] %vm1178_vm0, %v3867_v58 }
0x136e   : > { %v3868_v1 = vadd.f32 %v4311_v59, %v3860_v63 }
0x1370   : > { %3870 = vst.msk [vmem:[%s1100_s12 + $0x8] sm:$0xff] %vm1178_vm0, %v3868_v1 }
0x1371   : > { %5477 = shalt.err (!%p5474_p9)
}
0x1372   : > { %s5478_s16 = scalar_lea.hbm %s6642_s18, 256  ;;  %s5482_s23 = scalar_lea.hbm %s6828_s14, 512 }
0x1373   : > { %p5479_p7 = scmp.ne.s32.totalorder %s6642_s18, %s5478_s16  ;;  %p5483_p0 = scmp.lt.s32.totalorder %s6642_s18, %s6828_s14 }
0x1374   : > { %p5484_p6 = scmp.lt.s32.totalorder %s5482_s23, %s5478_s16 }
0x1375   : > { %p5480_p2 = pnand %p5479_p7, %p6829_p8 }
0x1376   : > { %p5485_p1 = por %p5484_p6, %p5483_p0 }
0x1377   : > { %p5481_p3 = pneg %p5480_p2 }
0x1379   : > { %p5486_p13 = pnand %p5485_p1, %p5481_p3 }
0x137b   : > { %5489 = shalt.err (!%p5486_p13)
}
0x137c   : > { %s5609_s4 = smov 128   ;;  %s5610_s0 = smov 8  }
0x137d   : > { %4757 = dma.vmem_to_hbm [thread:$0]  (%p6829_p8), %s6644_s6, 256, %s6642_s18, %s3872_s1, %s5609_s4, %s5609_s4, %s5610_s0  }
0x137e PF: > { %s6830_s12 = sld [smem:[#allocation42_spill]] }
0x137f   : > { %s6831_s8 = sld [smem:[#allocation50_spill]] }
0x1380   : > { %s6832_s10 = sld [smem:[#allocation45_spill]] }
0x1384   : > { %s3900_s30 = sand.u32 1, %s6830_s12  }
0x1385   : > { %p6833_p11 = scmp.ne.s32.totalorder %s6831_s8, 0  ;;  %s3901_s24 = scalar_lea.sflag [#allocation7], %s3900_s30 }
0x1386   : > { %p6834_p5 = scmp.ge.s32.totalorder %s6832_s10, 2 }
0x1388   : > { %p4810_p12 = pnand %p6834_p5, %p6833_p11 }
0x138a   : > { %p4811_p4 = pneg %p4810_p12 }
0x138c   : > { %5551 = dma.done.wait (%p4811_p4), %s3901_s24, 256  }
0x138d   : > { %5553 = vsyncadd (%p4811_p4), %s3901_s24, 4294967040  ;;  %s51_s3 = sadd.s32 1, %s6832_s10   ;;  %s6835_s9 = sld [smem:[#allocation43_spill]] }
0x138e   : > { %p48_p10 = scmp.ge.s32.totalorder %s51_s3, 4   ;;  %s6836_s6 = sld [smem:[#allocation49_spill]] }
0x138f   : > { %s6837_s25 = sld [smem:[#allocation47_spill]]  ;;  %s6838_s29 = smov %s5560_s2 }
0x1390   : > { %s6840_s30 = smov %s5572_s7 }
0x1391   :  { %50 = sbr.rel (!%p48_p10) target bundleno = 37 (0x25), region = 263 }
0x1393   : > { %s6839_s2 = smov %s6835_s9 }
0x1395   : > { %s6841_s7 = smov %s6837_s25 }
0x1396   :  { %3906 = vsyncpa [#allocation6], 1 }
0x1397   :  { %3908 = vsyncpa [#allocation6 + $0x1], 1 }
0x1398   :  { %3909 = vsyncpa [#allocation9], 1 }
0x1399   :  { %3911 = vsyncpa [#allocation9 + $0x1], 1 }
0x139a   :  { %3912 = vsyncpa [#allocation12], 1 }
0x139b   :  { %3913 = vsyncpa [#allocation15], 1 }
0x139c   :  { %3914 = vsyncpa [#allocation18], 1 }
0x139d   :  { %3915 = vsyncpa [#allocation21], 1 }
0x139e   :  { %3916 = vsyncpa [#allocation24], 1 }
0x139f   :  { %3917 = vsyncpa [#allocation27], 1 }
0x13a0   :  { %3918 = vsyncpa [#allocation30], 1 }
0x13a1   :  { %3919 = vsyncpa [#allocation7], 1 }
0x13a2   :  { %3921 = vsyncpa [#allocation7 + $0x1], 1 }

</bundles_post_ra>
